<compile_context>
chip_gen: v5e
topology: v5e:2x2
jax: 0.10.0
libtpu: 0.0.40
codegen_flags: <defaults>
</compile_context>

<pallas_src>
import functools
import math

import jax
import jax.numpy as jnp
from jax import lax
from jax.experimental import pallas as pl
from jax.experimental.pallas import tpu as pltpu


# ----------------------------------------------------------------------------
# VMEM capacity query (per-generation), with a safe fallback.
# ----------------------------------------------------------------------------
_VMEM_CAP = None


def _vmem_cap_bytes():
    global _VMEM_CAP
    if _VMEM_CAP is None:
        try:
            _VMEM_CAP = int(pltpu.get_tpu_info().vmem_capacity_bytes)
        except Exception:
            _VMEM_CAP = 64 * 1024 * 1024          # conservative (v7x physical)
    return _VMEM_CAP


# ----------------------------------------------------------------------------
# Pallas kernel 1: (M,K)@(K,N) [+ row bias (folded BN shift)] [+ ReLU].
# Weights already bf16 with BN scale folded in; patches already bf16.
# Output keeps the large dim (N = B*L_out) in lanes -> lane-dense stores.
# ----------------------------------------------------------------------------
def _mm_bias_kernel(a_ref, b_ref, s_ref, o_ref, *, relu):
    y = jnp.dot(a_ref[...], b_ref[...], preferred_element_type=jnp.float32)
    y = y + s_ref[...]                              # (M,1) row bias = BN shift
    if relu:
        y = jnp.maximum(y, 0.0)
    o_ref[...] = y.astype(o_ref.dtype)


def _mm_plain_kernel(a_ref, b_ref, o_ref):
    y = jnp.dot(a_ref[...], b_ref[...], preferred_element_type=jnp.float32)
    o_ref[...] = y.astype(o_ref.dtype)


def pallas_matmul(a, b, shift=None, relu=False, out_dtype=jnp.bfloat16):
    """Y = a @ b (+ shift[:,None]) (+ ReLU); a,b bf16, f32 accumulation."""
    a = a.astype(jnp.bfloat16)
    b = b.astype(jnp.bfloat16)
    M, K = a.shape
    K2, N = b.shape
    assert K == K2

    # Tile the lane dim only when it yields >=2 grid steps (so the second v7x
    # TensorCore actually engages); prefer 256-lane multiples (v6e/v7x MXU
    # width), 128 floor for v5e.  Small N => single whole-array tile.
    tn = N
    for cand in (512, 256, 128):
        if N % cand == 0 and N // cand >= 2:
            tn = cand
            break
    grid = (N // tn,)

    out_bytes = 2 if out_dtype == jnp.bfloat16 else 4
    flops = 2 * M * K * N
    bytes_accessed = (2 * M * K + 2 * K * N + out_bytes * M * N
                      + (4 * M if shift is not None else 0))
    ce = pl.CostEstimate(flops=flops, transcendentals=0,
                         bytes_accessed=int(bytes_accessed))

    # VMEM request derived from the double-buffered tile footprint, capped well
    # below the chip's physical VMEM (64 MiB on v7x, 128 MiB on v5e/v6e).
    tile_bytes = 2 * M * K + 2 * K * tn + out_bytes * M * tn + 4 * M
    vmem_limit = int(min(max(4 * 1024 * 1024, 4 * tile_bytes),
                         (3 * _vmem_cap_bytes()) // 4))

    in_specs = [pl.BlockSpec((M, K), lambda j: (0, 0)),
                pl.BlockSpec((K, tn), lambda j: (0, j))]
    operands = [a, b]
    if shift is not None:
        in_specs.append(pl.BlockSpec((M, 1), lambda j: (0, 0)))
        operands.append(shift.reshape(M, 1).astype(jnp.float32))
        kern = functools.partial(_mm_bias_kernel, relu=relu)
    else:
        kern = _mm_plain_kernel

    return pl.pallas_call(
        kern,
        out_shape=jax.ShapeDtypeStruct((M, N), out_dtype),
        grid_spec=pltpu.PrefetchScalarGridSpec(
            num_scalar_prefetch=0,
            grid=grid,
            in_specs=in_specs,
            out_specs=pl.BlockSpec((M, tn), lambda j: (0, j)),
        ),
        compiler_params=pltpu.CompilerParams(
            dimension_semantics=("parallel",),
            vmem_limit_bytes=vmem_limit,
        ),
        cost_estimate=ce,
    )(*operands)


# ----------------------------------------------------------------------------
# Conv1d / phase-split ConvTranspose1d in CBL layout (C, B, L), im2col + matmul
# (bias=False in the model; BN scale pre-folded into the weight matrix).
# ----------------------------------------------------------------------------
def conv1d_cbl(x_cbl, w_mat, shift, *, stride, padding, relu,
               out_dtype=jnp.bfloat16):
    C_in, B, L = x_cbl.shape
    C_out = w_mat.shape[0]
    k = w_mat.shape[1] // C_in
    xp = jnp.pad(x_cbl, ((0, 0), (0, 0), (padding, padding)))
    L_out = (L + 2 * padding - k) // stride + 1
    span = (L_out - 1) * stride + 1
    cols = [xp[:, :, ki:ki + span:stride] for ki in range(k)]    # k x (C_in,B,L_out)
    patches = jnp.stack(cols, axis=1).reshape(C_in * k, B * L_out)
    y = pallas_matmul(w_mat, patches.astype(jnp.bfloat16),
                      shift=shift, relu=relu, out_dtype=out_dtype)
    return y.reshape(C_out, B, L_out)                            # CBL


def conv_transpose_s2_cbl(x_cbl, w_ph, c_out, *, out_dtype=jnp.bfloat16):
    """ConvTranspose1d(stride=2, k=8, padding=3) via even/odd phase split.

    out[2m]   = sum_r x[m+r-2] * w[..., 7-2r]
    out[2m+1] = sum_r x[m+r-1] * w[..., 6-2r]
    Both phases share one 5-shift patch matrix of pad(x, 2, 2); the phase
    weights are stacked so a single matmul produces [even_rows; odd_rows]."""
    C_in, B, L = x_cbl.shape
    xp = jnp.pad(x_cbl, ((0, 0), (0, 0), (2, 2)))
    cols = [xp[:, :, r:r + L] for r in range(5)]                 # shifts 0..4
    patches = jnp.stack(cols, axis=1).reshape(C_in * 5, B * L)
    y = pallas_matmul(w_ph, patches.astype(jnp.bfloat16),
                      shift=None, relu=False, out_dtype=out_dtype)
    even = y[:c_out].reshape(c_out, B, L)
    odd = y[c_out:].reshape(c_out, B, L)
    return jnp.stack([even, odd], axis=-1).reshape(c_out, B, 2 * L)


# ----------------------------------------------------------------------------
# Pallas kernel 2: the whole Quantized_LSTM stack in ONE gridless call.
# Layout: everything VMEM-resident.  Per layer, ONE (T*B, D)@(D, 8H) projection
# dot for BOTH directions; per timestep, ONE (B,H)@(H,4H) recurrent dot.
# h/c carry across directions and layers (reference semantics), direction 1 is
# handled with reversed static indexing, outputs stored in forward time order.
# ----------------------------------------------------------------------------
def _sigmoidlinear(x):
    # TODO(synk): `sigmoidlinear` is not defined in the reference source; using
    # the standard piecewise-linear hard-sigmoid clip(0.25*x + 0.5, 0, 1).
    return jnp.clip(0.25 * x + 0.5, 0.0, 1.0)


def _lstm_stack_kernel(x_ref, w0_ref, b0_ref, w1_ref, b1_ref, u_ref,
                       out_ref, hT_ref, cT_ref, gx_ref, hid_ref, *, T, B, H):
    def run_direction(u, goff, reverse, dest_ref, doff, h, c):
        # Fully unrolled with static indices (T, B, H are compile-time ints).
        for t in range(T):
            tt = (T - 1 - t) if reverse else t
            r0 = tt * B
            g = gx_ref[r0:r0 + B, goff:goff + 4 * H] + jnp.dot(
                h.astype(jnp.bfloat16), u, preferred_element_type=jnp.float32)
            sl = _sigmoidlinear(g)                       # full 128-lane VPU op
            i_t = sl[:, 0:H]
            f_t = sl[:, H:2 * H]
            o_t = sl[:, 3 * H:4 * H]
            g_t = jnp.maximum(g[:, 2 * H:3 * H], 0.0)    # candidate gate = ReLU
            c = f_t * c + i_t * g_t
            h = o_t * _sigmoidlinear(c)
            # reverse direction stores directly at the flipped-back position
            dest_ref[r0:r0 + B, doff:doff + H] = h.astype(dest_ref.dtype)
        return h, c

    # ---- layer 0: fused input projection for both directions -> gx scratch
    gx_ref[...] = (jnp.dot(x_ref[...], w0_ref[...],
                           preferred_element_type=jnp.float32) + b0_ref[...])
    h = jnp.zeros((B, H), jnp.float32)
    c = jnp.zeros((B, H), jnp.float32)
    h, c = run_direction(u_ref[0], 0, False, hid_ref, 0, h, c)
    h, c = run_direction(u_ref[1], 4 * H, True, hid_ref, H, h, c)
    # Dropout(p=0.1) between layers: identity in eval mode.

    # ---- layer 1: projection of the (T*B, 2H) layer-0 output (still in VMEM)
    gx_ref[...] = (jnp.dot(hid_ref[...].astype(jnp.bfloat16), w1_ref[...],
                           preferred_element_type=jnp.float32) + b1_ref[...])
    h, c = run_direction(u_ref[2], 0, False, out_ref, 0, h, c)
    h, c = run_direction(u_ref[3], 4 * H, True, out_ref, H, h, c)

    hT_ref[...] = h
    cT_ref[...] = c


def lstm_stack(x_flat, lstm_pack, *, T, B, H):
    """x_flat: (T*B, D0) bf16 -> (hidden_seq (T*B, 2H) bf16, h_T, c_T)."""
    W0, b0, W1, b1, u4 = lstm_pack
    D0 = x_flat.shape[1]
    kern = functools.partial(_lstm_stack_kernel, T=T, B=B, H=H)
    vmem = pl.BlockSpec(memory_space=pltpu.MemorySpace.VMEM)
    flops = (2 * T * B * 8 * H * (D0 + 2 * H)          # two projection matmuls
             + 4 * T * 2 * B * H * 4 * H)              # recurrent dots
    bytes_accessed = (2 * T * B * D0 + 2 * (D0 + 2 * H) * 8 * H
                      + 2 * 4 * H * 4 * H + 4 * 2 * 8 * H
                      + 2 * T * B * 2 * H + 4 * 2 * B * H)
    ce = pl.CostEstimate(flops=int(flops), transcendentals=0,
                         bytes_accessed=int(bytes_accessed))
    out_shape = (jax.ShapeDtypeStruct((T * B, 2 * H), jnp.bfloat16),
                 jax.ShapeDtypeStruct((B, H), jnp.float32),
                 jax.ShapeDtypeStruct((B, H), jnp.float32))
    return pl.pallas_call(
        kern,
        out_shape=out_shape,
        in_specs=[vmem] * 6,
        out_specs=(vmem, vmem, vmem),
        scratch_shapes=[pltpu.VMEM((T * B, 8 * H), jnp.float32),   # gx
                        pltpu.VMEM((T * B, 2 * H), jnp.float32)],  # layer-0 out
        cost_estimate=ce,
    )(x_flat, W0, b0, W1, b1, u4)


# ----------------------------------------------------------------------------
# Parameter preparation: BN folding, bf16 weight casts, phase-split ConvT
# weights, fused per-layer LSTM projection matrices.  Done once, eagerly.
# ----------------------------------------------------------------------------
def prepare_params(p, eps=1e-5):
    H = p["layer_n"]

    def fold_conv(w, bn):
        gamma, beta, mean, var = bn
        scale = gamma / jnp.sqrt(var + eps)
        shift = beta - mean * scale
        C_out, C_in, k = w.shape
        w_mat = (w.reshape(C_out, C_in * k) * scale[:, None]).astype(jnp.bfloat16)
        return w_mat, shift.astype(jnp.float32)

    def phase_weights(wT):
        # wT: (C_in, C_out, 8) PyTorch ConvTranspose1d layout
        C_in, C_out, _ = wT.shape
        w_even = jnp.zeros((C_out, C_in, 5), jnp.float32).at[:, :, 0:4].set(
            jnp.transpose(wT[:, :, 7::-2], (1, 0, 2)))      # taps 7,5,3,1
        w_odd = jnp.zeros((C_out, C_in, 5), jnp.float32).at[:, :, 1:5].set(
            jnp.transpose(wT[:, :, 6::-2], (1, 0, 2)))      # taps 6,4,2,0
        w_ph = jnp.concatenate([w_even, w_odd], axis=0).reshape(2 * C_out, C_in * 5)
        return w_ph.astype(jnp.bfloat16), C_out

    def layer_pack(layer_params):
        (Wf, Uf, bf_), (Wb, Ub, bb) = layer_params
        Wcat = jnp.concatenate([Wf, Wb], axis=1).astype(jnp.bfloat16)       # (D, 8H)
        bcat = jnp.concatenate([bf_, bb], axis=0).reshape(1, 8 * H).astype(jnp.float32)
        return Wcat, bcat, Uf.astype(jnp.bfloat16), Ub.astype(jnp.bfloat16)

    W0, b0, U0f, U0b = layer_pack(p["lstm"][0])
    W1, b1, U1f, U1b = layer_pack(p["lstm"][1])
    u4 = jnp.stack([U0f, U0b, U1f, U1b], axis=0)                            # (4, H, 4H)

    return dict(
        layer_n=H,
        enc=fold_conv(p["conv1_w"], p["bn1"]),
        lstm=(W0, b0, W1, b1, u4),
        up1=phase_weights(p["up1_w"]),
        dec1_1=fold_conv(p["dec1_1_w"], p["dec1_1_bn"]),
        dec1_2=fold_conv(p["dec1_2_w"], p["dec1_2_bn"]),
        up2=phase_weights(p["up2_w"]),
        dec2_1=fold_conv(p["dec2_1_w"], p["dec2_1_bn"]),
        dec2_2=fold_conv(p["dec2_2_w"], p["dec2_2_bn"]),
    )


# ----------------------------------------------------------------------------
# Full CNN_BiLSTM_AttenQ forward (model I/O is PyTorch NCW: (B, C, L)).
# Note: despite the class name, the reference forward has NO attention block.
# ----------------------------------------------------------------------------
def cnn_bilstm_attenq_forward(x, prep):
    H = prep["layer_n"]
    B = x.shape[0]
    x_cbl = jnp.transpose(x, (1, 0, 2)).astype(jnp.bfloat16)       # (1, B, L)

    # encoder: Conv1d(1, H, k=8, s=4, p=3) + BN + ReLU (folded & fused)
    enc = conv1d_cbl(x_cbl, *prep["enc"], stride=4, padding=3, relu=True)  # (H,B,T)
    T = enc.shape[-1]

    # Quantized_LSTM (2 layers, bidirectional) as one fused Pallas call.
    x_flat = jnp.transpose(enc, (2, 1, 0)).reshape(T * B, H)       # (T*B, H) bf16
    hid_flat, _, _ = lstm_stack(x_flat, prep["lstm"], T=T, B=B, H=H)
    feat = jnp.transpose(hid_flat.reshape(T, B, 2 * H), (2, 1, 0))  # (2H,B,T) CBL

    # decoder (all CBL layout, bf16 activations; final layer in f32)
    y = conv_transpose_s2_cbl(feat, *prep["up1"])
    y = conv1d_cbl(y, *prep["dec1_1"], stride=1, padding=2, relu=True)
    y = conv1d_cbl(y, *prep["dec1_2"], stride=1, padding=2, relu=True)
    y = conv_transpose_s2_cbl(y, *prep["up2"])
    y = conv1d_cbl(y, *prep["dec2_1"], stride=1, padding=2, relu=True)
    y = conv1d_cbl(y, *prep["dec2_2"], stride=1, padding=2, relu=True,
                   out_dtype=jnp.float32)
    return jnp.transpose(y, (1, 0, 2))                             # (B, class_n, L)


# ----------------------------------------------------------------------------
# Deterministic parameter init (synthetic; no checkpoint loading)
# ----------------------------------------------------------------------------
def init_params(key, layer_n, class_n):
    keys = jax.random.split(key, 64)
    it = iter(keys)

    def u(shape, bound):
        return jax.random.uniform(next(it), shape, jnp.float32, -bound, bound)

    def conv_w(shape):   # (C_out, C_in, k)
        fan_in = shape[1] * shape[2]
        return u(shape, 1.0 / math.sqrt(fan_in))

    def convT_w(shape):  # (C_in, C_out, k)
        fan_in = shape[0] * shape[2]
        return u(shape, 1.0 / math.sqrt(fan_in))

    def bn(c):
        gamma = 1.0 + 0.1 * jax.random.normal(next(it), (c,), jnp.float32)
        beta = 0.1 * jax.random.normal(next(it), (c,), jnp.float32)
        mean = 0.1 * jax.random.normal(next(it), (c,), jnp.float32)
        var = 1.0 + 0.1 * jax.random.uniform(next(it), (c,), jnp.float32)
        return (gamma, beta, mean, var)

    H = layer_n
    stdv = 1.0 / math.sqrt(H)
    lstm = []
    for layer in range(2):
        D = H if layer == 0 else 2 * H
        dirs = []
        for _ in range(2):
            W = u((D, 4 * H), stdv)
            U = u((H, 4 * H), stdv)
            b = u((4 * H,), stdv)
            dirs.append((W, U, b))
        lstm.append(dirs)

    return dict(
        layer_n=layer_n,
        conv1_w=conv_w((layer_n, 1, 8)),
        bn1=bn(layer_n),
        lstm=lstm,
        up1_w=convT_w((2 * layer_n, layer_n, 8)),
        dec1_1_w=conv_w((layer_n, layer_n, 5)),
        dec1_1_bn=bn(layer_n),
        dec1_2_w=conv_w((layer_n // 2, layer_n, 5)),
        dec1_2_bn=bn(layer_n // 2),
        up2_w=convT_w((layer_n // 2, layer_n // 4, 8)),
        dec2_1_w=conv_w((layer_n // 4, layer_n // 4, 5)),
        dec2_1_bn=bn(layer_n // 4),
        dec2_2_w=conv_w((class_n, layer_n // 4, 5)),
        dec2_2_bn=bn(class_n),
    )


if __name__ == "__main__":
    layer_n = 32
    class_n = 3
    B, L = 2, 64                      # x: (B, 1, L) -> encoder T' = 16
    key = jax.random.PRNGKey(0)
    pkey, xkey = jax.random.split(key)
    params = init_params(pkey, layer_n, class_n)
    prep = prepare_params(params)
    x = jax.random.normal(xkey, (B, 1, L), jnp.float32)

    fwd = jax.jit(lambda inp: cnn_bilstm_attenq_forward(inp, prep))
    out = jax.block_until_ready(fwd(x))
    assert out.shape == (B, class_n, L), out.shape
    assert bool(jnp.all(jnp.isfinite(out)))
    print("KERNEL_OK")
</pallas_src>

<mosaic_0001>
module attributes {stable_mosaic.version = 11 : i64} {
  func.func @_mm_bias_kernel(%arg0: i32, %arg1: memref<32x8xbf16, #tpu.memory_space<vmem>>, %arg2: memref<8x32xbf16, #tpu.memory_space<vmem>>, %arg3: memref<32x1xf32, #tpu.memory_space<vmem>>, %arg4: memref<32x32xbf16, #tpu.memory_space<vmem>>) attributes {dimension_semantics = [#tpu.dimension_semantics<parallel>], iteration_bounds = array<i64: 1>, scalar_prefetch = 0 : i64, scratch_operands = 0 : i64, tpu.core_type = #tpu.core_type<tc>, window_params = [{pipeline_mode = #tpu.pipeline_mode<synchronous>, transform_indices = @transform_0, window_bounds = array<i64: 32, 8>}, {transform_indices = @transform_1, window_bounds = array<i64: 8, 32>}, {pipeline_mode = #tpu.pipeline_mode<synchronous>, transform_indices = @transform_2, window_bounds = array<i64: 32, 1>}, {transform_indices = @transform_3, window_bounds = array<i64: 32, 32>}]} {
    %c0 = arith.constant 0 : index
    %c0_0 = arith.constant 0 : index
    %0 = vector.load %arg1[%c0, %c0_0] : memref<32x8xbf16, #tpu.memory_space<vmem>>, vector<32x8xbf16>
    %c0_1 = arith.constant 0 : index
    %c0_2 = arith.constant 0 : index
    %1 = vector.load %arg2[%c0_1, %c0_2] : memref<8x32xbf16, #tpu.memory_space<vmem>>, vector<8x32xbf16>
    %cst = arith.constant dense<0.000000e+00> : vector<32x32xf32>
    %2 = tpu.matmul %0, %1, %cst {dimension_numbers = #tpu.dot_dimension_numbers<[1], [0], [0], [1], [0, 0, 1, 1], [], []>} : vector<32x8xbf16>, vector<8x32xbf16>, vector<32x32xf32> -> vector<32x32xf32>
    %c0_3 = arith.constant 0 : index
    %c0_4 = arith.constant 0 : index
    %3 = vector.load %arg3[%c0_3, %c0_4] : memref<32x1xf32, #tpu.memory_space<vmem>>, vector<32x1xf32>
    %4 = vector.broadcast %3 : vector<32x1xf32> to vector<32x32xf32>
    %5 = arith.addf %2, %4 : vector<32x32xf32>
    %cst_5 = arith.constant 0.000000e+00 : f32
    %6 = vector.broadcast %cst_5 : f32 to vector<32x32xf32>
    %7 = arith.maximumf %5, %6 : vector<32x32xf32>
    %8 = arith.truncf %7 : vector<32x32xf32> to vector<32x32xbf16>
    %c0_6 = arith.constant 0 : index
    %c0_7 = arith.constant 0 : index
    %9 = vector.load %arg4[%c0_6, %c0_7] : memref<32x32xbf16, #tpu.memory_space<vmem>>, vector<32x32xbf16>
    tpu.vector_store %arg4[%c0_6, %c0_7], %8 {strides = array<i32>} : memref<32x32xbf16, #tpu.memory_space<vmem>>, vector<32x32xbf16>,
    return
  }
  func.func @transform_0(%arg0: i32) -> (i32, i32) {
    %c0_i32 = arith.constant 0 : i32
    %c0_i32_0 = arith.constant 0 : i32
    %c0_i32_1 = arith.constant 0 : i32
    return %c0_i32, %c0_i32_0 : i32, i32
  }
  func.func @transform_1(%arg0: i32) -> (i32, i32) {
    %c0_i32 = arith.constant 0 : i32
    %c0_i32_0 = arith.constant 0 : i32
    return %c0_i32, %arg0 : i32, i32
  }
  func.func @transform_2(%arg0: i32) -> (i32, i32) {
    %c0_i32 = arith.constant 0 : i32
    %c0_i32_0 = arith.constant 0 : i32
    %c0_i32_1 = arith.constant 0 : i32
    return %c0_i32, %c0_i32_0 : i32, i32
  }
  func.func @transform_3(%arg0: i32) -> (i32, i32) {
    %c0_i32 = arith.constant 0 : i32
    %c0_i32_0 = arith.constant 0 : i32
    return %c0_i32, %arg0 : i32, i32
  }
}

module attributes {stable_mosaic.version = 11 : i64} {
  func.func @_mm_plain_kernel(%arg0: i32, %arg1: memref<64x320xbf16, #tpu.memory_space<vmem>>, %arg2: memref<320x32xbf16, #tpu.memory_space<vmem>>, %arg3: memref<64x32xbf16, #tpu.memory_space<vmem>>) attributes {dimension_semantics = [#tpu.dimension_semantics<parallel>], iteration_bounds = array<i64: 1>, scalar_prefetch = 0 : i64, scratch_operands = 0 : i64, tpu.core_type = #tpu.core_type<tc>, window_params = [{pipeline_mode = #tpu.pipeline_mode<synchronous>, transform_indices = @transform_0, window_bounds = array<i64: 64, 320>}, {transform_indices = @transform_1, window_bounds = array<i64: 320, 32>}, {transform_indices = @transform_2, window_bounds = array<i64: 64, 32>}]} {
    %c0 = arith.constant 0 : index
    %c0_0 = arith.constant 0 : index
    %0 = vector.load %arg1[%c0, %c0_0] : memref<64x320xbf16, #tpu.memory_space<vmem>>, vector<64x320xbf16>
    %c0_1 = arith.constant 0 : index
    %c0_2 = arith.constant 0 : index
    %1 = vector.load %arg2[%c0_1, %c0_2] : memref<320x32xbf16, #tpu.memory_space<vmem>>, vector<320x32xbf16>
    %cst = arith.constant dense<0.000000e+00> : vector<64x32xf32>
    %2 = tpu.matmul %0, %1, %cst {dimension_numbers = #tpu.dot_dimension_numbers<[1], [0], [0], [1], [0, 0, 1, 1], [], []>} : vector<64x320xbf16>, vector<320x32xbf16>, vector<64x32xf32> -> vector<64x32xf32>
    %3 = arith.truncf %2 : vector<64x32xf32> to vector<64x32xbf16>
    %c0_3 = arith.constant 0 : index
    %c0_4 = arith.constant 0 : index
    %4 = vector.load %arg3[%c0_3, %c0_4] : memref<64x32xbf16, #tpu.memory_space<vmem>>, vector<64x32xbf16>
    tpu.vector_store %arg3[%c0_3, %c0_4], %3 {strides = array<i32>} : memref<64x32xbf16, #tpu.memory_space<vmem>>, vector<64x32xbf16>,
    return
  }
  func.func @transform_0(%arg0: i32) -> (i32, i32) {
    %c0_i32 = arith.constant 0 : i32
    %c0_i32_0 = arith.constant 0 : i32
    %c0_i32_1 = arith.constant 0 : i32
    return %c0_i32, %c0_i32_0 : i32, i32
  }
  func.func @transform_1(%arg0: i32) -> (i32, i32) {
    %c0_i32 = arith.constant 0 : i32
    %c0_i32_0 = arith.constant 0 : i32
    return %c0_i32, %arg0 : i32, i32
  }
  func.func @transform_2(%arg0: i32) -> (i32, i32) {
    %c0_i32 = arith.constant 0 : i32
    %c0_i32_0 = arith.constant 0 : i32
    return %c0_i32, %arg0 : i32, i32
  }
}

module attributes {stable_mosaic.version = 11 : i64} {
  func.func @_lstm_stack_kernel(%arg0: memref<32x32xbf16, #tpu.memory_space<vmem>>, %arg1: memref<32x256xbf16, #tpu.memory_space<vmem>>, %arg2: memref<1x256xf32, #tpu.memory_space<vmem>>, %arg3: memref<64x256xbf16, #tpu.memory_space<vmem>>, %arg4: memref<1x256xf32, #tpu.memory_space<vmem>>, %arg5: memref<4x32x128xbf16, #tpu.memory_space<vmem>>, %arg6: memref<32x64xbf16, #tpu.memory_space<vmem>>, %arg7: memref<2x32xf32, #tpu.memory_space<vmem>>, %arg8: memref<2x32xf32, #tpu.memory_space<vmem>>, %arg9: memref<32x256xf32, #tpu.memory_space<vmem>>, %arg10: memref<32x64xf32, #tpu.memory_space<vmem>>) attributes {dimension_semantics = [], scalar_prefetch = 0 : i64, scratch_operands = 2 : i64, tpu.core_type = #tpu.core_type<tc>} {
    %c0 = arith.constant 0 : index
    %c0_0 = arith.constant 0 : index
    %0 = vector.load %arg0[%c0, %c0_0] : memref<32x32xbf16, #tpu.memory_space<vmem>>, vector<32x32xbf16>
    %c0_1 = arith.constant 0 : index
    %c0_2 = arith.constant 0 : index
    %1 = vector.load %arg1[%c0_1, %c0_2] : memref<32x256xbf16, #tpu.memory_space<vmem>>, vector<32x256xbf16>
    %cst = arith.constant dense<0.000000e+00> : vector<32x256xf32>
    %2 = tpu.matmul %0, %1, %cst {dimension_numbers = #tpu.dot_dimension_numbers<[1], [0], [0], [1], [0, 0, 1, 1], [], []>} : vector<32x32xbf16>, vector<32x256xbf16>, vector<32x256xf32> -> vector<32x256xf32>
    %c0_3 = arith.constant 0 : index
    %c0_4 = arith.constant 0 : index
    %3 = vector.load %arg2[%c0_3, %c0_4] : memref<1x256xf32, #tpu.memory_space<vmem>>, vector<1x256xf32>
    %4 = vector.broadcast %3 : vector<1x256xf32> to vector<32x256xf32>
    %5 = arith.addf %2, %4 : vector<32x256xf32>
    %c0_5 = arith.constant 0 : index
    %c0_6 = arith.constant 0 : index
    %6 = vector.load %arg9[%c0_5, %c0_6] : memref<32x256xf32, #tpu.memory_space<vmem>>, vector<32x256xf32>
    tpu.vector_store %arg9[%c0_5, %c0_6], %5 {strides = array<i32>} : memref<32x256xf32, #tpu.memory_space<vmem>>, vector<32x256xf32>,
    %cst_7 = arith.constant 0.000000e+00 : f32
    %7 = vector.broadcast %cst_7 : f32 to vector<2x32xf32>
    %cst_8 = arith.constant 0.000000e+00 : f32
    %8 = vector.broadcast %cst_8 : f32 to vector<2x32xf32>
    %c0_9 = arith.constant 0 : index
    %c0_10 = arith.constant 0 : index
    %c0_11 = arith.constant 0 : index
    %9 = vector.load %arg5[%c0_9, %c0_10, %c0_11] : memref<4x32x128xbf16, #tpu.memory_space<vmem>>, vector<1x32x128xbf16>
    %10 = vector.shape_cast %9 : vector<1x32x128xbf16> to vector<32x128xbf16>
    %c0_12 = arith.constant 0 : index
    %c0_13 = arith.constant 0 : index
    %11 = vector.load %arg9[%c0_12, %c0_13] : memref<32x256xf32, #tpu.memory_space<vmem>>, vector<2x128xf32>
    %12 = arith.truncf %7 : vector<2x32xf32> to vector<2x32xbf16>
    %cst_14 = arith.constant dense<0.000000e+00> : vector<2x128xf32>
    %13 = tpu.matmul %12, %10, %cst_14 {dimension_numbers = #tpu.dot_dimension_numbers<[1], [0], [0], [1], [0, 0, 1, 1], [], []>} : vector<2x32xbf16>, vector<32x128xbf16>, vector<2x128xf32> -> vector<2x128xf32>
    %14 = arith.addf %11, %13 : vector<2x128xf32>
    %cst_15 = arith.constant 2.500000e-01 : f32
    %15 = vector.broadcast %cst_15 : f32 to vector<2x128xf32>
    %16 = arith.mulf %15, %14 : vector<2x128xf32>
    %cst_16 = arith.constant 5.000000e-01 : f32
    %17 = vector.broadcast %cst_16 : f32 to vector<2x128xf32>
    %18 = arith.addf %16, %17 : vector<2x128xf32>
    %cst_17 = arith.constant 0.000000e+00 : f32
    %cst_18 = arith.constant 1.000000e+00 : f32
    %19 = vector.broadcast %cst_17 : f32 to vector<2x128xf32>
    %20 = arith.maximumf %19, %18 : vector<2x128xf32>
    %21 = vector.broadcast %cst_18 : f32 to vector<2x128xf32>
    %22 = arith.minimumf %21, %20 : vector<2x128xf32>
    %23 = vector.extract_strided_slice %22 {offsets = [0, 0], sizes = [2, 32], strides = [1, 1]} : vector<2x128xf32> to vector<2x32xf32>
    %24 = vector.extract_strided_slice %22 {offsets = [0, 32], sizes = [2, 32], strides = [1, 1]} : vector<2x128xf32> to vector<2x32xf32>
    %25 = vector.extract_strided_slice %22 {offsets = [0, 96], sizes = [2, 32], strides = [1, 1]} : vector<2x128xf32> to vector<2x32xf32>
    %26 = vector.extract_strided_slice %14 {offsets = [0, 64], sizes = [2, 32], strides = [1, 1]} : vector<2x128xf32> to vector<2x32xf32>
    %cst_19 = arith.constant 0.000000e+00 : f32
    %27 = vector.broadcast %cst_19 : f32 to vector<2x32xf32>
    %28 = arith.maximumf %26, %27 : vector<2x32xf32>
    %29 = arith.mulf %24, %8 : vector<2x32xf32>
    %30 = arith.mulf %23, %28 : vector<2x32xf32>
    %31 = arith.addf %29, %30 : vector<2x32xf32>
    %cst_20 = arith.constant 2.500000e-01 : f32
    %32 = vector.broadcast %cst_20 : f32 to vector<2x32xf32>
    %33 = arith.mulf %32, %31 : vector<2x32xf32>
    %cst_21 = arith.constant 5.000000e-01 : f32
    %34 = vector.broadcast %cst_21 : f32 to vector<2x32xf32>
    %35 = arith.addf %33, %34 : vector<2x32xf32>
    %cst_22 = arith.constant 0.000000e+00 : f32
    %cst_23 = arith.constant 1.000000e+00 : f32
    %36 = vector.broadcast %cst_22 : f32 to vector<2x32xf32>
    %37 = arith.maximumf %36, %35 : vector<2x32xf32>
    %38 = vector.broadcast %cst_23 : f32 to vector<2x32xf32>
    %39 = arith.minimumf %38, %37 : vector<2x32xf32>
    %40 = arith.mulf %25, %39 : vector<2x32xf32>
    %c0_24 = arith.constant 0 : index
    %c0_25 = arith.constant 0 : index
    %41 = vector.load %arg10[%c0_24, %c0_25] : memref<32x64xf32, #tpu.memory_space<vmem>>, vector<2x32xf32>
    tpu.vector_store %arg10[%c0_24, %c0_25], %40 {strides = array<i32>} : memref<32x64xf32, #tpu.memory_space<vmem>>, vector<2x32xf32>,
    %c2 = arith.constant 2 : index
    %c0_26 = arith.constant 0 : index
    %42 = vector.load %arg9[%c2, %c0_26] : memref<32x256xf32, #tpu.memory_space<vmem>>, vector<2x128xf32>
    %43 = arith.truncf %40 : vector<2x32xf32> to vector<2x32xbf16>
    %cst_27 = arith.constant dense<0.000000e+00> : vector<2x128xf32>
    %44 = tpu.matmul %43, %10, %cst_27 {dimension_numbers = #tpu.dot_dimension_numbers<[1], [0], [0], [1], [0, 0, 1, 1], [], []>} : vector<2x32xbf16>, vector<32x128xbf16>, vector<2x128xf32> -> vector<2x128xf32>
    %45 = arith.addf %42, %44 : vector<2x128xf32>
    %cst_28 = arith.constant 2.500000e-01 : f32
    %46 = vector.broadcast %cst_28 : f32 to vector<2x128xf32>
    %47 = arith.mulf %46, %45 : vector<2x128xf32>
    %cst_29 = arith.constant 5.000000e-01 : f32
    %48 = vector.broadcast %cst_29 : f32 to vector<2x128xf32>
    %49 = arith.addf %47, %48 : vector<2x128xf32>
    %cst_30 = arith.constant 0.000000e+00 : f32
    %cst_31 = arith.constant 1.000000e+00 : f32
    %50 = vector.broadcast %cst_30 : f32 to vector<2x128xf32>
    %51 = arith.maximumf %50, %49 : vector<2x128xf32>
    %52 = vector.broadcast %cst_31 : f32 to vector<2x128xf32>
    %53 = arith.minimumf %52, %51 : vector<2x128xf32>
    %54 = vector.extract_strided_slice %53 {offsets = [0, 0], sizes = [2, 32], strides = [1, 1]} : vector<2x128xf32> to vector<2x32xf32>
    %55 = vector.extract_strided_slice %53 {offsets = [0, 32], sizes = [2, 32], strides = [1, 1]} : vector<2x128xf32> to vector<2x32xf32>
    %56 = vector.extract_strided_slice %53 {offsets = [0, 96], sizes = [2, 32], strides = [1, 1]} : vector<2x128xf32> to vector<2x32xf32>
    %57 = vector.extract_strided_slice %45 {offsets = [0, 64], sizes = [2, 32], strides = [1, 1]} : vector<2x128xf32> to vector<2x32xf32>
    %cst_32 = arith.constant 0.000000e+00 : f32
    %58 = vector.broadcast %cst_32 : f32 to vector<2x32xf32>
    %59 = arith.maximumf %57, %58 : vector<2x32xf32>
    %60 = arith.mulf %55, %31 : vector<2x32xf32>
    %61 = arith.mulf %54, %59 : vector<2x32xf32>
    %62 = arith.addf %60, %61 : vector<2x32xf32>
    %cst_33 = arith.constant 2.500000e-01 : f32
    %63 = vector.broadcast %cst_33 : f32 to vector<2x32xf32>
    %64 = arith.mulf %63, %62 : vector<2x32xf32>
    %cst_34 = arith.constant 5.000000e-01 : f32
    %65 = vector.broadcast %cst_34 : f32 to vector<2x32xf32>
    %66 = arith.addf %64, %65 : vector<2x32xf32>
    %cst_35 = arith.constant 0.000000e+00 : f32
    %cst_36 = arith.constant 1.000000e+00 : f32
    %67 = vector.broadcast %cst_35 : f32 to vector<2x32xf32>
    %68 = arith.maximumf %67, %66 : vector<2x32xf32>
    %69 = vector.broadcast %cst_36 : f32 to vector<2x32xf32>
    %70 = arith.minimumf %69, %68 : vector<2x32xf32>
    %71 = arith.mulf %56, %70 : vector<2x32xf32>
    %c2_37 = arith.constant 2 : index
    %c0_38 = arith.constant 0 : index
    %72 = vector.load %arg10[%c2_37, %c0_38] : memref<32x64xf32, #tpu.memory_space<vmem>>, vector<2x32xf32>
    tpu.vector_store %arg10[%c2_37, %c0_38], %71 {strides = array<i32>} : memref<32x64xf32, #tpu.memory_space<vmem>>, vector<2x32xf32>,
    %c4 = arith.constant 4 : index
    %c0_39 = arith.constant 0 : index
    %73 = vector.load %arg9[%c4, %c0_39] : memref<32x256xf32, #tpu.memory_space<vmem>>, vector<2x128xf32>
    %74 = arith.truncf %71 : vector<2x32xf32> to vector<2x32xbf16>
    %cst_40 = arith.constant dense<0.000000e+00> : vector<2x128xf32>
    %75 = tpu.matmul %74, %10, %cst_40 {dimension_numbers = #tpu.dot_dimension_numbers<[1], [0], [0], [1], [0, 0, 1, 1], [], []>} : vector<2x32xbf16>, vector<32x128xbf16>, vector<2x128xf32> -> vector<2x128xf32>
    %76 = arith.addf %73, %75 : vector<2x128xf32>
    %cst_41 = arith.constant 2.500000e-01 : f32
    %77 = vector.broadcast %cst_41 : f32 to vector<2x128xf32>
    %78 = arith.mulf %77, %76 : vector<2x128xf32>
    %cst_42 = arith.constant 5.000000e-01 : f32
    %79 = vector.broadcast %cst_42 : f32 to vector<2x128xf32>
    %80 = arith.addf %78, %79 : vector<2x128xf32>
    %cst_43 = arith.constant 0.000000e+00 : f32
    %cst_44 = arith.constant 1.000000e+00 : f32
    %81 = vector.broadcast %cst_43 : f32 to vector<2x128xf32>
    %82 = arith.maximumf %81, %80 : vector<2x128xf32>
    %83 = vector.broadcast %cst_44 : f32 to vector<2x128xf32>
    %84 = arith.minimumf %83, %82 : vector<2x128xf32>
    %85 = vector.extract_strided_slice %84 {offsets = [0, 0], sizes = [2, 32], strides = [1, 1]} : vector<2x128xf32> to vector<2x32xf32>
    %86 = vector.extract_strided_slice %84 {offsets = [0, 32], sizes = [2, 32], strides = [1, 1]} : vector<2x128xf32> to vector<2x32xf32>
    %87 = vector.extract_strided_slice %84 {offsets = [0, 96], sizes = [2, 32], strides = [1, 1]} : vector<2x128xf32> to vector<2x32xf32>
    %88 = vector.extract_strided_slice %76 {offsets = [0, 64], sizes = [2, 32], strides = [1, 1]} : vector<2x128xf32> to vector<2x32xf32>
    %cst_45 = arith.constant 0.000000e+00 : f32
    %89 = vector.broadcast %cst_45 : f32 to vector<2x32xf32>
    %90 = arith.maximumf %88, %89 : vector<2x32xf32>
    %91 = arith.mulf %86, %62 : vector<2x32xf32>
    %92 = arith.mulf %85, %90 : vector<2x32xf32>
    %93 = arith.addf %91, %92 : vector<2x32xf32>
    %cst_46 = arith.constant 2.500000e-01 : f32
    %94 = vector.broadcast %cst_46 : f32 to vector<2x32xf32>
    %95 = arith.mulf %94, %93 : vector<2x32xf32>
    %cst_47 = arith.constant 5.000000e-01 : f32
    %96 = vector.broadcast %cst_47 : f32 to vector<2x32xf32>
    %97 = arith.addf %95, %96 : vector<2x32xf32>
    %cst_48 = arith.constant 0.000000e+00 : f32
    %cst_49 = arith.constant 1.000000e+00 : f32
    %98 = vector.broadcast %cst_48 : f32 to vector<2x32xf32>
    %99 = arith.maximumf %98, %97 : vector<2x32xf32>
    %100 = vector.broadcast %cst_49 : f32 to vector<2x32xf32>
    %101 = arith.minimumf %100, %99 : vector<2x32xf32>
    %102 = arith.mulf %87, %101 : vector<2x32xf32>
    %c4_50 = arith.constant 4 : index
    %c0_51 = arith.constant 0 : index
    %103 = vector.load %arg10[%c4_50, %c0_51] : memref<32x64xf32, #tpu.memory_space<vmem>>, vector<2x32xf32>
    tpu.vector_store %arg10[%c4_50, %c0_51], %102 {strides = array<i32>} : memref<32x64xf32, #tpu.memory_space<vmem>>, vector<2x32xf32>,
    %c6 = arith.constant 6 : index
    %c0_52 = arith.constant 0 : index
    %104 = vector.load %arg9[%c6, %c0_52] : memref<32x256xf32, #tpu.memory_space<vmem>>, vector<2x128xf32>
    %105 = arith.truncf %102 : vector<2x32xf32> to vector<2x32xbf16>
    %cst_53 = arith.constant dense<0.000000e+00> : vector<2x128xf32>
    %106 = tpu.matmul %105, %10, %cst_53 {dimension_numbers = #tpu.dot_dimension_numbers<[1], [0], [0], [1], [0, 0, 1, 1], [], []>} : vector<2x32xbf16>, vector<32x128xbf16>, vector<2x128xf32> -> vector<2x128xf32>
    %107 = arith.addf %104, %106 : vector<2x128xf32>
    %cst_54 = arith.constant 2.500000e-01 : f32
    %108 = vector.broadcast %cst_54 : f32 to vector<2x128xf32>
    %109 = arith.mulf %108, %107 : vector<2x128xf32>
    %cst_55 = arith.constant 5.000000e-01 : f32
    %110 = vector.broadcast %cst_55 : f32 to vector<2x128xf32>
    %111 = arith.addf %109, %110 : vector<2x128xf32>
    %cst_56 = arith.constant 0.000000e+00 : f32
    %cst_57 = arith.constant 1.000000e+00 : f32
    %112 = vector.broadcast %cst_56 : f32 to vector<2x128xf32>
    %113 = arith.maximumf %112, %111 : vector<2x128xf32>
    %114 = vector.broadcast %cst_57 : f32 to vector<2x128xf32>
    %115 = arith.minimumf %114, %113 : vector<2x128xf32>
    %116 = vector.extract_strided_slice %115 {offsets = [0, 0], sizes = [2, 32], strides = [1, 1]} : vector<2x128xf32> to vector<2x32xf32>
    %117 = vector.extract_strided_slice %115 {offsets = [0, 32], sizes = [2, 32], strides = [1, 1]} : vector<2x128xf32> to vector<2x32xf32>
    %118 = vector.extract_strided_slice %115 {offsets = [0, 96], sizes = [2, 32], strides = [1, 1]} : vector<2x128xf32> to vector<2x32xf32>
    %119 = vector.extract_strided_slice %107 {offsets = [0, 64], sizes = [2, 32], strides = [1, 1]} : vector<2x128xf32> to vector<2x32xf32>
    %cst_58 = arith.constant 0.000000e+00 : f32
    %120 = vector.broadcast %cst_58 : f32 to vector<2x32xf32>
    %121 = arith.maximumf %119, %120 : vector<2x32xf32>
    %122 = arith.mulf %117, %93 : vector<2x32xf32>
    %123 = arith.mulf %116, %121 : vector<2x32xf32>
    %124 = arith.addf %122, %123 : vector<2x32xf32>
    %cst_59 = arith.constant 2.500000e-01 : f32
    %125 = vector.broadcast %cst_59 : f32 to vector<2x32xf32>
    %126 = arith.mulf %125, %124 : vector<2x32xf32>
    %cst_60 = arith.constant 5.000000e-01 : f32
    %127 = vector.broadcast %cst_60 : f32 to vector<2x32xf32>
    %128 = arith.addf %126, %127 : vector<2x32xf32>
    %cst_61 = arith.constant 0.000000e+00 : f32
    %cst_62 = arith.constant 1.000000e+00 : f32
    %129 = vector.broadcast %cst_61 : f32 to vector<2x32xf32>
    %130 = arith.maximumf %129, %128 : vector<2x32xf32>
    %131 = vector.broadcast %cst_62 : f32 to vector<2x32xf32>
    %132 = arith.minimumf %131, %130 : vector<2x32xf32>
    %133 = arith.mulf %118, %132 : vector<2x32xf32>
    %c6_63 = arith.constant 6 : index
    %c0_64 = arith.constant 0 : index
    %134 = vector.load %arg10[%c6_63, %c0_64] : memref<32x64xf32, #tpu.memory_space<vmem>>, vector<2x32xf32>
    tpu.vector_store %arg10[%c6_63, %c0_64], %133 {strides = array<i32>} : memref<32x64xf32, #tpu.memory_space<vmem>>, vector<2x32xf32>,
    %c8 = arith.constant 8 : index
    %c0_65 = arith.constant 0 : index
    %135 = vector.load %arg9[%c8, %c0_65] : memref<32x256xf32, #tpu.memory_space<vmem>>, vector<2x128xf32>
    %136 = arith.truncf %133 : vector<2x32xf32> to vector<2x32xbf16>
    %cst_66 = arith.constant dense<0.000000e+00> : vector<2x128xf32>
    %137 = tpu.matmul %136, %10, %cst_66 {dimension_numbers = #tpu.dot_dimension_numbers<[1], [0], [0], [1], [0, 0, 1, 1], [], []>} : vector<2x32xbf16>, vector<32x128xbf16>, vector<2x128xf32> -> vector<2x128xf32>
    %138 = arith.addf %135, %137 : vector<2x128xf32>
    %cst_67 = arith.constant 2.500000e-01 : f32
    %139 = vector.broadcast %cst_67 : f32 to vector<2x128xf32>
    %140 = arith.mulf %139, %138 : vector<2x128xf32>
    %cst_68 = arith.constant 5.000000e-01 : f32
    %141 = vector.broadcast %cst_68 : f32 to vector<2x128xf32>
    %142 = arith.addf %140, %141 : vector<2x128xf32>
    %cst_69 = arith.constant 0.000000e+00 : f32
    %cst_70 = arith.constant 1.000000e+00 : f32
    %143 = vector.broadcast %cst_69 : f32 to vector<2x128xf32>
    %144 = arith.maximumf %143, %142 : vector<2x128xf32>
    %145 = vector.broadcast %cst_70 : f32 to vector<2x128xf32>
    %146 = arith.minimumf %145, %144 : vector<2x128xf32>
    %147 = vector.extract_strided_slice %146 {offsets = [0, 0], sizes = [2, 32], strides = [1, 1]} : vector<2x128xf32> to vector<2x32xf32>
    %148 = vector.extract_strided_slice %146 {offsets = [0, 32], sizes = [2, 32], strides = [1, 1]} : vector<2x128xf32> to vector<2x32xf32>
    %149 = vector.extract_strided_slice %146 {offsets = [0, 96], sizes = [2, 32], strides = [1, 1]} : vector<2x128xf32> to vector<2x32xf32>
    %150 = vector.extract_strided_slice %138 {offsets = [0, 64], sizes = [2, 32], strides = [1, 1]} : vector<2x128xf32> to vector<2x32xf32>
    %cst_71 = arith.constant 0.000000e+00 : f32
    %151 = vector.broadcast %cst_71 : f32 to vector<2x32xf32>
    %152 = arith.maximumf %150, %151 : vector<2x32xf32>
    %153 = arith.mulf %148, %124 : vector<2x32xf32>
    %154 = arith.mulf %147, %152 : vector<2x32xf32>
    %155 = arith.addf %153, %154 : vector<2x32xf32>
    %cst_72 = arith.constant 2.500000e-01 : f32
    %156 = vector.broadcast %cst_72 : f32 to vector<2x32xf32>
    %157 = arith.mulf %156, %155 : vector<2x32xf32>
    %cst_73 = arith.constant 5.000000e-01 : f32
    %158 = vector.broadcast %cst_73 : f32 to vector<2x32xf32>
    %159 = arith.addf %157, %158 : vector<2x32xf32>
    %cst_74 = arith.constant 0.000000e+00 : f32
    %cst_75 = arith.constant 1.000000e+00 : f32
    %160 = vector.broadcast %cst_74 : f32 to vector<2x32xf32>
    %161 = arith.maximumf %160, %159 : vector<2x32xf32>
    %162 = vector.broadcast %cst_75 : f32 to vector<2x32xf32>
    %163 = arith.minimumf %162, %161 : vector<2x32xf32>
    %164 = arith.mulf %149, %163 : vector<2x32xf32>
    %c8_76 = arith.constant 8 : index
    %c0_77 = arith.constant 0 : index
    %165 = vector.load %arg10[%c8_76, %c0_77] : memref<32x64xf32, #tpu.memory_space<vmem>>, vector<2x32xf32>
    tpu.vector_store %arg10[%c8_76, %c0_77], %164 {strides = array<i32>} : memref<32x64xf32, #tpu.memory_space<vmem>>, vector<2x32xf32>,
    %c10 = arith.constant 10 : index
    %c0_78 = arith.constant 0 : index
    %166 = vector.load %arg9[%c10, %c0_78] : memref<32x256xf32, #tpu.memory_space<vmem>>, vector<2x128xf32>
    %167 = arith.truncf %164 : vector<2x32xf32> to vector<2x32xbf16>
    %cst_79 = arith.constant dense<0.000000e+00> : vector<2x128xf32>
    %168 = tpu.matmul %167, %10, %cst_79 {dimension_numbers = #tpu.dot_dimension_numbers<[1], [0], [0], [1], [0, 0, 1, 1], [], []>} : vector<2x32xbf16>, vector<32x128xbf16>, vector<2x128xf32> -> vector<2x128xf32>
    %169 = arith.addf %166, %168 : vector<2x128xf32>
    %cst_80 = arith.constant 2.500000e-01 : f32
    %170 = vector.broadcast %cst_80 : f32 to vector<2x128xf32>
    %171 = arith.mulf %170, %169 : vector<2x128xf32>
    %cst_81 = arith.constant 5.000000e-01 : f32
    %172 = vector.broadcast %cst_81 : f32 to vector<2x128xf32>
    %173 = arith.addf %171, %172 : vector<2x128xf32>
    %cst_82 = arith.constant 0.000000e+00 : f32
    %cst_83 = arith.constant 1.000000e+00 : f32
    %174 = vector.broadcast %cst_82 : f32 to vector<2x128xf32>
    %175 = arith.maximumf %174, %173 : vector<2x128xf32>
    %176 = vector.broadcast %cst_83 : f32 to vector<2x128xf32>
    %177 = arith.minimumf %176, %175 : vector<2x128xf32>
    %178 = vector.extract_strided_slice %177 {offsets = [0, 0], sizes = [2, 32], strides = [1, 1]} : vector<2x128xf32> to vector<2x32xf32>
    %179 = vector.extract_strided_slice %177 {offsets = [0, 32], sizes = [2, 32], strides = [1, 1]} : vector<2x128xf32> to vector<2x32xf32>
    %180 = vector.extract_strided_slice %177 {offsets = [0, 96], sizes = [2, 32], strides = [1, 1]} : vector<2x128xf32> to vector<2x32xf32>
    %181 = vector.extract_strided_slice %169 {offsets = [0, 64], sizes = [2, 32], strides = [1, 1]} : vector<2x128xf32> to vector<2x32xf32>
    %cst_84 = arith.constant 0.000000e+00 : f32
    %182 = vector.broadcast %cst_84 : f32 to vector<2x32xf32>
    %183 = arith.maximumf %181, %182 : vector<2x32xf32>
    %184 = arith.mulf %179, %155 : vector<2x32xf32>
    %185 = arith.mulf %178, %183 : vector<2x32xf32>
    %186 = arith.addf %184, %185 : vector<2x32xf32>
    %cst_85 = arith.constant 2.500000e-01 : f32
    %187 = vector.broadcast %cst_85 : f32 to vector<2x32xf32>
    %188 = arith.mulf %187, %186 : vector<2x32xf32>
    %cst_86 = arith.constant 5.000000e-01 : f32
    %189 = vector.broadcast %cst_86 : f32 to vector<2x32xf32>
    %190 = arith.addf %188, %189 : vector<2x32xf32>
    %cst_87 = arith.constant 0.000000e+00 : f32
    %cst_88 = arith.constant 1.000000e+00 : f32
    %191 = vector.broadcast %cst_87 : f32 to vector<2x32xf32>
    %192 = arith.maximumf %191, %190 : vector<2x32xf32>
    %193 = vector.broadcast %cst_88 : f32 to vector<2x32xf32>
    %194 = arith.minimumf %193, %192 : vector<2x32xf32>
    %195 = arith.mulf %180, %194 : vector<2x32xf32>
    %c10_89 = arith.constant 10 : index
    %c0_90 = arith.constant 0 : index
    %196 = vector.load %arg10[%c10_89, %c0_90] : memref<32x64xf32, #tpu.memory_space<vmem>>, vector<2x32xf32>
    tpu.vector_store %arg10[%c10_89, %c0_90], %195 {strides = array<i32>} : memref<32x64xf32, #tpu.memory_space<vmem>>, vector<2x32xf32>,
    %c12 = arith.constant 12 : index
    %c0_91 = arith.constant 0 : index
    %197 = vector.load %arg9[%c12, %c0_91] : memref<32x256xf32, #tpu.memory_space<vmem>>, vector<2x128xf32>
    %198 = arith.truncf %195 : vector<2x32xf32> to vector<2x32xbf16>
    %cst_92 = arith.constant dense<0.000000e+00> : vector<2x128xf32>
    %199 = tpu.matmul %198, %10, %cst_92 {dimension_numbers = #tpu.dot_dimension_numbers<[1], [0], [0], [1], [0, 0, 1, 1], [], []>} : vector<2x32xbf16>, vector<32x128xbf16>, vector<2x128xf32> -> vector<2x128xf32>
    %200 = arith.addf %197, %199 : vector<2x128xf32>
    %cst_93 = arith.constant 2.500000e-01 : f32
    %201 = vector.broadcast %cst_93 : f32 to vector<2x128xf32>
    %202 = arith.mulf %201, %200 : vector<2x128xf32>
    %cst_94 = arith.constant 5.000000e-01 : f32
    %203 = vector.broadcast %cst_94 : f32 to vector<2x128xf32>
    %204 = arith.addf %202, %203 : vector<2x128xf32>
    %cst_95 = arith.constant 0.000000e+00 : f32
    %cst_96 = arith.constant 1.000000e+00 : f32
    %205 = vector.broadcast %cst_95 : f32 to vector<2x128xf32>
    %206 = arith.maximumf %205, %204 : vector<2x128xf32>
    %207 = vector.broadcast %cst_96 : f32 to vector<2x128xf32>
    %208 = arith.minimumf %207, %206 : vector<2x128xf32>
    %209 = vector.extract_strided_slice %208 {offsets = [0, 0], sizes = [2, 32], strides = [1, 1]} : vector<2x128xf32> to vector<2x32xf32>
    %210 = vector.extract_strided_slice %208 {offsets = [0, 32], sizes = [2, 32], strides = [1, 1]} : vector<2x128xf32> to vector<2x32xf32>
    %211 = vector.extract_strided_slice %208 {offsets = [0, 96], sizes = [2, 32], strides = [1, 1]} : vector<2x128xf32> to vector<2x32xf32>
    %212 = vector.extract_strided_slice %200 {offsets = [0, 64], sizes = [2, 32], strides = [1, 1]} : vector<2x128xf32> to vector<2x32xf32>
    %cst_97 = arith.constant 0.000000e+00 : f32
    %213 = vector.broadcast %cst_97 : f32 to vector<2x32xf32>
    %214 = arith.maximumf %212, %213 : vector<2x32xf32>
    %215 = arith.mulf %210, %186 : vector<2x32xf32>
    %216 = arith.mulf %209, %214 : vector<2x32xf32>
    %217 = arith.addf %215, %216 : vector<2x32xf32>
    %cst_98 = arith.constant 2.500000e-01 : f32
    %218 = vector.broadcast %cst_98 : f32 to vector<2x32xf32>
    %219 = arith.mulf %218, %217 : vector<2x32xf32>
    %cst_99 = arith.constant 5.000000e-01 : f32
    %220 = vector.broadcast %cst_99 : f32 to vector<2x32xf32>
    %221 = arith.addf %219, %220 : vector<2x32xf32>
    %cst_100 = arith.constant 0.000000e+00 : f32
    %cst_101 = arith.constant 1.000000e+00 : f32
    %222 = vector.broadcast %cst_100 : f32 to vector<2x32xf32>
    %223 = arith.maximumf %222, %221 : vector<2x32xf32>
    %224 = vector.broadcast %cst_101 : f32 to vector<2x32xf32>
    %225 = arith.minimumf %224, %223 : vector<2x32xf32>
    %226 = arith.mulf %211, %225 : vector<2x32xf32>
    %c12_102 = arith.constant 12 : index
    %c0_103 = arith.constant 0 : index
    %227 = vector.load %arg10[%c12_102, %c0_103] : memref<32x64xf32, #tpu.memory_space<vmem>>, vector<2x32xf32>
    tpu.vector_store %arg10[%c12_102, %c0_103], %226 {strides = array<i32>} : memref<32x64xf32, #tpu.memory_space<vmem>>, vector<2x32xf32>,
    %c14 = arith.constant 14 : index
    %c0_104 = arith.constant 0 : index
    %228 = vector.load %arg9[%c14, %c0_104] : memref<32x256xf32, #tpu.memory_space<vmem>>, vector<2x128xf32>
    %229 = arith.truncf %226 : vector<2x32xf32> to vector<2x32xbf16>
    %cst_105 = arith.constant dense<0.000000e+00> : vector<2x128xf32>
    %230 = tpu.matmul %229, %10, %cst_105 {dimension_numbers = #tpu.dot_dimension_numbers<[1], [0], [0], [1], [0, 0, 1, 1], [], []>} : vector<2x32xbf16>, vector<32x128xbf16>, vector<2x128xf32> -> vector<2x128xf32>
    %231 = arith.addf %228, %230 : vector<2x128xf32>
    %cst_106 = arith.constant 2.500000e-01 : f32
    %232 = vector.broadcast %cst_106 : f32 to vector<2x128xf32>
    %233 = arith.mulf %232, %231 : vector<2x128xf32>
    %cst_107 = arith.constant 5.000000e-01 : f32
    %234 = vector.broadcast %cst_107 : f32 to vector<2x128xf32>
    %235 = arith.addf %233, %234 : vector<2x128xf32>
    %cst_108 = arith.constant 0.000000e+00 : f32
    %cst_109 = arith.constant 1.000000e+00 : f32
    %236 = vector.broadcast %cst_108 : f32 to vector<2x128xf32>
    %237 = arith.maximumf %236, %235 : vector<2x128xf32>
    %238 = vector.broadcast %cst_109 : f32 to vector<2x128xf32>
    %239 = arith.minimumf %238, %237 : vector<2x128xf32>
    %240 = vector.extract_strided_slice %239 {offsets = [0, 0], sizes = [2, 32], strides = [1, 1]} : vector<2x128xf32> to vector<2x32xf32>
    %241 = vector.extract_strided_slice %239 {offsets = [0, 32], sizes = [2, 32], strides = [1, 1]} : vector<2x128xf32> to vector<2x32xf32>
    %242 = vector.extract_strided_slice %239 {offsets = [0, 96], sizes = [2, 32], strides = [1, 1]} : vector<2x128xf32> to vector<2x32xf32>
    %243 = vector.extract_strided_slice %231 {offsets = [0, 64], sizes = [2, 32], strides = [1, 1]} : vector<2x128xf32> to vector<2x32xf32>
    %cst_110 = arith.constant 0.000000e+00 : f32
    %244 = vector.broadcast %cst_110 : f32 to vector<2x32xf32>
    %245 = arith.maximumf %243, %244 : vector<2x32xf32>
    %246 = arith.mulf %241, %217 : vector<2x32xf32>
    %247 = arith.mulf %240, %245 : vector<2x32xf32>
    %248 = arith.addf %246, %247 : vector<2x32xf32>
    %cst_111 = arith.constant 2.500000e-01 : f32
    %249 = vector.broadcast %cst_111 : f32 to vector<2x32xf32>
    %250 = arith.mulf %249, %248 : vector<2x32xf32>
    %cst_112 = arith.constant 5.000000e-01 : f32
    %251 = vector.broadcast %cst_112 : f32 to vector<2x32xf32>
    %252 = arith.addf %250, %251 : vector<2x32xf32>
    %cst_113 = arith.constant 0.000000e+00 : f32
    %cst_114 = arith.constant 1.000000e+00 : f32
    %253 = vector.broadcast %cst_113 : f32 to vector<2x32xf32>
    %254 = arith.maximumf %253, %252 : vector<2x32xf32>
    %255 = vector.broadcast %cst_114 : f32 to vector<2x32xf32>
    %256 = arith.minimumf %255, %254 : vector<2x32xf32>
    %257 = arith.mulf %242, %256 : vector<2x32xf32>
    %c14_115 = arith.constant 14 : index
    %c0_116 = arith.constant 0 : index
    %258 = vector.load %arg10[%c14_115, %c0_116] : memref<32x64xf32, #tpu.memory_space<vmem>>, vector<2x32xf32>
    tpu.vector_store %arg10[%c14_115, %c0_116], %257 {strides = array<i32>} : memref<32x64xf32, #tpu.memory_space<vmem>>, vector<2x32xf32>,
    %c16 = arith.constant 16 : index
    %c0_117 = arith.constant 0 : index
    %259 = vector.load %arg9[%c16, %c0_117] : memref<32x256xf32, #tpu.memory_space<vmem>>, vector<2x128xf32>
    %260 = arith.truncf %257 : vector<2x32xf32> to vector<2x32xbf16>
    %cst_118 = arith.constant dense<0.000000e+00> : vector<2x128xf32>
    %261 = tpu.matmul %260, %10, %cst_118 {dimension_numbers = #tpu.dot_dimension_numbers<[1], [0], [0], [1], [0, 0, 1, 1], [], []>} : vector<2x32xbf16>, vector<32x128xbf16>, vector<2x128xf32> -> vector<2x128xf32>
    %262 = arith.addf %259, %261 : vector<2x128xf32>
    %cst_119 = arith.constant 2.500000e-01 : f32
    %263 = vector.broadcast %cst_119 : f32 to vector<2x128xf32>
    %264 = arith.mulf %263, %262 : vector<2x128xf32>
    %cst_120 = arith.constant 5.000000e-01 : f32
    %265 = vector.broadcast %cst_120 : f32 to vector<2x128xf32>
    %266 = arith.addf %264, %265 : vector<2x128xf32>
    %cst_121 = arith.constant 0.000000e+00 : f32
    %cst_122 = arith.constant 1.000000e+00 : f32
    %267 = vector.broadcast %cst_121 : f32 to vector<2x128xf32>
    %268 = arith.maximumf %267, %266 : vector<2x128xf32>
    %269 = vector.broadcast %cst_122 : f32 to vector<2x128xf32>
    %270 = arith.minimumf %269, %268 : vector<2x128xf32>
    %271 = vector.extract_strided_slice %270 {offsets = [0, 0], sizes = [2, 32], strides = [1, 1]} : vector<2x128xf32> to vector<2x32xf32>
    %272 = vector.extract_strided_slice %270 {offsets = [0, 32], sizes = [2, 32], strides = [1, 1]} : vector<2x128xf32> to vector<2x32xf32>
    %273 = vector.extract_strided_slice %270 {offsets = [0, 96], sizes = [2, 32], strides = [1, 1]} : vector<2x128xf32> to vector<2x32xf32>
    %274 = vector.extract_strided_slice %262 {offsets = [0, 64], sizes = [2, 32], strides = [1, 1]} : vector<2x128xf32> to vector<2x32xf32>
    %cst_123 = arith.constant 0.000000e+00 : f32
    %275 = vector.broadcast %cst_123 : f32 to vector<2x32xf32>
    %276 = arith.maximumf %274, %275 : vector<2x32xf32>
    %277 = arith.mulf %272, %248 : vector<2x32xf32>
    %278 = arith.mulf %271, %276 : vector<2x32xf32>
    %279 = arith.addf %277, %278 : vector<2x32xf32>
    %cst_124 = arith.constant 2.500000e-01 : f32
    %280 = vector.broadcast %cst_124 : f32 to vector<2x32xf32>
    %281 = arith.mulf %280, %279 : vector<2x32xf32>
    %cst_125 = arith.constant 5.000000e-01 : f32
    %282 = vector.broadcast %cst_125 : f32 to vector<2x32xf32>
    %283 = arith.addf %281, %282 : vector<2x32xf32>
    %cst_126 = arith.constant 0.000000e+00 : f32
    %cst_127 = arith.constant 1.000000e+00 : f32
    %284 = vector.broadcast %cst_126 : f32 to vector<2x32xf32>
    %285 = arith.maximumf %284, %283 : vector<2x32xf32>
    %286 = vector.broadcast %cst_127 : f32 to vector<2x32xf32>
    %287 = arith.minimumf %286, %285 : vector<2x32xf32>
    %288 = arith.mulf %273, %287 : vector<2x32xf32>
    %c16_128 = arith.constant 16 : index
    %c0_129 = arith.constant 0 : index
    %289 = vector.load %arg10[%c16_128, %c0_129] : memref<32x64xf32, #tpu.memory_space<vmem>>, vector<2x32xf32>
    tpu.vector_store %arg10[%c16_128, %c0_129], %288 {strides = array<i32>} : memref<32x64xf32, #tpu.memory_space<vmem>>, vector<2x32xf32>,
    %c18 = arith.constant 18 : index
    %c0_130 = arith.constant 0 : index
    %290 = vector.load %arg9[%c18, %c0_130] : memref<32x256xf32, #tpu.memory_space<vmem>>, vector<2x128xf32>
    %291 = arith.truncf %288 : vector<2x32xf32> to vector<2x32xbf16>
    %cst_131 = arith.constant dense<0.000000e+00> : vector<2x128xf32>
    %292 = tpu.matmul %291, %10, %cst_131 {dimension_numbers = #tpu.dot_dimension_numbers<[1], [0], [0], [1], [0, 0, 1, 1], [], []>} : vector<2x32xbf16>, vector<32x128xbf16>, vector<2x128xf32> -> vector<2x128xf32>
    %293 = arith.addf %290, %292 : vector<2x128xf32>
    %cst_132 = arith.constant 2.500000e-01 : f32
    %294 = vector.broadcast %cst_132 : f32 to vector<2x128xf32>
    %295 = arith.mulf %294, %293 : vector<2x128xf32>
    %cst_133 = arith.constant 5.000000e-01 : f32
    %296 = vector.broadcast %cst_133 : f32 to vector<2x128xf32>
    %297 = arith.addf %295, %296 : vector<2x128xf32>
    %cst_134 = arith.constant 0.000000e+00 : f32
    %cst_135 = arith.constant 1.000000e+00 : f32
    %298 = vector.broadcast %cst_134 : f32 to vector<2x128xf32>
    %299 = arith.maximumf %298, %297 : vector<2x128xf32>
    %300 = vector.broadcast %cst_135 : f32 to vector<2x128xf32>
    %301 = arith.minimumf %300, %299 : vector<2x128xf32>
    %302 = vector.extract_strided_slice %301 {offsets = [0, 0], sizes = [2, 32], strides = [1, 1]} : vector<2x128xf32> to vector<2x32xf32>
    %303 = vector.extract_strided_slice %301 {offsets = [0, 32], sizes = [2, 32], strides = [1, 1]} : vector<2x128xf32> to vector<2x32xf32>
    %304 = vector.extract_strided_slice %301 {offsets = [0, 96], sizes = [2, 32], strides = [1, 1]} : vector<2x128xf32> to vector<2x32xf32>
    %305 = vector.extract_strided_slice %293 {offsets = [0, 64], sizes = [2, 32], strides = [1, 1]} : vector<2x128xf32> to vector<2x32xf32>
    %cst_136 = arith.constant 0.000000e+00 : f32
    %306 = vector.broadcast %cst_136 : f32 to vector<2x32xf32>
    %307 = arith.maximumf %305, %306 : vector<2x32xf32>
    %308 = arith.mulf %303, %279 : vector<2x32xf32>
    %309 = arith.mulf %302, %307 : vector<2x32xf32>
    %310 = arith.addf %308, %309 : vector<2x32xf32>
    %cst_137 = arith.constant 2.500000e-01 : f32
    %311 = vector.broadcast %cst_137 : f32 to vector<2x32xf32>
    %312 = arith.mulf %311, %310 : vector<2x32xf32>
    %cst_138 = arith.constant 5.000000e-01 : f32
    %313 = vector.broadcast %cst_138 : f32 to vector<2x32xf32>
    %314 = arith.addf %312, %313 : vector<2x32xf32>
    %cst_139 = arith.constant 0.000000e+00 : f32
    %cst_140 = arith.constant 1.000000e+00 : f32
    %315 = vector.broadcast %cst_139 : f32 to vector<2x32xf32>
    %316 = arith.maximumf %315, %314 : vector<2x32xf32>
    %317 = vector.broadcast %cst_140 : f32 to vector<2x32xf32>
    %318 = arith.minimumf %317, %316 : vector<2x32xf32>
    %319 = arith.mulf %304, %318 : vector<2x32xf32>
    %c18_141 = arith.constant 18 : index
    %c0_142 = arith.constant 0 : index
    %320 = vector.load %arg10[%c18_141, %c0_142] : memref<32x64xf32, #tpu.memory_space<vmem>>, vector<2x32xf32>
    tpu.vector_store %arg10[%c18_141, %c0_142], %319 {strides = array<i32>} : memref<32x64xf32, #tpu.memory_space<vmem>>, vector<2x32xf32>,
    %c20 = arith.constant 20 : index
    %c0_143 = arith.constant 0 : index
    %321 = vector.load %arg9[%c20, %c0_143] : memref<32x256xf32, #tpu.memory_space<vmem>>, vector<2x128xf32>
    %322 = arith.truncf %319 : vector<2x32xf32> to vector<2x32xbf16>
    %cst_144 = arith.constant dense<0.000000e+00> : vector<2x128xf32>
    %323 = tpu.matmul %322, %10, %cst_144 {dimension_numbers = #tpu.dot_dimension_numbers<[1], [0], [0], [1], [0, 0, 1, 1], [], []>} : vector<2x32xbf16>, vector<32x128xbf16>, vector<2x128xf32> -> vector<2x128xf32>
    %324 = arith.addf %321, %323 : vector<2x128xf32>
    %cst_145 = arith.constant 2.500000e-01 : f32
    %325 = vector.broadcast %cst_145 : f32 to vector<2x128xf32>
    %326 = arith.mulf %325, %324 : vector<2x128xf32>
    %cst_146 = arith.constant 5.000000e-01 : f32
    %327 = vector.broadcast %cst_146 : f32 to vector<2x128xf32>
    %328 = arith.addf %326, %327 : vector<2x128xf32>
    %cst_147 = arith.constant 0.000000e+00 : f32
    %cst_148 = arith.constant 1.000000e+00 : f32
    %329 = vector.broadcast %cst_147 : f32 to vector<2x128xf32>
    %330 = arith.maximumf %329, %328 : vector<2x128xf32>
    %331 = vector.broadcast %cst_148 : f32 to vector<2x128xf32>
    %332 = arith.minimumf %331, %330 : vector<2x128xf32>
    %333 = vector.extract_strided_slice %332 {offsets = [0, 0], sizes = [2, 32], strides = [1, 1]} : vector<2x128xf32> to vector<2x32xf32>
    %334 = vector.extract_strided_slice %332 {offsets = [0, 32], sizes = [2, 32], strides = [1, 1]} : vector<2x128xf32> to vector<2x32xf32>
    %335 = vector.extract_strided_slice %332 {offsets = [0, 96], sizes = [2, 32], strides = [1, 1]} : vector<2x128xf32> to vector<2x32xf32>
    %336 = vector.extract_strided_slice %324 {offsets = [0, 64], sizes = [2, 32], strides = [1, 1]} : vector<2x128xf32> to vector<2x32xf32>
    %cst_149 = arith.constant 0.000000e+00 : f32
    %337 = vector.broadcast %cst_149 : f32 to vector<2x32xf32>
    %338 = arith.maximumf %336, %337 : vector<2x32xf32>
    %339 = arith.mulf %334, %310 : vector<2x32xf32>
    %340 = arith.mulf %333, %338 : vector<2x32xf32>
    %341 = arith.addf %339, %340 : vector<2x32xf32>
    %cst_150 = arith.constant 2.500000e-01 : f32
    %342 = vector.broadcast %cst_150 : f32 to vector<2x32xf32>
    %343 = arith.mulf %342, %341 : vector<2x32xf32>
    %cst_151 = arith.constant 5.000000e-01 : f32
    %344 = vector.broadcast %cst_151 : f32 to vector<2x32xf32>
    %345 = arith.addf %343, %344 : vector<2x32xf32>
    %cst_152 = arith.constant 0.000000e+00 : f32
    %cst_153 = arith.constant 1.000000e+00 : f32
    %346 = vector.broadcast %cst_152 : f32 to vector<2x32xf32>
    %347 = arith.maximumf %346, %345 : vector<2x32xf32>
    %348 = vector.broadcast %cst_153 : f32 to vector<2x32xf32>
    %349 = arith.minimumf %348, %347 : vector<2x32xf32>
    %350 = arith.mulf %335, %349 : vector<2x32xf32>
    %c20_154 = arith.constant 20 : index
    %c0_155 = arith.constant 0 : index
    %351 = vector.load %arg10[%c20_154, %c0_155] : memref<32x64xf32, #tpu.memory_space<vmem>>, vector<2x32xf32>
    tpu.vector_store %arg10[%c20_154, %c0_155], %350 {strides = array<i32>} : memref<32x64xf32, #tpu.memory_space<vmem>>, vector<2x32xf32>,
    %c22 = arith.constant 22 : index
    %c0_156 = arith.constant 0 : index
    %352 = vector.load %arg9[%c22, %c0_156] : memref<32x256xf32, #tpu.memory_space<vmem>>, vector<2x128xf32>
    %353 = arith.truncf %350 : vector<2x32xf32> to vector<2x32xbf16>
    %cst_157 = arith.constant dense<0.000000e+00> : vector<2x128xf32>
    %354 = tpu.matmul %353, %10, %cst_157 {dimension_numbers = #tpu.dot_dimension_numbers<[1], [0], [0], [1], [0, 0, 1, 1], [], []>} : vector<2x32xbf16>, vector<32x128xbf16>, vector<2x128xf32> -> vector<2x128xf32>
    %355 = arith.addf %352, %354 : vector<2x128xf32>
    %cst_158 = arith.constant 2.500000e-01 : f32
    %356 = vector.broadcast %cst_158 : f32 to vector<2x128xf32>
    %357 = arith.mulf %356, %355 : vector<2x128xf32>
    %cst_159 = arith.constant 5.000000e-01 : f32
    %358 = vector.broadcast %cst_159 : f32 to vector<2x128xf32>
    %359 = arith.addf %357, %358 : vector<2x128xf32>
    %cst_160 = arith.constant 0.000000e+00 : f32
    %cst_161 = arith.constant 1.000000e+00 : f32
    %360 = vector.broadcast %cst_160 : f32 to vector<2x128xf32>
    %361 = arith.maximumf %360, %359 : vector<2x128xf32>
    %362 = vector.broadcast %cst_161 : f32 to vector<2x128xf32>
    %363 = arith.minimumf %362, %361 : vector<2x128xf32>
    %364 = vector.extract_strided_slice %363 {offsets = [0, 0], sizes = [2, 32], strides = [1, 1]} : vector<2x128xf32> to vector<2x32xf32>
    %365 = vector.extract_strided_slice %363 {offsets = [0, 32], sizes = [2, 32], strides = [1, 1]} : vector<2x128xf32> to vector<2x32xf32>
    %366 = vector.extract_strided_slice %363 {offsets = [0, 96], sizes = [2, 32], strides = [1, 1]} : vector<2x128xf32> to vector<2x32xf32>
    %367 = vector.extract_strided_slice %355 {offsets = [0, 64], sizes = [2, 32], strides = [1, 1]} : vector<2x128xf32> to vector<2x32xf32>
    %cst_162 = arith.constant 0.000000e+00 : f32
    %368 = vector.broadcast %cst_162 : f32 to vector<2x32xf32>
    %369 = arith.maximumf %367, %368 : vector<2x32xf32>
    %370 = arith.mulf %365, %341 : vector<2x32xf32>
    %371 = arith.mulf %364, %369 : vector<2x32xf32>
    %372 = arith.addf %370, %371 : vector<2x32xf32>
    %cst_163 = arith.constant 2.500000e-01 : f32
    %373 = vector.broadcast %cst_163 : f32 to vector<2x32xf32>
    %374 = arith.mulf %373, %372 : vector<2x32xf32>
    %cst_164 = arith.constant 5.000000e-01 : f32
    %375 = vector.broadcast %cst_164 : f32 to vector<2x32xf32>
    %376 = arith.addf %374, %375 : vector<2x32xf32>
    %cst_165 = arith.constant 0.000000e+00 : f32
    %cst_166 = arith.constant 1.000000e+00 : f32
    %377 = vector.broadcast %cst_165 : f32 to vector<2x32xf32>
    %378 = arith.maximumf %377, %376 : vector<2x32xf32>
    %379 = vector.broadcast %cst_166 : f32 to vector<2x32xf32>
    %380 = arith.minimumf %379, %378 : vector<2x32xf32>
    %381 = arith.mulf %366, %380 : vector<2x32xf32>
    %c22_167 = arith.constant 22 : index
    %c0_168 = arith.constant 0 : index
    %382 = vector.load %arg10[%c22_167, %c0_168] : memref<32x64xf32, #tpu.memory_space<vmem>>, vector<2x32xf32>
    tpu.vector_store %arg10[%c22_167, %c0_168], %381 {strides = array<i32>} : memref<32x64xf32, #tpu.memory_space<vmem>>, vector<2x32xf32>,
    %c24 = arith.constant 24 : index
    %c0_169 = arith.constant 0 : index
    %383 = vector.load %arg9[%c24, %c0_169] : memref<32x256xf32, #tpu.memory_space<vmem>>, vector<2x128xf32>
    %384 = arith.truncf %381 : vector<2x32xf32> to vector<2x32xbf16>
    %cst_170 = arith.constant dense<0.000000e+00> : vector<2x128xf32>
    %385 = tpu.matmul %384, %10, %cst_170 {dimension_numbers = #tpu.dot_dimension_numbers<[1], [0], [0], [1], [0, 0, 1, 1], [], []>} : vector<2x32xbf16>, vector<32x128xbf16>, vector<2x128xf32> -> vector<2x128xf32>
    %386 = arith.addf %383, %385 : vector<2x128xf32>
    %cst_171 = arith.constant 2.500000e-01 : f32
    %387 = vector.broadcast %cst_171 : f32 to vector<2x128xf32>
    %388 = arith.mulf %387, %386 : vector<2x128xf32>
    %cst_172 = arith.constant 5.000000e-01 : f32
    %389 = vector.broadcast %cst_172 : f32 to vector<2x128xf32>
    %390 = arith.addf %388, %389 : vector<2x128xf32>
    %cst_173 = arith.constant 0.000000e+00 : f32
    %cst_174 = arith.constant 1.000000e+00 : f32
    %391 = vector.broadcast %cst_173 : f32 to vector<2x128xf32>
    %392 = arith.maximumf %391, %390 : vector<2x128xf32>
    %393 = vector.broadcast %cst_174 : f32 to vector<2x128xf32>
    %394 = arith.minimumf %393, %392 : vector<2x128xf32>
    %395 = vector.extract_strided_slice %394 {offsets = [0, 0], sizes = [2, 32], strides = [1, 1]} : vector<2x128xf32> to vector<2x32xf32>
    %396 = vector.extract_strided_slice %394 {offsets = [0, 32], sizes = [2, 32], strides = [1, 1]} : vector<2x128xf32> to vector<2x32xf32>
    %397 = vector.extract_strided_slice %394 {offsets = [0, 96], sizes = [2, 32], strides = [1, 1]} : vector<2x128xf32> to vector<2x32xf32>
    %398 = vector.extract_strided_slice %386 {offsets = [0, 64], sizes = [2, 32], strides = [1, 1]} : vector<2x128xf32> to vector<2x32xf32>
    %cst_175 = arith.constant 0.000000e+00 : f32
    %399 = vector.broadcast %cst_175 : f32 to vector<2x32xf32>
    %400 = arith.maximumf %398, %399 : vector<2x32xf32>
    %401 = arith.mulf %396, %372 : vector<2x32xf32>
    %402 = arith.mulf %395, %400 : vector<2x32xf32>
    %403 = arith.addf %401, %402 : vector<2x32xf32>
    %cst_176 = arith.constant 2.500000e-01 : f32
    %404 = vector.broadcast %cst_176 : f32 to vector<2x32xf32>
    %405 = arith.mulf %404, %403 : vector<2x32xf32>
    %cst_177 = arith.constant 5.000000e-01 : f32
    %406 = vector.broadcast %cst_177 : f32 to vector<2x32xf32>
    %407 = arith.addf %405, %406 : vector<2x32xf32>
    %cst_178 = arith.constant 0.000000e+00 : f32
    %cst_179 = arith.constant 1.000000e+00 : f32
    %408 = vector.broadcast %cst_178 : f32 to vector<2x32xf32>
    %409 = arith.maximumf %408, %407 : vector<2x32xf32>
    %410 = vector.broadcast %cst_179 : f32 to vector<2x32xf32>
    %411 = arith.minimumf %410, %409 : vector<2x32xf32>
    %412 = arith.mulf %397, %411 : vector<2x32xf32>
    %c24_180 = arith.constant 24 : index
    %c0_181 = arith.constant 0 : index
    %413 = vector.load %arg10[%c24_180, %c0_181] : memref<32x64xf32, #tpu.memory_space<vmem>>, vector<2x32xf32>
    tpu.vector_store %arg10[%c24_180, %c0_181], %412 {strides = array<i32>} : memref<32x64xf32, #tpu.memory_space<vmem>>, vector<2x32xf32>,
    %c26 = arith.constant 26 : index
    %c0_182 = arith.constant 0 : index
    %414 = vector.load %arg9[%c26, %c0_182] : memref<32x256xf32, #tpu.memory_space<vmem>>, vector<2x128xf32>
    %415 = arith.truncf %412 : vector<2x32xf32> to vector<2x32xbf16>
    %cst_183 = arith.constant dense<0.000000e+00> : vector<2x128xf32>
    %416 = tpu.matmul %415, %10, %cst_183 {dimension_numbers = #tpu.dot_dimension_numbers<[1], [0], [0], [1], [0, 0, 1, 1], [], []>} : vector<2x32xbf16>, vector<32x128xbf16>, vector<2x128xf32> -> vector<2x128xf32>
    %417 = arith.addf %414, %416 : vector<2x128xf32>
    %cst_184 = arith.constant 2.500000e-01 : f32
    %418 = vector.broadcast %cst_184 : f32 to vector<2x128xf32>
    %419 = arith.mulf %418, %417 : vector<2x128xf32>
    %cst_185 = arith.constant 5.000000e-01 : f32
    %420 = vector.broadcast %cst_185 : f32 to vector<2x128xf32>
    %421 = arith.addf %419, %420 : vector<2x128xf32>
    %cst_186 = arith.constant 0.000000e+00 : f32
    %cst_187 = arith.constant 1.000000e+00 : f32
    %422 = vector.broadcast %cst_186 : f32 to vector<2x128xf32>
    %423 = arith.maximumf %422, %421 : vector<2x128xf32>
    %424 = vector.broadcast %cst_187 : f32 to vector<2x128xf32>
    %425 = arith.minimumf %424, %423 : vector<2x128xf32>
    %426 = vector.extract_strided_slice %425 {offsets = [0, 0], sizes = [2, 32], strides = [1, 1]} : vector<2x128xf32> to vector<2x32xf32>
    %427 = vector.extract_strided_slice %425 {offsets = [0, 32], sizes = [2, 32], strides = [1, 1]} : vector<2x128xf32> to vector<2x32xf32>
    %428 = vector.extract_strided_slice %425 {offsets = [0, 96], sizes = [2, 32], strides = [1, 1]} : vector<2x128xf32> to vector<2x32xf32>
    %429 = vector.extract_strided_slice %417 {offsets = [0, 64], sizes = [2, 32], strides = [1, 1]} : vector<2x128xf32> to vector<2x32xf32>
    %cst_188 = arith.constant 0.000000e+00 : f32
    %430 = vector.broadcast %cst_188 : f32 to vector<2x32xf32>
    %431 = arith.maximumf %429, %430 : vector<2x32xf32>
    %432 = arith.mulf %427, %403 : vector<2x32xf32>
    %433 = arith.mulf %426, %431 : vector<2x32xf32>
    %434 = arith.addf %432, %433 : vector<2x32xf32>
    %cst_189 = arith.constant 2.500000e-01 : f32
    %435 = vector.broadcast %cst_189 : f32 to vector<2x32xf32>
    %436 = arith.mulf %435, %434 : vector<2x32xf32>
    %cst_190 = arith.constant 5.000000e-01 : f32
    %437 = vector.broadcast %cst_190 : f32 to vector<2x32xf32>
    %438 = arith.addf %436, %437 : vector<2x32xf32>
    %cst_191 = arith.constant 0.000000e+00 : f32
    %cst_192 = arith.constant 1.000000e+00 : f32
    %439 = vector.broadcast %cst_191 : f32 to vector<2x32xf32>
    %440 = arith.maximumf %439, %438 : vector<2x32xf32>
    %441 = vector.broadcast %cst_192 : f32 to vector<2x32xf32>
    %442 = arith.minimumf %441, %440 : vector<2x32xf32>
    %443 = arith.mulf %428, %442 : vector<2x32xf32>
    %c26_193 = arith.constant 26 : index
    %c0_194 = arith.constant 0 : index
    %444 = vector.load %arg10[%c26_193, %c0_194] : memref<32x64xf32, #tpu.memory_space<vmem>>, vector<2x32xf32>
    tpu.vector_store %arg10[%c26_193, %c0_194], %443 {strides = array<i32>} : memref<32x64xf32, #tpu.memory_space<vmem>>, vector<2x32xf32>,
    %c28 = arith.constant 28 : index
    %c0_195 = arith.constant 0 : index
    %445 = vector.load %arg9[%c28, %c0_195] : memref<32x256xf32, #tpu.memory_space<vmem>>, vector<2x128xf32>
    %446 = arith.truncf %443 : vector<2x32xf32> to vector<2x32xbf16>
    %cst_196 = arith.constant dense<0.000000e+00> : vector<2x128xf32>
    %447 = tpu.matmul %446, %10, %cst_196 {dimension_numbers = #tpu.dot_dimension_numbers<[1], [0], [0], [1], [0, 0, 1, 1], [], []>} : vector<2x32xbf16>, vector<32x128xbf16>, vector<2x128xf32> -> vector<2x128xf32>
    %448 = arith.addf %445, %447 : vector<2x128xf32>
    %cst_197 = arith.constant 2.500000e-01 : f32
    %449 = vector.broadcast %cst_197 : f32 to vector<2x128xf32>
    %450 = arith.mulf %449, %448 : vector<2x128xf32>
    %cst_198 = arith.constant 5.000000e-01 : f32
    %451 = vector.broadcast %cst_198 : f32 to vector<2x128xf32>
    %452 = arith.addf %450, %451 : vector<2x128xf32>
    %cst_199 = arith.constant 0.000000e+00 : f32
    %cst_200 = arith.constant 1.000000e+00 : f32
    %453 = vector.broadcast %cst_199 : f32 to vector<2x128xf32>
    %454 = arith.maximumf %453, %452 : vector<2x128xf32>
    %455 = vector.broadcast %cst_200 : f32 to vector<2x128xf32>
    %456 = arith.minimumf %455, %454 : vector<2x128xf32>
    %457 = vector.extract_strided_slice %456 {offsets = [0, 0], sizes = [2, 32], strides = [1, 1]} : vector<2x128xf32> to vector<2x32xf32>
    %458 = vector.extract_strided_slice %456 {offsets = [0, 32], sizes = [2, 32], strides = [1, 1]} : vector<2x128xf32> to vector<2x32xf32>
    %459 = vector.extract_strided_slice %456 {offsets = [0, 96], sizes = [2, 32], strides = [1, 1]} : vector<2x128xf32> to vector<2x32xf32>
    %460 = vector.extract_strided_slice %448 {offsets = [0, 64], sizes = [2, 32], strides = [1, 1]} : vector<2x128xf32> to vector<2x32xf32>
    %cst_201 = arith.constant 0.000000e+00 : f32
    %461 = vector.broadcast %cst_201 : f32 to vector<2x32xf32>
    %462 = arith.maximumf %460, %461 : vector<2x32xf32>
    %463 = arith.mulf %458, %434 : vector<2x32xf32>
    %464 = arith.mulf %457, %462 : vector<2x32xf32>
    %465 = arith.addf %463, %464 : vector<2x32xf32>
    %cst_202 = arith.constant 2.500000e-01 : f32
    %466 = vector.broadcast %cst_202 : f32 to vector<2x32xf32>
    %467 = arith.mulf %466, %465 : vector<2x32xf32>
    %cst_203 = arith.constant 5.000000e-01 : f32
    %468 = vector.broadcast %cst_203 : f32 to vector<2x32xf32>
    %469 = arith.addf %467, %468 : vector<2x32xf32>
    %cst_204 = arith.constant 0.000000e+00 : f32
    %cst_205 = arith.constant 1.000000e+00 : f32
    %470 = vector.broadcast %cst_204 : f32 to vector<2x32xf32>
    %471 = arith.maximumf %470, %469 : vector<2x32xf32>
    %472 = vector.broadcast %cst_205 : f32 to vector<2x32xf32>
    %473 = arith.minimumf %472, %471 : vector<2x32xf32>
    %474 = arith.mulf %459, %473 : vector<2x32xf32>
    %c28_206 = arith.constant 28 : index
    %c0_207 = arith.constant 0 : index
    %475 = vector.load %arg10[%c28_206, %c0_207] : memref<32x64xf32, #tpu.memory_space<vmem>>, vector<2x32xf32>
    tpu.vector_store %arg10[%c28_206, %c0_207], %474 {strides = array<i32>} : memref<32x64xf32, #tpu.memory_space<vmem>>, vector<2x32xf32>,
    %c30 = arith.constant 30 : index
    %c0_208 = arith.constant 0 : index
    %476 = vector.load %arg9[%c30, %c0_208] : memref<32x256xf32, #tpu.memory_space<vmem>>, vector<2x128xf32>
    %477 = arith.truncf %474 : vector<2x32xf32> to vector<2x32xbf16>
    %cst_209 = arith.constant dense<0.000000e+00> : vector<2x128xf32>
    %478 = tpu.matmul %477, %10, %cst_209 {dimension_numbers = #tpu.dot_dimension_numbers<[1], [0], [0], [1], [0, 0, 1, 1], [], []>} : vector<2x32xbf16>, vector<32x128xbf16>, vector<2x128xf32> -> vector<2x128xf32>
    %479 = arith.addf %476, %478 : vector<2x128xf32>
    %cst_210 = arith.constant 2.500000e-01 : f32
    %480 = vector.broadcast %cst_210 : f32 to vector<2x128xf32>
    %481 = arith.mulf %480, %479 : vector<2x128xf32>
    %cst_211 = arith.constant 5.000000e-01 : f32
    %482 = vector.broadcast %cst_211 : f32 to vector<2x128xf32>
    %483 = arith.addf %481, %482 : vector<2x128xf32>
    %cst_212 = arith.constant 0.000000e+00 : f32
    %cst_213 = arith.constant 1.000000e+00 : f32
    %484 = vector.broadcast %cst_212 : f32 to vector<2x128xf32>
    %485 = arith.maximumf %484, %483 : vector<2x128xf32>
    %486 = vector.broadcast %cst_213 : f32 to vector<2x128xf32>
    %487 = arith.minimumf %486, %485 : vector<2x128xf32>
    %488 = vector.extract_strided_slice %487 {offsets = [0, 0], sizes = [2, 32], strides = [1, 1]} : vector<2x128xf32> to vector<2x32xf32>
    %489 = vector.extract_strided_slice %487 {offsets = [0, 32], sizes = [2, 32], strides = [1, 1]} : vector<2x128xf32> to vector<2x32xf32>
    %490 = vector.extract_strided_slice %487 {offsets = [0, 96], sizes = [2, 32], strides = [1, 1]} : vector<2x128xf32> to vector<2x32xf32>
    %491 = vector.extract_strided_slice %479 {offsets = [0, 64], sizes = [2, 32], strides = [1, 1]} : vector<2x128xf32> to vector<2x32xf32>
    %cst_214 = arith.constant 0.000000e+00 : f32
    %492 = vector.broadcast %cst_214 : f32 to vector<2x32xf32>
    %493 = arith.maximumf %491, %492 : vector<2x32xf32>
    %494 = arith.mulf %489, %465 : vector<2x32xf32>
    %495 = arith.mulf %488, %493 : vector<2x32xf32>
    %496 = arith.addf %494, %495 : vector<2x32xf32>
    %cst_215 = arith.constant 2.500000e-01 : f32
    %497 = vector.broadcast %cst_215 : f32 to vector<2x32xf32>
    %498 = arith.mulf %497, %496 : vector<2x32xf32>
    %cst_216 = arith.constant 5.000000e-01 : f32
    %499 = vector.broadcast %cst_216 : f32 to vector<2x32xf32>
    %500 = arith.addf %498, %499 : vector<2x32xf32>
    %cst_217 = arith.constant 0.000000e+00 : f32
    %cst_218 = arith.constant 1.000000e+00 : f32
    %501 = vector.broadcast %cst_217 : f32 to vector<2x32xf32>
    %502 = arith.maximumf %501, %500 : vector<2x32xf32>
    %503 = vector.broadcast %cst_218 : f32 to vector<2x32xf32>
    %504 = arith.minimumf %503, %502 : vector<2x32xf32>
    %505 = arith.mulf %490, %504 : vector<2x32xf32>
    %c30_219 = arith.constant 30 : index
    %c0_220 = arith.constant 0 : index
    %506 = vector.load %arg10[%c30_219, %c0_220] : memref<32x64xf32, #tpu.memory_space<vmem>>, vector<2x32xf32>
    tpu.vector_store %arg10[%c30_219, %c0_220], %505 {strides = array<i32>} : memref<32x64xf32, #tpu.memory_space<vmem>>, vector<2x32xf32>,
    %c1 = arith.constant 1 : index
    %c0_221 = arith.constant 0 : index
    %c0_222 = arith.constant 0 : index
    %507 = vector.load %arg5[%c1, %c0_221, %c0_222] : memref<4x32x128xbf16, #tpu.memory_space<vmem>>, vector<1x32x128xbf16>
    %508 = vector.shape_cast %507 : vector<1x32x128xbf16> to vector<32x128xbf16>
    %c30_223 = arith.constant 30 : index
    %c128 = arith.constant 128 : index
    %509 = vector.load %arg9[%c30_223, %c128] : memref<32x256xf32, #tpu.memory_space<vmem>>, vector<2x128xf32>
    %510 = arith.truncf %505 : vector<2x32xf32> to vector<2x32xbf16>
    %cst_224 = arith.constant dense<0.000000e+00> : vector<2x128xf32>
    %511 = tpu.matmul %510, %508, %cst_224 {dimension_numbers = #tpu.dot_dimension_numbers<[1], [0], [0], [1], [0, 0, 1, 1], [], []>} : vector<2x32xbf16>, vector<32x128xbf16>, vector<2x128xf32> -> vector<2x128xf32>
    %512 = arith.addf %509, %511 : vector<2x128xf32>
    %cst_225 = arith.constant 2.500000e-01 : f32
    %513 = vector.broadcast %cst_225 : f32 to vector<2x128xf32>
    %514 = arith.mulf %513, %512 : vector<2x128xf32>
    %cst_226 = arith.constant 5.000000e-01 : f32
    %515 = vector.broadcast %cst_226 : f32 to vector<2x128xf32>
    %516 = arith.addf %514, %515 : vector<2x128xf32>
    %cst_227 = arith.constant 0.000000e+00 : f32
    %cst_228 = arith.constant 1.000000e+00 : f32
    %517 = vector.broadcast %cst_227 : f32 to vector<2x128xf32>
    %518 = arith.maximumf %517, %516 : vector<2x128xf32>
    %519 = vector.broadcast %cst_228 : f32 to vector<2x128xf32>
    %520 = arith.minimumf %519, %518 : vector<2x128xf32>
    %521 = vector.extract_strided_slice %520 {offsets = [0, 0], sizes = [2, 32], strides = [1, 1]} : vector<2x128xf32> to vector<2x32xf32>
    %522 = vector.extract_strided_slice %520 {offsets = [0, 32], sizes = [2, 32], strides = [1, 1]} : vector<2x128xf32> to vector<2x32xf32>
    %523 = vector.extract_strided_slice %520 {offsets = [0, 96], sizes = [2, 32], strides = [1, 1]} : vector<2x128xf32> to vector<2x32xf32>
    %524 = vector.extract_strided_slice %512 {offsets = [0, 64], sizes = [2, 32], strides = [1, 1]} : vector<2x128xf32> to vector<2x32xf32>
    %cst_229 = arith.constant 0.000000e+00 : f32
    %525 = vector.broadcast %cst_229 : f32 to vector<2x32xf32>
    %526 = arith.maximumf %524, %525 : vector<2x32xf32>
    %527 = arith.mulf %522, %496 : vector<2x32xf32>
    %528 = arith.mulf %521, %526 : vector<2x32xf32>
    %529 = arith.addf %527, %528 : vector<2x32xf32>
    %cst_230 = arith.constant 2.500000e-01 : f32
    %530 = vector.broadcast %cst_230 : f32 to vector<2x32xf32>
    %531 = arith.mulf %530, %529 : vector<2x32xf32>
    %cst_231 = arith.constant 5.000000e-01 : f32
    %532 = vector.broadcast %cst_231 : f32 to vector<2x32xf32>
    %533 = arith.addf %531, %532 : vector<2x32xf32>
    %cst_232 = arith.constant 0.000000e+00 : f32
    %cst_233 = arith.constant 1.000000e+00 : f32
    %534 = vector.broadcast %cst_232 : f32 to vector<2x32xf32>
    %535 = arith.maximumf %534, %533 : vector<2x32xf32>
    %536 = vector.broadcast %cst_233 : f32 to vector<2x32xf32>
    %537 = arith.minimumf %536, %535 : vector<2x32xf32>
    %538 = arith.mulf %523, %537 : vector<2x32xf32>
    %c30_234 = arith.constant 30 : index
    %c32 = arith.constant 32 : index
    %539 = vector.load %arg10[%c30_234, %c32] : memref<32x64xf32, #tpu.memory_space<vmem>>, vector<2x32xf32>
    tpu.vector_store %arg10[%c30_234, %c32], %538 {strides = array<i32>} : memref<32x64xf32, #tpu.memory_space<vmem>>, vector<2x32xf32>,
    %c28_235 = arith.constant 28 : index
    %c128_236 = arith.constant 128 : index
    %540 = vector.load %arg9[%c28_235, %c128_236] : memref<32x256xf32, #tpu.memory_space<vmem>>, vector<2x128xf32>
    %541 = arith.truncf %538 : vector<2x32xf32> to vector<2x32xbf16>
    %cst_237 = arith.constant dense<0.000000e+00> : vector<2x128xf32>
    %542 = tpu.matmul %541, %508, %cst_237 {dimension_numbers = #tpu.dot_dimension_numbers<[1], [0], [0], [1], [0, 0, 1, 1], [], []>} : vector<2x32xbf16>, vector<32x128xbf16>, vector<2x128xf32> -> vector<2x128xf32>
    %543 = arith.addf %540, %542 : vector<2x128xf32>
    %cst_238 = arith.constant 2.500000e-01 : f32
    %544 = vector.broadcast %cst_238 : f32 to vector<2x128xf32>
    %545 = arith.mulf %544, %543 : vector<2x128xf32>
    %cst_239 = arith.constant 5.000000e-01 : f32
    %546 = vector.broadcast %cst_239 : f32 to vector<2x128xf32>
    %547 = arith.addf %545, %546 : vector<2x128xf32>
    %cst_240 = arith.constant 0.000000e+00 : f32
    %cst_241 = arith.constant 1.000000e+00 : f32
    %548 = vector.broadcast %cst_240 : f32 to vector<2x128xf32>
    %549 = arith.maximumf %548, %547 : vector<2x128xf32>
    %550 = vector.broadcast %cst_241 : f32 to vector<2x128xf32>
    %551 = arith.minimumf %550, %549 : vector<2x128xf32>
    %552 = vector.extract_strided_slice %551 {offsets = [0, 0], sizes = [2, 32], strides = [1, 1]} : vector<2x128xf32> to vector<2x32xf32>
    %553 = vector.extract_strided_slice %551 {offsets = [0, 32], sizes = [2, 32], strides = [1, 1]} : vector<2x128xf32> to vector<2x32xf32>
    %554 = vector.extract_strided_slice %551 {offsets = [0, 96], sizes = [2, 32], strides = [1, 1]} : vector<2x128xf32> to vector<2x32xf32>
    %555 = vector.extract_strided_slice %543 {offsets = [0, 64], sizes = [2, 32], strides = [1, 1]} : vector<2x128xf32> to vector<2x32xf32>
    %cst_242 = arith.constant 0.000000e+00 : f32
    %556 = vector.broadcast %cst_242 : f32 to vector<2x32xf32>
    %557 = arith.maximumf %555, %556 : vector<2x32xf32>
    %558 = arith.mulf %553, %529 : vector<2x32xf32>
    %559 = arith.mulf %552, %557 : vector<2x32xf32>
    %560 = arith.addf %558, %559 : vector<2x32xf32>
    %cst_243 = arith.constant 2.500000e-01 : f32
    %561 = vector.broadcast %cst_243 : f32 to vector<2x32xf32>
    %562 = arith.mulf %561, %560 : vector<2x32xf32>
    %cst_244 = arith.constant 5.000000e-01 : f32
    %563 = vector.broadcast %cst_244 : f32 to vector<2x32xf32>
    %564 = arith.addf %562, %563 : vector<2x32xf32>
    %cst_245 = arith.constant 0.000000e+00 : f32
    %cst_246 = arith.constant 1.000000e+00 : f32
    %565 = vector.broadcast %cst_245 : f32 to vector<2x32xf32>
    %566 = arith.maximumf %565, %564 : vector<2x32xf32>
    %567 = vector.broadcast %cst_246 : f32 to vector<2x32xf32>
    %568 = arith.minimumf %567, %566 : vector<2x32xf32>
    %569 = arith.mulf %554, %568 : vector<2x32xf32>
    %c28_247 = arith.constant 28 : index
    %c32_248 = arith.constant 32 : index
    %570 = vector.load %arg10[%c28_247, %c32_248] : memref<32x64xf32, #tpu.memory_space<vmem>>, vector<2x32xf32>
    tpu.vector_store %arg10[%c28_247, %c32_248], %569 {strides = array<i32>} : memref<32x64xf32, #tpu.memory_space<vmem>>, vector<2x32xf32>,
    %c26_249 = arith.constant 26 : index
    %c128_250 = arith.constant 128 : index
    %571 = vector.load %arg9[%c26_249, %c128_250] : memref<32x256xf32, #tpu.memory_space<vmem>>, vector<2x128xf32>
    %572 = arith.truncf %569 : vector<2x32xf32> to vector<2x32xbf16>
    %cst_251 = arith.constant dense<0.000000e+00> : vector<2x128xf32>
    %573 = tpu.matmul %572, %508, %cst_251 {dimension_numbers = #tpu.dot_dimension_numbers<[1], [0], [0], [1], [0, 0, 1, 1], [], []>} : vector<2x32xbf16>, vector<32x128xbf16>, vector<2x128xf32> -> vector<2x128xf32>
    %574 = arith.addf %571, %573 : vector<2x128xf32>
    %cst_252 = arith.constant 2.500000e-01 : f32
    %575 = vector.broadcast %cst_252 : f32 to vector<2x128xf32>
    %576 = arith.mulf %575, %574 : vector<2x128xf32>
    %cst_253 = arith.constant 5.000000e-01 : f32
    %577 = vector.broadcast %cst_253 : f32 to vector<2x128xf32>
    %578 = arith.addf %576, %577 : vector<2x128xf32>
    %cst_254 = arith.constant 0.000000e+00 : f32
    %cst_255 = arith.constant 1.000000e+00 : f32
    %579 = vector.broadcast %cst_254 : f32 to vector<2x128xf32>
    %580 = arith.maximumf %579, %578 : vector<2x128xf32>
    %581 = vector.broadcast %cst_255 : f32 to vector<2x128xf32>
    %582 = arith.minimumf %581, %580 : vector<2x128xf32>
    %583 = vector.extract_strided_slice %582 {offsets = [0, 0], sizes = [2, 32], strides = [1, 1]} : vector<2x128xf32> to vector<2x32xf32>
    %584 = vector.extract_strided_slice %582 {offsets = [0, 32], sizes = [2, 32], strides = [1, 1]} : vector<2x128xf32> to vector<2x32xf32>
    %585 = vector.extract_strided_slice %582 {offsets = [0, 96], sizes = [2, 32], strides = [1, 1]} : vector<2x128xf32> to vector<2x32xf32>
    %586 = vector.extract_strided_slice %574 {offsets = [0, 64], sizes = [2, 32], strides = [1, 1]} : vector<2x128xf32> to vector<2x32xf32>
    %cst_256 = arith.constant 0.000000e+00 : f32
    %587 = vector.broadcast %cst_256 : f32 to vector<2x32xf32>
    %588 = arith.maximumf %586, %587 : vector<2x32xf32>
    %589 = arith.mulf %584, %560 : vector<2x32xf32>
    %590 = arith.mulf %583, %588 : vector<2x32xf32>
    %591 = arith.addf %589, %590 : vector<2x32xf32>
    %cst_257 = arith.constant 2.500000e-01 : f32
    %592 = vector.broadcast %cst_257 : f32 to vector<2x32xf32>
    %593 = arith.mulf %592, %591 : vector<2x32xf32>
    %cst_258 = arith.constant 5.000000e-01 : f32
    %594 = vector.broadcast %cst_258 : f32 to vector<2x32xf32>
    %595 = arith.addf %593, %594 : vector<2x32xf32>
    %cst_259 = arith.constant 0.000000e+00 : f32
    %cst_260 = arith.constant 1.000000e+00 : f32
    %596 = vector.broadcast %cst_259 : f32 to vector<2x32xf32>
    %597 = arith.maximumf %596, %595 : vector<2x32xf32>
    %598 = vector.broadcast %cst_260 : f32 to vector<2x32xf32>
    %599 = arith.minimumf %598, %597 : vector<2x32xf32>
    %600 = arith.mulf %585, %599 : vector<2x32xf32>
    %c26_261 = arith.constant 26 : index
    %c32_262 = arith.constant 32 : index
    %601 = vector.load %arg10[%c26_261, %c32_262] : memref<32x64xf32, #tpu.memory_space<vmem>>, vector<2x32xf32>
    tpu.vector_store %arg10[%c26_261, %c32_262], %600 {strides = array<i32>} : memref<32x64xf32, #tpu.memory_space<vmem>>, vector<2x32xf32>,
    %c24_263 = arith.constant 24 : index
    %c128_264 = arith.constant 128 : index
    %602 = vector.load %arg9[%c24_263, %c128_264] : memref<32x256xf32, #tpu.memory_space<vmem>>, vector<2x128xf32>
    %603 = arith.truncf %600 : vector<2x32xf32> to vector<2x32xbf16>
    %cst_265 = arith.constant dense<0.000000e+00> : vector<2x128xf32>
    %604 = tpu.matmul %603, %508, %cst_265 {dimension_numbers = #tpu.dot_dimension_numbers<[1], [0], [0], [1], [0, 0, 1, 1], [], []>} : vector<2x32xbf16>, vector<32x128xbf16>, vector<2x128xf32> -> vector<2x128xf32>
    %605 = arith.addf %602, %604 : vector<2x128xf32>
    %cst_266 = arith.constant 2.500000e-01 : f32
    %606 = vector.broadcast %cst_266 : f32 to vector<2x128xf32>
    %607 = arith.mulf %606, %605 : vector<2x128xf32>
    %cst_267 = arith.constant 5.000000e-01 : f32
    %608 = vector.broadcast %cst_267 : f32 to vector<2x128xf32>
    %609 = arith.addf %607, %608 : vector<2x128xf32>
    %cst_268 = arith.constant 0.000000e+00 : f32
    %cst_269 = arith.constant 1.000000e+00 : f32
    %610 = vector.broadcast %cst_268 : f32 to vector<2x128xf32>
    %611 = arith.maximumf %610, %609 : vector<2x128xf32>
    %612 = vector.broadcast %cst_269 : f32 to vector<2x128xf32>
    %613 = arith.minimumf %612, %611 : vector<2x128xf32>
    %614 = vector.extract_strided_slice %613 {offsets = [0, 0], sizes = [2, 32], strides = [1, 1]} : vector<2x128xf32> to vector<2x32xf32>
    %615 = vector.extract_strided_slice %613 {offsets = [0, 32], sizes = [2, 32], strides = [1, 1]} : vector<2x128xf32> to vector<2x32xf32>
    %616 = vector.extract_strided_slice %613 {offsets = [0, 96], sizes = [2, 32], strides = [1, 1]} : vector<2x128xf32> to vector<2x32xf32>
    %617 = vector.extract_strided_slice %605 {offsets = [0, 64], sizes = [2, 32], strides = [1, 1]} : vector<2x128xf32> to vector<2x32xf32>
    %cst_270 = arith.constant 0.000000e+00 : f32
    %618 = vector.broadcast %cst_270 : f32 to vector<2x32xf32>
    %619 = arith.maximumf %617, %618 : vector<2x32xf32>
    %620 = arith.mulf %615, %591 : vector<2x32xf32>
    %621 = arith.mulf %614, %619 : vector<2x32xf32>
    %622 = arith.addf %620, %621 : vector<2x32xf32>
    %cst_271 = arith.constant 2.500000e-01 : f32
    %623 = vector.broadcast %cst_271 : f32 to vector<2x32xf32>
    %624 = arith.mulf %623, %622 : vector<2x32xf32>
    %cst_272 = arith.constant 5.000000e-01 : f32
    %625 = vector.broadcast %cst_272 : f32 to vector<2x32xf32>
    %626 = arith.addf %624, %625 : vector<2x32xf32>
    %cst_273 = arith.constant 0.000000e+00 : f32
    %cst_274 = arith.constant 1.000000e+00 : f32
    %627 = vector.broadcast %cst_273 : f32 to vector<2x32xf32>
    %628 = arith.maximumf %627, %626 : vector<2x32xf32>
    %629 = vector.broadcast %cst_274 : f32 to vector<2x32xf32>
    %630 = arith.minimumf %629, %628 : vector<2x32xf32>
    %631 = arith.mulf %616, %630 : vector<2x32xf32>
    %c24_275 = arith.constant 24 : index
    %c32_276 = arith.constant 32 : index
    %632 = vector.load %arg10[%c24_275, %c32_276] : memref<32x64xf32, #tpu.memory_space<vmem>>, vector<2x32xf32>
    tpu.vector_store %arg10[%c24_275, %c32_276], %631 {strides = array<i32>} : memref<32x64xf32, #tpu.memory_space<vmem>>, vector<2x32xf32>,
    %c22_277 = arith.constant 22 : index
    %c128_278 = arith.constant 128 : index
    %633 = vector.load %arg9[%c22_277, %c128_278] : memref<32x256xf32, #tpu.memory_space<vmem>>, vector<2x128xf32>
    %634 = arith.truncf %631 : vector<2x32xf32> to vector<2x32xbf16>
    %cst_279 = arith.constant dense<0.000000e+00> : vector<2x128xf32>
    %635 = tpu.matmul %634, %508, %cst_279 {dimension_numbers = #tpu.dot_dimension_numbers<[1], [0], [0], [1], [0, 0, 1, 1], [], []>} : vector<2x32xbf16>, vector<32x128xbf16>, vector<2x128xf32> -> vector<2x128xf32>
    %636 = arith.addf %633, %635 : vector<2x128xf32>
    %cst_280 = arith.constant 2.500000e-01 : f32
    %637 = vector.broadcast %cst_280 : f32 to vector<2x128xf32>
    %638 = arith.mulf %637, %636 : vector<2x128xf32>
    %cst_281 = arith.constant 5.000000e-01 : f32
    %639 = vector.broadcast %cst_281 : f32 to vector<2x128xf32>
    %640 = arith.addf %638, %639 : vector<2x128xf32>
    %cst_282 = arith.constant 0.000000e+00 : f32
    %cst_283 = arith.constant 1.000000e+00 : f32
    %641 = vector.broadcast %cst_282 : f32 to vector<2x128xf32>
    %642 = arith.maximumf %641, %640 : vector<2x128xf32>
    %643 = vector.broadcast %cst_283 : f32 to vector<2x128xf32>
    %644 = arith.minimumf %643, %642 : vector<2x128xf32>
    %645 = vector.extract_strided_slice %644 {offsets = [0, 0], sizes = [2, 32], strides = [1, 1]} : vector<2x128xf32> to vector<2x32xf32>
    %646 = vector.extract_strided_slice %644 {offsets = [0, 32], sizes = [2, 32], strides = [1, 1]} : vector<2x128xf32> to vector<2x32xf32>
    %647 = vector.extract_strided_slice %644 {offsets = [0, 96], sizes = [2, 32], strides = [1, 1]} : vector<2x128xf32> to vector<2x32xf32>
    %648 = vector.extract_strided_slice %636 {offsets = [0, 64], sizes = [2, 32], strides = [1, 1]} : vector<2x128xf32> to vector<2x32xf32>
    %cst_284 = arith.constant 0.000000e+00 : f32
    %649 = vector.broadcast %cst_284 : f32 to vector<2x32xf32>
    %650 = arith.maximumf %648, %649 : vector<2x32xf32>
    %651 = arith.mulf %646, %622 : vector<2x32xf32>
    %652 = arith.mulf %645, %650 : vector<2x32xf32>
    %653 = arith.addf %651, %652 : vector<2x32xf32>
    %cst_285 = arith.constant 2.500000e-01 : f32
    %654 = vector.broadcast %cst_285 : f32 to vector<2x32xf32>
    %655 = arith.mulf %654, %653 : vector<2x32xf32>
    %cst_286 = arith.constant 5.000000e-01 : f32
    %656 = vector.broadcast %cst_286 : f32 to vector<2x32xf32>
    %657 = arith.addf %655, %656 : vector<2x32xf32>
    %cst_287 = arith.constant 0.000000e+00 : f32
    %cst_288 = arith.constant 1.000000e+00 : f32
    %658 = vector.broadcast %cst_287 : f32 to vector<2x32xf32>
    %659 = arith.maximumf %658, %657 : vector<2x32xf32>
    %660 = vector.broadcast %cst_288 : f32 to vector<2x32xf32>
    %661 = arith.minimumf %660, %659 : vector<2x32xf32>
    %662 = arith.mulf %647, %661 : vector<2x32xf32>
    %c22_289 = arith.constant 22 : index
    %c32_290 = arith.constant 32 : index
    %663 = vector.load %arg10[%c22_289, %c32_290] : memref<32x64xf32, #tpu.memory_space<vmem>>, vector<2x32xf32>
    tpu.vector_store %arg10[%c22_289, %c32_290], %662 {strides = array<i32>} : memref<32x64xf32, #tpu.memory_space<vmem>>, vector<2x32xf32>,
    %c20_291 = arith.constant 20 : index
    %c128_292 = arith.constant 128 : index
    %664 = vector.load %arg9[%c20_291, %c128_292] : memref<32x256xf32, #tpu.memory_space<vmem>>, vector<2x128xf32>
    %665 = arith.truncf %662 : vector<2x32xf32> to vector<2x32xbf16>
    %cst_293 = arith.constant dense<0.000000e+00> : vector<2x128xf32>
    %666 = tpu.matmul %665, %508, %cst_293 {dimension_numbers = #tpu.dot_dimension_numbers<[1], [0], [0], [1], [0, 0, 1, 1], [], []>} : vector<2x32xbf16>, vector<32x128xbf16>, vector<2x128xf32> -> vector<2x128xf32>
    %667 = arith.addf %664, %666 : vector<2x128xf32>
    %cst_294 = arith.constant 2.500000e-01 : f32
    %668 = vector.broadcast %cst_294 : f32 to vector<2x128xf32>
    %669 = arith.mulf %668, %667 : vector<2x128xf32>
    %cst_295 = arith.constant 5.000000e-01 : f32
    %670 = vector.broadcast %cst_295 : f32 to vector<2x128xf32>
    %671 = arith.addf %669, %670 : vector<2x128xf32>
    %cst_296 = arith.constant 0.000000e+00 : f32
    %cst_297 = arith.constant 1.000000e+00 : f32
    %672 = vector.broadcast %cst_296 : f32 to vector<2x128xf32>
    %673 = arith.maximumf %672, %671 : vector<2x128xf32>
    %674 = vector.broadcast %cst_297 : f32 to vector<2x128xf32>
    %675 = arith.minimumf %674, %673 : vector<2x128xf32>
    %676 = vector.extract_strided_slice %675 {offsets = [0, 0], sizes = [2, 32], strides = [1, 1]} : vector<2x128xf32> to vector<2x32xf32>
    %677 = vector.extract_strided_slice %675 {offsets = [0, 32], sizes = [2, 32], strides = [1, 1]} : vector<2x128xf32> to vector<2x32xf32>
    %678 = vector.extract_strided_slice %675 {offsets = [0, 96], sizes = [2, 32], strides = [1, 1]} : vector<2x128xf32> to vector<2x32xf32>
    %679 = vector.extract_strided_slice %667 {offsets = [0, 64], sizes = [2, 32], strides = [1, 1]} : vector<2x128xf32> to vector<2x32xf32>
    %cst_298 = arith.constant 0.000000e+00 : f32
    %680 = vector.broadcast %cst_298 : f32 to vector<2x32xf32>
    %681 = arith.maximumf %679, %680 : vector<2x32xf32>
    %682 = arith.mulf %677, %653 : vector<2x32xf32>
    %683 = arith.mulf %676, %681 : vector<2x32xf32>
    %684 = arith.addf %682, %683 : vector<2x32xf32>
    %cst_299 = arith.constant 2.500000e-01 : f32
    %685 = vector.broadcast %cst_299 : f32 to vector<2x32xf32>
    %686 = arith.mulf %685, %684 : vector<2x32xf32>
    %cst_300 = arith.constant 5.000000e-01 : f32
    %687 = vector.broadcast %cst_300 : f32 to vector<2x32xf32>
    %688 = arith.addf %686, %687 : vector<2x32xf32>
    %cst_301 = arith.constant 0.000000e+00 : f32
    %cst_302 = arith.constant 1.000000e+00 : f32
    %689 = vector.broadcast %cst_301 : f32 to vector<2x32xf32>
    %690 = arith.maximumf %689, %688 : vector<2x32xf32>
    %691 = vector.broadcast %cst_302 : f32 to vector<2x32xf32>
    %692 = arith.minimumf %691, %690 : vector<2x32xf32>
    %693 = arith.mulf %678, %692 : vector<2x32xf32>
    %c20_303 = arith.constant 20 : index
    %c32_304 = arith.constant 32 : index
    %694 = vector.load %arg10[%c20_303, %c32_304] : memref<32x64xf32, #tpu.memory_space<vmem>>, vector<2x32xf32>
    tpu.vector_store %arg10[%c20_303, %c32_304], %693 {strides = array<i32>} : memref<32x64xf32, #tpu.memory_space<vmem>>, vector<2x32xf32>,
    %c18_305 = arith.constant 18 : index
    %c128_306 = arith.constant 128 : index
    %695 = vector.load %arg9[%c18_305, %c128_306] : memref<32x256xf32, #tpu.memory_space<vmem>>, vector<2x128xf32>
    %696 = arith.truncf %693 : vector<2x32xf32> to vector<2x32xbf16>
    %cst_307 = arith.constant dense<0.000000e+00> : vector<2x128xf32>
    %697 = tpu.matmul %696, %508, %cst_307 {dimension_numbers = #tpu.dot_dimension_numbers<[1], [0], [0], [1], [0, 0, 1, 1], [], []>} : vector<2x32xbf16>, vector<32x128xbf16>, vector<2x128xf32> -> vector<2x128xf32>
    %698 = arith.addf %695, %697 : vector<2x128xf32>
    %cst_308 = arith.constant 2.500000e-01 : f32
    %699 = vector.broadcast %cst_308 : f32 to vector<2x128xf32>
    %700 = arith.mulf %699, %698 : vector<2x128xf32>
    %cst_309 = arith.constant 5.000000e-01 : f32
    %701 = vector.broadcast %cst_309 : f32 to vector<2x128xf32>
    %702 = arith.addf %700, %701 : vector<2x128xf32>
    %cst_310 = arith.constant 0.000000e+00 : f32
    %cst_311 = arith.constant 1.000000e+00 : f32
    %703 = vector.broadcast %cst_310 : f32 to vector<2x128xf32>
    %704 = arith.maximumf %703, %702 : vector<2x128xf32>
    %705 = vector.broadcast %cst_311 : f32 to vector<2x128xf32>
    %706 = arith.minimumf %705, %704 : vector<2x128xf32>
    %707 = vector.extract_strided_slice %706 {offsets = [0, 0], sizes = [2, 32], strides = [1, 1]} : vector<2x128xf32> to vector<2x32xf32>
    %708 = vector.extract_strided_slice %706 {offsets = [0, 32], sizes = [2, 32], strides = [1, 1]} : vector<2x128xf32> to vector<2x32xf32>
    %709 = vector.extract_strided_slice %706 {offsets = [0, 96], sizes = [2, 32], strides = [1, 1]} : vector<2x128xf32> to vector<2x32xf32>
    %710 = vector.extract_strided_slice %698 {offsets = [0, 64], sizes = [2, 32], strides = [1, 1]} : vector<2x128xf32> to vector<2x32xf32>
    %cst_312 = arith.constant 0.000000e+00 : f32
    %711 = vector.broadcast %cst_312 : f32 to vector<2x32xf32>
    %712 = arith.maximumf %710, %711 : vector<2x32xf32>
    %713 = arith.mulf %708, %684 : vector<2x32xf32>
    %714 = arith.mulf %707, %712 : vector<2x32xf32>
    %715 = arith.addf %713, %714 : vector<2x32xf32>
    %cst_313 = arith.constant 2.500000e-01 : f32
    %716 = vector.broadcast %cst_313 : f32 to vector<2x32xf32>
    %717 = arith.mulf %716, %715 : vector<2x32xf32>
    %cst_314 = arith.constant 5.000000e-01 : f32
    %718 = vector.broadcast %cst_314 : f32 to vector<2x32xf32>
    %719 = arith.addf %717, %718 : vector<2x32xf32>
    %cst_315 = arith.constant 0.000000e+00 : f32
    %cst_316 = arith.constant 1.000000e+00 : f32
    %720 = vector.broadcast %cst_315 : f32 to vector<2x32xf32>
    %721 = arith.maximumf %720, %719 : vector<2x32xf32>
    %722 = vector.broadcast %cst_316 : f32 to vector<2x32xf32>
    %723 = arith.minimumf %722, %721 : vector<2x32xf32>
    %724 = arith.mulf %709, %723 : vector<2x32xf32>
    %c18_317 = arith.constant 18 : index
    %c32_318 = arith.constant 32 : index
    %725 = vector.load %arg10[%c18_317, %c32_318] : memref<32x64xf32, #tpu.memory_space<vmem>>, vector<2x32xf32>
    tpu.vector_store %arg10[%c18_317, %c32_318], %724 {strides = array<i32>} : memref<32x64xf32, #tpu.memory_space<vmem>>, vector<2x32xf32>,
    %c16_319 = arith.constant 16 : index
    %c128_320 = arith.constant 128 : index
    %726 = vector.load %arg9[%c16_319, %c128_320] : memref<32x256xf32, #tpu.memory_space<vmem>>, vector<2x128xf32>
    %727 = arith.truncf %724 : vector<2x32xf32> to vector<2x32xbf16>
    %cst_321 = arith.constant dense<0.000000e+00> : vector<2x128xf32>
    %728 = tpu.matmul %727, %508, %cst_321 {dimension_numbers = #tpu.dot_dimension_numbers<[1], [0], [0], [1], [0, 0, 1, 1], [], []>} : vector<2x32xbf16>, vector<32x128xbf16>, vector<2x128xf32> -> vector<2x128xf32>
    %729 = arith.addf %726, %728 : vector<2x128xf32>
    %cst_322 = arith.constant 2.500000e-01 : f32
    %730 = vector.broadcast %cst_322 : f32 to vector<2x128xf32>
    %731 = arith.mulf %730, %729 : vector<2x128xf32>
    %cst_323 = arith.constant 5.000000e-01 : f32
    %732 = vector.broadcast %cst_323 : f32 to vector<2x128xf32>
    %733 = arith.addf %731, %732 : vector<2x128xf32>
    %cst_324 = arith.constant 0.000000e+00 : f32
    %cst_325 = arith.constant 1.000000e+00 : f32
    %734 = vector.broadcast %cst_324 : f32 to vector<2x128xf32>
    %735 = arith.maximumf %734, %733 : vector<2x128xf32>
    %736 = vector.broadcast %cst_325 : f32 to vector<2x128xf32>
    %737 = arith.minimumf %736, %735 : vector<2x128xf32>
    %738 = vector.extract_strided_slice %737 {offsets = [0, 0], sizes = [2, 32], strides = [1, 1]} : vector<2x128xf32> to vector<2x32xf32>
    %739 = vector.extract_strided_slice %737 {offsets = [0, 32], sizes = [2, 32], strides = [1, 1]} : vector<2x128xf32> to vector<2x32xf32>
    %740 = vector.extract_strided_slice %737 {offsets = [0, 96], sizes = [2, 32], strides = [1, 1]} : vector<2x128xf32> to vector<2x32xf32>
    %741 = vector.extract_strided_slice %729 {offsets = [0, 64], sizes = [2, 32], strides = [1, 1]} : vector<2x128xf32> to vector<2x32xf32>
    %cst_326 = arith.constant 0.000000e+00 : f32
    %742 = vector.broadcast %cst_326 : f32 to vector<2x32xf32>
    %743 = arith.maximumf %741, %742 : vector<2x32xf32>
    %744 = arith.mulf %739, %715 : vector<2x32xf32>
    %745 = arith.mulf %738, %743 : vector<2x32xf32>
    %746 = arith.addf %744, %745 : vector<2x32xf32>
    %cst_327 = arith.constant 2.500000e-01 : f32
    %747 = vector.broadcast %cst_327 : f32 to vector<2x32xf32>
    %748 = arith.mulf %747, %746 : vector<2x32xf32>
    %cst_328 = arith.constant 5.000000e-01 : f32
    %749 = vector.broadcast %cst_328 : f32 to vector<2x32xf32>
    %750 = arith.addf %748, %749 : vector<2x32xf32>
    %cst_329 = arith.constant 0.000000e+00 : f32
    %cst_330 = arith.constant 1.000000e+00 : f32
    %751 = vector.broadcast %cst_329 : f32 to vector<2x32xf32>
    %752 = arith.maximumf %751, %750 : vector<2x32xf32>
    %753 = vector.broadcast %cst_330 : f32 to vector<2x32xf32>
    %754 = arith.minimumf %753, %752 : vector<2x32xf32>
    %755 = arith.mulf %740, %754 : vector<2x32xf32>
    %c16_331 = arith.constant 16 : index
    %c32_332 = arith.constant 32 : index
    %756 = vector.load %arg10[%c16_331, %c32_332] : memref<32x64xf32, #tpu.memory_space<vmem>>, vector<2x32xf32>
    tpu.vector_store %arg10[%c16_331, %c32_332], %755 {strides = array<i32>} : memref<32x64xf32, #tpu.memory_space<vmem>>, vector<2x32xf32>,
    %c14_333 = arith.constant 14 : index
    %c128_334 = arith.constant 128 : index
    %757 = vector.load %arg9[%c14_333, %c128_334] : memref<32x256xf32, #tpu.memory_space<vmem>>, vector<2x128xf32>
    %758 = arith.truncf %755 : vector<2x32xf32> to vector<2x32xbf16>
    %cst_335 = arith.constant dense<0.000000e+00> : vector<2x128xf32>
    %759 = tpu.matmul %758, %508, %cst_335 {dimension_numbers = #tpu.dot_dimension_numbers<[1], [0], [0], [1], [0, 0, 1, 1], [], []>} : vector<2x32xbf16>, vector<32x128xbf16>, vector<2x128xf32> -> vector<2x128xf32>
    %760 = arith.addf %757, %759 : vector<2x128xf32>
    %cst_336 = arith.constant 2.500000e-01 : f32
    %761 = vector.broadcast %cst_336 : f32 to vector<2x128xf32>
    %762 = arith.mulf %761, %760 : vector<2x128xf32>
    %cst_337 = arith.constant 5.000000e-01 : f32
    %763 = vector.broadcast %cst_337 : f32 to vector<2x128xf32>
    %764 = arith.addf %762, %763 : vector<2x128xf32>
    %cst_338 = arith.constant 0.000000e+00 : f32
    %cst_339 = arith.constant 1.000000e+00 : f32
    %765 = vector.broadcast %cst_338 : f32 to vector<2x128xf32>
    %766 = arith.maximumf %765, %764 : vector<2x128xf32>
    %767 = vector.broadcast %cst_339 : f32 to vector<2x128xf32>
    %768 = arith.minimumf %767, %766 : vector<2x128xf32>
    %769 = vector.extract_strided_slice %768 {offsets = [0, 0], sizes = [2, 32], strides = [1, 1]} : vector<2x128xf32> to vector<2x32xf32>
    %770 = vector.extract_strided_slice %768 {offsets = [0, 32], sizes = [2, 32], strides = [1, 1]} : vector<2x128xf32> to vector<2x32xf32>
    %771 = vector.extract_strided_slice %768 {offsets = [0, 96], sizes = [2, 32], strides = [1, 1]} : vector<2x128xf32> to vector<2x32xf32>
    %772 = vector.extract_strided_slice %760 {offsets = [0, 64], sizes = [2, 32], strides = [1, 1]} : vector<2x128xf32> to vector<2x32xf32>
    %cst_340 = arith.constant 0.000000e+00 : f32
    %773 = vector.broadcast %cst_340 : f32 to vector<2x32xf32>
    %774 = arith.maximumf %772, %773 : vector<2x32xf32>
    %775 = arith.mulf %770, %746 : vector<2x32xf32>
    %776 = arith.mulf %769, %774 : vector<2x32xf32>
    %777 = arith.addf %775, %776 : vector<2x32xf32>
    %cst_341 = arith.constant 2.500000e-01 : f32
    %778 = vector.broadcast %cst_341 : f32 to vector<2x32xf32>
    %779 = arith.mulf %778, %777 : vector<2x32xf32>
    %cst_342 = arith.constant 5.000000e-01 : f32
    %780 = vector.broadcast %cst_342 : f32 to vector<2x32xf32>
    %781 = arith.addf %779, %780 : vector<2x32xf32>
    %cst_343 = arith.constant 0.000000e+00 : f32
    %cst_344 = arith.constant 1.000000e+00 : f32
    %782 = vector.broadcast %cst_343 : f32 to vector<2x32xf32>
    %783 = arith.maximumf %782, %781 : vector<2x32xf32>
    %784 = vector.broadcast %cst_344 : f32 to vector<2x32xf32>
    %785 = arith.minimumf %784, %783 : vector<2x32xf32>
    %786 = arith.mulf %771, %785 : vector<2x32xf32>
    %c14_345 = arith.constant 14 : index
    %c32_346 = arith.constant 32 : index
    %787 = vector.load %arg10[%c14_345, %c32_346] : memref<32x64xf32, #tpu.memory_space<vmem>>, vector<2x32xf32>
    tpu.vector_store %arg10[%c14_345, %c32_346], %786 {strides = array<i32>} : memref<32x64xf32, #tpu.memory_space<vmem>>, vector<2x32xf32>,
    %c12_347 = arith.constant 12 : index
    %c128_348 = arith.constant 128 : index
    %788 = vector.load %arg9[%c12_347, %c128_348] : memref<32x256xf32, #tpu.memory_space<vmem>>, vector<2x128xf32>
    %789 = arith.truncf %786 : vector<2x32xf32> to vector<2x32xbf16>
    %cst_349 = arith.constant dense<0.000000e+00> : vector<2x128xf32>
    %790 = tpu.matmul %789, %508, %cst_349 {dimension_numbers = #tpu.dot_dimension_numbers<[1], [0], [0], [1], [0, 0, 1, 1], [], []>} : vector<2x32xbf16>, vector<32x128xbf16>, vector<2x128xf32> -> vector<2x128xf32>
    %791 = arith.addf %788, %790 : vector<2x128xf32>
    %cst_350 = arith.constant 2.500000e-01 : f32
    %792 = vector.broadcast %cst_350 : f32 to vector<2x128xf32>
    %793 = arith.mulf %792, %791 : vector<2x128xf32>
    %cst_351 = arith.constant 5.000000e-01 : f32
    %794 = vector.broadcast %cst_351 : f32 to vector<2x128xf32>
    %795 = arith.addf %793, %794 : vector<2x128xf32>
    %cst_352 = arith.constant 0.000000e+00 : f32
    %cst_353 = arith.constant 1.000000e+00 : f32
    %796 = vector.broadcast %cst_352 : f32 to vector<2x128xf32>
    %797 = arith.maximumf %796, %795 : vector<2x128xf32>
    %798 = vector.broadcast %cst_353 : f32 to vector<2x128xf32>
    %799 = arith.minimumf %798, %797 : vector<2x128xf32>
    %800 = vector.extract_strided_slice %799 {offsets = [0, 0], sizes = [2, 32], strides = [1, 1]} : vector<2x128xf32> to vector<2x32xf32>
    %801 = vector.extract_strided_slice %799 {offsets = [0, 32], sizes = [2, 32], strides = [1, 1]} : vector<2x128xf32> to vector<2x32xf32>
    %802 = vector.extract_strided_slice %799 {offsets = [0, 96], sizes = [2, 32], strides = [1, 1]} : vector<2x128xf32> to vector<2x32xf32>
    %803 = vector.extract_strided_slice %791 {offsets = [0, 64], sizes = [2, 32], strides = [1, 1]} : vector<2x128xf32> to vector<2x32xf32>
    %cst_354 = arith.constant 0.000000e+00 : f32
    %804 = vector.broadcast %cst_354 : f32 to vector<2x32xf32>
    %805 = arith.maximumf %803, %804 : vector<2x32xf32>
    %806 = arith.mulf %801, %777 : vector<2x32xf32>
    %807 = arith.mulf %800, %805 : vector<2x32xf32>
    %808 = arith.addf %806, %807 : vector<2x32xf32>
    %cst_355 = arith.constant 2.500000e-01 : f32
    %809 = vector.broadcast %cst_355 : f32 to vector<2x32xf32>
    %810 = arith.mulf %809, %808 : vector<2x32xf32>
    %cst_356 = arith.constant 5.000000e-01 : f32
    %811 = vector.broadcast %cst_356 : f32 to vector<2x32xf32>
    %812 = arith.addf %810, %811 : vector<2x32xf32>
    %cst_357 = arith.constant 0.000000e+00 : f32
    %cst_358 = arith.constant 1.000000e+00 : f32
    %813 = vector.broadcast %cst_357 : f32 to vector<2x32xf32>
    %814 = arith.maximumf %813, %812 : vector<2x32xf32>
    %815 = vector.broadcast %cst_358 : f32 to vector<2x32xf32>
    %816 = arith.minimumf %815, %814 : vector<2x32xf32>
    %817 = arith.mulf %802, %816 : vector<2x32xf32>
    %c12_359 = arith.constant 12 : index
    %c32_360 = arith.constant 32 : index
    %818 = vector.load %arg10[%c12_359, %c32_360] : memref<32x64xf32, #tpu.memory_space<vmem>>, vector<2x32xf32>
    tpu.vector_store %arg10[%c12_359, %c32_360], %817 {strides = array<i32>} : memref<32x64xf32, #tpu.memory_space<vmem>>, vector<2x32xf32>,
    %c10_361 = arith.constant 10 : index
    %c128_362 = arith.constant 128 : index
    %819 = vector.load %arg9[%c10_361, %c128_362] : memref<32x256xf32, #tpu.memory_space<vmem>>, vector<2x128xf32>
    %820 = arith.truncf %817 : vector<2x32xf32> to vector<2x32xbf16>
    %cst_363 = arith.constant dense<0.000000e+00> : vector<2x128xf32>
    %821 = tpu.matmul %820, %508, %cst_363 {dimension_numbers = #tpu.dot_dimension_numbers<[1], [0], [0], [1], [0, 0, 1, 1], [], []>} : vector<2x32xbf16>, vector<32x128xbf16>, vector<2x128xf32> -> vector<2x128xf32>
    %822 = arith.addf %819, %821 : vector<2x128xf32>
    %cst_364 = arith.constant 2.500000e-01 : f32
    %823 = vector.broadcast %cst_364 : f32 to vector<2x128xf32>
    %824 = arith.mulf %823, %822 : vector<2x128xf32>
    %cst_365 = arith.constant 5.000000e-01 : f32
    %825 = vector.broadcast %cst_365 : f32 to vector<2x128xf32>
    %826 = arith.addf %824, %825 : vector<2x128xf32>
    %cst_366 = arith.constant 0.000000e+00 : f32
    %cst_367 = arith.constant 1.000000e+00 : f32
    %827 = vector.broadcast %cst_366 : f32 to vector<2x128xf32>
    %828 = arith.maximumf %827, %826 : vector<2x128xf32>
    %829 = vector.broadcast %cst_367 : f32 to vector<2x128xf32>
    %830 = arith.minimumf %829, %828 : vector<2x128xf32>
    %831 = vector.extract_strided_slice %830 {offsets = [0, 0], sizes = [2, 32], strides = [1, 1]} : vector<2x128xf32> to vector<2x32xf32>
    %832 = vector.extract_strided_slice %830 {offsets = [0, 32], sizes = [2, 32], strides = [1, 1]} : vector<2x128xf32> to vector<2x32xf32>
    %833 = vector.extract_strided_slice %830 {offsets = [0, 96], sizes = [2, 32], strides = [1, 1]} : vector<2x128xf32> to vector<2x32xf32>
    %834 = vector.extract_strided_slice %822 {offsets = [0, 64], sizes = [2, 32], strides = [1, 1]} : vector<2x128xf32> to vector<2x32xf32>
    %cst_368 = arith.constant 0.000000e+00 : f32
    %835 = vector.broadcast %cst_368 : f32 to vector<2x32xf32>
    %836 = arith.maximumf %834, %835 : vector<2x32xf32>
    %837 = arith.mulf %832, %808 : vector<2x32xf32>
    %838 = arith.mulf %831, %836 : vector<2x32xf32>
    %839 = arith.addf %837, %838 : vector<2x32xf32>
    %cst_369 = arith.constant 2.500000e-01 : f32
    %840 = vector.broadcast %cst_369 : f32 to vector<2x32xf32>
    %841 = arith.mulf %840, %839 : vector<2x32xf32>
    %cst_370 = arith.constant 5.000000e-01 : f32
    %842 = vector.broadcast %cst_370 : f32 to vector<2x32xf32>
    %843 = arith.addf %841, %842 : vector<2x32xf32>
    %cst_371 = arith.constant 0.000000e+00 : f32
    %cst_372 = arith.constant 1.000000e+00 : f32
    %844 = vector.broadcast %cst_371 : f32 to vector<2x32xf32>
    %845 = arith.maximumf %844, %843 : vector<2x32xf32>
    %846 = vector.broadcast %cst_372 : f32 to vector<2x32xf32>
    %847 = arith.minimumf %846, %845 : vector<2x32xf32>
    %848 = arith.mulf %833, %847 : vector<2x32xf32>
    %c10_373 = arith.constant 10 : index
    %c32_374 = arith.constant 32 : index
    %849 = vector.load %arg10[%c10_373, %c32_374] : memref<32x64xf32, #tpu.memory_space<vmem>>, vector<2x32xf32>
    tpu.vector_store %arg10[%c10_373, %c32_374], %848 {strides = array<i32>} : memref<32x64xf32, #tpu.memory_space<vmem>>, vector<2x32xf32>,
    %c8_375 = arith.constant 8 : index
    %c128_376 = arith.constant 128 : index
    %850 = vector.load %arg9[%c8_375, %c128_376] : memref<32x256xf32, #tpu.memory_space<vmem>>, vector<2x128xf32>
    %851 = arith.truncf %848 : vector<2x32xf32> to vector<2x32xbf16>
    %cst_377 = arith.constant dense<0.000000e+00> : vector<2x128xf32>
    %852 = tpu.matmul %851, %508, %cst_377 {dimension_numbers = #tpu.dot_dimension_numbers<[1], [0], [0], [1], [0, 0, 1, 1], [], []>} : vector<2x32xbf16>, vector<32x128xbf16>, vector<2x128xf32> -> vector<2x128xf32>
    %853 = arith.addf %850, %852 : vector<2x128xf32>
    %cst_378 = arith.constant 2.500000e-01 : f32
    %854 = vector.broadcast %cst_378 : f32 to vector<2x128xf32>
    %855 = arith.mulf %854, %853 : vector<2x128xf32>
    %cst_379 = arith.constant 5.000000e-01 : f32
    %856 = vector.broadcast %cst_379 : f32 to vector<2x128xf32>
    %857 = arith.addf %855, %856 : vector<2x128xf32>
    %cst_380 = arith.constant 0.000000e+00 : f32
    %cst_381 = arith.constant 1.000000e+00 : f32
    %858 = vector.broadcast %cst_380 : f32 to vector<2x128xf32>
    %859 = arith.maximumf %858, %857 : vector<2x128xf32>
    %860 = vector.broadcast %cst_381 : f32 to vector<2x128xf32>
    %861 = arith.minimumf %860, %859 : vector<2x128xf32>
    %862 = vector.extract_strided_slice %861 {offsets = [0, 0], sizes = [2, 32], strides = [1, 1]} : vector<2x128xf32> to vector<2x32xf32>
    %863 = vector.extract_strided_slice %861 {offsets = [0, 32], sizes = [2, 32], strides = [1, 1]} : vector<2x128xf32> to vector<2x32xf32>
    %864 = vector.extract_strided_slice %861 {offsets = [0, 96], sizes = [2, 32], strides = [1, 1]} : vector<2x128xf32> to vector<2x32xf32>
    %865 = vector.extract_strided_slice %853 {offsets = [0, 64], sizes = [2, 32], strides = [1, 1]} : vector<2x128xf32> to vector<2x32xf32>
    %cst_382 = arith.constant 0.000000e+00 : f32
    %866 = vector.broadcast %cst_382 : f32 to vector<2x32xf32>
    %867 = arith.maximumf %865, %866 : vector<2x32xf32>
    %868 = arith.mulf %863, %839 : vector<2x32xf32>
    %869 = arith.mulf %862, %867 : vector<2x32xf32>
    %870 = arith.addf %868, %869 : vector<2x32xf32>
    %cst_383 = arith.constant 2.500000e-01 : f32
    %871 = vector.broadcast %cst_383 : f32 to vector<2x32xf32>
    %872 = arith.mulf %871, %870 : vector<2x32xf32>
    %cst_384 = arith.constant 5.000000e-01 : f32
    %873 = vector.broadcast %cst_384 : f32 to vector<2x32xf32>
    %874 = arith.addf %872, %873 : vector<2x32xf32>
    %cst_385 = arith.constant 0.000000e+00 : f32
    %cst_386 = arith.constant 1.000000e+00 : f32
    %875 = vector.broadcast %cst_385 : f32 to vector<2x32xf32>
    %876 = arith.maximumf %875, %874 : vector<2x32xf32>
    %877 = vector.broadcast %cst_386 : f32 to vector<2x32xf32>
    %878 = arith.minimumf %877, %876 : vector<2x32xf32>
    %879 = arith.mulf %864, %878 : vector<2x32xf32>
    %c8_387 = arith.constant 8 : index
    %c32_388 = arith.constant 32 : index
    %880 = vector.load %arg10[%c8_387, %c32_388] : memref<32x64xf32, #tpu.memory_space<vmem>>, vector<2x32xf32>
    tpu.vector_store %arg10[%c8_387, %c32_388], %879 {strides = array<i32>} : memref<32x64xf32, #tpu.memory_space<vmem>>, vector<2x32xf32>,
    %c6_389 = arith.constant 6 : index
    %c128_390 = arith.constant 128 : index
    %881 = vector.load %arg9[%c6_389, %c128_390] : memref<32x256xf32, #tpu.memory_space<vmem>>, vector<2x128xf32>
    %882 = arith.truncf %879 : vector<2x32xf32> to vector<2x32xbf16>
    %cst_391 = arith.constant dense<0.000000e+00> : vector<2x128xf32>
    %883 = tpu.matmul %882, %508, %cst_391 {dimension_numbers = #tpu.dot_dimension_numbers<[1], [0], [0], [1], [0, 0, 1, 1], [], []>} : vector<2x32xbf16>, vector<32x128xbf16>, vector<2x128xf32> -> vector<2x128xf32>
    %884 = arith.addf %881, %883 : vector<2x128xf32>
    %cst_392 = arith.constant 2.500000e-01 : f32
    %885 = vector.broadcast %cst_392 : f32 to vector<2x128xf32>
    %886 = arith.mulf %885, %884 : vector<2x128xf32>
    %cst_393 = arith.constant 5.000000e-01 : f32
    %887 = vector.broadcast %cst_393 : f32 to vector<2x128xf32>
    %888 = arith.addf %886, %887 : vector<2x128xf32>
    %cst_394 = arith.constant 0.000000e+00 : f32
    %cst_395 = arith.constant 1.000000e+00 : f32
    %889 = vector.broadcast %cst_394 : f32 to vector<2x128xf32>
    %890 = arith.maximumf %889, %888 : vector<2x128xf32>
    %891 = vector.broadcast %cst_395 : f32 to vector<2x128xf32>
    %892 = arith.minimumf %891, %890 : vector<2x128xf32>
    %893 = vector.extract_strided_slice %892 {offsets = [0, 0], sizes = [2, 32], strides = [1, 1]} : vector<2x128xf32> to vector<2x32xf32>
    %894 = vector.extract_strided_slice %892 {offsets = [0, 32], sizes = [2, 32], strides = [1, 1]} : vector<2x128xf32> to vector<2x32xf32>
    %895 = vector.extract_strided_slice %892 {offsets = [0, 96], sizes = [2, 32], strides = [1, 1]} : vector<2x128xf32> to vector<2x32xf32>
    %896 = vector.extract_strided_slice %884 {offsets = [0, 64], sizes = [2, 32], strides = [1, 1]} : vector<2x128xf32> to vector<2x32xf32>
    %cst_396 = arith.constant 0.000000e+00 : f32
    %897 = vector.broadcast %cst_396 : f32 to vector<2x32xf32>
    %898 = arith.maximumf %896, %897 : vector<2x32xf32>
    %899 = arith.mulf %894, %870 : vector<2x32xf32>
    %900 = arith.mulf %893, %898 : vector<2x32xf32>
    %901 = arith.addf %899, %900 : vector<2x32xf32>
    %cst_397 = arith.constant 2.500000e-01 : f32
    %902 = vector.broadcast %cst_397 : f32 to vector<2x32xf32>
    %903 = arith.mulf %902, %901 : vector<2x32xf32>
    %cst_398 = arith.constant 5.000000e-01 : f32
    %904 = vector.broadcast %cst_398 : f32 to vector<2x32xf32>
    %905 = arith.addf %903, %904 : vector<2x32xf32>
    %cst_399 = arith.constant 0.000000e+00 : f32
    %cst_400 = arith.constant 1.000000e+00 : f32
    %906 = vector.broadcast %cst_399 : f32 to vector<2x32xf32>
    %907 = arith.maximumf %906, %905 : vector<2x32xf32>
    %908 = vector.broadcast %cst_400 : f32 to vector<2x32xf32>
    %909 = arith.minimumf %908, %907 : vector<2x32xf32>
    %910 = arith.mulf %895, %909 : vector<2x32xf32>
    %c6_401 = arith.constant 6 : index
    %c32_402 = arith.constant 32 : index
    %911 = vector.load %arg10[%c6_401, %c32_402] : memref<32x64xf32, #tpu.memory_space<vmem>>, vector<2x32xf32>
    tpu.vector_store %arg10[%c6_401, %c32_402], %910 {strides = array<i32>} : memref<32x64xf32, #tpu.memory_space<vmem>>, vector<2x32xf32>,
    %c4_403 = arith.constant 4 : index
    %c128_404 = arith.constant 128 : index
    %912 = vector.load %arg9[%c4_403, %c128_404] : memref<32x256xf32, #tpu.memory_space<vmem>>, vector<2x128xf32>
    %913 = arith.truncf %910 : vector<2x32xf32> to vector<2x32xbf16>
    %cst_405 = arith.constant dense<0.000000e+00> : vector<2x128xf32>
    %914 = tpu.matmul %913, %508, %cst_405 {dimension_numbers = #tpu.dot_dimension_numbers<[1], [0], [0], [1], [0, 0, 1, 1], [], []>} : vector<2x32xbf16>, vector<32x128xbf16>, vector<2x128xf32> -> vector<2x128xf32>
    %915 = arith.addf %912, %914 : vector<2x128xf32>
    %cst_406 = arith.constant 2.500000e-01 : f32
    %916 = vector.broadcast %cst_406 : f32 to vector<2x128xf32>
    %917 = arith.mulf %916, %915 : vector<2x128xf32>
    %cst_407 = arith.constant 5.000000e-01 : f32
    %918 = vector.broadcast %cst_407 : f32 to vector<2x128xf32>
    %919 = arith.addf %917, %918 : vector<2x128xf32>
    %cst_408 = arith.constant 0.000000e+00 : f32
    %cst_409 = arith.constant 1.000000e+00 : f32
    %920 = vector.broadcast %cst_408 : f32 to vector<2x128xf32>
    %921 = arith.maximumf %920, %919 : vector<2x128xf32>
    %922 = vector.broadcast %cst_409 : f32 to vector<2x128xf32>
    %923 = arith.minimumf %922, %921 : vector<2x128xf32>
    %924 = vector.extract_strided_slice %923 {offsets = [0, 0], sizes = [2, 32], strides = [1, 1]} : vector<2x128xf32> to vector<2x32xf32>
    %925 = vector.extract_strided_slice %923 {offsets = [0, 32], sizes = [2, 32], strides = [1, 1]} : vector<2x128xf32> to vector<2x32xf32>
    %926 = vector.extract_strided_slice %923 {offsets = [0, 96], sizes = [2, 32], strides = [1, 1]} : vector<2x128xf32> to vector<2x32xf32>
    %927 = vector.extract_strided_slice %915 {offsets = [0, 64], sizes = [2, 32], strides = [1, 1]} : vector<2x128xf32> to vector<2x32xf32>
    %cst_410 = arith.constant 0.000000e+00 : f32
    %928 = vector.broadcast %cst_410 : f32 to vector<2x32xf32>
    %929 = arith.maximumf %927, %928 : vector<2x32xf32>
    %930 = arith.mulf %925, %901 : vector<2x32xf32>
    %931 = arith.mulf %924, %929 : vector<2x32xf32>
    %932 = arith.addf %930, %931 : vector<2x32xf32>
    %cst_411 = arith.constant 2.500000e-01 : f32
    %933 = vector.broadcast %cst_411 : f32 to vector<2x32xf32>
    %934 = arith.mulf %933, %932 : vector<2x32xf32>
    %cst_412 = arith.constant 5.000000e-01 : f32
    %935 = vector.broadcast %cst_412 : f32 to vector<2x32xf32>
    %936 = arith.addf %934, %935 : vector<2x32xf32>
    %cst_413 = arith.constant 0.000000e+00 : f32
    %cst_414 = arith.constant 1.000000e+00 : f32
    %937 = vector.broadcast %cst_413 : f32 to vector<2x32xf32>
    %938 = arith.maximumf %937, %936 : vector<2x32xf32>
    %939 = vector.broadcast %cst_414 : f32 to vector<2x32xf32>
    %940 = arith.minimumf %939, %938 : vector<2x32xf32>
    %941 = arith.mulf %926, %940 : vector<2x32xf32>
    %c4_415 = arith.constant 4 : index
    %c32_416 = arith.constant 32 : index
    %942 = vector.load %arg10[%c4_415, %c32_416] : memref<32x64xf32, #tpu.memory_space<vmem>>, vector<2x32xf32>
    tpu.vector_store %arg10[%c4_415, %c32_416], %941 {strides = array<i32>} : memref<32x64xf32, #tpu.memory_space<vmem>>, vector<2x32xf32>,
    %c2_417 = arith.constant 2 : index
    %c128_418 = arith.constant 128 : index
    %943 = vector.load %arg9[%c2_417, %c128_418] : memref<32x256xf32, #tpu.memory_space<vmem>>, vector<2x128xf32>
    %944 = arith.truncf %941 : vector<2x32xf32> to vector<2x32xbf16>
    %cst_419 = arith.constant dense<0.000000e+00> : vector<2x128xf32>
    %945 = tpu.matmul %944, %508, %cst_419 {dimension_numbers = #tpu.dot_dimension_numbers<[1], [0], [0], [1], [0, 0, 1, 1], [], []>} : vector<2x32xbf16>, vector<32x128xbf16>, vector<2x128xf32> -> vector<2x128xf32>
    %946 = arith.addf %943, %945 : vector<2x128xf32>
    %cst_420 = arith.constant 2.500000e-01 : f32
    %947 = vector.broadcast %cst_420 : f32 to vector<2x128xf32>
    %948 = arith.mulf %947, %946 : vector<2x128xf32>
    %cst_421 = arith.constant 5.000000e-01 : f32
    %949 = vector.broadcast %cst_421 : f32 to vector<2x128xf32>
    %950 = arith.addf %948, %949 : vector<2x128xf32>
    %cst_422 = arith.constant 0.000000e+00 : f32
    %cst_423 = arith.constant 1.000000e+00 : f32
    %951 = vector.broadcast %cst_422 : f32 to vector<2x128xf32>
    %952 = arith.maximumf %951, %950 : vector<2x128xf32>
    %953 = vector.broadcast %cst_423 : f32 to vector<2x128xf32>
    %954 = arith.minimumf %953, %952 : vector<2x128xf32>
    %955 = vector.extract_strided_slice %954 {offsets = [0, 0], sizes = [2, 32], strides = [1, 1]} : vector<2x128xf32> to vector<2x32xf32>
    %956 = vector.extract_strided_slice %954 {offsets = [0, 32], sizes = [2, 32], strides = [1, 1]} : vector<2x128xf32> to vector<2x32xf32>
    %957 = vector.extract_strided_slice %954 {offsets = [0, 96], sizes = [2, 32], strides = [1, 1]} : vector<2x128xf32> to vector<2x32xf32>
    %958 = vector.extract_strided_slice %946 {offsets = [0, 64], sizes = [2, 32], strides = [1, 1]} : vector<2x128xf32> to vector<2x32xf32>
    %cst_424 = arith.constant 0.000000e+00 : f32
    %959 = vector.broadcast %cst_424 : f32 to vector<2x32xf32>
    %960 = arith.maximumf %958, %959 : vector<2x32xf32>
    %961 = arith.mulf %956, %932 : vector<2x32xf32>
    %962 = arith.mulf %955, %960 : vector<2x32xf32>
    %963 = arith.addf %961, %962 : vector<2x32xf32>
    %cst_425 = arith.constant 2.500000e-01 : f32
    %964 = vector.broadcast %cst_425 : f32 to vector<2x32xf32>
    %965 = arith.mulf %964, %963 : vector<2x32xf32>
    %cst_426 = arith.constant 5.000000e-01 : f32
    %966 = vector.broadcast %cst_426 : f32 to vector<2x32xf32>
    %967 = arith.addf %965, %966 : vector<2x32xf32>
    %cst_427 = arith.constant 0.000000e+00 : f32
    %cst_428 = arith.constant 1.000000e+00 : f32
    %968 = vector.broadcast %cst_427 : f32 to vector<2x32xf32>
    %969 = arith.maximumf %968, %967 : vector<2x32xf32>
    %970 = vector.broadcast %cst_428 : f32 to vector<2x32xf32>
    %971 = arith.minimumf %970, %969 : vector<2x32xf32>
    %972 = arith.mulf %957, %971 : vector<2x32xf32>
    %c2_429 = arith.constant 2 : index
    %c32_430 = arith.constant 32 : index
    %973 = vector.load %arg10[%c2_429, %c32_430] : memref<32x64xf32, #tpu.memory_space<vmem>>, vector<2x32xf32>
    tpu.vector_store %arg10[%c2_429, %c32_430], %972 {strides = array<i32>} : memref<32x64xf32, #tpu.memory_space<vmem>>, vector<2x32xf32>,
    %c0_431 = arith.constant 0 : index
    %c128_432 = arith.constant 128 : index
    %974 = vector.load %arg9[%c0_431, %c128_432] : memref<32x256xf32, #tpu.memory_space<vmem>>, vector<2x128xf32>
    %975 = arith.truncf %972 : vector<2x32xf32> to vector<2x32xbf16>
    %cst_433 = arith.constant dense<0.000000e+00> : vector<2x128xf32>
    %976 = tpu.matmul %975, %508, %cst_433 {dimension_numbers = #tpu.dot_dimension_numbers<[1], [0], [0], [1], [0, 0, 1, 1], [], []>} : vector<2x32xbf16>, vector<32x128xbf16>, vector<2x128xf32> -> vector<2x128xf32>
    %977 = arith.addf %974, %976 : vector<2x128xf32>
    %cst_434 = arith.constant 2.500000e-01 : f32
    %978 = vector.broadcast %cst_434 : f32 to vector<2x128xf32>
    %979 = arith.mulf %978, %977 : vector<2x128xf32>
    %cst_435 = arith.constant 5.000000e-01 : f32
    %980 = vector.broadcast %cst_435 : f32 to vector<2x128xf32>
    %981 = arith.addf %979, %980 : vector<2x128xf32>
    %cst_436 = arith.constant 0.000000e+00 : f32
    %cst_437 = arith.constant 1.000000e+00 : f32
    %982 = vector.broadcast %cst_436 : f32 to vector<2x128xf32>
    %983 = arith.maximumf %982, %981 : vector<2x128xf32>
    %984 = vector.broadcast %cst_437 : f32 to vector<2x128xf32>
    %985 = arith.minimumf %984, %983 : vector<2x128xf32>
    %986 = vector.extract_strided_slice %985 {offsets = [0, 0], sizes = [2, 32], strides = [1, 1]} : vector<2x128xf32> to vector<2x32xf32>
    %987 = vector.extract_strided_slice %985 {offsets = [0, 32], sizes = [2, 32], strides = [1, 1]} : vector<2x128xf32> to vector<2x32xf32>
    %988 = vector.extract_strided_slice %985 {offsets = [0, 96], sizes = [2, 32], strides = [1, 1]} : vector<2x128xf32> to vector<2x32xf32>
    %989 = vector.extract_strided_slice %977 {offsets = [0, 64], sizes = [2, 32], strides = [1, 1]} : vector<2x128xf32> to vector<2x32xf32>
    %cst_438 = arith.constant 0.000000e+00 : f32
    %990 = vector.broadcast %cst_438 : f32 to vector<2x32xf32>
    %991 = arith.maximumf %989, %990 : vector<2x32xf32>
    %992 = arith.mulf %987, %963 : vector<2x32xf32>
    %993 = arith.mulf %986, %991 : vector<2x32xf32>
    %994 = arith.addf %992, %993 : vector<2x32xf32>
    %cst_439 = arith.constant 2.500000e-01 : f32
    %995 = vector.broadcast %cst_439 : f32 to vector<2x32xf32>
    %996 = arith.mulf %995, %994 : vector<2x32xf32>
    %cst_440 = arith.constant 5.000000e-01 : f32
    %997 = vector.broadcast %cst_440 : f32 to vector<2x32xf32>
    %998 = arith.addf %996, %997 : vector<2x32xf32>
    %cst_441 = arith.constant 0.000000e+00 : f32
    %cst_442 = arith.constant 1.000000e+00 : f32
    %999 = vector.broadcast %cst_441 : f32 to vector<2x32xf32>
    %1000 = arith.maximumf %999, %998 : vector<2x32xf32>
    %1001 = vector.broadcast %cst_442 : f32 to vector<2x32xf32>
    %1002 = arith.minimumf %1001, %1000 : vector<2x32xf32>
    %1003 = arith.mulf %988, %1002 : vector<2x32xf32>
    %c0_443 = arith.constant 0 : index
    %c32_444 = arith.constant 32 : index
    %1004 = vector.load %arg10[%c0_443, %c32_444] : memref<32x64xf32, #tpu.memory_space<vmem>>, vector<2x32xf32>
    tpu.vector_store %arg10[%c0_443, %c32_444], %1003 {strides = array<i32>} : memref<32x64xf32, #tpu.memory_space<vmem>>, vector<2x32xf32>,
    %c0_445 = arith.constant 0 : index
    %c0_446 = arith.constant 0 : index
    %1005 = vector.load %arg10[%c0_445, %c0_446] : memref<32x64xf32, #tpu.memory_space<vmem>>, vector<32x64xf32>
    %1006 = arith.truncf %1005 : vector<32x64xf32> to vector<32x64xbf16>
    %c0_447 = arith.constant 0 : index
    %c0_448 = arith.constant 0 : index
    %1007 = vector.load %arg3[%c0_447, %c0_448] : memref<64x256xbf16, #tpu.memory_space<vmem>>, vector<64x256xbf16>
    %cst_449 = arith.constant dense<0.000000e+00> : vector<32x256xf32>
    %1008 = tpu.matmul %1006, %1007, %cst_449 {dimension_numbers = #tpu.dot_dimension_numbers<[1], [0], [0], [1], [0, 0, 1, 1], [], []>} : vector<32x64xbf16>, vector<64x256xbf16>, vector<32x256xf32> -> vector<32x256xf32>
    %c0_450 = arith.constant 0 : index
    %c0_451 = arith.constant 0 : index
    %1009 = vector.load %arg4[%c0_450, %c0_451] : memref<1x256xf32, #tpu.memory_space<vmem>>, vector<1x256xf32>
    %1010 = vector.broadcast %1009 : vector<1x256xf32> to vector<32x256xf32>
    %1011 = arith.addf %1008, %1010 : vector<32x256xf32>
    %c0_452 = arith.constant 0 : index
    %c0_453 = arith.constant 0 : index
    %1012 = vector.load %arg9[%c0_452, %c0_453] : memref<32x256xf32, #tpu.memory_space<vmem>>, vector<32x256xf32>
    tpu.vector_store %arg9[%c0_452, %c0_453], %1011 {strides = array<i32>} : memref<32x256xf32, #tpu.memory_space<vmem>>, vector<32x256xf32>,
    %c2_454 = arith.constant 2 : index
    %c0_455 = arith.constant 0 : index
    %c0_456 = arith.constant 0 : index
    %1013 = vector.load %arg5[%c2_454, %c0_455, %c0_456] : memref<4x32x128xbf16, #tpu.memory_space<vmem>>, vector<1x32x128xbf16>
    %1014 = vector.shape_cast %1013 : vector<1x32x128xbf16> to vector<32x128xbf16>
    %c0_457 = arith.constant 0 : index
    %c0_458 = arith.constant 0 : index
    %1015 = vector.load %arg9[%c0_457, %c0_458] : memref<32x256xf32, #tpu.memory_space<vmem>>, vector<2x128xf32>
    %1016 = arith.truncf %1003 : vector<2x32xf32> to vector<2x32xbf16>
    %cst_459 = arith.constant dense<0.000000e+00> : vector<2x128xf32>
    %1017 = tpu.matmul %1016, %1014, %cst_459 {dimension_numbers = #tpu.dot_dimension_numbers<[1], [0], [0], [1], [0, 0, 1, 1], [], []>} : vector<2x32xbf16>, vector<32x128xbf16>, vector<2x128xf32> -> vector<2x128xf32>
    %1018 = arith.addf %1015, %1017 : vector<2x128xf32>
    %cst_460 = arith.constant 2.500000e-01 : f32
    %1019 = vector.broadcast %cst_460 : f32 to vector<2x128xf32>
    %1020 = arith.mulf %1019, %1018 : vector<2x128xf32>
    %cst_461 = arith.constant 5.000000e-01 : f32
    %1021 = vector.broadcast %cst_461 : f32 to vector<2x128xf32>
    %1022 = arith.addf %1020, %1021 : vector<2x128xf32>
    %cst_462 = arith.constant 0.000000e+00 : f32
    %cst_463 = arith.constant 1.000000e+00 : f32
    %1023 = vector.broadcast %cst_462 : f32 to vector<2x128xf32>
    %1024 = arith.maximumf %1023, %1022 : vector<2x128xf32>
    %1025 = vector.broadcast %cst_463 : f32 to vector<2x128xf32>
    %1026 = arith.minimumf %1025, %1024 : vector<2x128xf32>
    %1027 = vector.extract_strided_slice %1026 {offsets = [0, 0], sizes = [2, 32], strides = [1, 1]} : vector<2x128xf32> to vector<2x32xf32>
    %1028 = vector.extract_strided_slice %1026 {offsets = [0, 32], sizes = [2, 32], strides = [1, 1]} : vector<2x128xf32> to vector<2x32xf32>
    %1029 = vector.extract_strided_slice %1026 {offsets = [0, 96], sizes = [2, 32], strides = [1, 1]} : vector<2x128xf32> to vector<2x32xf32>
    %1030 = vector.extract_strided_slice %1018 {offsets = [0, 64], sizes = [2, 32], strides = [1, 1]} : vector<2x128xf32> to vector<2x32xf32>
    %cst_464 = arith.constant 0.000000e+00 : f32
    %1031 = vector.broadcast %cst_464 : f32 to vector<2x32xf32>
    %1032 = arith.maximumf %1030, %1031 : vector<2x32xf32>
    %1033 = arith.mulf %1028, %994 : vector<2x32xf32>
    %1034 = arith.mulf %1027, %1032 : vector<2x32xf32>
    %1035 = arith.addf %1033, %1034 : vector<2x32xf32>
    %cst_465 = arith.constant 2.500000e-01 : f32
    %1036 = vector.broadcast %cst_465 : f32 to vector<2x32xf32>
    %1037 = arith.mulf %1036, %1035 : vector<2x32xf32>
    %cst_466 = arith.constant 5.000000e-01 : f32
    %1038 = vector.broadcast %cst_466 : f32 to vector<2x32xf32>
    %1039 = arith.addf %1037, %1038 : vector<2x32xf32>
    %cst_467 = arith.constant 0.000000e+00 : f32
    %cst_468 = arith.constant 1.000000e+00 : f32
    %1040 = vector.broadcast %cst_467 : f32 to vector<2x32xf32>
    %1041 = arith.maximumf %1040, %1039 : vector<2x32xf32>
    %1042 = vector.broadcast %cst_468 : f32 to vector<2x32xf32>
    %1043 = arith.minimumf %1042, %1041 : vector<2x32xf32>
    %1044 = arith.mulf %1029, %1043 : vector<2x32xf32>
    %1045 = arith.truncf %1044 : vector<2x32xf32> to vector<2x32xbf16>
    %c0_469 = arith.constant 0 : index
    %c0_470 = arith.constant 0 : index
    %1046 = vector.load %arg6[%c0_469, %c0_470] : memref<32x64xbf16, #tpu.memory_space<vmem>>, vector<2x32xbf16>
    tpu.vector_store %arg6[%c0_469, %c0_470], %1045 {strides = array<i32>} : memref<32x64xbf16, #tpu.memory_space<vmem>>, vector<2x32xbf16>,
    %c2_471 = arith.constant 2 : index
    %c0_472 = arith.constant 0 : index
    %1047 = vector.load %arg9[%c2_471, %c0_472] : memref<32x256xf32, #tpu.memory_space<vmem>>, vector<2x128xf32>
    %1048 = arith.truncf %1044 : vector<2x32xf32> to vector<2x32xbf16>
    %cst_473 = arith.constant dense<0.000000e+00> : vector<2x128xf32>
    %1049 = tpu.matmul %1048, %1014, %cst_473 {dimension_numbers = #tpu.dot_dimension_numbers<[1], [0], [0], [1], [0, 0, 1, 1], [], []>} : vector<2x32xbf16>, vector<32x128xbf16>, vector<2x128xf32> -> vector<2x128xf32>
    %1050 = arith.addf %1047, %1049 : vector<2x128xf32>
    %cst_474 = arith.constant 2.500000e-01 : f32
    %1051 = vector.broadcast %cst_474 : f32 to vector<2x128xf32>
    %1052 = arith.mulf %1051, %1050 : vector<2x128xf32>
    %cst_475 = arith.constant 5.000000e-01 : f32
    %1053 = vector.broadcast %cst_475 : f32 to vector<2x128xf32>
    %1054 = arith.addf %1052, %1053 : vector<2x128xf32>
    %cst_476 = arith.constant 0.000000e+00 : f32
    %cst_477 = arith.constant 1.000000e+00 : f32
    %1055 = vector.broadcast %cst_476 : f32 to vector<2x128xf32>
    %1056 = arith.maximumf %1055, %1054 : vector<2x128xf32>
    %1057 = vector.broadcast %cst_477 : f32 to vector<2x128xf32>
    %1058 = arith.minimumf %1057, %1056 : vector<2x128xf32>
    %1059 = vector.extract_strided_slice %1058 {offsets = [0, 0], sizes = [2, 32], strides = [1, 1]} : vector<2x128xf32> to vector<2x32xf32>
    %1060 = vector.extract_strided_slice %1058 {offsets = [0, 32], sizes = [2, 32], strides = [1, 1]} : vector<2x128xf32> to vector<2x32xf32>
    %1061 = vector.extract_strided_slice %1058 {offsets = [0, 96], sizes = [2, 32], strides = [1, 1]} : vector<2x128xf32> to vector<2x32xf32>
    %1062 = vector.extract_strided_slice %1050 {offsets = [0, 64], sizes = [2, 32], strides = [1, 1]} : vector<2x128xf32> to vector<2x32xf32>
    %cst_478 = arith.constant 0.000000e+00 : f32
    %1063 = vector.broadcast %cst_478 : f32 to vector<2x32xf32>
    %1064 = arith.maximumf %1062, %1063 : vector<2x32xf32>
    %1065 = arith.mulf %1060, %1035 : vector<2x32xf32>
    %1066 = arith.mulf %1059, %1064 : vector<2x32xf32>
    %1067 = arith.addf %1065, %1066 : vector<2x32xf32>
    %cst_479 = arith.constant 2.500000e-01 : f32
    %1068 = vector.broadcast %cst_479 : f32 to vector<2x32xf32>
    %1069 = arith.mulf %1068, %1067 : vector<2x32xf32>
    %cst_480 = arith.constant 5.000000e-01 : f32
    %1070 = vector.broadcast %cst_480 : f32 to vector<2x32xf32>
    %1071 = arith.addf %1069, %1070 : vector<2x32xf32>
    %cst_481 = arith.constant 0.000000e+00 : f32
    %cst_482 = arith.constant 1.000000e+00 : f32
    %1072 = vector.broadcast %cst_481 : f32 to vector<2x32xf32>
    %1073 = arith.maximumf %1072, %1071 : vector<2x32xf32>
    %1074 = vector.broadcast %cst_482 : f32 to vector<2x32xf32>
    %1075 = arith.minimumf %1074, %1073 : vector<2x32xf32>
    %1076 = arith.mulf %1061, %1075 : vector<2x32xf32>
    %1077 = arith.truncf %1076 : vector<2x32xf32> to vector<2x32xbf16>
    %c2_483 = arith.constant 2 : index
    %c0_484 = arith.constant 0 : index
    %1078 = vector.load %arg6[%c2_483, %c0_484] : memref<32x64xbf16, #tpu.memory_space<vmem>>, vector<2x32xbf16>
    tpu.vector_store %arg6[%c2_483, %c0_484], %1077 {strides = array<i32>} : memref<32x64xbf16, #tpu.memory_space<vmem>>, vector<2x32xbf16>,
    %c4_485 = arith.constant 4 : index
    %c0_486 = arith.constant 0 : index
    %1079 = vector.load %arg9[%c4_485, %c0_486] : memref<32x256xf32, #tpu.memory_space<vmem>>, vector<2x128xf32>
    %1080 = arith.truncf %1076 : vector<2x32xf32> to vector<2x32xbf16>
    %cst_487 = arith.constant dense<0.000000e+00> : vector<2x128xf32>
    %1081 = tpu.matmul %1080, %1014, %cst_487 {dimension_numbers = #tpu.dot_dimension_numbers<[1], [0], [0], [1], [0, 0, 1, 1], [], []>} : vector<2x32xbf16>, vector<32x128xbf16>, vector<2x128xf32> -> vector<2x128xf32>
    %1082 = arith.addf %1079, %1081 : vector<2x128xf32>
    %cst_488 = arith.constant 2.500000e-01 : f32
    %1083 = vector.broadcast %cst_488 : f32 to vector<2x128xf32>
    %1084 = arith.mulf %1083, %1082 : vector<2x128xf32>
    %cst_489 = arith.constant 5.000000e-01 : f32
    %1085 = vector.broadcast %cst_489 : f32 to vector<2x128xf32>
    %1086 = arith.addf %1084, %1085 : vector<2x128xf32>
    %cst_490 = arith.constant 0.000000e+00 : f32
    %cst_491 = arith.constant 1.000000e+00 : f32
    %1087 = vector.broadcast %cst_490 : f32 to vector<2x128xf32>
    %1088 = arith.maximumf %1087, %1086 : vector<2x128xf32>
    %1089 = vector.broadcast %cst_491 : f32 to vector<2x128xf32>
    %1090 = arith.minimumf %1089, %1088 : vector<2x128xf32>
    %1091 = vector.extract_strided_slice %1090 {offsets = [0, 0], sizes = [2, 32], strides = [1, 1]} : vector<2x128xf32> to vector<2x32xf32>
    %1092 = vector.extract_strided_slice %1090 {offsets = [0, 32], sizes = [2, 32], strides = [1, 1]} : vector<2x128xf32> to vector<2x32xf32>
    %1093 = vector.extract_strided_slice %1090 {offsets = [0, 96], sizes = [2, 32], strides = [1, 1]} : vector<2x128xf32> to vector<2x32xf32>
    %1094 = vector.extract_strided_slice %1082 {offsets = [0, 64], sizes = [2, 32], strides = [1, 1]} : vector<2x128xf32> to vector<2x32xf32>
    %cst_492 = arith.constant 0.000000e+00 : f32
    %1095 = vector.broadcast %cst_492 : f32 to vector<2x32xf32>
    %1096 = arith.maximumf %1094, %1095 : vector<2x32xf32>
    %1097 = arith.mulf %1092, %1067 : vector<2x32xf32>
    %1098 = arith.mulf %1091, %1096 : vector<2x32xf32>
    %1099 = arith.addf %1097, %1098 : vector<2x32xf32>
    %cst_493 = arith.constant 2.500000e-01 : f32
    %1100 = vector.broadcast %cst_493 : f32 to vector<2x32xf32>
    %1101 = arith.mulf %1100, %1099 : vector<2x32xf32>
    %cst_494 = arith.constant 5.000000e-01 : f32
    %1102 = vector.broadcast %cst_494 : f32 to vector<2x32xf32>
    %1103 = arith.addf %1101, %1102 : vector<2x32xf32>
    %cst_495 = arith.constant 0.000000e+00 : f32
    %cst_496 = arith.constant 1.000000e+00 : f32
    %1104 = vector.broadcast %cst_495 : f32 to vector<2x32xf32>
    %1105 = arith.maximumf %1104, %1103 : vector<2x32xf32>
    %1106 = vector.broadcast %cst_496 : f32 to vector<2x32xf32>
    %1107 = arith.minimumf %1106, %1105 : vector<2x32xf32>
    %1108 = arith.mulf %1093, %1107 : vector<2x32xf32>
    %1109 = arith.truncf %1108 : vector<2x32xf32> to vector<2x32xbf16>
    %c4_497 = arith.constant 4 : index
    %c0_498 = arith.constant 0 : index
    %1110 = vector.load %arg6[%c4_497, %c0_498] : memref<32x64xbf16, #tpu.memory_space<vmem>>, vector<2x32xbf16>
    tpu.vector_store %arg6[%c4_497, %c0_498], %1109 {strides = array<i32>} : memref<32x64xbf16, #tpu.memory_space<vmem>>, vector<2x32xbf16>,
    %c6_499 = arith.constant 6 : index
    %c0_500 = arith.constant 0 : index
    %1111 = vector.load %arg9[%c6_499, %c0_500] : memref<32x256xf32, #tpu.memory_space<vmem>>, vector<2x128xf32>
    %1112 = arith.truncf %1108 : vector<2x32xf32> to vector<2x32xbf16>
    %cst_501 = arith.constant dense<0.000000e+00> : vector<2x128xf32>
    %1113 = tpu.matmul %1112, %1014, %cst_501 {dimension_numbers = #tpu.dot_dimension_numbers<[1], [0], [0], [1], [0, 0, 1, 1], [], []>} : vector<2x32xbf16>, vector<32x128xbf16>, vector<2x128xf32> -> vector<2x128xf32>
    %1114 = arith.addf %1111, %1113 : vector<2x128xf32>
    %cst_502 = arith.constant 2.500000e-01 : f32
    %1115 = vector.broadcast %cst_502 : f32 to vector<2x128xf32>
    %1116 = arith.mulf %1115, %1114 : vector<2x128xf32>
    %cst_503 = arith.constant 5.000000e-01 : f32
    %1117 = vector.broadcast %cst_503 : f32 to vector<2x128xf32>
    %1118 = arith.addf %1116, %1117 : vector<2x128xf32>
    %cst_504 = arith.constant 0.000000e+00 : f32
    %cst_505 = arith.constant 1.000000e+00 : f32
    %1119 = vector.broadcast %cst_504 : f32 to vector<2x128xf32>
    %1120 = arith.maximumf %1119, %1118 : vector<2x128xf32>
    %1121 = vector.broadcast %cst_505 : f32 to vector<2x128xf32>
    %1122 = arith.minimumf %1121, %1120 : vector<2x128xf32>
    %1123 = vector.extract_strided_slice %1122 {offsets = [0, 0], sizes = [2, 32], strides = [1, 1]} : vector<2x128xf32> to vector<2x32xf32>
    %1124 = vector.extract_strided_slice %1122 {offsets = [0, 32], sizes = [2, 32], strides = [1, 1]} : vector<2x128xf32> to vector<2x32xf32>
    %1125 = vector.extract_strided_slice %1122 {offsets = [0, 96], sizes = [2, 32], strides = [1, 1]} : vector<2x128xf32> to vector<2x32xf32>
    %1126 = vector.extract_strided_slice %1114 {offsets = [0, 64], sizes = [2, 32], strides = [1, 1]} : vector<2x128xf32> to vector<2x32xf32>
    %cst_506 = arith.constant 0.000000e+00 : f32
    %1127 = vector.broadcast %cst_506 : f32 to vector<2x32xf32>
    %1128 = arith.maximumf %1126, %1127 : vector<2x32xf32>
    %1129 = arith.mulf %1124, %1099 : vector<2x32xf32>
    %1130 = arith.mulf %1123, %1128 : vector<2x32xf32>
    %1131 = arith.addf %1129, %1130 : vector<2x32xf32>
    %cst_507 = arith.constant 2.500000e-01 : f32
    %1132 = vector.broadcast %cst_507 : f32 to vector<2x32xf32>
    %1133 = arith.mulf %1132, %1131 : vector<2x32xf32>
    %cst_508 = arith.constant 5.000000e-01 : f32
    %1134 = vector.broadcast %cst_508 : f32 to vector<2x32xf32>
    %1135 = arith.addf %1133, %1134 : vector<2x32xf32>
    %cst_509 = arith.constant 0.000000e+00 : f32
    %cst_510 = arith.constant 1.000000e+00 : f32
    %1136 = vector.broadcast %cst_509 : f32 to vector<2x32xf32>
    %1137 = arith.maximumf %1136, %1135 : vector<2x32xf32>
    %1138 = vector.broadcast %cst_510 : f32 to vector<2x32xf32>
    %1139 = arith.minimumf %1138, %1137 : vector<2x32xf32>
    %1140 = arith.mulf %1125, %1139 : vector<2x32xf32>
    %1141 = arith.truncf %1140 : vector<2x32xf32> to vector<2x32xbf16>
    %c6_511 = arith.constant 6 : index
    %c0_512 = arith.constant 0 : index
    %1142 = vector.load %arg6[%c6_511, %c0_512] : memref<32x64xbf16, #tpu.memory_space<vmem>>, vector<2x32xbf16>
    tpu.vector_store %arg6[%c6_511, %c0_512], %1141 {strides = array<i32>} : memref<32x64xbf16, #tpu.memory_space<vmem>>, vector<2x32xbf16>,
    %c8_513 = arith.constant 8 : index
    %c0_514 = arith.constant 0 : index
    %1143 = vector.load %arg9[%c8_513, %c0_514] : memref<32x256xf32, #tpu.memory_space<vmem>>, vector<2x128xf32>
    %1144 = arith.truncf %1140 : vector<2x32xf32> to vector<2x32xbf16>
    %cst_515 = arith.constant dense<0.000000e+00> : vector<2x128xf32>
    %1145 = tpu.matmul %1144, %1014, %cst_515 {dimension_numbers = #tpu.dot_dimension_numbers<[1], [0], [0], [1], [0, 0, 1, 1], [], []>} : vector<2x32xbf16>, vector<32x128xbf16>, vector<2x128xf32> -> vector<2x128xf32>
    %1146 = arith.addf %1143, %1145 : vector<2x128xf32>
    %cst_516 = arith.constant 2.500000e-01 : f32
    %1147 = vector.broadcast %cst_516 : f32 to vector<2x128xf32>
    %1148 = arith.mulf %1147, %1146 : vector<2x128xf32>
    %cst_517 = arith.constant 5.000000e-01 : f32
    %1149 = vector.broadcast %cst_517 : f32 to vector<2x128xf32>
    %1150 = arith.addf %1148, %1149 : vector<2x128xf32>
    %cst_518 = arith.constant 0.000000e+00 : f32
    %cst_519 = arith.constant 1.000000e+00 : f32
    %1151 = vector.broadcast %cst_518 : f32 to vector<2x128xf32>
    %1152 = arith.maximumf %1151, %1150 : vector<2x128xf32>
    %1153 = vector.broadcast %cst_519 : f32 to vector<2x128xf32>
    %1154 = arith.minimumf %1153, %1152 : vector<2x128xf32>
    %1155 = vector.extract_strided_slice %1154 {offsets = [0, 0], sizes = [2, 32], strides = [1, 1]} : vector<2x128xf32> to vector<2x32xf32>
    %1156 = vector.extract_strided_slice %1154 {offsets = [0, 32], sizes = [2, 32], strides = [1, 1]} : vector<2x128xf32> to vector<2x32xf32>
    %1157 = vector.extract_strided_slice %1154 {offsets = [0, 96], sizes = [2, 32], strides = [1, 1]} : vector<2x128xf32> to vector<2x32xf32>
    %1158 = vector.extract_strided_slice %1146 {offsets = [0, 64], sizes = [2, 32], strides = [1, 1]} : vector<2x128xf32> to vector<2x32xf32>
    %cst_520 = arith.constant 0.000000e+00 : f32
    %1159 = vector.broadcast %cst_520 : f32 to vector<2x32xf32>
    %1160 = arith.maximumf %1158, %1159 : vector<2x32xf32>
    %1161 = arith.mulf %1156, %1131 : vector<2x32xf32>
    %1162 = arith.mulf %1155, %1160 : vector<2x32xf32>
    %1163 = arith.addf %1161, %1162 : vector<2x32xf32>
    %cst_521 = arith.constant 2.500000e-01 : f32
    %1164 = vector.broadcast %cst_521 : f32 to vector<2x32xf32>
    %1165 = arith.mulf %1164, %1163 : vector<2x32xf32>
    %cst_522 = arith.constant 5.000000e-01 : f32
    %1166 = vector.broadcast %cst_522 : f32 to vector<2x32xf32>
    %1167 = arith.addf %1165, %1166 : vector<2x32xf32>
    %cst_523 = arith.constant 0.000000e+00 : f32
    %cst_524 = arith.constant 1.000000e+00 : f32
    %1168 = vector.broadcast %cst_523 : f32 to vector<2x32xf32>
    %1169 = arith.maximumf %1168, %1167 : vector<2x32xf32>
    %1170 = vector.broadcast %cst_524 : f32 to vector<2x32xf32>
    %1171 = arith.minimumf %1170, %1169 : vector<2x32xf32>
    %1172 = arith.mulf %1157, %1171 : vector<2x32xf32>
    %1173 = arith.truncf %1172 : vector<2x32xf32> to vector<2x32xbf16>
    %c8_525 = arith.constant 8 : index
    %c0_526 = arith.constant 0 : index
    %1174 = vector.load %arg6[%c8_525, %c0_526] : memref<32x64xbf16, #tpu.memory_space<vmem>>, vector<2x32xbf16>
    tpu.vector_store %arg6[%c8_525, %c0_526], %1173 {strides = array<i32>} : memref<32x64xbf16, #tpu.memory_space<vmem>>, vector<2x32xbf16>,
    %c10_527 = arith.constant 10 : index
    %c0_528 = arith.constant 0 : index
    %1175 = vector.load %arg9[%c10_527, %c0_528] : memref<32x256xf32, #tpu.memory_space<vmem>>, vector<2x128xf32>
    %1176 = arith.truncf %1172 : vector<2x32xf32> to vector<2x32xbf16>
    %cst_529 = arith.constant dense<0.000000e+00> : vector<2x128xf32>
    %1177 = tpu.matmul %1176, %1014, %cst_529 {dimension_numbers = #tpu.dot_dimension_numbers<[1], [0], [0], [1], [0, 0, 1, 1], [], []>} : vector<2x32xbf16>, vector<32x128xbf16>, vector<2x128xf32> -> vector<2x128xf32>
    %1178 = arith.addf %1175, %1177 : vector<2x128xf32>
    %cst_530 = arith.constant 2.500000e-01 : f32
    %1179 = vector.broadcast %cst_530 : f32 to vector<2x128xf32>
    %1180 = arith.mulf %1179, %1178 : vector<2x128xf32>
    %cst_531 = arith.constant 5.000000e-01 : f32
    %1181 = vector.broadcast %cst_531 : f32 to vector<2x128xf32>
    %1182 = arith.addf %1180, %1181 : vector<2x128xf32>
    %cst_532 = arith.constant 0.000000e+00 : f32
    %cst_533 = arith.constant 1.000000e+00 : f32
    %1183 = vector.broadcast %cst_532 : f32 to vector<2x128xf32>
    %1184 = arith.maximumf %1183, %1182 : vector<2x128xf32>
    %1185 = vector.broadcast %cst_533 : f32 to vector<2x128xf32>
    %1186 = arith.minimumf %1185, %1184 : vector<2x128xf32>
    %1187 = vector.extract_strided_slice %1186 {offsets = [0, 0], sizes = [2, 32], strides = [1, 1]} : vector<2x128xf32> to vector<2x32xf32>
    %1188 = vector.extract_strided_slice %1186 {offsets = [0, 32], sizes = [2, 32], strides = [1, 1]} : vector<2x128xf32> to vector<2x32xf32>
    %1189 = vector.extract_strided_slice %1186 {offsets = [0, 96], sizes = [2, 32], strides = [1, 1]} : vector<2x128xf32> to vector<2x32xf32>
    %1190 = vector.extract_strided_slice %1178 {offsets = [0, 64], sizes = [2, 32], strides = [1, 1]} : vector<2x128xf32> to vector<2x32xf32>
    %cst_534 = arith.constant 0.000000e+00 : f32
    %1191 = vector.broadcast %cst_534 : f32 to vector<2x32xf32>
    %1192 = arith.maximumf %1190, %1191 : vector<2x32xf32>
    %1193 = arith.mulf %1188, %1163 : vector<2x32xf32>
    %1194 = arith.mulf %1187, %1192 : vector<2x32xf32>
    %1195 = arith.addf %1193, %1194 : vector<2x32xf32>
    %cst_535 = arith.constant 2.500000e-01 : f32
    %1196 = vector.broadcast %cst_535 : f32 to vector<2x32xf32>
    %1197 = arith.mulf %1196, %1195 : vector<2x32xf32>
    %cst_536 = arith.constant 5.000000e-01 : f32
    %1198 = vector.broadcast %cst_536 : f32 to vector<2x32xf32>
    %1199 = arith.addf %1197, %1198 : vector<2x32xf32>
    %cst_537 = arith.constant 0.000000e+00 : f32
    %cst_538 = arith.constant 1.000000e+00 : f32
    %1200 = vector.broadcast %cst_537 : f32 to vector<2x32xf32>
    %1201 = arith.maximumf %1200, %1199 : vector<2x32xf32>
    %1202 = vector.broadcast %cst_538 : f32 to vector<2x32xf32>
    %1203 = arith.minimumf %1202, %1201 : vector<2x32xf32>
    %1204 = arith.mulf %1189, %1203 : vector<2x32xf32>
    %1205 = arith.truncf %1204 : vector<2x32xf32> to vector<2x32xbf16>
    %c10_539 = arith.constant 10 : index
    %c0_540 = arith.constant 0 : index
    %1206 = vector.load %arg6[%c10_539, %c0_540] : memref<32x64xbf16, #tpu.memory_space<vmem>>, vector<2x32xbf16>
    tpu.vector_store %arg6[%c10_539, %c0_540], %1205 {strides = array<i32>} : memref<32x64xbf16, #tpu.memory_space<vmem>>, vector<2x32xbf16>,
    %c12_541 = arith.constant 12 : index
    %c0_542 = arith.constant 0 : index
    %1207 = vector.load %arg9[%c12_541, %c0_542] : memref<32x256xf32, #tpu.memory_space<vmem>>, vector<2x128xf32>
    %1208 = arith.truncf %1204 : vector<2x32xf32> to vector<2x32xbf16>
    %cst_543 = arith.constant dense<0.000000e+00> : vector<2x128xf32>
    %1209 = tpu.matmul %1208, %1014, %cst_543 {dimension_numbers = #tpu.dot_dimension_numbers<[1], [0], [0], [1], [0, 0, 1, 1], [], []>} : vector<2x32xbf16>, vector<32x128xbf16>, vector<2x128xf32> -> vector<2x128xf32>
    %1210 = arith.addf %1207, %1209 : vector<2x128xf32>
    %cst_544 = arith.constant 2.500000e-01 : f32
    %1211 = vector.broadcast %cst_544 : f32 to vector<2x128xf32>
    %1212 = arith.mulf %1211, %1210 : vector<2x128xf32>
    %cst_545 = arith.constant 5.000000e-01 : f32
    %1213 = vector.broadcast %cst_545 : f32 to vector<2x128xf32>
    %1214 = arith.addf %1212, %1213 : vector<2x128xf32>
    %cst_546 = arith.constant 0.000000e+00 : f32
    %cst_547 = arith.constant 1.000000e+00 : f32
    %1215 = vector.broadcast %cst_546 : f32 to vector<2x128xf32>
    %1216 = arith.maximumf %1215, %1214 : vector<2x128xf32>
    %1217 = vector.broadcast %cst_547 : f32 to vector<2x128xf32>
    %1218 = arith.minimumf %1217, %1216 : vector<2x128xf32>
    %1219 = vector.extract_strided_slice %1218 {offsets = [0, 0], sizes = [2, 32], strides = [1, 1]} : vector<2x128xf32> to vector<2x32xf32>
    %1220 = vector.extract_strided_slice %1218 {offsets = [0, 32], sizes = [2, 32], strides = [1, 1]} : vector<2x128xf32> to vector<2x32xf32>
    %1221 = vector.extract_strided_slice %1218 {offsets = [0, 96], sizes = [2, 32], strides = [1, 1]} : vector<2x128xf32> to vector<2x32xf32>
    %1222 = vector.extract_strided_slice %1210 {offsets = [0, 64], sizes = [2, 32], strides = [1, 1]} : vector<2x128xf32> to vector<2x32xf32>
    %cst_548 = arith.constant 0.000000e+00 : f32
    %1223 = vector.broadcast %cst_548 : f32 to vector<2x32xf32>
    %1224 = arith.maximumf %1222, %1223 : vector<2x32xf32>
    %1225 = arith.mulf %1220, %1195 : vector<2x32xf32>
    %1226 = arith.mulf %1219, %1224 : vector<2x32xf32>
    %1227 = arith.addf %1225, %1226 : vector<2x32xf32>
    %cst_549 = arith.constant 2.500000e-01 : f32
    %1228 = vector.broadcast %cst_549 : f32 to vector<2x32xf32>
    %1229 = arith.mulf %1228, %1227 : vector<2x32xf32>
    %cst_550 = arith.constant 5.000000e-01 : f32
    %1230 = vector.broadcast %cst_550 : f32 to vector<2x32xf32>
    %1231 = arith.addf %1229, %1230 : vector<2x32xf32>
    %cst_551 = arith.constant 0.000000e+00 : f32
    %cst_552 = arith.constant 1.000000e+00 : f32
    %1232 = vector.broadcast %cst_551 : f32 to vector<2x32xf32>
    %1233 = arith.maximumf %1232, %1231 : vector<2x32xf32>
    %1234 = vector.broadcast %cst_552 : f32 to vector<2x32xf32>
    %1235 = arith.minimumf %1234, %1233 : vector<2x32xf32>
    %1236 = arith.mulf %1221, %1235 : vector<2x32xf32>
    %1237 = arith.truncf %1236 : vector<2x32xf32> to vector<2x32xbf16>
    %c12_553 = arith.constant 12 : index
    %c0_554 = arith.constant 0 : index
    %1238 = vector.load %arg6[%c12_553, %c0_554] : memref<32x64xbf16, #tpu.memory_space<vmem>>, vector<2x32xbf16>
    tpu.vector_store %arg6[%c12_553, %c0_554], %1237 {strides = array<i32>} : memref<32x64xbf16, #tpu.memory_space<vmem>>, vector<2x32xbf16>,
    %c14_555 = arith.constant 14 : index
    %c0_556 = arith.constant 0 : index
    %1239 = vector.load %arg9[%c14_555, %c0_556] : memref<32x256xf32, #tpu.memory_space<vmem>>, vector<2x128xf32>
    %1240 = arith.truncf %1236 : vector<2x32xf32> to vector<2x32xbf16>
    %cst_557 = arith.constant dense<0.000000e+00> : vector<2x128xf32>
    %1241 = tpu.matmul %1240, %1014, %cst_557 {dimension_numbers = #tpu.dot_dimension_numbers<[1], [0], [0], [1], [0, 0, 1, 1], [], []>} : vector<2x32xbf16>, vector<32x128xbf16>, vector<2x128xf32> -> vector<2x128xf32>
    %1242 = arith.addf %1239, %1241 : vector<2x128xf32>
    %cst_558 = arith.constant 2.500000e-01 : f32
    %1243 = vector.broadcast %cst_558 : f32 to vector<2x128xf32>
    %1244 = arith.mulf %1243, %1242 : vector<2x128xf32>
    %cst_559 = arith.constant 5.000000e-01 : f32
    %1245 = vector.broadcast %cst_559 : f32 to vector<2x128xf32>
    %1246 = arith.addf %1244, %1245 : vector<2x128xf32>
    %cst_560 = arith.constant 0.000000e+00 : f32
    %cst_561 = arith.constant 1.000000e+00 : f32
    %1247 = vector.broadcast %cst_560 : f32 to vector<2x128xf32>
    %1248 = arith.maximumf %1247, %1246 : vector<2x128xf32>
    %1249 = vector.broadcast %cst_561 : f32 to vector<2x128xf32>
    %1250 = arith.minimumf %1249, %1248 : vector<2x128xf32>
    %1251 = vector.extract_strided_slice %1250 {offsets = [0, 0], sizes = [2, 32], strides = [1, 1]} : vector<2x128xf32> to vector<2x32xf32>
    %1252 = vector.extract_strided_slice %1250 {offsets = [0, 32], sizes = [2, 32], strides = [1, 1]} : vector<2x128xf32> to vector<2x32xf32>
    %1253 = vector.extract_strided_slice %1250 {offsets = [0, 96], sizes = [2, 32], strides = [1, 1]} : vector<2x128xf32> to vector<2x32xf32>
    %1254 = vector.extract_strided_slice %1242 {offsets = [0, 64], sizes = [2, 32], strides = [1, 1]} : vector<2x128xf32> to vector<2x32xf32>
    %cst_562 = arith.constant 0.000000e+00 : f32
    %1255 = vector.broadcast %cst_562 : f32 to vector<2x32xf32>
    %1256 = arith.maximumf %1254, %1255 : vector<2x32xf32>
    %1257 = arith.mulf %1252, %1227 : vector<2x32xf32>
    %1258 = arith.mulf %1251, %1256 : vector<2x32xf32>
    %1259 = arith.addf %1257, %1258 : vector<2x32xf32>
    %cst_563 = arith.constant 2.500000e-01 : f32
    %1260 = vector.broadcast %cst_563 : f32 to vector<2x32xf32>
    %1261 = arith.mulf %1260, %1259 : vector<2x32xf32>
    %cst_564 = arith.constant 5.000000e-01 : f32
    %1262 = vector.broadcast %cst_564 : f32 to vector<2x32xf32>
    %1263 = arith.addf %1261, %1262 : vector<2x32xf32>
    %cst_565 = arith.constant 0.000000e+00 : f32
    %cst_566 = arith.constant 1.000000e+00 : f32
    %1264 = vector.broadcast %cst_565 : f32 to vector<2x32xf32>
    %1265 = arith.maximumf %1264, %1263 : vector<2x32xf32>
    %1266 = vector.broadcast %cst_566 : f32 to vector<2x32xf32>
    %1267 = arith.minimumf %1266, %1265 : vector<2x32xf32>
    %1268 = arith.mulf %1253, %1267 : vector<2x32xf32>
    %1269 = arith.truncf %1268 : vector<2x32xf32> to vector<2x32xbf16>
    %c14_567 = arith.constant 14 : index
    %c0_568 = arith.constant 0 : index
    %1270 = vector.load %arg6[%c14_567, %c0_568] : memref<32x64xbf16, #tpu.memory_space<vmem>>, vector<2x32xbf16>
    tpu.vector_store %arg6[%c14_567, %c0_568], %1269 {strides = array<i32>} : memref<32x64xbf16, #tpu.memory_space<vmem>>, vector<2x32xbf16>,
    %c16_569 = arith.constant 16 : index
    %c0_570 = arith.constant 0 : index
    %1271 = vector.load %arg9[%c16_569, %c0_570] : memref<32x256xf32, #tpu.memory_space<vmem>>, vector<2x128xf32>
    %1272 = arith.truncf %1268 : vector<2x32xf32> to vector<2x32xbf16>
    %cst_571 = arith.constant dense<0.000000e+00> : vector<2x128xf32>
    %1273 = tpu.matmul %1272, %1014, %cst_571 {dimension_numbers = #tpu.dot_dimension_numbers<[1], [0], [0], [1], [0, 0, 1, 1], [], []>} : vector<2x32xbf16>, vector<32x128xbf16>, vector<2x128xf32> -> vector<2x128xf32>
    %1274 = arith.addf %1271, %1273 : vector<2x128xf32>
    %cst_572 = arith.constant 2.500000e-01 : f32
    %1275 = vector.broadcast %cst_572 : f32 to vector<2x128xf32>
    %1276 = arith.mulf %1275, %1274 : vector<2x128xf32>
    %cst_573 = arith.constant 5.000000e-01 : f32
    %1277 = vector.broadcast %cst_573 : f32 to vector<2x128xf32>
    %1278 = arith.addf %1276, %1277 : vector<2x128xf32>
    %cst_574 = arith.constant 0.000000e+00 : f32
    %cst_575 = arith.constant 1.000000e+00 : f32
    %1279 = vector.broadcast %cst_574 : f32 to vector<2x128xf32>
    %1280 = arith.maximumf %1279, %1278 : vector<2x128xf32>
    %1281 = vector.broadcast %cst_575 : f32 to vector<2x128xf32>
    %1282 = arith.minimumf %1281, %1280 : vector<2x128xf32>
    %1283 = vector.extract_strided_slice %1282 {offsets = [0, 0], sizes = [2, 32], strides = [1, 1]} : vector<2x128xf32> to vector<2x32xf32>
    %1284 = vector.extract_strided_slice %1282 {offsets = [0, 32], sizes = [2, 32], strides = [1, 1]} : vector<2x128xf32> to vector<2x32xf32>
    %1285 = vector.extract_strided_slice %1282 {offsets = [0, 96], sizes = [2, 32], strides = [1, 1]} : vector<2x128xf32> to vector<2x32xf32>
    %1286 = vector.extract_strided_slice %1274 {offsets = [0, 64], sizes = [2, 32], strides = [1, 1]} : vector<2x128xf32> to vector<2x32xf32>
    %cst_576 = arith.constant 0.000000e+00 : f32
    %1287 = vector.broadcast %cst_576 : f32 to vector<2x32xf32>
    %1288 = arith.maximumf %1286, %1287 : vector<2x32xf32>
    %1289 = arith.mulf %1284, %1259 : vector<2x32xf32>
    %1290 = arith.mulf %1283, %1288 : vector<2x32xf32>
    %1291 = arith.addf %1289, %1290 : vector<2x32xf32>
    %cst_577 = arith.constant 2.500000e-01 : f32
    %1292 = vector.broadcast %cst_577 : f32 to vector<2x32xf32>
    %1293 = arith.mulf %1292, %1291 : vector<2x32xf32>
    %cst_578 = arith.constant 5.000000e-01 : f32
    %1294 = vector.broadcast %cst_578 : f32 to vector<2x32xf32>
    %1295 = arith.addf %1293, %1294 : vector<2x32xf32>
    %cst_579 = arith.constant 0.000000e+00 : f32
    %cst_580 = arith.constant 1.000000e+00 : f32
    %1296 = vector.broadcast %cst_579 : f32 to vector<2x32xf32>
    %1297 = arith.maximumf %1296, %1295 : vector<2x32xf32>
    %1298 = vector.broadcast %cst_580 : f32 to vector<2x32xf32>
    %1299 = arith.minimumf %1298, %1297 : vector<2x32xf32>
    %1300 = arith.mulf %1285, %1299 : vector<2x32xf32>
    %1301 = arith.truncf %1300 : vector<2x32xf32> to vector<2x32xbf16>
    %c16_581 = arith.constant 16 : index
    %c0_582 = arith.constant 0 : index
    %1302 = vector.load %arg6[%c16_581, %c0_582] : memref<32x64xbf16, #tpu.memory_space<vmem>>, vector<2x32xbf16>
    tpu.vector_store %arg6[%c16_581, %c0_582], %1301 {strides = array<i32>} : memref<32x64xbf16, #tpu.memory_space<vmem>>, vector<2x32xbf16>,
    %c18_583 = arith.constant 18 : index
    %c0_584 = arith.constant 0 : index
    %1303 = vector.load %arg9[%c18_583, %c0_584] : memref<32x256xf32, #tpu.memory_space<vmem>>, vector<2x128xf32>
    %1304 = arith.truncf %1300 : vector<2x32xf32> to vector<2x32xbf16>
    %cst_585 = arith.constant dense<0.000000e+00> : vector<2x128xf32>
    %1305 = tpu.matmul %1304, %1014, %cst_585 {dimension_numbers = #tpu.dot_dimension_numbers<[1], [0], [0], [1], [0, 0, 1, 1], [], []>} : vector<2x32xbf16>, vector<32x128xbf16>, vector<2x128xf32> -> vector<2x128xf32>
    %1306 = arith.addf %1303, %1305 : vector<2x128xf32>
    %cst_586 = arith.constant 2.500000e-01 : f32
    %1307 = vector.broadcast %cst_586 : f32 to vector<2x128xf32>
    %1308 = arith.mulf %1307, %1306 : vector<2x128xf32>
    %cst_587 = arith.constant 5.000000e-01 : f32
    %1309 = vector.broadcast %cst_587 : f32 to vector<2x128xf32>
    %1310 = arith.addf %1308, %1309 : vector<2x128xf32>
    %cst_588 = arith.constant 0.000000e+00 : f32
    %cst_589 = arith.constant 1.000000e+00 : f32
    %1311 = vector.broadcast %cst_588 : f32 to vector<2x128xf32>
    %1312 = arith.maximumf %1311, %1310 : vector<2x128xf32>
    %1313 = vector.broadcast %cst_589 : f32 to vector<2x128xf32>
    %1314 = arith.minimumf %1313, %1312 : vector<2x128xf32>
    %1315 = vector.extract_strided_slice %1314 {offsets = [0, 0], sizes = [2, 32], strides = [1, 1]} : vector<2x128xf32> to vector<2x32xf32>
    %1316 = vector.extract_strided_slice %1314 {offsets = [0, 32], sizes = [2, 32], strides = [1, 1]} : vector<2x128xf32> to vector<2x32xf32>
    %1317 = vector.extract_strided_slice %1314 {offsets = [0, 96], sizes = [2, 32], strides = [1, 1]} : vector<2x128xf32> to vector<2x32xf32>
    %1318 = vector.extract_strided_slice %1306 {offsets = [0, 64], sizes = [2, 32], strides = [1, 1]} : vector<2x128xf32> to vector<2x32xf32>
    %cst_590 = arith.constant 0.000000e+00 : f32
    %1319 = vector.broadcast %cst_590 : f32 to vector<2x32xf32>
    %1320 = arith.maximumf %1318, %1319 : vector<2x32xf32>
    %1321 = arith.mulf %1316, %1291 : vector<2x32xf32>
    %1322 = arith.mulf %1315, %1320 : vector<2x32xf32>
    %1323 = arith.addf %1321, %1322 : vector<2x32xf32>
    %cst_591 = arith.constant 2.500000e-01 : f32
    %1324 = vector.broadcast %cst_591 : f32 to vector<2x32xf32>
    %1325 = arith.mulf %1324, %1323 : vector<2x32xf32>
    %cst_592 = arith.constant 5.000000e-01 : f32
    %1326 = vector.broadcast %cst_592 : f32 to vector<2x32xf32>
    %1327 = arith.addf %1325, %1326 : vector<2x32xf32>
    %cst_593 = arith.constant 0.000000e+00 : f32
    %cst_594 = arith.constant 1.000000e+00 : f32
    %1328 = vector.broadcast %cst_593 : f32 to vector<2x32xf32>
    %1329 = arith.maximumf %1328, %1327 : vector<2x32xf32>
    %1330 = vector.broadcast %cst_594 : f32 to vector<2x32xf32>
    %1331 = arith.minimumf %1330, %1329 : vector<2x32xf32>
    %1332 = arith.mulf %1317, %1331 : vector<2x32xf32>
    %1333 = arith.truncf %1332 : vector<2x32xf32> to vector<2x32xbf16>
    %c18_595 = arith.constant 18 : index
    %c0_596 = arith.constant 0 : index
    %1334 = vector.load %arg6[%c18_595, %c0_596] : memref<32x64xbf16, #tpu.memory_space<vmem>>, vector<2x32xbf16>
    tpu.vector_store %arg6[%c18_595, %c0_596], %1333 {strides = array<i32>} : memref<32x64xbf16, #tpu.memory_space<vmem>>, vector<2x32xbf16>,
    %c20_597 = arith.constant 20 : index
    %c0_598 = arith.constant 0 : index
    %1335 = vector.load %arg9[%c20_597, %c0_598] : memref<32x256xf32, #tpu.memory_space<vmem>>, vector<2x128xf32>
    %1336 = arith.truncf %1332 : vector<2x32xf32> to vector<2x32xbf16>
    %cst_599 = arith.constant dense<0.000000e+00> : vector<2x128xf32>
    %1337 = tpu.matmul %1336, %1014, %cst_599 {dimension_numbers = #tpu.dot_dimension_numbers<[1], [0], [0], [1], [0, 0, 1, 1], [], []>} : vector<2x32xbf16>, vector<32x128xbf16>, vector<2x128xf32> -> vector<2x128xf32>
    %1338 = arith.addf %1335, %1337 : vector<2x128xf32>
    %cst_600 = arith.constant 2.500000e-01 : f32
    %1339 = vector.broadcast %cst_600 : f32 to vector<2x128xf32>
    %1340 = arith.mulf %1339, %1338 : vector<2x128xf32>
    %cst_601 = arith.constant 5.000000e-01 : f32
    %1341 = vector.broadcast %cst_601 : f32 to vector<2x128xf32>
    %1342 = arith.addf %1340, %1341 : vector<2x128xf32>
    %cst_602 = arith.constant 0.000000e+00 : f32
    %cst_603 = arith.constant 1.000000e+00 : f32
    %1343 = vector.broadcast %cst_602 : f32 to vector<2x128xf32>
    %1344 = arith.maximumf %1343, %1342 : vector<2x128xf32>
    %1345 = vector.broadcast %cst_603 : f32 to vector<2x128xf32>
    %1346 = arith.minimumf %1345, %1344 : vector<2x128xf32>
    %1347 = vector.extract_strided_slice %1346 {offsets = [0, 0], sizes = [2, 32], strides = [1, 1]} : vector<2x128xf32> to vector<2x32xf32>
    %1348 = vector.extract_strided_slice %1346 {offsets = [0, 32], sizes = [2, 32], strides = [1, 1]} : vector<2x128xf32> to vector<2x32xf32>
    %1349 = vector.extract_strided_slice %1346 {offsets = [0, 96], sizes = [2, 32], strides = [1, 1]} : vector<2x128xf32> to vector<2x32xf32>
    %1350 = vector.extract_strided_slice %1338 {offsets = [0, 64], sizes = [2, 32], strides = [1, 1]} : vector<2x128xf32> to vector<2x32xf32>
    %cst_604 = arith.constant 0.000000e+00 : f32
    %1351 = vector.broadcast %cst_604 : f32 to vector<2x32xf32>
    %1352 = arith.maximumf %1350, %1351 : vector<2x32xf32>
    %1353 = arith.mulf %1348, %1323 : vector<2x32xf32>
    %1354 = arith.mulf %1347, %1352 : vector<2x32xf32>
    %1355 = arith.addf %1353, %1354 : vector<2x32xf32>
    %cst_605 = arith.constant 2.500000e-01 : f32
    %1356 = vector.broadcast %cst_605 : f32 to vector<2x32xf32>
    %1357 = arith.mulf %1356, %1355 : vector<2x32xf32>
    %cst_606 = arith.constant 5.000000e-01 : f32
    %1358 = vector.broadcast %cst_606 : f32 to vector<2x32xf32>
    %1359 = arith.addf %1357, %1358 : vector<2x32xf32>
    %cst_607 = arith.constant 0.000000e+00 : f32
    %cst_608 = arith.constant 1.000000e+00 : f32
    %1360 = vector.broadcast %cst_607 : f32 to vector<2x32xf32>
    %1361 = arith.maximumf %1360, %1359 : vector<2x32xf32>
    %1362 = vector.broadcast %cst_608 : f32 to vector<2x32xf32>
    %1363 = arith.minimumf %1362, %1361 : vector<2x32xf32>
    %1364 = arith.mulf %1349, %1363 : vector<2x32xf32>
    %1365 = arith.truncf %1364 : vector<2x32xf32> to vector<2x32xbf16>
    %c20_609 = arith.constant 20 : index
    %c0_610 = arith.constant 0 : index
    %1366 = vector.load %arg6[%c20_609, %c0_610] : memref<32x64xbf16, #tpu.memory_space<vmem>>, vector<2x32xbf16>
    tpu.vector_store %arg6[%c20_609, %c0_610], %1365 {strides = array<i32>} : memref<32x64xbf16, #tpu.memory_space<vmem>>, vector<2x32xbf16>,
    %c22_611 = arith.constant 22 : index
    %c0_612 = arith.constant 0 : index
    %1367 = vector.load %arg9[%c22_611, %c0_612] : memref<32x256xf32, #tpu.memory_space<vmem>>, vector<2x128xf32>
    %1368 = arith.truncf %1364 : vector<2x32xf32> to vector<2x32xbf16>
    %cst_613 = arith.constant dense<0.000000e+00> : vector<2x128xf32>
    %1369 = tpu.matmul %1368, %1014, %cst_613 {dimension_numbers = #tpu.dot_dimension_numbers<[1], [0], [0], [1], [0, 0, 1, 1], [], []>} : vector<2x32xbf16>, vector<32x128xbf16>, vector<2x128xf32> -> vector<2x128xf32>
    %1370 = arith.addf %1367, %1369 : vector<2x128xf32>
    %cst_614 = arith.constant 2.500000e-01 : f32
    %1371 = vector.broadcast %cst_614 : f32 to vector<2x128xf32>
    %1372 = arith.mulf %1371, %1370 : vector<2x128xf32>
    %cst_615 = arith.constant 5.000000e-01 : f32
    %1373 = vector.broadcast %cst_615 : f32 to vector<2x128xf32>
    %1374 = arith.addf %1372, %1373 : vector<2x128xf32>
    %cst_616 = arith.constant 0.000000e+00 : f32
    %cst_617 = arith.constant 1.000000e+00 : f32
    %1375 = vector.broadcast %cst_616 : f32 to vector<2x128xf32>
    %1376 = arith.maximumf %1375, %1374 : vector<2x128xf32>
    %1377 = vector.broadcast %cst_617 : f32 to vector<2x128xf32>
    %1378 = arith.minimumf %1377, %1376 : vector<2x128xf32>
    %1379 = vector.extract_strided_slice %1378 {offsets = [0, 0], sizes = [2, 32], strides = [1, 1]} : vector<2x128xf32> to vector<2x32xf32>
    %1380 = vector.extract_strided_slice %1378 {offsets = [0, 32], sizes = [2, 32], strides = [1, 1]} : vector<2x128xf32> to vector<2x32xf32>
    %1381 = vector.extract_strided_slice %1378 {offsets = [0, 96], sizes = [2, 32], strides = [1, 1]} : vector<2x128xf32> to vector<2x32xf32>
    %1382 = vector.extract_strided_slice %1370 {offsets = [0, 64], sizes = [2, 32], strides = [1, 1]} : vector<2x128xf32> to vector<2x32xf32>
    %cst_618 = arith.constant 0.000000e+00 : f32
    %1383 = vector.broadcast %cst_618 : f32 to vector<2x32xf32>
    %1384 = arith.maximumf %1382, %1383 : vector<2x32xf32>
    %1385 = arith.mulf %1380, %1355 : vector<2x32xf32>
    %1386 = arith.mulf %1379, %1384 : vector<2x32xf32>
    %1387 = arith.addf %1385, %1386 : vector<2x32xf32>
    %cst_619 = arith.constant 2.500000e-01 : f32
    %1388 = vector.broadcast %cst_619 : f32 to vector<2x32xf32>
    %1389 = arith.mulf %1388, %1387 : vector<2x32xf32>
    %cst_620 = arith.constant 5.000000e-01 : f32
    %1390 = vector.broadcast %cst_620 : f32 to vector<2x32xf32>
    %1391 = arith.addf %1389, %1390 : vector<2x32xf32>
    %cst_621 = arith.constant 0.000000e+00 : f32
    %cst_622 = arith.constant 1.000000e+00 : f32
    %1392 = vector.broadcast %cst_621 : f32 to vector<2x32xf32>
    %1393 = arith.maximumf %1392, %1391 : vector<2x32xf32>
    %1394 = vector.broadcast %cst_622 : f32 to vector<2x32xf32>
    %1395 = arith.minimumf %1394, %1393 : vector<2x32xf32>
    %1396 = arith.mulf %1381, %1395 : vector<2x32xf32>
    %1397 = arith.truncf %1396 : vector<2x32xf32> to vector<2x32xbf16>
    %c22_623 = arith.constant 22 : index
    %c0_624 = arith.constant 0 : index
    %1398 = vector.load %arg6[%c22_623, %c0_624] : memref<32x64xbf16, #tpu.memory_space<vmem>>, vector<2x32xbf16>
    tpu.vector_store %arg6[%c22_623, %c0_624], %1397 {strides = array<i32>} : memref<32x64xbf16, #tpu.memory_space<vmem>>, vector<2x32xbf16>,
    %c24_625 = arith.constant 24 : index
    %c0_626 = arith.constant 0 : index
    %1399 = vector.load %arg9[%c24_625, %c0_626] : memref<32x256xf32, #tpu.memory_space<vmem>>, vector<2x128xf32>
    %1400 = arith.truncf %1396 : vector<2x32xf32> to vector<2x32xbf16>
    %cst_627 = arith.constant dense<0.000000e+00> : vector<2x128xf32>
    %1401 = tpu.matmul %1400, %1014, %cst_627 {dimension_numbers = #tpu.dot_dimension_numbers<[1], [0], [0], [1], [0, 0, 1, 1], [], []>} : vector<2x32xbf16>, vector<32x128xbf16>, vector<2x128xf32> -> vector<2x128xf32>
    %1402 = arith.addf %1399, %1401 : vector<2x128xf32>
    %cst_628 = arith.constant 2.500000e-01 : f32
    %1403 = vector.broadcast %cst_628 : f32 to vector<2x128xf32>
    %1404 = arith.mulf %1403, %1402 : vector<2x128xf32>
    %cst_629 = arith.constant 5.000000e-01 : f32
    %1405 = vector.broadcast %cst_629 : f32 to vector<2x128xf32>
    %1406 = arith.addf %1404, %1405 : vector<2x128xf32>
    %cst_630 = arith.constant 0.000000e+00 : f32
    %cst_631 = arith.constant 1.000000e+00 : f32
    %1407 = vector.broadcast %cst_630 : f32 to vector<2x128xf32>
    %1408 = arith.maximumf %1407, %1406 : vector<2x128xf32>
    %1409 = vector.broadcast %cst_631 : f32 to vector<2x128xf32>
    %1410 = arith.minimumf %1409, %1408 : vector<2x128xf32>
    %1411 = vector.extract_strided_slice %1410 {offsets = [0, 0], sizes = [2, 32], strides = [1, 1]} : vector<2x128xf32> to vector<2x32xf32>
    %1412 = vector.extract_strided_slice %1410 {offsets = [0, 32], sizes = [2, 32], strides = [1, 1]} : vector<2x128xf32> to vector<2x32xf32>
    %1413 = vector.extract_strided_slice %1410 {offsets = [0, 96], sizes = [2, 32], strides = [1, 1]} : vector<2x128xf32> to vector<2x32xf32>
    %1414 = vector.extract_strided_slice %1402 {offsets = [0, 64], sizes = [2, 32], strides = [1, 1]} : vector<2x128xf32> to vector<2x32xf32>
    %cst_632 = arith.constant 0.000000e+00 : f32
    %1415 = vector.broadcast %cst_632 : f32 to vector<2x32xf32>
    %1416 = arith.maximumf %1414, %1415 : vector<2x32xf32>
    %1417 = arith.mulf %1412, %1387 : vector<2x32xf32>
    %1418 = arith.mulf %1411, %1416 : vector<2x32xf32>
    %1419 = arith.addf %1417, %1418 : vector<2x32xf32>
    %cst_633 = arith.constant 2.500000e-01 : f32
    %1420 = vector.broadcast %cst_633 : f32 to vector<2x32xf32>
    %1421 = arith.mulf %1420, %1419 : vector<2x32xf32>
    %cst_634 = arith.constant 5.000000e-01 : f32
    %1422 = vector.broadcast %cst_634 : f32 to vector<2x32xf32>
    %1423 = arith.addf %1421, %1422 : vector<2x32xf32>
    %cst_635 = arith.constant 0.000000e+00 : f32
    %cst_636 = arith.constant 1.000000e+00 : f32
    %1424 = vector.broadcast %cst_635 : f32 to vector<2x32xf32>
    %1425 = arith.maximumf %1424, %1423 : vector<2x32xf32>
    %1426 = vector.broadcast %cst_636 : f32 to vector<2x32xf32>
    %1427 = arith.minimumf %1426, %1425 : vector<2x32xf32>
    %1428 = arith.mulf %1413, %1427 : vector<2x32xf32>
    %1429 = arith.truncf %1428 : vector<2x32xf32> to vector<2x32xbf16>
    %c24_637 = arith.constant 24 : index
    %c0_638 = arith.constant 0 : index
    %1430 = vector.load %arg6[%c24_637, %c0_638] : memref<32x64xbf16, #tpu.memory_space<vmem>>, vector<2x32xbf16>
    tpu.vector_store %arg6[%c24_637, %c0_638], %1429 {strides = array<i32>} : memref<32x64xbf16, #tpu.memory_space<vmem>>, vector<2x32xbf16>,
    %c26_639 = arith.constant 26 : index
    %c0_640 = arith.constant 0 : index
    %1431 = vector.load %arg9[%c26_639, %c0_640] : memref<32x256xf32, #tpu.memory_space<vmem>>, vector<2x128xf32>
    %1432 = arith.truncf %1428 : vector<2x32xf32> to vector<2x32xbf16>
    %cst_641 = arith.constant dense<0.000000e+00> : vector<2x128xf32>
    %1433 = tpu.matmul %1432, %1014, %cst_641 {dimension_numbers = #tpu.dot_dimension_numbers<[1], [0], [0], [1], [0, 0, 1, 1], [], []>} : vector<2x32xbf16>, vector<32x128xbf16>, vector<2x128xf32> -> vector<2x128xf32>
    %1434 = arith.addf %1431, %1433 : vector<2x128xf32>
    %cst_642 = arith.constant 2.500000e-01 : f32
    %1435 = vector.broadcast %cst_642 : f32 to vector<2x128xf32>
    %1436 = arith.mulf %1435, %1434 : vector<2x128xf32>
    %cst_643 = arith.constant 5.000000e-01 : f32
    %1437 = vector.broadcast %cst_643 : f32 to vector<2x128xf32>
    %1438 = arith.addf %1436, %1437 : vector<2x128xf32>
    %cst_644 = arith.constant 0.000000e+00 : f32
    %cst_645 = arith.constant 1.000000e+00 : f32
    %1439 = vector.broadcast %cst_644 : f32 to vector<2x128xf32>
    %1440 = arith.maximumf %1439, %1438 : vector<2x128xf32>
    %1441 = vector.broadcast %cst_645 : f32 to vector<2x128xf32>
    %1442 = arith.minimumf %1441, %1440 : vector<2x128xf32>
    %1443 = vector.extract_strided_slice %1442 {offsets = [0, 0], sizes = [2, 32], strides = [1, 1]} : vector<2x128xf32> to vector<2x32xf32>
    %1444 = vector.extract_strided_slice %1442 {offsets = [0, 32], sizes = [2, 32], strides = [1, 1]} : vector<2x128xf32> to vector<2x32xf32>
    %1445 = vector.extract_strided_slice %1442 {offsets = [0, 96], sizes = [2, 32], strides = [1, 1]} : vector<2x128xf32> to vector<2x32xf32>
    %1446 = vector.extract_strided_slice %1434 {offsets = [0, 64], sizes = [2, 32], strides = [1, 1]} : vector<2x128xf32> to vector<2x32xf32>
    %cst_646 = arith.constant 0.000000e+00 : f32
    %1447 = vector.broadcast %cst_646 : f32 to vector<2x32xf32>
    %1448 = arith.maximumf %1446, %1447 : vector<2x32xf32>
    %1449 = arith.mulf %1444, %1419 : vector<2x32xf32>
    %1450 = arith.mulf %1443, %1448 : vector<2x32xf32>
    %1451 = arith.addf %1449, %1450 : vector<2x32xf32>
    %cst_647 = arith.constant 2.500000e-01 : f32
    %1452 = vector.broadcast %cst_647 : f32 to vector<2x32xf32>
    %1453 = arith.mulf %1452, %1451 : vector<2x32xf32>
    %cst_648 = arith.constant 5.000000e-01 : f32
    %1454 = vector.broadcast %cst_648 : f32 to vector<2x32xf32>
    %1455 = arith.addf %1453, %1454 : vector<2x32xf32>
    %cst_649 = arith.constant 0.000000e+00 : f32
    %cst_650 = arith.constant 1.000000e+00 : f32
    %1456 = vector.broadcast %cst_649 : f32 to vector<2x32xf32>
    %1457 = arith.maximumf %1456, %1455 : vector<2x32xf32>
    %1458 = vector.broadcast %cst_650 : f32 to vector<2x32xf32>
    %1459 = arith.minimumf %1458, %1457 : vector<2x32xf32>
    %1460 = arith.mulf %1445, %1459 : vector<2x32xf32>
    %1461 = arith.truncf %1460 : vector<2x32xf32> to vector<2x32xbf16>
    %c26_651 = arith.constant 26 : index
    %c0_652 = arith.constant 0 : index
    %1462 = vector.load %arg6[%c26_651, %c0_652] : memref<32x64xbf16, #tpu.memory_space<vmem>>, vector<2x32xbf16>
    tpu.vector_store %arg6[%c26_651, %c0_652], %1461 {strides = array<i32>} : memref<32x64xbf16, #tpu.memory_space<vmem>>, vector<2x32xbf16>,
    %c28_653 = arith.constant 28 : index
    %c0_654 = arith.constant 0 : index
    %1463 = vector.load %arg9[%c28_653, %c0_654] : memref<32x256xf32, #tpu.memory_space<vmem>>, vector<2x128xf32>
    %1464 = arith.truncf %1460 : vector<2x32xf32> to vector<2x32xbf16>
    %cst_655 = arith.constant dense<0.000000e+00> : vector<2x128xf32>
    %1465 = tpu.matmul %1464, %1014, %cst_655 {dimension_numbers = #tpu.dot_dimension_numbers<[1], [0], [0], [1], [0, 0, 1, 1], [], []>} : vector<2x32xbf16>, vector<32x128xbf16>, vector<2x128xf32> -> vector<2x128xf32>
    %1466 = arith.addf %1463, %1465 : vector<2x128xf32>
    %cst_656 = arith.constant 2.500000e-01 : f32
    %1467 = vector.broadcast %cst_656 : f32 to vector<2x128xf32>
    %1468 = arith.mulf %1467, %1466 : vector<2x128xf32>
    %cst_657 = arith.constant 5.000000e-01 : f32
    %1469 = vector.broadcast %cst_657 : f32 to vector<2x128xf32>
    %1470 = arith.addf %1468, %1469 : vector<2x128xf32>
    %cst_658 = arith.constant 0.000000e+00 : f32
    %cst_659 = arith.constant 1.000000e+00 : f32
    %1471 = vector.broadcast %cst_658 : f32 to vector<2x128xf32>
    %1472 = arith.maximumf %1471, %1470 : vector<2x128xf32>
    %1473 = vector.broadcast %cst_659 : f32 to vector<2x128xf32>
    %1474 = arith.minimumf %1473, %1472 : vector<2x128xf32>
    %1475 = vector.extract_strided_slice %1474 {offsets = [0, 0], sizes = [2, 32], strides = [1, 1]} : vector<2x128xf32> to vector<2x32xf32>
    %1476 = vector.extract_strided_slice %1474 {offsets = [0, 32], sizes = [2, 32], strides = [1, 1]} : vector<2x128xf32> to vector<2x32xf32>
    %1477 = vector.extract_strided_slice %1474 {offsets = [0, 96], sizes = [2, 32], strides = [1, 1]} : vector<2x128xf32> to vector<2x32xf32>
    %1478 = vector.extract_strided_slice %1466 {offsets = [0, 64], sizes = [2, 32], strides = [1, 1]} : vector<2x128xf32> to vector<2x32xf32>
    %cst_660 = arith.constant 0.000000e+00 : f32
    %1479 = vector.broadcast %cst_660 : f32 to vector<2x32xf32>
    %1480 = arith.maximumf %1478, %1479 : vector<2x32xf32>
    %1481 = arith.mulf %1476, %1451 : vector<2x32xf32>
    %1482 = arith.mulf %1475, %1480 : vector<2x32xf32>
    %1483 = arith.addf %1481, %1482 : vector<2x32xf32>
    %cst_661 = arith.constant 2.500000e-01 : f32
    %1484 = vector.broadcast %cst_661 : f32 to vector<2x32xf32>
    %1485 = arith.mulf %1484, %1483 : vector<2x32xf32>
    %cst_662 = arith.constant 5.000000e-01 : f32
    %1486 = vector.broadcast %cst_662 : f32 to vector<2x32xf32>
    %1487 = arith.addf %1485, %1486 : vector<2x32xf32>
    %cst_663 = arith.constant 0.000000e+00 : f32
    %cst_664 = arith.constant 1.000000e+00 : f32
    %1488 = vector.broadcast %cst_663 : f32 to vector<2x32xf32>
    %1489 = arith.maximumf %1488, %1487 : vector<2x32xf32>
    %1490 = vector.broadcast %cst_664 : f32 to vector<2x32xf32>
    %1491 = arith.minimumf %1490, %1489 : vector<2x32xf32>
    %1492 = arith.mulf %1477, %1491 : vector<2x32xf32>
    %1493 = arith.truncf %1492 : vector<2x32xf32> to vector<2x32xbf16>
    %c28_665 = arith.constant 28 : index
    %c0_666 = arith.constant 0 : index
    %1494 = vector.load %arg6[%c28_665, %c0_666] : memref<32x64xbf16, #tpu.memory_space<vmem>>, vector<2x32xbf16>
    tpu.vector_store %arg6[%c28_665, %c0_666], %1493 {strides = array<i32>} : memref<32x64xbf16, #tpu.memory_space<vmem>>, vector<2x32xbf16>,
    %c30_667 = arith.constant 30 : index
    %c0_668 = arith.constant 0 : index
    %1495 = vector.load %arg9[%c30_667, %c0_668] : memref<32x256xf32, #tpu.memory_space<vmem>>, vector<2x128xf32>
    %1496 = arith.truncf %1492 : vector<2x32xf32> to vector<2x32xbf16>
    %cst_669 = arith.constant dense<0.000000e+00> : vector<2x128xf32>
    %1497 = tpu.matmul %1496, %1014, %cst_669 {dimension_numbers = #tpu.dot_dimension_numbers<[1], [0], [0], [1], [0, 0, 1, 1], [], []>} : vector<2x32xbf16>, vector<32x128xbf16>, vector<2x128xf32> -> vector<2x128xf32>
    %1498 = arith.addf %1495, %1497 : vector<2x128xf32>
    %cst_670 = arith.constant 2.500000e-01 : f32
    %1499 = vector.broadcast %cst_670 : f32 to vector<2x128xf32>
    %1500 = arith.mulf %1499, %1498 : vector<2x128xf32>
    %cst_671 = arith.constant 5.000000e-01 : f32
    %1501 = vector.broadcast %cst_671 : f32 to vector<2x128xf32>
    %1502 = arith.addf %1500, %1501 : vector<2x128xf32>
    %cst_672 = arith.constant 0.000000e+00 : f32
    %cst_673 = arith.constant 1.000000e+00 : f32
    %1503 = vector.broadcast %cst_672 : f32 to vector<2x128xf32>
    %1504 = arith.maximumf %1503, %1502 : vector<2x128xf32>
    %1505 = vector.broadcast %cst_673 : f32 to vector<2x128xf32>
    %1506 = arith.minimumf %1505, %1504 : vector<2x128xf32>
    %1507 = vector.extract_strided_slice %1506 {offsets = [0, 0], sizes = [2, 32], strides = [1, 1]} : vector<2x128xf32> to vector<2x32xf32>
    %1508 = vector.extract_strided_slice %1506 {offsets = [0, 32], sizes = [2, 32], strides = [1, 1]} : vector<2x128xf32> to vector<2x32xf32>
    %1509 = vector.extract_strided_slice %1506 {offsets = [0, 96], sizes = [2, 32], strides = [1, 1]} : vector<2x128xf32> to vector<2x32xf32>
    %1510 = vector.extract_strided_slice %1498 {offsets = [0, 64], sizes = [2, 32], strides = [1, 1]} : vector<2x128xf32> to vector<2x32xf32>
    %cst_674 = arith.constant 0.000000e+00 : f32
    %1511 = vector.broadcast %cst_674 : f32 to vector<2x32xf32>
    %1512 = arith.maximumf %1510, %1511 : vector<2x32xf32>
    %1513 = arith.mulf %1508, %1483 : vector<2x32xf32>
    %1514 = arith.mulf %1507, %1512 : vector<2x32xf32>
    %1515 = arith.addf %1513, %1514 : vector<2x32xf32>
    %cst_675 = arith.constant 2.500000e-01 : f32
    %1516 = vector.broadcast %cst_675 : f32 to vector<2x32xf32>
    %1517 = arith.mulf %1516, %1515 : vector<2x32xf32>
    %cst_676 = arith.constant 5.000000e-01 : f32
    %1518 = vector.broadcast %cst_676 : f32 to vector<2x32xf32>
    %1519 = arith.addf %1517, %1518 : vector<2x32xf32>
    %cst_677 = arith.constant 0.000000e+00 : f32
    %cst_678 = arith.constant 1.000000e+00 : f32
    %1520 = vector.broadcast %cst_677 : f32 to vector<2x32xf32>
    %1521 = arith.maximumf %1520, %1519 : vector<2x32xf32>
    %1522 = vector.broadcast %cst_678 : f32 to vector<2x32xf32>
    %1523 = arith.minimumf %1522, %1521 : vector<2x32xf32>
    %1524 = arith.mulf %1509, %1523 : vector<2x32xf32>
    %1525 = arith.truncf %1524 : vector<2x32xf32> to vector<2x32xbf16>
    %c30_679 = arith.constant 30 : index
    %c0_680 = arith.constant 0 : index
    %1526 = vector.load %arg6[%c30_679, %c0_680] : memref<32x64xbf16, #tpu.memory_space<vmem>>, vector<2x32xbf16>
    tpu.vector_store %arg6[%c30_679, %c0_680], %1525 {strides = array<i32>} : memref<32x64xbf16, #tpu.memory_space<vmem>>, vector<2x32xbf16>,
    %c3 = arith.constant 3 : index
    %c0_681 = arith.constant 0 : index
    %c0_682 = arith.constant 0 : index
    %1527 = vector.load %arg5[%c3, %c0_681, %c0_682] : memref<4x32x128xbf16, #tpu.memory_space<vmem>>, vector<1x32x128xbf16>
    %1528 = vector.shape_cast %1527 : vector<1x32x128xbf16> to vector<32x128xbf16>
    %c30_683 = arith.constant 30 : index
    %c128_684 = arith.constant 128 : index
    %1529 = vector.load %arg9[%c30_683, %c128_684] : memref<32x256xf32, #tpu.memory_space<vmem>>, vector<2x128xf32>
    %1530 = arith.truncf %1524 : vector<2x32xf32> to vector<2x32xbf16>
    %cst_685 = arith.constant dense<0.000000e+00> : vector<2x128xf32>
    %1531 = tpu.matmul %1530, %1528, %cst_685 {dimension_numbers = #tpu.dot_dimension_numbers<[1], [0], [0], [1], [0, 0, 1, 1], [], []>} : vector<2x32xbf16>, vector<32x128xbf16>, vector<2x128xf32> -> vector<2x128xf32>
    %1532 = arith.addf %1529, %1531 : vector<2x128xf32>
    %cst_686 = arith.constant 2.500000e-01 : f32
    %1533 = vector.broadcast %cst_686 : f32 to vector<2x128xf32>
    %1534 = arith.mulf %1533, %1532 : vector<2x128xf32>
    %cst_687 = arith.constant 5.000000e-01 : f32
    %1535 = vector.broadcast %cst_687 : f32 to vector<2x128xf32>
    %1536 = arith.addf %1534, %1535 : vector<2x128xf32>
    %cst_688 = arith.constant 0.000000e+00 : f32
    %cst_689 = arith.constant 1.000000e+00 : f32
    %1537 = vector.broadcast %cst_688 : f32 to vector<2x128xf32>
    %1538 = arith.maximumf %1537, %1536 : vector<2x128xf32>
    %1539 = vector.broadcast %cst_689 : f32 to vector<2x128xf32>
    %1540 = arith.minimumf %1539, %1538 : vector<2x128xf32>
    %1541 = vector.extract_strided_slice %1540 {offsets = [0, 0], sizes = [2, 32], strides = [1, 1]} : vector<2x128xf32> to vector<2x32xf32>
    %1542 = vector.extract_strided_slice %1540 {offsets = [0, 32], sizes = [2, 32], strides = [1, 1]} : vector<2x128xf32> to vector<2x32xf32>
    %1543 = vector.extract_strided_slice %1540 {offsets = [0, 96], sizes = [2, 32], strides = [1, 1]} : vector<2x128xf32> to vector<2x32xf32>
    %1544 = vector.extract_strided_slice %1532 {offsets = [0, 64], sizes = [2, 32], strides = [1, 1]} : vector<2x128xf32> to vector<2x32xf32>
    %cst_690 = arith.constant 0.000000e+00 : f32
    %1545 = vector.broadcast %cst_690 : f32 to vector<2x32xf32>
    %1546 = arith.maximumf %1544, %1545 : vector<2x32xf32>
    %1547 = arith.mulf %1542, %1515 : vector<2x32xf32>
    %1548 = arith.mulf %1541, %1546 : vector<2x32xf32>
    %1549 = arith.addf %1547, %1548 : vector<2x32xf32>
    %cst_691 = arith.constant 2.500000e-01 : f32
    %1550 = vector.broadcast %cst_691 : f32 to vector<2x32xf32>
    %1551 = arith.mulf %1550, %1549 : vector<2x32xf32>
    %cst_692 = arith.constant 5.000000e-01 : f32
    %1552 = vector.broadcast %cst_692 : f32 to vector<2x32xf32>
    %1553 = arith.addf %1551, %1552 : vector<2x32xf32>
    %cst_693 = arith.constant 0.000000e+00 : f32
    %cst_694 = arith.constant 1.000000e+00 : f32
    %1554 = vector.broadcast %cst_693 : f32 to vector<2x32xf32>
    %1555 = arith.maximumf %1554, %1553 : vector<2x32xf32>
    %1556 = vector.broadcast %cst_694 : f32 to vector<2x32xf32>
    %1557 = arith.minimumf %1556, %1555 : vector<2x32xf32>
    %1558 = arith.mulf %1543, %1557 : vector<2x32xf32>
    %1559 = arith.truncf %1558 : vector<2x32xf32> to vector<2x32xbf16>
    %c30_695 = arith.constant 30 : index
    %c32_696 = arith.constant 32 : index
    %1560 = vector.load %arg6[%c30_695, %c32_696] : memref<32x64xbf16, #tpu.memory_space<vmem>>, vector<2x32xbf16>
    tpu.vector_store %arg6[%c30_695, %c32_696], %1559 {strides = array<i32>} : memref<32x64xbf16, #tpu.memory_space<vmem>>, vector<2x32xbf16>,
    %c28_697 = arith.constant 28 : index
    %c128_698 = arith.constant 128 : index
    %1561 = vector.load %arg9[%c28_697, %c128_698] : memref<32x256xf32, #tpu.memory_space<vmem>>, vector<2x128xf32>
    %1562 = arith.truncf %1558 : vector<2x32xf32> to vector<2x32xbf16>
    %cst_699 = arith.constant dense<0.000000e+00> : vector<2x128xf32>
    %1563 = tpu.matmul %1562, %1528, %cst_699 {dimension_numbers = #tpu.dot_dimension_numbers<[1], [0], [0], [1], [0, 0, 1, 1], [], []>} : vector<2x32xbf16>, vector<32x128xbf16>, vector<2x128xf32> -> vector<2x128xf32>
    %1564 = arith.addf %1561, %1563 : vector<2x128xf32>
    %cst_700 = arith.constant 2.500000e-01 : f32
    %1565 = vector.broadcast %cst_700 : f32 to vector<2x128xf32>
    %1566 = arith.mulf %1565, %1564 : vector<2x128xf32>
    %cst_701 = arith.constant 5.000000e-01 : f32
    %1567 = vector.broadcast %cst_701 : f32 to vector<2x128xf32>
    %1568 = arith.addf %1566, %1567 : vector<2x128xf32>
    %cst_702 = arith.constant 0.000000e+00 : f32
    %cst_703 = arith.constant 1.000000e+00 : f32
    %1569 = vector.broadcast %cst_702 : f32 to vector<2x128xf32>
    %1570 = arith.maximumf %1569, %1568 : vector<2x128xf32>
    %1571 = vector.broadcast %cst_703 : f32 to vector<2x128xf32>
    %1572 = arith.minimumf %1571, %1570 : vector<2x128xf32>
    %1573 = vector.extract_strided_slice %1572 {offsets = [0, 0], sizes = [2, 32], strides = [1, 1]} : vector<2x128xf32> to vector<2x32xf32>
    %1574 = vector.extract_strided_slice %1572 {offsets = [0, 32], sizes = [2, 32], strides = [1, 1]} : vector<2x128xf32> to vector<2x32xf32>
    %1575 = vector.extract_strided_slice %1572 {offsets = [0, 96], sizes = [2, 32], strides = [1, 1]} : vector<2x128xf32> to vector<2x32xf32>
    %1576 = vector.extract_strided_slice %1564 {offsets = [0, 64], sizes = [2, 32], strides = [1, 1]} : vector<2x128xf32> to vector<2x32xf32>
    %cst_704 = arith.constant 0.000000e+00 : f32
    %1577 = vector.broadcast %cst_704 : f32 to vector<2x32xf32>
    %1578 = arith.maximumf %1576, %1577 : vector<2x32xf32>
    %1579 = arith.mulf %1574, %1549 : vector<2x32xf32>
    %1580 = arith.mulf %1573, %1578 : vector<2x32xf32>
    %1581 = arith.addf %1579, %1580 : vector<2x32xf32>
    %cst_705 = arith.constant 2.500000e-01 : f32
    %1582 = vector.broadcast %cst_705 : f32 to vector<2x32xf32>
    %1583 = arith.mulf %1582, %1581 : vector<2x32xf32>
    %cst_706 = arith.constant 5.000000e-01 : f32
    %1584 = vector.broadcast %cst_706 : f32 to vector<2x32xf32>
    %1585 = arith.addf %1583, %1584 : vector<2x32xf32>
    %cst_707 = arith.constant 0.000000e+00 : f32
    %cst_708 = arith.constant 1.000000e+00 : f32
    %1586 = vector.broadcast %cst_707 : f32 to vector<2x32xf32>
    %1587 = arith.maximumf %1586, %1585 : vector<2x32xf32>
    %1588 = vector.broadcast %cst_708 : f32 to vector<2x32xf32>
    %1589 = arith.minimumf %1588, %1587 : vector<2x32xf32>
    %1590 = arith.mulf %1575, %1589 : vector<2x32xf32>
    %1591 = arith.truncf %1590 : vector<2x32xf32> to vector<2x32xbf16>
    %c28_709 = arith.constant 28 : index
    %c32_710 = arith.constant 32 : index
    %1592 = vector.load %arg6[%c28_709, %c32_710] : memref<32x64xbf16, #tpu.memory_space<vmem>>, vector<2x32xbf16>
    tpu.vector_store %arg6[%c28_709, %c32_710], %1591 {strides = array<i32>} : memref<32x64xbf16, #tpu.memory_space<vmem>>, vector<2x32xbf16>,
    %c26_711 = arith.constant 26 : index
    %c128_712 = arith.constant 128 : index
    %1593 = vector.load %arg9[%c26_711, %c128_712] : memref<32x256xf32, #tpu.memory_space<vmem>>, vector<2x128xf32>
    %1594 = arith.truncf %1590 : vector<2x32xf32> to vector<2x32xbf16>
    %cst_713 = arith.constant dense<0.000000e+00> : vector<2x128xf32>
    %1595 = tpu.matmul %1594, %1528, %cst_713 {dimension_numbers = #tpu.dot_dimension_numbers<[1], [0], [0], [1], [0, 0, 1, 1], [], []>} : vector<2x32xbf16>, vector<32x128xbf16>, vector<2x128xf32> -> vector<2x128xf32>
    %1596 = arith.addf %1593, %1595 : vector<2x128xf32>
    %cst_714 = arith.constant 2.500000e-01 : f32
    %1597 = vector.broadcast %cst_714 : f32 to vector<2x128xf32>
    %1598 = arith.mulf %1597, %1596 : vector<2x128xf32>
    %cst_715 = arith.constant 5.000000e-01 : f32
    %1599 = vector.broadcast %cst_715 : f32 to vector<2x128xf32>
    %1600 = arith.addf %1598, %1599 : vector<2x128xf32>
    %cst_716 = arith.constant 0.000000e+00 : f32
    %cst_717 = arith.constant 1.000000e+00 : f32
    %1601 = vector.broadcast %cst_716 : f32 to vector<2x128xf32>
    %1602 = arith.maximumf %1601, %1600 : vector<2x128xf32>
    %1603 = vector.broadcast %cst_717 : f32 to vector<2x128xf32>
    %1604 = arith.minimumf %1603, %1602 : vector<2x128xf32>
    %1605 = vector.extract_strided_slice %1604 {offsets = [0, 0], sizes = [2, 32], strides = [1, 1]} : vector<2x128xf32> to vector<2x32xf32>
    %1606 = vector.extract_strided_slice %1604 {offsets = [0, 32], sizes = [2, 32], strides = [1, 1]} : vector<2x128xf32> to vector<2x32xf32>
    %1607 = vector.extract_strided_slice %1604 {offsets = [0, 96], sizes = [2, 32], strides = [1, 1]} : vector<2x128xf32> to vector<2x32xf32>
    %1608 = vector.extract_strided_slice %1596 {offsets = [0, 64], sizes = [2, 32], strides = [1, 1]} : vector<2x128xf32> to vector<2x32xf32>
    %cst_718 = arith.constant 0.000000e+00 : f32
    %1609 = vector.broadcast %cst_718 : f32 to vector<2x32xf32>
    %1610 = arith.maximumf %1608, %1609 : vector<2x32xf32>
    %1611 = arith.mulf %1606, %1581 : vector<2x32xf32>
    %1612 = arith.mulf %1605, %1610 : vector<2x32xf32>
    %1613 = arith.addf %1611, %1612 : vector<2x32xf32>
    %cst_719 = arith.constant 2.500000e-01 : f32
    %1614 = vector.broadcast %cst_719 : f32 to vector<2x32xf32>
    %1615 = arith.mulf %1614, %1613 : vector<2x32xf32>
    %cst_720 = arith.constant 5.000000e-01 : f32
    %1616 = vector.broadcast %cst_720 : f32 to vector<2x32xf32>
    %1617 = arith.addf %1615, %1616 : vector<2x32xf32>
    %cst_721 = arith.constant 0.000000e+00 : f32
    %cst_722 = arith.constant 1.000000e+00 : f32
    %1618 = vector.broadcast %cst_721 : f32 to vector<2x32xf32>
    %1619 = arith.maximumf %1618, %1617 : vector<2x32xf32>
    %1620 = vector.broadcast %cst_722 : f32 to vector<2x32xf32>
    %1621 = arith.minimumf %1620, %1619 : vector<2x32xf32>
    %1622 = arith.mulf %1607, %1621 : vector<2x32xf32>
    %1623 = arith.truncf %1622 : vector<2x32xf32> to vector<2x32xbf16>
    %c26_723 = arith.constant 26 : index
    %c32_724 = arith.constant 32 : index
    %1624 = vector.load %arg6[%c26_723, %c32_724] : memref<32x64xbf16, #tpu.memory_space<vmem>>, vector<2x32xbf16>
    tpu.vector_store %arg6[%c26_723, %c32_724], %1623 {strides = array<i32>} : memref<32x64xbf16, #tpu.memory_space<vmem>>, vector<2x32xbf16>,
    %c24_725 = arith.constant 24 : index
    %c128_726 = arith.constant 128 : index
    %1625 = vector.load %arg9[%c24_725, %c128_726] : memref<32x256xf32, #tpu.memory_space<vmem>>, vector<2x128xf32>
    %1626 = arith.truncf %1622 : vector<2x32xf32> to vector<2x32xbf16>
    %cst_727 = arith.constant dense<0.000000e+00> : vector<2x128xf32>
    %1627 = tpu.matmul %1626, %1528, %cst_727 {dimension_numbers = #tpu.dot_dimension_numbers<[1], [0], [0], [1], [0, 0, 1, 1], [], []>} : vector<2x32xbf16>, vector<32x128xbf16>, vector<2x128xf32> -> vector<2x128xf32>
    %1628 = arith.addf %1625, %1627 : vector<2x128xf32>
    %cst_728 = arith.constant 2.500000e-01 : f32
    %1629 = vector.broadcast %cst_728 : f32 to vector<2x128xf32>
    %1630 = arith.mulf %1629, %1628 : vector<2x128xf32>
    %cst_729 = arith.constant 5.000000e-01 : f32
    %1631 = vector.broadcast %cst_729 : f32 to vector<2x128xf32>
    %1632 = arith.addf %1630, %1631 : vector<2x128xf32>
    %cst_730 = arith.constant 0.000000e+00 : f32
    %cst_731 = arith.constant 1.000000e+00 : f32
    %1633 = vector.broadcast %cst_730 : f32 to vector<2x128xf32>
    %1634 = arith.maximumf %1633, %1632 : vector<2x128xf32>
    %1635 = vector.broadcast %cst_731 : f32 to vector<2x128xf32>
    %1636 = arith.minimumf %1635, %1634 : vector<2x128xf32>
    %1637 = vector.extract_strided_slice %1636 {offsets = [0, 0], sizes = [2, 32], strides = [1, 1]} : vector<2x128xf32> to vector<2x32xf32>
    %1638 = vector.extract_strided_slice %1636 {offsets = [0, 32], sizes = [2, 32], strides = [1, 1]} : vector<2x128xf32> to vector<2x32xf32>
    %1639 = vector.extract_strided_slice %1636 {offsets = [0, 96], sizes = [2, 32], strides = [1, 1]} : vector<2x128xf32> to vector<2x32xf32>
    %1640 = vector.extract_strided_slice %1628 {offsets = [0, 64], sizes = [2, 32], strides = [1, 1]} : vector<2x128xf32> to vector<2x32xf32>
    %cst_732 = arith.constant 0.000000e+00 : f32
    %1641 = vector.broadcast %cst_732 : f32 to vector<2x32xf32>
    %1642 = arith.maximumf %1640, %1641 : vector<2x32xf32>
    %1643 = arith.mulf %1638, %1613 : vector<2x32xf32>
    %1644 = arith.mulf %1637, %1642 : vector<2x32xf32>
    %1645 = arith.addf %1643, %1644 : vector<2x32xf32>
    %cst_733 = arith.constant 2.500000e-01 : f32
    %1646 = vector.broadcast %cst_733 : f32 to vector<2x32xf32>
    %1647 = arith.mulf %1646, %1645 : vector<2x32xf32>
    %cst_734 = arith.constant 5.000000e-01 : f32
    %1648 = vector.broadcast %cst_734 : f32 to vector<2x32xf32>
    %1649 = arith.addf %1647, %1648 : vector<2x32xf32>
    %cst_735 = arith.constant 0.000000e+00 : f32
    %cst_736 = arith.constant 1.000000e+00 : f32
    %1650 = vector.broadcast %cst_735 : f32 to vector<2x32xf32>
    %1651 = arith.maximumf %1650, %1649 : vector<2x32xf32>
    %1652 = vector.broadcast %cst_736 : f32 to vector<2x32xf32>
    %1653 = arith.minimumf %1652, %1651 : vector<2x32xf32>
    %1654 = arith.mulf %1639, %1653 : vector<2x32xf32>
    %1655 = arith.truncf %1654 : vector<2x32xf32> to vector<2x32xbf16>
    %c24_737 = arith.constant 24 : index
    %c32_738 = arith.constant 32 : index
    %1656 = vector.load %arg6[%c24_737, %c32_738] : memref<32x64xbf16, #tpu.memory_space<vmem>>, vector<2x32xbf16>
    tpu.vector_store %arg6[%c24_737, %c32_738], %1655 {strides = array<i32>} : memref<32x64xbf16, #tpu.memory_space<vmem>>, vector<2x32xbf16>,
    %c22_739 = arith.constant 22 : index
    %c128_740 = arith.constant 128 : index
    %1657 = vector.load %arg9[%c22_739, %c128_740] : memref<32x256xf32, #tpu.memory_space<vmem>>, vector<2x128xf32>
    %1658 = arith.truncf %1654 : vector<2x32xf32> to vector<2x32xbf16>
    %cst_741 = arith.constant dense<0.000000e+00> : vector<2x128xf32>
    %1659 = tpu.matmul %1658, %1528, %cst_741 {dimension_numbers = #tpu.dot_dimension_numbers<[1], [0], [0], [1], [0, 0, 1, 1], [], []>} : vector<2x32xbf16>, vector<32x128xbf16>, vector<2x128xf32> -> vector<2x128xf32>
    %1660 = arith.addf %1657, %1659 : vector<2x128xf32>
    %cst_742 = arith.constant 2.500000e-01 : f32
    %1661 = vector.broadcast %cst_742 : f32 to vector<2x128xf32>
    %1662 = arith.mulf %1661, %1660 : vector<2x128xf32>
    %cst_743 = arith.constant 5.000000e-01 : f32
    %1663 = vector.broadcast %cst_743 : f32 to vector<2x128xf32>
    %1664 = arith.addf %1662, %1663 : vector<2x128xf32>
    %cst_744 = arith.constant 0.000000e+00 : f32
    %cst_745 = arith.constant 1.000000e+00 : f32
    %1665 = vector.broadcast %cst_744 : f32 to vector<2x128xf32>
    %1666 = arith.maximumf %1665, %1664 : vector<2x128xf32>
    %1667 = vector.broadcast %cst_745 : f32 to vector<2x128xf32>
    %1668 = arith.minimumf %1667, %1666 : vector<2x128xf32>
    %1669 = vector.extract_strided_slice %1668 {offsets = [0, 0], sizes = [2, 32], strides = [1, 1]} : vector<2x128xf32> to vector<2x32xf32>
    %1670 = vector.extract_strided_slice %1668 {offsets = [0, 32], sizes = [2, 32], strides = [1, 1]} : vector<2x128xf32> to vector<2x32xf32>
    %1671 = vector.extract_strided_slice %1668 {offsets = [0, 96], sizes = [2, 32], strides = [1, 1]} : vector<2x128xf32> to vector<2x32xf32>
    %1672 = vector.extract_strided_slice %1660 {offsets = [0, 64], sizes = [2, 32], strides = [1, 1]} : vector<2x128xf32> to vector<2x32xf32>
    %cst_746 = arith.constant 0.000000e+00 : f32
    %1673 = vector.broadcast %cst_746 : f32 to vector<2x32xf32>
    %1674 = arith.maximumf %1672, %1673 : vector<2x32xf32>
    %1675 = arith.mulf %1670, %1645 : vector<2x32xf32>
    %1676 = arith.mulf %1669, %1674 : vector<2x32xf32>
    %1677 = arith.addf %1675, %1676 : vector<2x32xf32>
    %cst_747 = arith.constant 2.500000e-01 : f32
    %1678 = vector.broadcast %cst_747 : f32 to vector<2x32xf32>
    %1679 = arith.mulf %1678, %1677 : vector<2x32xf32>
    %cst_748 = arith.constant 5.000000e-01 : f32
    %1680 = vector.broadcast %cst_748 : f32 to vector<2x32xf32>
    %1681 = arith.addf %1679, %1680 : vector<2x32xf32>
    %cst_749 = arith.constant 0.000000e+00 : f32
    %cst_750 = arith.constant 1.000000e+00 : f32
    %1682 = vector.broadcast %cst_749 : f32 to vector<2x32xf32>
    %1683 = arith.maximumf %1682, %1681 : vector<2x32xf32>
    %1684 = vector.broadcast %cst_750 : f32 to vector<2x32xf32>
    %1685 = arith.minimumf %1684, %1683 : vector<2x32xf32>
    %1686 = arith.mulf %1671, %1685 : vector<2x32xf32>
    %1687 = arith.truncf %1686 : vector<2x32xf32> to vector<2x32xbf16>
    %c22_751 = arith.constant 22 : index
    %c32_752 = arith.constant 32 : index
    %1688 = vector.load %arg6[%c22_751, %c32_752] : memref<32x64xbf16, #tpu.memory_space<vmem>>, vector<2x32xbf16>
    tpu.vector_store %arg6[%c22_751, %c32_752], %1687 {strides = array<i32>} : memref<32x64xbf16, #tpu.memory_space<vmem>>, vector<2x32xbf16>,
    %c20_753 = arith.constant 20 : index
    %c128_754 = arith.constant 128 : index
    %1689 = vector.load %arg9[%c20_753, %c128_754] : memref<32x256xf32, #tpu.memory_space<vmem>>, vector<2x128xf32>
    %1690 = arith.truncf %1686 : vector<2x32xf32> to vector<2x32xbf16>
    %cst_755 = arith.constant dense<0.000000e+00> : vector<2x128xf32>
    %1691 = tpu.matmul %1690, %1528, %cst_755 {dimension_numbers = #tpu.dot_dimension_numbers<[1], [0], [0], [1], [0, 0, 1, 1], [], []>} : vector<2x32xbf16>, vector<32x128xbf16>, vector<2x128xf32> -> vector<2x128xf32>
    %1692 = arith.addf %1689, %1691 : vector<2x128xf32>
    %cst_756 = arith.constant 2.500000e-01 : f32
    %1693 = vector.broadcast %cst_756 : f32 to vector<2x128xf32>
    %1694 = arith.mulf %1693, %1692 : vector<2x128xf32>
    %cst_757 = arith.constant 5.000000e-01 : f32
    %1695 = vector.broadcast %cst_757 : f32 to vector<2x128xf32>
    %1696 = arith.addf %1694, %1695 : vector<2x128xf32>
    %cst_758 = arith.constant 0.000000e+00 : f32
    %cst_759 = arith.constant 1.000000e+00 : f32
    %1697 = vector.broadcast %cst_758 : f32 to vector<2x128xf32>
    %1698 = arith.maximumf %1697, %1696 : vector<2x128xf32>
    %1699 = vector.broadcast %cst_759 : f32 to vector<2x128xf32>
    %1700 = arith.minimumf %1699, %1698 : vector<2x128xf32>
    %1701 = vector.extract_strided_slice %1700 {offsets = [0, 0], sizes = [2, 32], strides = [1, 1]} : vector<2x128xf32> to vector<2x32xf32>
    %1702 = vector.extract_strided_slice %1700 {offsets = [0, 32], sizes = [2, 32], strides = [1, 1]} : vector<2x128xf32> to vector<2x32xf32>
    %1703 = vector.extract_strided_slice %1700 {offsets = [0, 96], sizes = [2, 32], strides = [1, 1]} : vector<2x128xf32> to vector<2x32xf32>
    %1704 = vector.extract_strided_slice %1692 {offsets = [0, 64], sizes = [2, 32], strides = [1, 1]} : vector<2x128xf32> to vector<2x32xf32>
    %cst_760 = arith.constant 0.000000e+00 : f32
    %1705 = vector.broadcast %cst_760 : f32 to vector<2x32xf32>
    %1706 = arith.maximumf %1704, %1705 : vector<2x32xf32>
    %1707 = arith.mulf %1702, %1677 : vector<2x32xf32>
    %1708 = arith.mulf %1701, %1706 : vector<2x32xf32>
    %1709 = arith.addf %1707, %1708 : vector<2x32xf32>
    %cst_761 = arith.constant 2.500000e-01 : f32
    %1710 = vector.broadcast %cst_761 : f32 to vector<2x32xf32>
    %1711 = arith.mulf %1710, %1709 : vector<2x32xf32>
    %cst_762 = arith.constant 5.000000e-01 : f32
    %1712 = vector.broadcast %cst_762 : f32 to vector<2x32xf32>
    %1713 = arith.addf %1711, %1712 : vector<2x32xf32>
    %cst_763 = arith.constant 0.000000e+00 : f32
    %cst_764 = arith.constant 1.000000e+00 : f32
    %1714 = vector.broadcast %cst_763 : f32 to vector<2x32xf32>
    %1715 = arith.maximumf %1714, %1713 : vector<2x32xf32>
    %1716 = vector.broadcast %cst_764 : f32 to vector<2x32xf32>
    %1717 = arith.minimumf %1716, %1715 : vector<2x32xf32>
    %1718 = arith.mulf %1703, %1717 : vector<2x32xf32>
    %1719 = arith.truncf %1718 : vector<2x32xf32> to vector<2x32xbf16>
    %c20_765 = arith.constant 20 : index
    %c32_766 = arith.constant 32 : index
    %1720 = vector.load %arg6[%c20_765, %c32_766] : memref<32x64xbf16, #tpu.memory_space<vmem>>, vector<2x32xbf16>
    tpu.vector_store %arg6[%c20_765, %c32_766], %1719 {strides = array<i32>} : memref<32x64xbf16, #tpu.memory_space<vmem>>, vector<2x32xbf16>,
    %c18_767 = arith.constant 18 : index
    %c128_768 = arith.constant 128 : index
    %1721 = vector.load %arg9[%c18_767, %c128_768] : memref<32x256xf32, #tpu.memory_space<vmem>>, vector<2x128xf32>
    %1722 = arith.truncf %1718 : vector<2x32xf32> to vector<2x32xbf16>
    %cst_769 = arith.constant dense<0.000000e+00> : vector<2x128xf32>
    %1723 = tpu.matmul %1722, %1528, %cst_769 {dimension_numbers = #tpu.dot_dimension_numbers<[1], [0], [0], [1], [0, 0, 1, 1], [], []>} : vector<2x32xbf16>, vector<32x128xbf16>, vector<2x128xf32> -> vector<2x128xf32>
    %1724 = arith.addf %1721, %1723 : vector<2x128xf32>
    %cst_770 = arith.constant 2.500000e-01 : f32
    %1725 = vector.broadcast %cst_770 : f32 to vector<2x128xf32>
    %1726 = arith.mulf %1725, %1724 : vector<2x128xf32>
    %cst_771 = arith.constant 5.000000e-01 : f32
    %1727 = vector.broadcast %cst_771 : f32 to vector<2x128xf32>
    %1728 = arith.addf %1726, %1727 : vector<2x128xf32>
    %cst_772 = arith.constant 0.000000e+00 : f32
    %cst_773 = arith.constant 1.000000e+00 : f32
    %1729 = vector.broadcast %cst_772 : f32 to vector<2x128xf32>
    %1730 = arith.maximumf %1729, %1728 : vector<2x128xf32>
    %1731 = vector.broadcast %cst_773 : f32 to vector<2x128xf32>
    %1732 = arith.minimumf %1731, %1730 : vector<2x128xf32>
    %1733 = vector.extract_strided_slice %1732 {offsets = [0, 0], sizes = [2, 32], strides = [1, 1]} : vector<2x128xf32> to vector<2x32xf32>
    %1734 = vector.extract_strided_slice %1732 {offsets = [0, 32], sizes = [2, 32], strides = [1, 1]} : vector<2x128xf32> to vector<2x32xf32>
    %1735 = vector.extract_strided_slice %1732 {offsets = [0, 96], sizes = [2, 32], strides = [1, 1]} : vector<2x128xf32> to vector<2x32xf32>
    %1736 = vector.extract_strided_slice %1724 {offsets = [0, 64], sizes = [2, 32], strides = [1, 1]} : vector<2x128xf32> to vector<2x32xf32>
    %cst_774 = arith.constant 0.000000e+00 : f32
    %1737 = vector.broadcast %cst_774 : f32 to vector<2x32xf32>
    %1738 = arith.maximumf %1736, %1737 : vector<2x32xf32>
    %1739 = arith.mulf %1734, %1709 : vector<2x32xf32>
    %1740 = arith.mulf %1733, %1738 : vector<2x32xf32>
    %1741 = arith.addf %1739, %1740 : vector<2x32xf32>
    %cst_775 = arith.constant 2.500000e-01 : f32
    %1742 = vector.broadcast %cst_775 : f32 to vector<2x32xf32>
    %1743 = arith.mulf %1742, %1741 : vector<2x32xf32>
    %cst_776 = arith.constant 5.000000e-01 : f32
    %1744 = vector.broadcast %cst_776 : f32 to vector<2x32xf32>
    %1745 = arith.addf %1743, %1744 : vector<2x32xf32>
    %cst_777 = arith.constant 0.000000e+00 : f32
    %cst_778 = arith.constant 1.000000e+00 : f32
    %1746 = vector.broadcast %cst_777 : f32 to vector<2x32xf32>
    %1747 = arith.maximumf %1746, %1745 : vector<2x32xf32>
    %1748 = vector.broadcast %cst_778 : f32 to vector<2x32xf32>
    %1749 = arith.minimumf %1748, %1747 : vector<2x32xf32>
    %1750 = arith.mulf %1735, %1749 : vector<2x32xf32>
    %1751 = arith.truncf %1750 : vector<2x32xf32> to vector<2x32xbf16>
    %c18_779 = arith.constant 18 : index
    %c32_780 = arith.constant 32 : index
    %1752 = vector.load %arg6[%c18_779, %c32_780] : memref<32x64xbf16, #tpu.memory_space<vmem>>, vector<2x32xbf16>
    tpu.vector_store %arg6[%c18_779, %c32_780], %1751 {strides = array<i32>} : memref<32x64xbf16, #tpu.memory_space<vmem>>, vector<2x32xbf16>,
    %c16_781 = arith.constant 16 : index
    %c128_782 = arith.constant 128 : index
    %1753 = vector.load %arg9[%c16_781, %c128_782] : memref<32x256xf32, #tpu.memory_space<vmem>>, vector<2x128xf32>
    %1754 = arith.truncf %1750 : vector<2x32xf32> to vector<2x32xbf16>
    %cst_783 = arith.constant dense<0.000000e+00> : vector<2x128xf32>
    %1755 = tpu.matmul %1754, %1528, %cst_783 {dimension_numbers = #tpu.dot_dimension_numbers<[1], [0], [0], [1], [0, 0, 1, 1], [], []>} : vector<2x32xbf16>, vector<32x128xbf16>, vector<2x128xf32> -> vector<2x128xf32>
    %1756 = arith.addf %1753, %1755 : vector<2x128xf32>
    %cst_784 = arith.constant 2.500000e-01 : f32
    %1757 = vector.broadcast %cst_784 : f32 to vector<2x128xf32>
    %1758 = arith.mulf %1757, %1756 : vector<2x128xf32>
    %cst_785 = arith.constant 5.000000e-01 : f32
    %1759 = vector.broadcast %cst_785 : f32 to vector<2x128xf32>
    %1760 = arith.addf %1758, %1759 : vector<2x128xf32>
    %cst_786 = arith.constant 0.000000e+00 : f32
    %cst_787 = arith.constant 1.000000e+00 : f32
    %1761 = vector.broadcast %cst_786 : f32 to vector<2x128xf32>
    %1762 = arith.maximumf %1761, %1760 : vector<2x128xf32>
    %1763 = vector.broadcast %cst_787 : f32 to vector<2x128xf32>
    %1764 = arith.minimumf %1763, %1762 : vector<2x128xf32>
    %1765 = vector.extract_strided_slice %1764 {offsets = [0, 0], sizes = [2, 32], strides = [1, 1]} : vector<2x128xf32> to vector<2x32xf32>
    %1766 = vector.extract_strided_slice %1764 {offsets = [0, 32], sizes = [2, 32], strides = [1, 1]} : vector<2x128xf32> to vector<2x32xf32>
    %1767 = vector.extract_strided_slice %1764 {offsets = [0, 96], sizes = [2, 32], strides = [1, 1]} : vector<2x128xf32> to vector<2x32xf32>
    %1768 = vector.extract_strided_slice %1756 {offsets = [0, 64], sizes = [2, 32], strides = [1, 1]} : vector<2x128xf32> to vector<2x32xf32>
    %cst_788 = arith.constant 0.000000e+00 : f32
    %1769 = vector.broadcast %cst_788 : f32 to vector<2x32xf32>
    %1770 = arith.maximumf %1768, %1769 : vector<2x32xf32>
    %1771 = arith.mulf %1766, %1741 : vector<2x32xf32>
    %1772 = arith.mulf %1765, %1770 : vector<2x32xf32>
    %1773 = arith.addf %1771, %1772 : vector<2x32xf32>
    %cst_789 = arith.constant 2.500000e-01 : f32
    %1774 = vector.broadcast %cst_789 : f32 to vector<2x32xf32>
    %1775 = arith.mulf %1774, %1773 : vector<2x32xf32>
    %cst_790 = arith.constant 5.000000e-01 : f32
    %1776 = vector.broadcast %cst_790 : f32 to vector<2x32xf32>
    %1777 = arith.addf %1775, %1776 : vector<2x32xf32>
    %cst_791 = arith.constant 0.000000e+00 : f32
    %cst_792 = arith.constant 1.000000e+00 : f32
    %1778 = vector.broadcast %cst_791 : f32 to vector<2x32xf32>
    %1779 = arith.maximumf %1778, %1777 : vector<2x32xf32>
    %1780 = vector.broadcast %cst_792 : f32 to vector<2x32xf32>
    %1781 = arith.minimumf %1780, %1779 : vector<2x32xf32>
    %1782 = arith.mulf %1767, %1781 : vector<2x32xf32>
    %1783 = arith.truncf %1782 : vector<2x32xf32> to vector<2x32xbf16>
    %c16_793 = arith.constant 16 : index
    %c32_794 = arith.constant 32 : index
    %1784 = vector.load %arg6[%c16_793, %c32_794] : memref<32x64xbf16, #tpu.memory_space<vmem>>, vector<2x32xbf16>
    tpu.vector_store %arg6[%c16_793, %c32_794], %1783 {strides = array<i32>} : memref<32x64xbf16, #tpu.memory_space<vmem>>, vector<2x32xbf16>,
    %c14_795 = arith.constant 14 : index
    %c128_796 = arith.constant 128 : index
    %1785 = vector.load %arg9[%c14_795, %c128_796] : memref<32x256xf32, #tpu.memory_space<vmem>>, vector<2x128xf32>
    %1786 = arith.truncf %1782 : vector<2x32xf32> to vector<2x32xbf16>
    %cst_797 = arith.constant dense<0.000000e+00> : vector<2x128xf32>
    %1787 = tpu.matmul %1786, %1528, %cst_797 {dimension_numbers = #tpu.dot_dimension_numbers<[1], [0], [0], [1], [0, 0, 1, 1], [], []>} : vector<2x32xbf16>, vector<32x128xbf16>, vector<2x128xf32> -> vector<2x128xf32>
    %1788 = arith.addf %1785, %1787 : vector<2x128xf32>
    %cst_798 = arith.constant 2.500000e-01 : f32
    %1789 = vector.broadcast %cst_798 : f32 to vector<2x128xf32>
    %1790 = arith.mulf %1789, %1788 : vector<2x128xf32>
    %cst_799 = arith.constant 5.000000e-01 : f32
    %1791 = vector.broadcast %cst_799 : f32 to vector<2x128xf32>
    %1792 = arith.addf %1790, %1791 : vector<2x128xf32>
    %cst_800 = arith.constant 0.000000e+00 : f32
    %cst_801 = arith.constant 1.000000e+00 : f32
    %1793 = vector.broadcast %cst_800 : f32 to vector<2x128xf32>
    %1794 = arith.maximumf %1793, %1792 : vector<2x128xf32>
    %1795 = vector.broadcast %cst_801 : f32 to vector<2x128xf32>
    %1796 = arith.minimumf %1795, %1794 : vector<2x128xf32>
    %1797 = vector.extract_strided_slice %1796 {offsets = [0, 0], sizes = [2, 32], strides = [1, 1]} : vector<2x128xf32> to vector<2x32xf32>
    %1798 = vector.extract_strided_slice %1796 {offsets = [0, 32], sizes = [2, 32], strides = [1, 1]} : vector<2x128xf32> to vector<2x32xf32>
    %1799 = vector.extract_strided_slice %1796 {offsets = [0, 96], sizes = [2, 32], strides = [1, 1]} : vector<2x128xf32> to vector<2x32xf32>
    %1800 = vector.extract_strided_slice %1788 {offsets = [0, 64], sizes = [2, 32], strides = [1, 1]} : vector<2x128xf32> to vector<2x32xf32>
    %cst_802 = arith.constant 0.000000e+00 : f32
    %1801 = vector.broadcast %cst_802 : f32 to vector<2x32xf32>
    %1802 = arith.maximumf %1800, %1801 : vector<2x32xf32>
    %1803 = arith.mulf %1798, %1773 : vector<2x32xf32>
    %1804 = arith.mulf %1797, %1802 : vector<2x32xf32>
    %1805 = arith.addf %1803, %1804 : vector<2x32xf32>
    %cst_803 = arith.constant 2.500000e-01 : f32
    %1806 = vector.broadcast %cst_803 : f32 to vector<2x32xf32>
    %1807 = arith.mulf %1806, %1805 : vector<2x32xf32>
    %cst_804 = arith.constant 5.000000e-01 : f32
    %1808 = vector.broadcast %cst_804 : f32 to vector<2x32xf32>
    %1809 = arith.addf %1807, %1808 : vector<2x32xf32>
    %cst_805 = arith.constant 0.000000e+00 : f32
    %cst_806 = arith.constant 1.000000e+00 : f32
    %1810 = vector.broadcast %cst_805 : f32 to vector<2x32xf32>
    %1811 = arith.maximumf %1810, %1809 : vector<2x32xf32>
    %1812 = vector.broadcast %cst_806 : f32 to vector<2x32xf32>
    %1813 = arith.minimumf %1812, %1811 : vector<2x32xf32>
    %1814 = arith.mulf %1799, %1813 : vector<2x32xf32>
    %1815 = arith.truncf %1814 : vector<2x32xf32> to vector<2x32xbf16>
    %c14_807 = arith.constant 14 : index
    %c32_808 = arith.constant 32 : index
    %1816 = vector.load %arg6[%c14_807, %c32_808] : memref<32x64xbf16, #tpu.memory_space<vmem>>, vector<2x32xbf16>
    tpu.vector_store %arg6[%c14_807, %c32_808], %1815 {strides = array<i32>} : memref<32x64xbf16, #tpu.memory_space<vmem>>, vector<2x32xbf16>,
    %c12_809 = arith.constant 12 : index
    %c128_810 = arith.constant 128 : index
    %1817 = vector.load %arg9[%c12_809, %c128_810] : memref<32x256xf32, #tpu.memory_space<vmem>>, vector<2x128xf32>
    %1818 = arith.truncf %1814 : vector<2x32xf32> to vector<2x32xbf16>
    %cst_811 = arith.constant dense<0.000000e+00> : vector<2x128xf32>
    %1819 = tpu.matmul %1818, %1528, %cst_811 {dimension_numbers = #tpu.dot_dimension_numbers<[1], [0], [0], [1], [0, 0, 1, 1], [], []>} : vector<2x32xbf16>, vector<32x128xbf16>, vector<2x128xf32> -> vector<2x128xf32>
    %1820 = arith.addf %1817, %1819 : vector<2x128xf32>
    %cst_812 = arith.constant 2.500000e-01 : f32
    %1821 = vector.broadcast %cst_812 : f32 to vector<2x128xf32>
    %1822 = arith.mulf %1821, %1820 : vector<2x128xf32>
    %cst_813 = arith.constant 5.000000e-01 : f32
    %1823 = vector.broadcast %cst_813 : f32 to vector<2x128xf32>
    %1824 = arith.addf %1822, %1823 : vector<2x128xf32>
    %cst_814 = arith.constant 0.000000e+00 : f32
    %cst_815 = arith.constant 1.000000e+00 : f32
    %1825 = vector.broadcast %cst_814 : f32 to vector<2x128xf32>
    %1826 = arith.maximumf %1825, %1824 : vector<2x128xf32>
    %1827 = vector.broadcast %cst_815 : f32 to vector<2x128xf32>
    %1828 = arith.minimumf %1827, %1826 : vector<2x128xf32>
    %1829 = vector.extract_strided_slice %1828 {offsets = [0, 0], sizes = [2, 32], strides = [1, 1]} : vector<2x128xf32> to vector<2x32xf32>
    %1830 = vector.extract_strided_slice %1828 {offsets = [0, 32], sizes = [2, 32], strides = [1, 1]} : vector<2x128xf32> to vector<2x32xf32>
    %1831 = vector.extract_strided_slice %1828 {offsets = [0, 96], sizes = [2, 32], strides = [1, 1]} : vector<2x128xf32> to vector<2x32xf32>
    %1832 = vector.extract_strided_slice %1820 {offsets = [0, 64], sizes = [2, 32], strides = [1, 1]} : vector<2x128xf32> to vector<2x32xf32>
    %cst_816 = arith.constant 0.000000e+00 : f32
    %1833 = vector.broadcast %cst_816 : f32 to vector<2x32xf32>
    %1834 = arith.maximumf %1832, %1833 : vector<2x32xf32>
    %1835 = arith.mulf %1830, %1805 : vector<2x32xf32>
    %1836 = arith.mulf %1829, %1834 : vector<2x32xf32>
    %1837 = arith.addf %1835, %1836 : vector<2x32xf32>
    %cst_817 = arith.constant 2.500000e-01 : f32
    %1838 = vector.broadcast %cst_817 : f32 to vector<2x32xf32>
    %1839 = arith.mulf %1838, %1837 : vector<2x32xf32>
    %cst_818 = arith.constant 5.000000e-01 : f32
    %1840 = vector.broadcast %cst_818 : f32 to vector<2x32xf32>
    %1841 = arith.addf %1839, %1840 : vector<2x32xf32>
    %cst_819 = arith.constant 0.000000e+00 : f32
    %cst_820 = arith.constant 1.000000e+00 : f32
    %1842 = vector.broadcast %cst_819 : f32 to vector<2x32xf32>
    %1843 = arith.maximumf %1842, %1841 : vector<2x32xf32>
    %1844 = vector.broadcast %cst_820 : f32 to vector<2x32xf32>
    %1845 = arith.minimumf %1844, %1843 : vector<2x32xf32>
    %1846 = arith.mulf %1831, %1845 : vector<2x32xf32>
    %1847 = arith.truncf %1846 : vector<2x32xf32> to vector<2x32xbf16>
    %c12_821 = arith.constant 12 : index
    %c32_822 = arith.constant 32 : index
    %1848 = vector.load %arg6[%c12_821, %c32_822] : memref<32x64xbf16, #tpu.memory_space<vmem>>, vector<2x32xbf16>
    tpu.vector_store %arg6[%c12_821, %c32_822], %1847 {strides = array<i32>} : memref<32x64xbf16, #tpu.memory_space<vmem>>, vector<2x32xbf16>,
    %c10_823 = arith.constant 10 : index
    %c128_824 = arith.constant 128 : index
    %1849 = vector.load %arg9[%c10_823, %c128_824] : memref<32x256xf32, #tpu.memory_space<vmem>>, vector<2x128xf32>
    %1850 = arith.truncf %1846 : vector<2x32xf32> to vector<2x32xbf16>
    %cst_825 = arith.constant dense<0.000000e+00> : vector<2x128xf32>
    %1851 = tpu.matmul %1850, %1528, %cst_825 {dimension_numbers = #tpu.dot_dimension_numbers<[1], [0], [0], [1], [0, 0, 1, 1], [], []>} : vector<2x32xbf16>, vector<32x128xbf16>, vector<2x128xf32> -> vector<2x128xf32>
    %1852 = arith.addf %1849, %1851 : vector<2x128xf32>
    %cst_826 = arith.constant 2.500000e-01 : f32
    %1853 = vector.broadcast %cst_826 : f32 to vector<2x128xf32>
    %1854 = arith.mulf %1853, %1852 : vector<2x128xf32>
    %cst_827 = arith.constant 5.000000e-01 : f32
    %1855 = vector.broadcast %cst_827 : f32 to vector<2x128xf32>
    %1856 = arith.addf %1854, %1855 : vector<2x128xf32>
    %cst_828 = arith.constant 0.000000e+00 : f32
    %cst_829 = arith.constant 1.000000e+00 : f32
    %1857 = vector.broadcast %cst_828 : f32 to vector<2x128xf32>
    %1858 = arith.maximumf %1857, %1856 : vector<2x128xf32>
    %1859 = vector.broadcast %cst_829 : f32 to vector<2x128xf32>
    %1860 = arith.minimumf %1859, %1858 : vector<2x128xf32>
    %1861 = vector.extract_strided_slice %1860 {offsets = [0, 0], sizes = [2, 32], strides = [1, 1]} : vector<2x128xf32> to vector<2x32xf32>
    %1862 = vector.extract_strided_slice %1860 {offsets = [0, 32], sizes = [2, 32], strides = [1, 1]} : vector<2x128xf32> to vector<2x32xf32>
    %1863 = vector.extract_strided_slice %1860 {offsets = [0, 96], sizes = [2, 32], strides = [1, 1]} : vector<2x128xf32> to vector<2x32xf32>
    %1864 = vector.extract_strided_slice %1852 {offsets = [0, 64], sizes = [2, 32], strides = [1, 1]} : vector<2x128xf32> to vector<2x32xf32>
    %cst_830 = arith.constant 0.000000e+00 : f32
    %1865 = vector.broadcast %cst_830 : f32 to vector<2x32xf32>
    %1866 = arith.maximumf %1864, %1865 : vector<2x32xf32>
    %1867 = arith.mulf %1862, %1837 : vector<2x32xf32>
    %1868 = arith.mulf %1861, %1866 : vector<2x32xf32>
    %1869 = arith.addf %1867, %1868 : vector<2x32xf32>
    %cst_831 = arith.constant 2.500000e-01 : f32
    %1870 = vector.broadcast %cst_831 : f32 to vector<2x32xf32>
    %1871 = arith.mulf %1870, %1869 : vector<2x32xf32>
    %cst_832 = arith.constant 5.000000e-01 : f32
    %1872 = vector.broadcast %cst_832 : f32 to vector<2x32xf32>
    %1873 = arith.addf %1871, %1872 : vector<2x32xf32>
    %cst_833 = arith.constant 0.000000e+00 : f32
    %cst_834 = arith.constant 1.000000e+00 : f32
    %1874 = vector.broadcast %cst_833 : f32 to vector<2x32xf32>
    %1875 = arith.maximumf %1874, %1873 : vector<2x32xf32>
    %1876 = vector.broadcast %cst_834 : f32 to vector<2x32xf32>
    %1877 = arith.minimumf %1876, %1875 : vector<2x32xf32>
    %1878 = arith.mulf %1863, %1877 : vector<2x32xf32>
    %1879 = arith.truncf %1878 : vector<2x32xf32> to vector<2x32xbf16>
    %c10_835 = arith.constant 10 : index
    %c32_836 = arith.constant 32 : index
    %1880 = vector.load %arg6[%c10_835, %c32_836] : memref<32x64xbf16, #tpu.memory_space<vmem>>, vector<2x32xbf16>
    tpu.vector_store %arg6[%c10_835, %c32_836], %1879 {strides = array<i32>} : memref<32x64xbf16, #tpu.memory_space<vmem>>, vector<2x32xbf16>,
    %c8_837 = arith.constant 8 : index
    %c128_838 = arith.constant 128 : index
    %1881 = vector.load %arg9[%c8_837, %c128_838] : memref<32x256xf32, #tpu.memory_space<vmem>>, vector<2x128xf32>
    %1882 = arith.truncf %1878 : vector<2x32xf32> to vector<2x32xbf16>
    %cst_839 = arith.constant dense<0.000000e+00> : vector<2x128xf32>
    %1883 = tpu.matmul %1882, %1528, %cst_839 {dimension_numbers = #tpu.dot_dimension_numbers<[1], [0], [0], [1], [0, 0, 1, 1], [], []>} : vector<2x32xbf16>, vector<32x128xbf16>, vector<2x128xf32> -> vector<2x128xf32>
    %1884 = arith.addf %1881, %1883 : vector<2x128xf32>
    %cst_840 = arith.constant 2.500000e-01 : f32
    %1885 = vector.broadcast %cst_840 : f32 to vector<2x128xf32>
    %1886 = arith.mulf %1885, %1884 : vector<2x128xf32>
    %cst_841 = arith.constant 5.000000e-01 : f32
    %1887 = vector.broadcast %cst_841 : f32 to vector<2x128xf32>
    %1888 = arith.addf %1886, %1887 : vector<2x128xf32>
    %cst_842 = arith.constant 0.000000e+00 : f32
    %cst_843 = arith.constant 1.000000e+00 : f32
    %1889 = vector.broadcast %cst_842 : f32 to vector<2x128xf32>
    %1890 = arith.maximumf %1889, %1888 : vector<2x128xf32>
    %1891 = vector.broadcast %cst_843 : f32 to vector<2x128xf32>
    %1892 = arith.minimumf %1891, %1890 : vector<2x128xf32>
    %1893 = vector.extract_strided_slice %1892 {offsets = [0, 0], sizes = [2, 32], strides = [1, 1]} : vector<2x128xf32> to vector<2x32xf32>
    %1894 = vector.extract_strided_slice %1892 {offsets = [0, 32], sizes = [2, 32], strides = [1, 1]} : vector<2x128xf32> to vector<2x32xf32>
    %1895 = vector.extract_strided_slice %1892 {offsets = [0, 96], sizes = [2, 32], strides = [1, 1]} : vector<2x128xf32> to vector<2x32xf32>
    %1896 = vector.extract_strided_slice %1884 {offsets = [0, 64], sizes = [2, 32], strides = [1, 1]} : vector<2x128xf32> to vector<2x32xf32>
    %cst_844 = arith.constant 0.000000e+00 : f32
    %1897 = vector.broadcast %cst_844 : f32 to vector<2x32xf32>
    %1898 = arith.maximumf %1896, %1897 : vector<2x32xf32>
    %1899 = arith.mulf %1894, %1869 : vector<2x32xf32>
    %1900 = arith.mulf %1893, %1898 : vector<2x32xf32>
    %1901 = arith.addf %1899, %1900 : vector<2x32xf32>
    %cst_845 = arith.constant 2.500000e-01 : f32
    %1902 = vector.broadcast %cst_845 : f32 to vector<2x32xf32>
    %1903 = arith.mulf %1902, %1901 : vector<2x32xf32>
    %cst_846 = arith.constant 5.000000e-01 : f32
    %1904 = vector.broadcast %cst_846 : f32 to vector<2x32xf32>
    %1905 = arith.addf %1903, %1904 : vector<2x32xf32>
    %cst_847 = arith.constant 0.000000e+00 : f32
    %cst_848 = arith.constant 1.000000e+00 : f32
    %1906 = vector.broadcast %cst_847 : f32 to vector<2x32xf32>
    %1907 = arith.maximumf %1906, %1905 : vector<2x32xf32>
    %1908 = vector.broadcast %cst_848 : f32 to vector<2x32xf32>
    %1909 = arith.minimumf %1908, %1907 : vector<2x32xf32>
    %1910 = arith.mulf %1895, %1909 : vector<2x32xf32>
    %1911 = arith.truncf %1910 : vector<2x32xf32> to vector<2x32xbf16>
    %c8_849 = arith.constant 8 : index
    %c32_850 = arith.constant 32 : index
    %1912 = vector.load %arg6[%c8_849, %c32_850] : memref<32x64xbf16, #tpu.memory_space<vmem>>, vector<2x32xbf16>
    tpu.vector_store %arg6[%c8_849, %c32_850], %1911 {strides = array<i32>} : memref<32x64xbf16, #tpu.memory_space<vmem>>, vector<2x32xbf16>,
    %c6_851 = arith.constant 6 : index
    %c128_852 = arith.constant 128 : index
    %1913 = vector.load %arg9[%c6_851, %c128_852] : memref<32x256xf32, #tpu.memory_space<vmem>>, vector<2x128xf32>
    %1914 = arith.truncf %1910 : vector<2x32xf32> to vector<2x32xbf16>
    %cst_853 = arith.constant dense<0.000000e+00> : vector<2x128xf32>
    %1915 = tpu.matmul %1914, %1528, %cst_853 {dimension_numbers = #tpu.dot_dimension_numbers<[1], [0], [0], [1], [0, 0, 1, 1], [], []>} : vector<2x32xbf16>, vector<32x128xbf16>, vector<2x128xf32> -> vector<2x128xf32>
    %1916 = arith.addf %1913, %1915 : vector<2x128xf32>
    %cst_854 = arith.constant 2.500000e-01 : f32
    %1917 = vector.broadcast %cst_854 : f32 to vector<2x128xf32>
    %1918 = arith.mulf %1917, %1916 : vector<2x128xf32>
    %cst_855 = arith.constant 5.000000e-01 : f32
    %1919 = vector.broadcast %cst_855 : f32 to vector<2x128xf32>
    %1920 = arith.addf %1918, %1919 : vector<2x128xf32>
    %cst_856 = arith.constant 0.000000e+00 : f32
    %cst_857 = arith.constant 1.000000e+00 : f32
    %1921 = vector.broadcast %cst_856 : f32 to vector<2x128xf32>
    %1922 = arith.maximumf %1921, %1920 : vector<2x128xf32>
    %1923 = vector.broadcast %cst_857 : f32 to vector<2x128xf32>
    %1924 = arith.minimumf %1923, %1922 : vector<2x128xf32>
    %1925 = vector.extract_strided_slice %1924 {offsets = [0, 0], sizes = [2, 32], strides = [1, 1]} : vector<2x128xf32> to vector<2x32xf32>
    %1926 = vector.extract_strided_slice %1924 {offsets = [0, 32], sizes = [2, 32], strides = [1, 1]} : vector<2x128xf32> to vector<2x32xf32>
    %1927 = vector.extract_strided_slice %1924 {offsets = [0, 96], sizes = [2, 32], strides = [1, 1]} : vector<2x128xf32> to vector<2x32xf32>
    %1928 = vector.extract_strided_slice %1916 {offsets = [0, 64], sizes = [2, 32], strides = [1, 1]} : vector<2x128xf32> to vector<2x32xf32>
    %cst_858 = arith.constant 0.000000e+00 : f32
    %1929 = vector.broadcast %cst_858 : f32 to vector<2x32xf32>
    %1930 = arith.maximumf %1928, %1929 : vector<2x32xf32>
    %1931 = arith.mulf %1926, %1901 : vector<2x32xf32>
    %1932 = arith.mulf %1925, %1930 : vector<2x32xf32>
    %1933 = arith.addf %1931, %1932 : vector<2x32xf32>
    %cst_859 = arith.constant 2.500000e-01 : f32
    %1934 = vector.broadcast %cst_859 : f32 to vector<2x32xf32>
    %1935 = arith.mulf %1934, %1933 : vector<2x32xf32>
    %cst_860 = arith.constant 5.000000e-01 : f32
    %1936 = vector.broadcast %cst_860 : f32 to vector<2x32xf32>
    %1937 = arith.addf %1935, %1936 : vector<2x32xf32>
    %cst_861 = arith.constant 0.000000e+00 : f32
    %cst_862 = arith.constant 1.000000e+00 : f32
    %1938 = vector.broadcast %cst_861 : f32 to vector<2x32xf32>
    %1939 = arith.maximumf %1938, %1937 : vector<2x32xf32>
    %1940 = vector.broadcast %cst_862 : f32 to vector<2x32xf32>
    %1941 = arith.minimumf %1940, %1939 : vector<2x32xf32>
    %1942 = arith.mulf %1927, %1941 : vector<2x32xf32>
    %1943 = arith.truncf %1942 : vector<2x32xf32> to vector<2x32xbf16>
    %c6_863 = arith.constant 6 : index
    %c32_864 = arith.constant 32 : index
    %1944 = vector.load %arg6[%c6_863, %c32_864] : memref<32x64xbf16, #tpu.memory_space<vmem>>, vector<2x32xbf16>
    tpu.vector_store %arg6[%c6_863, %c32_864], %1943 {strides = array<i32>} : memref<32x64xbf16, #tpu.memory_space<vmem>>, vector<2x32xbf16>,
    %c4_865 = arith.constant 4 : index
    %c128_866 = arith.constant 128 : index
    %1945 = vector.load %arg9[%c4_865, %c128_866] : memref<32x256xf32, #tpu.memory_space<vmem>>, vector<2x128xf32>
    %1946 = arith.truncf %1942 : vector<2x32xf32> to vector<2x32xbf16>
    %cst_867 = arith.constant dense<0.000000e+00> : vector<2x128xf32>
    %1947 = tpu.matmul %1946, %1528, %cst_867 {dimension_numbers = #tpu.dot_dimension_numbers<[1], [0], [0], [1], [0, 0, 1, 1], [], []>} : vector<2x32xbf16>, vector<32x128xbf16>, vector<2x128xf32> -> vector<2x128xf32>
    %1948 = arith.addf %1945, %1947 : vector<2x128xf32>
    %cst_868 = arith.constant 2.500000e-01 : f32
    %1949 = vector.broadcast %cst_868 : f32 to vector<2x128xf32>
    %1950 = arith.mulf %1949, %1948 : vector<2x128xf32>
    %cst_869 = arith.constant 5.000000e-01 : f32
    %1951 = vector.broadcast %cst_869 : f32 to vector<2x128xf32>
    %1952 = arith.addf %1950, %1951 : vector<2x128xf32>
    %cst_870 = arith.constant 0.000000e+00 : f32
    %cst_871 = arith.constant 1.000000e+00 : f32
    %1953 = vector.broadcast %cst_870 : f32 to vector<2x128xf32>
    %1954 = arith.maximumf %1953, %1952 : vector<2x128xf32>
    %1955 = vector.broadcast %cst_871 : f32 to vector<2x128xf32>
    %1956 = arith.minimumf %1955, %1954 : vector<2x128xf32>
    %1957 = vector.extract_strided_slice %1956 {offsets = [0, 0], sizes = [2, 32], strides = [1, 1]} : vector<2x128xf32> to vector<2x32xf32>
    %1958 = vector.extract_strided_slice %1956 {offsets = [0, 32], sizes = [2, 32], strides = [1, 1]} : vector<2x128xf32> to vector<2x32xf32>
    %1959 = vector.extract_strided_slice %1956 {offsets = [0, 96], sizes = [2, 32], strides = [1, 1]} : vector<2x128xf32> to vector<2x32xf32>
    %1960 = vector.extract_strided_slice %1948 {offsets = [0, 64], sizes = [2, 32], strides = [1, 1]} : vector<2x128xf32> to vector<2x32xf32>
    %cst_872 = arith.constant 0.000000e+00 : f32
    %1961 = vector.broadcast %cst_872 : f32 to vector<2x32xf32>
    %1962 = arith.maximumf %1960, %1961 : vector<2x32xf32>
    %1963 = arith.mulf %1958, %1933 : vector<2x32xf32>
    %1964 = arith.mulf %1957, %1962 : vector<2x32xf32>
    %1965 = arith.addf %1963, %1964 : vector<2x32xf32>
    %cst_873 = arith.constant 2.500000e-01 : f32
    %1966 = vector.broadcast %cst_873 : f32 to vector<2x32xf32>
    %1967 = arith.mulf %1966, %1965 : vector<2x32xf32>
    %cst_874 = arith.constant 5.000000e-01 : f32
    %1968 = vector.broadcast %cst_874 : f32 to vector<2x32xf32>
    %1969 = arith.addf %1967, %1968 : vector<2x32xf32>
    %cst_875 = arith.constant 0.000000e+00 : f32
    %cst_876 = arith.constant 1.000000e+00 : f32
    %1970 = vector.broadcast %cst_875 : f32 to vector<2x32xf32>
    %1971 = arith.maximumf %1970, %1969 : vector<2x32xf32>
    %1972 = vector.broadcast %cst_876 : f32 to vector<2x32xf32>
    %1973 = arith.minimumf %1972, %1971 : vector<2x32xf32>
    %1974 = arith.mulf %1959, %1973 : vector<2x32xf32>
    %1975 = arith.truncf %1974 : vector<2x32xf32> to vector<2x32xbf16>
    %c4_877 = arith.constant 4 : index
    %c32_878 = arith.constant 32 : index
    %1976 = vector.load %arg6[%c4_877, %c32_878] : memref<32x64xbf16, #tpu.memory_space<vmem>>, vector<2x32xbf16>
    tpu.vector_store %arg6[%c4_877, %c32_878], %1975 {strides = array<i32>} : memref<32x64xbf16, #tpu.memory_space<vmem>>, vector<2x32xbf16>,
    %c2_879 = arith.constant 2 : index
    %c128_880 = arith.constant 128 : index
    %1977 = vector.load %arg9[%c2_879, %c128_880] : memref<32x256xf32, #tpu.memory_space<vmem>>, vector<2x128xf32>
    %1978 = arith.truncf %1974 : vector<2x32xf32> to vector<2x32xbf16>
    %cst_881 = arith.constant dense<0.000000e+00> : vector<2x128xf32>
    %1979 = tpu.matmul %1978, %1528, %cst_881 {dimension_numbers = #tpu.dot_dimension_numbers<[1], [0], [0], [1], [0, 0, 1, 1], [], []>} : vector<2x32xbf16>, vector<32x128xbf16>, vector<2x128xf32> -> vector<2x128xf32>
    %1980 = arith.addf %1977, %1979 : vector<2x128xf32>
    %cst_882 = arith.constant 2.500000e-01 : f32
    %1981 = vector.broadcast %cst_882 : f32 to vector<2x128xf32>
    %1982 = arith.mulf %1981, %1980 : vector<2x128xf32>
    %cst_883 = arith.constant 5.000000e-01 : f32
    %1983 = vector.broadcast %cst_883 : f32 to vector<2x128xf32>
    %1984 = arith.addf %1982, %1983 : vector<2x128xf32>
    %cst_884 = arith.constant 0.000000e+00 : f32
    %cst_885 = arith.constant 1.000000e+00 : f32
    %1985 = vector.broadcast %cst_884 : f32 to vector<2x128xf32>
    %1986 = arith.maximumf %1985, %1984 : vector<2x128xf32>
    %1987 = vector.broadcast %cst_885 : f32 to vector<2x128xf32>
    %1988 = arith.minimumf %1987, %1986 : vector<2x128xf32>
    %1989 = vector.extract_strided_slice %1988 {offsets = [0, 0], sizes = [2, 32], strides = [1, 1]} : vector<2x128xf32> to vector<2x32xf32>
    %1990 = vector.extract_strided_slice %1988 {offsets = [0, 32], sizes = [2, 32], strides = [1, 1]} : vector<2x128xf32> to vector<2x32xf32>
    %1991 = vector.extract_strided_slice %1988 {offsets = [0, 96], sizes = [2, 32], strides = [1, 1]} : vector<2x128xf32> to vector<2x32xf32>
    %1992 = vector.extract_strided_slice %1980 {offsets = [0, 64], sizes = [2, 32], strides = [1, 1]} : vector<2x128xf32> to vector<2x32xf32>
    %cst_886 = arith.constant 0.000000e+00 : f32
    %1993 = vector.broadcast %cst_886 : f32 to vector<2x32xf32>
    %1994 = arith.maximumf %1992, %1993 : vector<2x32xf32>
    %1995 = arith.mulf %1990, %1965 : vector<2x32xf32>
    %1996 = arith.mulf %1989, %1994 : vector<2x32xf32>
    %1997 = arith.addf %1995, %1996 : vector<2x32xf32>
    %cst_887 = arith.constant 2.500000e-01 : f32
    %1998 = vector.broadcast %cst_887 : f32 to vector<2x32xf32>
    %1999 = arith.mulf %1998, %1997 : vector<2x32xf32>
    %cst_888 = arith.constant 5.000000e-01 : f32
    %2000 = vector.broadcast %cst_888 : f32 to vector<2x32xf32>
    %2001 = arith.addf %1999, %2000 : vector<2x32xf32>
    %cst_889 = arith.constant 0.000000e+00 : f32
    %cst_890 = arith.constant 1.000000e+00 : f32
    %2002 = vector.broadcast %cst_889 : f32 to vector<2x32xf32>
    %2003 = arith.maximumf %2002, %2001 : vector<2x32xf32>
    %2004 = vector.broadcast %cst_890 : f32 to vector<2x32xf32>
    %2005 = arith.minimumf %2004, %2003 : vector<2x32xf32>
    %2006 = arith.mulf %1991, %2005 : vector<2x32xf32>
    %2007 = arith.truncf %2006 : vector<2x32xf32> to vector<2x32xbf16>
    %c2_891 = arith.constant 2 : index
    %c32_892 = arith.constant 32 : index
    %2008 = vector.load %arg6[%c2_891, %c32_892] : memref<32x64xbf16, #tpu.memory_space<vmem>>, vector<2x32xbf16>
    tpu.vector_store %arg6[%c2_891, %c32_892], %2007 {strides = array<i32>} : memref<32x64xbf16, #tpu.memory_space<vmem>>, vector<2x32xbf16>,
    %c0_893 = arith.constant 0 : index
    %c128_894 = arith.constant 128 : index
    %2009 = vector.load %arg9[%c0_893, %c128_894] : memref<32x256xf32, #tpu.memory_space<vmem>>, vector<2x128xf32>
    %2010 = arith.truncf %2006 : vector<2x32xf32> to vector<2x32xbf16>
    %cst_895 = arith.constant dense<0.000000e+00> : vector<2x128xf32>
    %2011 = tpu.matmul %2010, %1528, %cst_895 {dimension_numbers = #tpu.dot_dimension_numbers<[1], [0], [0], [1], [0, 0, 1, 1], [], []>} : vector<2x32xbf16>, vector<32x128xbf16>, vector<2x128xf32> -> vector<2x128xf32>
    %2012 = arith.addf %2009, %2011 : vector<2x128xf32>
    %cst_896 = arith.constant 2.500000e-01 : f32
    %2013 = vector.broadcast %cst_896 : f32 to vector<2x128xf32>
    %2014 = arith.mulf %2013, %2012 : vector<2x128xf32>
    %cst_897 = arith.constant 5.000000e-01 : f32
    %2015 = vector.broadcast %cst_897 : f32 to vector<2x128xf32>
    %2016 = arith.addf %2014, %2015 : vector<2x128xf32>
    %cst_898 = arith.constant 0.000000e+00 : f32
    %cst_899 = arith.constant 1.000000e+00 : f32
    %2017 = vector.broadcast %cst_898 : f32 to vector<2x128xf32>
    %2018 = arith.maximumf %2017, %2016 : vector<2x128xf32>
    %2019 = vector.broadcast %cst_899 : f32 to vector<2x128xf32>
    %2020 = arith.minimumf %2019, %2018 : vector<2x128xf32>
    %2021 = vector.extract_strided_slice %2020 {offsets = [0, 0], sizes = [2, 32], strides = [1, 1]} : vector<2x128xf32> to vector<2x32xf32>
    %2022 = vector.extract_strided_slice %2020 {offsets = [0, 32], sizes = [2, 32], strides = [1, 1]} : vector<2x128xf32> to vector<2x32xf32>
    %2023 = vector.extract_strided_slice %2020 {offsets = [0, 96], sizes = [2, 32], strides = [1, 1]} : vector<2x128xf32> to vector<2x32xf32>
    %2024 = vector.extract_strided_slice %2012 {offsets = [0, 64], sizes = [2, 32], strides = [1, 1]} : vector<2x128xf32> to vector<2x32xf32>
    %cst_900 = arith.constant 0.000000e+00 : f32
    %2025 = vector.broadcast %cst_900 : f32 to vector<2x32xf32>
    %2026 = arith.maximumf %2024, %2025 : vector<2x32xf32>
    %2027 = arith.mulf %2022, %1997 : vector<2x32xf32>
    %2028 = arith.mulf %2021, %2026 : vector<2x32xf32>
    %2029 = arith.addf %2027, %2028 : vector<2x32xf32>
    %cst_901 = arith.constant 2.500000e-01 : f32
    %2030 = vector.broadcast %cst_901 : f32 to vector<2x32xf32>
    %2031 = arith.mulf %2030, %2029 : vector<2x32xf32>
    %cst_902 = arith.constant 5.000000e-01 : f32
    %2032 = vector.broadcast %cst_902 : f32 to vector<2x32xf32>
    %2033 = arith.addf %2031, %2032 : vector<2x32xf32>
    %cst_903 = arith.constant 0.000000e+00 : f32
    %cst_904 = arith.constant 1.000000e+00 : f32
    %2034 = vector.broadcast %cst_903 : f32 to vector<2x32xf32>
    %2035 = arith.maximumf %2034, %2033 : vector<2x32xf32>
    %2036 = vector.broadcast %cst_904 : f32 to vector<2x32xf32>
    %2037 = arith.minimumf %2036, %2035 : vector<2x32xf32>
    %2038 = arith.mulf %2023, %2037 : vector<2x32xf32>
    %2039 = arith.truncf %2038 : vector<2x32xf32> to vector<2x32xbf16>
    %c0_905 = arith.constant 0 : index
    %c32_906 = arith.constant 32 : index
    %2040 = vector.load %arg6[%c0_905, %c32_906] : memref<32x64xbf16, #tpu.memory_space<vmem>>, vector<2x32xbf16>
    tpu.vector_store %arg6[%c0_905, %c32_906], %2039 {strides = array<i32>} : memref<32x64xbf16, #tpu.memory_space<vmem>>, vector<2x32xbf16>,
    %c0_907 = arith.constant 0 : index
    %c0_908 = arith.constant 0 : index
    %2041 = vector.load %arg7[%c0_907, %c0_908] : memref<2x32xf32, #tpu.memory_space<vmem>>, vector<2x32xf32>
    tpu.vector_store %arg7[%c0_907, %c0_908], %2038 {strides = array<i32>} : memref<2x32xf32, #tpu.memory_space<vmem>>, vector<2x32xf32>,
    %c0_909 = arith.constant 0 : index
    %c0_910 = arith.constant 0 : index
    %2042 = vector.load %arg8[%c0_909, %c0_910] : memref<2x32xf32, #tpu.memory_space<vmem>>, vector<2x32xf32>
    tpu.vector_store %arg8[%c0_909, %c0_910], %2029 {strides = array<i32>} : memref<2x32xf32, #tpu.memory_space<vmem>>, vector<2x32xf32>,
    return
  }
}

module attributes {stable_mosaic.version = 11 : i64} {
  func.func @_mm_bias_kernel(%arg0: i32, %arg1: memref<32x160xbf16, #tpu.memory_space<vmem>>, %arg2: memref<160x64xbf16, #tpu.memory_space<vmem>>, %arg3: memref<32x1xf32, #tpu.memory_space<vmem>>, %arg4: memref<32x64xbf16, #tpu.memory_space<vmem>>) attributes {dimension_semantics = [#tpu.dimension_semantics<parallel>], iteration_bounds = array<i64: 1>, scalar_prefetch = 0 : i64, scratch_operands = 0 : i64, tpu.core_type = #tpu.core_type<tc>, window_params = [{pipeline_mode = #tpu.pipeline_mode<synchronous>, transform_indices = @transform_0, window_bounds = array<i64: 32, 160>}, {transform_indices = @transform_1, window_bounds = array<i64: 160, 64>}, {pipeline_mode = #tpu.pipeline_mode<synchronous>, transform_indices = @transform_2, window_bounds = array<i64: 32, 1>}, {transform_indices = @transform_3, window_bounds = array<i64: 32, 64>}]} {
    %c0 = arith.constant 0 : index
    %c0_0 = arith.constant 0 : index
    %0 = vector.load %arg1[%c0, %c0_0] : memref<32x160xbf16, #tpu.memory_space<vmem>>, vector<32x160xbf16>
    %c0_1 = arith.constant 0 : index
    %c0_2 = arith.constant 0 : index
    %1 = vector.load %arg2[%c0_1, %c0_2] : memref<160x64xbf16, #tpu.memory_space<vmem>>, vector<160x64xbf16>
    %cst = arith.constant dense<0.000000e+00> : vector<32x64xf32>
    %2 = tpu.matmul %0, %1, %cst {dimension_numbers = #tpu.dot_dimension_numbers<[1], [0], [0], [1], [0, 0, 1, 1], [], []>} : vector<32x160xbf16>, vector<160x64xbf16>, vector<32x64xf32> -> vector<32x64xf32>
    %c0_3 = arith.constant 0 : index
    %c0_4 = arith.constant 0 : index
    %3 = vector.load %arg3[%c0_3, %c0_4] : memref<32x1xf32, #tpu.memory_space<vmem>>, vector<32x1xf32>
    %4 = vector.broadcast %3 : vector<32x1xf32> to vector<32x64xf32>
    %5 = arith.addf %2, %4 : vector<32x64xf32>
    %cst_5 = arith.constant 0.000000e+00 : f32
    %6 = vector.broadcast %cst_5 : f32 to vector<32x64xf32>
    %7 = arith.maximumf %5, %6 : vector<32x64xf32>
    %8 = arith.truncf %7 : vector<32x64xf32> to vector<32x64xbf16>
    %c0_6 = arith.constant 0 : index
    %c0_7 = arith.constant 0 : index
    %9 = vector.load %arg4[%c0_6, %c0_7] : memref<32x64xbf16, #tpu.memory_space<vmem>>, vector<32x64xbf16>
    tpu.vector_store %arg4[%c0_6, %c0_7], %8 {strides = array<i32>} : memref<32x64xbf16, #tpu.memory_space<vmem>>, vector<32x64xbf16>,
    return
  }
  func.func @transform_0(%arg0: i32) -> (i32, i32) {
    %c0_i32 = arith.constant 0 : i32
    %c0_i32_0 = arith.constant 0 : i32
    %c0_i32_1 = arith.constant 0 : i32
    return %c0_i32, %c0_i32_0 : i32, i32
  }
  func.func @transform_1(%arg0: i32) -> (i32, i32) {
    %c0_i32 = arith.constant 0 : i32
    %c0_i32_0 = arith.constant 0 : i32
    return %c0_i32, %arg0 : i32, i32
  }
  func.func @transform_2(%arg0: i32) -> (i32, i32) {
    %c0_i32 = arith.constant 0 : i32
    %c0_i32_0 = arith.constant 0 : i32
    %c0_i32_1 = arith.constant 0 : i32
    return %c0_i32, %c0_i32_0 : i32, i32
  }
  func.func @transform_3(%arg0: i32) -> (i32, i32) {
    %c0_i32 = arith.constant 0 : i32
    %c0_i32_0 = arith.constant 0 : i32
    return %c0_i32, %arg0 : i32, i32
  }
}

module attributes {stable_mosaic.version = 11 : i64} {
  func.func @_mm_bias_kernel(%arg0: i32, %arg1: memref<16x160xbf16, #tpu.memory_space<vmem>>, %arg2: memref<160x64xbf16, #tpu.memory_space<vmem>>, %arg3: memref<16x1xf32, #tpu.memory_space<vmem>>, %arg4: memref<16x64xbf16, #tpu.memory_space<vmem>>) attributes {dimension_semantics = [#tpu.dimension_semantics<parallel>], iteration_bounds = array<i64: 1>, scalar_prefetch = 0 : i64, scratch_operands = 0 : i64, tpu.core_type = #tpu.core_type<tc>, window_params = [{pipeline_mode = #tpu.pipeline_mode<synchronous>, transform_indices = @transform_0, window_bounds = array<i64: 16, 160>}, {transform_indices = @transform_1, window_bounds = array<i64: 160, 64>}, {pipeline_mode = #tpu.pipeline_mode<synchronous>, transform_indices = @transform_2, window_bounds = array<i64: 16, 1>}, {transform_indices = @transform_3, window_bounds = array<i64: 16, 64>}]} {
    %c0 = arith.constant 0 : index
    %c0_0 = arith.constant 0 : index
    %0 = vector.load %arg1[%c0, %c0_0] : memref<16x160xbf16, #tpu.memory_space<vmem>>, vector<16x160xbf16>
    %c0_1 = arith.constant 0 : index
    %c0_2 = arith.constant 0 : index
    %1 = vector.load %arg2[%c0_1, %c0_2] : memref<160x64xbf16, #tpu.memory_space<vmem>>, vector<160x64xbf16>
    %cst = arith.constant dense<0.000000e+00> : vector<16x64xf32>
    %2 = tpu.matmul %0, %1, %cst {dimension_numbers = #tpu.dot_dimension_numbers<[1], [0], [0], [1], [0, 0, 1, 1], [], []>} : vector<16x160xbf16>, vector<160x64xbf16>, vector<16x64xf32> -> vector<16x64xf32>
    %c0_3 = arith.constant 0 : index
    %c0_4 = arith.constant 0 : index
    %3 = vector.load %arg3[%c0_3, %c0_4] : memref<16x1xf32, #tpu.memory_space<vmem>>, vector<16x1xf32>
    %4 = vector.broadcast %3 : vector<16x1xf32> to vector<16x64xf32>
    %5 = arith.addf %2, %4 : vector<16x64xf32>
    %cst_5 = arith.constant 0.000000e+00 : f32
    %6 = vector.broadcast %cst_5 : f32 to vector<16x64xf32>
    %7 = arith.maximumf %5, %6 : vector<16x64xf32>
    %8 = arith.truncf %7 : vector<16x64xf32> to vector<16x64xbf16>
    %c0_6 = arith.constant 0 : index
    %c0_7 = arith.constant 0 : index
    %9 = vector.load %arg4[%c0_6, %c0_7] : memref<16x64xbf16, #tpu.memory_space<vmem>>, vector<16x64xbf16>
    tpu.vector_store %arg4[%c0_6, %c0_7], %8 {strides = array<i32>} : memref<16x64xbf16, #tpu.memory_space<vmem>>, vector<16x64xbf16>,
    return
  }
  func.func @transform_0(%arg0: i32) -> (i32, i32) {
    %c0_i32 = arith.constant 0 : i32
    %c0_i32_0 = arith.constant 0 : i32
    %c0_i32_1 = arith.constant 0 : i32
    return %c0_i32, %c0_i32_0 : i32, i32
  }
  func.func @transform_1(%arg0: i32) -> (i32, i32) {
    %c0_i32 = arith.constant 0 : i32
    %c0_i32_0 = arith.constant 0 : i32
    return %c0_i32, %arg0 : i32, i32
  }
  func.func @transform_2(%arg0: i32) -> (i32, i32) {
    %c0_i32 = arith.constant 0 : i32
    %c0_i32_0 = arith.constant 0 : i32
    %c0_i32_1 = arith.constant 0 : i32
    return %c0_i32, %c0_i32_0 : i32, i32
  }
  func.func @transform_3(%arg0: i32) -> (i32, i32) {
    %c0_i32 = arith.constant 0 : i32
    %c0_i32_0 = arith.constant 0 : i32
    return %c0_i32, %arg0 : i32, i32
  }
}

module attributes {stable_mosaic.version = 11 : i64} {
  func.func @_mm_plain_kernel(%arg0: i32, %arg1: memref<16x80xbf16, #tpu.memory_space<vmem>>, %arg2: memref<80x64xbf16, #tpu.memory_space<vmem>>, %arg3: memref<16x64xbf16, #tpu.memory_space<vmem>>) attributes {dimension_semantics = [#tpu.dimension_semantics<parallel>], iteration_bounds = array<i64: 1>, scalar_prefetch = 0 : i64, scratch_operands = 0 : i64, tpu.core_type = #tpu.core_type<tc>, window_params = [{pipeline_mode = #tpu.pipeline_mode<synchronous>, transform_indices = @transform_0, window_bounds = array<i64: 16, 80>}, {transform_indices = @transform_1, window_bounds = array<i64: 80, 64>}, {transform_indices = @transform_2, window_bounds = array<i64: 16, 64>}]} {
    %c0 = arith.constant 0 : index
    %c0_0 = arith.constant 0 : index
    %0 = vector.load %arg1[%c0, %c0_0] : memref<16x80xbf16, #tpu.memory_space<vmem>>, vector<16x80xbf16>
    %c0_1 = arith.constant 0 : index
    %c0_2 = arith.constant 0 : index
    %1 = vector.load %arg2[%c0_1, %c0_2] : memref<80x64xbf16, #tpu.memory_space<vmem>>, vector<80x64xbf16>
    %cst = arith.constant dense<0.000000e+00> : vector<16x64xf32>
    %2 = tpu.matmul %0, %1, %cst {dimension_numbers = #tpu.dot_dimension_numbers<[1], [0], [0], [1], [0, 0, 1, 1], [], []>} : vector<16x80xbf16>, vector<80x64xbf16>, vector<16x64xf32> -> vector<16x64xf32>
    %3 = arith.truncf %2 : vector<16x64xf32> to vector<16x64xbf16>
    %c0_3 = arith.constant 0 : index
    %c0_4 = arith.constant 0 : index
    %4 = vector.load %arg3[%c0_3, %c0_4] : memref<16x64xbf16, #tpu.memory_space<vmem>>, vector<16x64xbf16>
    tpu.vector_store %arg3[%c0_3, %c0_4], %3 {strides = array<i32>} : memref<16x64xbf16, #tpu.memory_space<vmem>>, vector<16x64xbf16>,
    return
  }
  func.func @transform_0(%arg0: i32) -> (i32, i32) {
    %c0_i32 = arith.constant 0 : i32
    %c0_i32_0 = arith.constant 0 : i32
    %c0_i32_1 = arith.constant 0 : i32
    return %c0_i32, %c0_i32_0 : i32, i32
  }
  func.func @transform_1(%arg0: i32) -> (i32, i32) {
    %c0_i32 = arith.constant 0 : i32
    %c0_i32_0 = arith.constant 0 : i32
    return %c0_i32, %arg0 : i32, i32
  }
  func.func @transform_2(%arg0: i32) -> (i32, i32) {
    %c0_i32 = arith.constant 0 : i32
    %c0_i32_0 = arith.constant 0 : i32
    return %c0_i32, %arg0 : i32, i32
  }
}

module attributes {stable_mosaic.version = 11 : i64} {
  func.func @_mm_bias_kernel(%arg0: i32, %arg1: memref<8x40xbf16, #tpu.memory_space<vmem>>, %arg2: memref<40x128xbf16, #tpu.memory_space<vmem>>, %arg3: memref<8x1xf32, #tpu.memory_space<vmem>>, %arg4: memref<8x128xbf16, #tpu.memory_space<vmem>>) attributes {dimension_semantics = [#tpu.dimension_semantics<parallel>], iteration_bounds = array<i64: 1>, scalar_prefetch = 0 : i64, scratch_operands = 0 : i64, tpu.core_type = #tpu.core_type<tc>, window_params = [{pipeline_mode = #tpu.pipeline_mode<synchronous>, transform_indices = @transform_0, window_bounds = array<i64: 8, 40>}, {transform_indices = @transform_1, window_bounds = array<i64: 40, 128>}, {pipeline_mode = #tpu.pipeline_mode<synchronous>, transform_indices = @transform_2, window_bounds = array<i64: 8, 1>}, {transform_indices = @transform_3, window_bounds = array<i64: 8, 128>}]} {
    %c0 = arith.constant 0 : index
    %c0_0 = arith.constant 0 : index
    %0 = vector.load %arg1[%c0, %c0_0] : memref<8x40xbf16, #tpu.memory_space<vmem>>, vector<8x40xbf16>
    %c0_1 = arith.constant 0 : index
    %c0_2 = arith.constant 0 : index
    %1 = vector.load %arg2[%c0_1, %c0_2] : memref<40x128xbf16, #tpu.memory_space<vmem>>, vector<40x128xbf16>
    %cst = arith.constant dense<0.000000e+00> : vector<8x128xf32>
    %2 = tpu.matmul %0, %1, %cst {dimension_numbers = #tpu.dot_dimension_numbers<[1], [0], [0], [1], [0, 0, 1, 1], [], []>} : vector<8x40xbf16>, vector<40x128xbf16>, vector<8x128xf32> -> vector<8x128xf32>
    %c0_3 = arith.constant 0 : index
    %c0_4 = arith.constant 0 : index
    %3 = vector.load %arg3[%c0_3, %c0_4] : memref<8x1xf32, #tpu.memory_space<vmem>>, vector<8x1xf32>
    %4 = vector.broadcast %3 : vector<8x1xf32> to vector<8x128xf32>
    %5 = arith.addf %2, %4 : vector<8x128xf32>
    %cst_5 = arith.constant 0.000000e+00 : f32
    %6 = vector.broadcast %cst_5 : f32 to vector<8x128xf32>
    %7 = arith.maximumf %5, %6 : vector<8x128xf32>
    %8 = arith.truncf %7 : vector<8x128xf32> to vector<8x128xbf16>
    %c0_6 = arith.constant 0 : index
    %c0_7 = arith.constant 0 : index
    %9 = vector.load %arg4[%c0_6, %c0_7] : memref<8x128xbf16, #tpu.memory_space<vmem>>, vector<8x128xbf16>
    tpu.vector_store %arg4[%c0_6, %c0_7], %8 {strides = array<i32>} : memref<8x128xbf16, #tpu.memory_space<vmem>>, vector<8x128xbf16>,
    return
  }
  func.func @transform_0(%arg0: i32) -> (i32, i32) {
    %c0_i32 = arith.constant 0 : i32
    %c0_i32_0 = arith.constant 0 : i32
    %c0_i32_1 = arith.constant 0 : i32
    return %c0_i32, %c0_i32_0 : i32, i32
  }
  func.func @transform_1(%arg0: i32) -> (i32, i32) {
    %c0_i32 = arith.constant 0 : i32
    %c0_i32_0 = arith.constant 0 : i32
    return %c0_i32, %arg0 : i32, i32
  }
  func.func @transform_2(%arg0: i32) -> (i32, i32) {
    %c0_i32 = arith.constant 0 : i32
    %c0_i32_0 = arith.constant 0 : i32
    %c0_i32_1 = arith.constant 0 : i32
    return %c0_i32, %c0_i32_0 : i32, i32
  }
  func.func @transform_3(%arg0: i32) -> (i32, i32) {
    %c0_i32 = arith.constant 0 : i32
    %c0_i32_0 = arith.constant 0 : i32
    return %c0_i32, %arg0 : i32, i32
  }
}

module attributes {stable_mosaic.version = 11 : i64} {
  func.func @_mm_bias_kernel(%arg0: i32, %arg1: memref<3x40xbf16, #tpu.memory_space<vmem>>, %arg2: memref<40x128xbf16, #tpu.memory_space<vmem>>, %arg3: memref<3x1xf32, #tpu.memory_space<vmem>>, %arg4: memref<3x128xf32, #tpu.memory_space<vmem>>) attributes {dimension_semantics = [#tpu.dimension_semantics<parallel>], iteration_bounds = array<i64: 1>, scalar_prefetch = 0 : i64, scratch_operands = 0 : i64, tpu.core_type = #tpu.core_type<tc>, window_params = [{pipeline_mode = #tpu.pipeline_mode<synchronous>, transform_indices = @transform_0, window_bounds = array<i64: 3, 40>}, {transform_indices = @transform_1, window_bounds = array<i64: 40, 128>}, {pipeline_mode = #tpu.pipeline_mode<synchronous>, transform_indices = @transform_2, window_bounds = array<i64: 3, 1>}, {transform_indices = @transform_3, window_bounds = array<i64: 3, 128>}]} {
    %c0 = arith.constant 0 : index
    %c0_0 = arith.constant 0 : index
    %0 = vector.load %arg1[%c0, %c0_0] : memref<3x40xbf16, #tpu.memory_space<vmem>>, vector<3x40xbf16>
    %c0_1 = arith.constant 0 : index
    %c0_2 = arith.constant 0 : index
    %1 = vector.load %arg2[%c0_1, %c0_2] : memref<40x128xbf16, #tpu.memory_space<vmem>>, vector<40x128xbf16>
    %cst = arith.constant dense<0.000000e+00> : vector<3x128xf32>
    %2 = tpu.matmul %0, %1, %cst {dimension_numbers = #tpu.dot_dimension_numbers<[1], [0], [0], [1], [0, 0, 1, 1], [], []>} : vector<3x40xbf16>, vector<40x128xbf16>, vector<3x128xf32> -> vector<3x128xf32>
    %c0_3 = arith.constant 0 : index
    %c0_4 = arith.constant 0 : index
    %3 = vector.load %arg3[%c0_3, %c0_4] : memref<3x1xf32, #tpu.memory_space<vmem>>, vector<3x1xf32>
    %4 = vector.broadcast %3 : vector<3x1xf32> to vector<3x128xf32>
    %5 = arith.addf %2, %4 : vector<3x128xf32>
    %cst_5 = arith.constant 0.000000e+00 : f32
    %6 = vector.broadcast %cst_5 : f32 to vector<3x128xf32>
    %7 = arith.maximumf %5, %6 : vector<3x128xf32>
    %c0_6 = arith.constant 0 : index
    %c0_7 = arith.constant 0 : index
    %8 = vector.load %arg4[%c0_6, %c0_7] : memref<3x128xf32, #tpu.memory_space<vmem>>, vector<3x128xf32>
    tpu.vector_store %arg4[%c0_6, %c0_7], %7 {strides = array<i32>} : memref<3x128xf32, #tpu.memory_space<vmem>>, vector<3x128xf32>,
    return
  }
  func.func @transform_0(%arg0: i32) -> (i32, i32) {
    %c0_i32 = arith.constant 0 : i32
    %c0_i32_0 = arith.constant 0 : i32
    %c0_i32_1 = arith.constant 0 : i32
    return %c0_i32, %c0_i32_0 : i32, i32
  }
  func.func @transform_1(%arg0: i32) -> (i32, i32) {
    %c0_i32 = arith.constant 0 : i32
    %c0_i32_0 = arith.constant 0 : i32
    return %c0_i32, %arg0 : i32, i32
  }
  func.func @transform_2(%arg0: i32) -> (i32, i32) {
    %c0_i32 = arith.constant 0 : i32
    %c0_i32_0 = arith.constant 0 : i32
    %c0_i32_1 = arith.constant 0 : i32
    return %c0_i32, %c0_i32_0 : i32, i32
  }
  func.func @transform_3(%arg0: i32) -> (i32, i32) {
    %c0_i32 = arith.constant 0 : i32
    %c0_i32_0 = arith.constant 0 : i32
    return %c0_i32, %arg0 : i32, i32
  }
}

</mosaic_0001>

<bundles_post_ra>
// kernel: _lambda_.8
= control target key start
LH: loop header
LB: loop body
LE: loop exit
PB: predicated region body
PF: predicated region fallthrough
CT: control target
= control target key end

     0   :  { %8 = vsyncpa [#allocation3], 0  ;;  %s261_s0 = inlined_call_operand.hbm [shape: bf16[32,8], index: 0, kind: input, shape index: {}]   ;;  %s262_s1 = inlined_call_operand.vmem [shape: bf16[8,32], index: 1, kind: input, shape index: {}]   ;;  %s263_s2 = inlined_call_operand.hbm [shape: f32[32,1], index: 2, kind: input, shape index: {}]   ;;  %s264_s3 = inlined_call_operand.vmem [shape: bf16[32,32], index: 3, kind: output, shape index: {}]  }
   0x1   :  { %s14_s14 = sshll.u32 %s261_s0, 4  ;;  %s15_s14 = int_to_ptr.hbm [resolvable:$true] %s14_s14 }
   0x2   :  { %9 = vsyncpa [#allocation5], 0  ;;  %s209_s15 = smov [#allocation2]   ;;  %s29_s19 = sshll.u32 %s263_s2, 4  ;;  %s30_s19 = int_to_ptr.hbm [resolvable:$true] %s29_s19 }
   0x3   :  { %s16_s16 = sshll.u32 %s209_s15, 4  ;;  %s210_s20 = smov 64   ;;  %s17_s16 = int_to_ptr.vmem [resolvable:$true] %s16_s16 }
   0x4   :  { %s211_s21 = smov 4   ;;  %s212_s22 = smov [#allocation4]  }
   0x5   :  { %22 = dma.hbm_to_vmem [thread:$0]  %s15_s14, 256, %s17_s16, [#allocation3], %s210_s20, %s210_s20, %s211_s21  }
   0x6   :  { %s31_s23 = sshll.u32 %s212_s22, 4  ;;  %s213_s24 = smov 128   ;;  %s32_s23 = int_to_ptr.vmem [resolvable:$true] %s31_s23 }
   0x7   :  { %s214_s25 = smov 8  }
   0x8   :  { %37 = dma.hbm_to_vmem [thread:$0]  %s30_s19, 512, %s32_s23, [#allocation5], %s213_s24, %s213_s24, %s214_s25  }
   0x9   :  { %205 = dma.done.wait [#allocation3], 256  }
   0xa   :  { %206 = vsyncadd [#allocation3], 4294967040 }
   0xb   :  { %207 = dma.done.wait [#allocation5], 512  }
   0xc   :  { %208 = vsyncadd [#allocation5], 4294966784  ;;  %v215_v0 = vmov 0   ;;  %vm93_vm0 = vcmask 1043456   ;;  %v51_v1 = vld [vmem:[%s262_s1] sm:$0xf] }
   0xd   :  { %156 = vset.pattern.permute.xlu1 %v215_v0  ;;  %155 = vset.pattern.permute.xlu0 %v215_v0  ;;  %v145_v2 = vld [vmem:[#allocation2] sm:$0xff]  ;;  %v95_v3 = vsel %vm93_vm0, %v51_v1, 0  ;;  %v146_v4 = vld [vmem:[#allocation2 + $0x8] sm:$0xff]  ;;  %v52_v6 = vld [vmem:[#allocation4] sm:$0xff]  ;;  %vm86_vm1 = vcmask 64512   ;;  %vm124_vm2 = vcmask 257024  }
   0xe   :  { %v54_v5 = vld [vmem:[#allocation4 + $0x10] sm:$0xff]  ;;  %104 = vmatpush.bf16.msra.mxu0 %v95_v3  ;;  %147 = vmatpush.bf16.msra.mxu1 %v95_v3  ;;  %v55_v7 = vld [vmem:[#allocation4 + $0x18] sm:$0xff]  ;;  %v53_v8 = vld [vmem:[#allocation4 + $0x8] sm:$0xff] }
   0xf   :  { %68 = vperm.xlu1 %156, %v54_v5   ;;  %58 = vperm.xlu0 %155, %v52_v6  }
  0x11   :  { %143 = vmatmul.msk.bf16.vlgmr.msra.gmra.mxu0 %vm86_vm1, %v145_v2  ;;  %144 = vmatmul.msk.bf16.vlgmr.msra.gmra.mxu1 %vm86_vm1, %v146_v4 }
  0x17   :  { %73 = vperm.xlu1 %156, %v55_v7   ;;  %63 = vperm.xlu0 %155, %v53_v8  }
  0x81   :  { %v69_v9 = vpop.permute.xlu1 %68  ;;  %v59_v10 = vpop.permute.xlu0 %58 }
  0x89   :  { %v74_v19 = vpop.permute.xlu1 %73  ;;  %v64_v20 = vpop.permute.xlu0 %63 }
  0x8e   :  { %v106_v11 = vpop.f32.mrf.mxu0  ;;  %v111_v12 = vpop.f32.mrf.mxu1 }
  0x8f   :  { %v107_v13 = vadd.f32 %v106_v11, %v59_v10  ;;  %v112_v14 = vadd.f32 %v111_v12, %v69_v9 }
  0x91   :  { %v116_v15 = vmax.f32 %v107_v13, 0.0  ;;  %v118_v16 = vmax.f32 %v112_v14, 0.0 }
  0x93   :  { %v120_v17 = vpack.c.bf16 %v116_v15, %v116_v15  ;;  %v122_v18 = vpack.c.bf16 %v118_v16, %v118_v16 }
  0x95   :  { %125 = vst.msk [vmem:[%s264_s3] sm:$0xf] %vm124_vm2, %v120_v17 }
  0x96   :  { %127 = vst.msk [vmem:[%s264_s3 + $0x8] sm:$0xf] %vm124_vm2, %v122_v18  ;;  %v108_v21 = vpop.f32.mrf.mxu0  ;;  %v113_v22 = vpop.f32.mrf.mxu1 }
  0x97   :  { %v109_v23 = vadd.f32 %v108_v21, %v64_v20  ;;  %v114_v24 = vadd.f32 %v113_v22, %v74_v19 }
  0x99   :  { %v117_v25 = vmax.f32 %v109_v23, 0.0  ;;  %v119_v26 = vmax.f32 %v114_v24, 0.0 }
  0x9b   :  { %v121_v27 = vpack.c.bf16 %v117_v25, %v117_v25  ;;  %v123_v28 = vpack.c.bf16 %v119_v26, %v119_v26 }
  0x9d   :  { %126 = vst.msk [vmem:[%s264_s3 + $0x4] sm:$0xf] %vm124_vm2, %v121_v27 }
  0x9e   :  { %128 = vst.msk [vmem:[%s264_s3 + $0xc] sm:$0xf] %vm124_vm2, %v123_v28 }
  0x9f   :  { %133 = vsyncpa [#allocation3], 1 }
  0xa0   :  { %134 = vsyncpa [#allocation5], 1 }

// kernel: _lambda_.10
= control target key start
LH: loop header
LB: loop body
LE: loop exit
PB: predicated region body
PF: predicated region fallthrough
CT: control target
= control target key end

     0   :  { %vm248_vm0 = vcmask 523264   ;;  %vm356_vm1 = vcmask 257024   ;;  %s740_s1 = inlined_call_operand.vmem [shape: bf16[320,32], index: 1, kind: input, shape index: {}]   ;;  %s741_s0 = inlined_call_operand.vmem [shape: bf16[64,320], index: 0, kind: input, shape index: {}]   ;;  %s742_s2 = inlined_call_operand.vmem [shape: bf16[64,32], index: 2, kind: output, shape index: {}]  }
   0x1   :  { %v520_v0 = vld [vmem:[%s740_s1 + $0x38] sm:$0xff]  ;;  %v519_v3 = vld [vmem:[%s740_s1 + $0x30] sm:$0xff]  ;;  %v518_v6 = vld [vmem:[%s740_s1 + $0x28] sm:$0xff] }
   0x2   :  { %v570_v1 = vld [vmem:[%s740_s1 + $0x78] sm:$0xff]  ;;  %261 = vmatpush.bf16.msra.mxu0 %v520_v0  ;;  %533 = vmatpush.bf16.msra.mxu3 %v520_v0  ;;  %v582_v4 = vld [vmem:[%s740_s1 + $0x70] sm:$0xff]  ;;  %v526_v7 = vld [vmem:[%s740_s1 + $0x68] sm:$0xff] }
   0x3   :  { %v532_v2 = vld [vmem:[%s740_s1 + $0x98] sm:$0xff]  ;;  %541 = vmatpush.bf16.msra.mxu1 %v570_v1  ;;  %v531_v5 = vld [vmem:[%s740_s1 + $0x90] sm:$0xff]  ;;  %v530_v8 = vld [vmem:[%s740_s1 + $0x88] sm:$0xff] }
   0x4   :  { %323 = vmatpush.bf16.msra.mxu2 %v532_v2  ;;  %v517_v9 = vld [vmem:[%s740_s1 + $0x20] sm:$0xff]  ;;  %v379_v12 = vld [vmem:[%s741_s0 + $0x8] sm:$0xf]  ;;  %v503_v13 = vld [vmem:[%s741_s0 + $0x10] sm:$0xf0] }
   0x5   :  { %v525_v10 = vld [vmem:[%s740_s1 + $0x60] sm:$0xff]  ;;  %v380_v14 = vor.u32 %v503_v13, %v379_v12  ;;  %v516_v15 = vld [vmem:[%s740_s1 + $0x18] sm:$0xff]  ;;  %v515_v17 = vld [vmem:[%s740_s1 + $0x10] sm:$0xff] }
   0x6   :  { %262 = vmatpush.bf16.msra.mxu0 %v519_v3  ;;  %534 = vmatpush.bf16.msra.mxu3 %v519_v3  ;;  %v529_v11 = vld [vmem:[%s740_s1 + $0x80] sm:$0xff]  ;;  %v524_v16 = vld [vmem:[%s740_s1 + $0x58] sm:$0xff]  ;;  %v523_v18 = vld [vmem:[%s740_s1 + $0x50] sm:$0xff] }
   0x7   :  { %542 = vmatpush.bf16.msra.mxu1 %v582_v4  ;;  %v514_v19 = vld [vmem:[%s740_s1 + $0x8] sm:$0xff]  ;;  %v513_v21 = vld [vmem:[%s740_s1] sm:$0xff]  ;;  %v383_v23 = vld [vmem:[%s741_s0 + $0x18] sm:$0xf] }
   0x8   :  { %324 = vmatpush.bf16.msra.mxu2 %v531_v5  ;;  %v522_v20 = vld [vmem:[%s740_s1 + $0x48] sm:$0xff]  ;;  %v521_v22 = vld [vmem:[%s740_s1 + $0x40] sm:$0xff]  ;;  %v504_v27 = vld [vmem:[%s741_s0 + $0x1c] sm:$0xf] }
   0x9   :  { %v371_v24 = vld [vmem:[%s741_s0] sm:$0xf]  ;;  %v502_v25 = vld [vmem:[%s741_s0 + $0x8] sm:$0xf0]  ;;  %v505_v26 = vld [vmem:[%s741_s0 + $0x20] sm:$0xf0] }
   0xa   :  { %263 = vmatpush.bf16.msra.mxu0 %v518_v6  ;;  %535 = vmatpush.bf16.msra.mxu3 %v518_v6  ;;  %v385_v28 = vld [vmem:[%s741_s0 + $0x24] sm:$0xf0]  ;;  %v391_v29 = vld [vmem:[%s741_s0 + $0x20] sm:$0xf]  ;;  %v506_v30 = vld [vmem:[%s741_s0 + $0x28] sm:$0xf0]  ;;  %v372_v31 = vor.u32 %v502_v25, %v371_v24  ;;  %v384_v32 = vor.u32 %v505_v26, %v383_v23 }
   0xb   :  { %543 = vmatpush.bf16.msra.mxu1 %v526_v7  ;;  %v388_v33 = vor.u32 %v504_v27, %v385_v28  ;;  %v392_v34 = vor.u32 %v506_v30, %v391_v29  ;;  %v395_v35 = vld [vmem:[%s741_s0 + $0x30] sm:$0xf]  ;;  %v508_v36 = vld [vmem:[%s741_s0 + $0x38] sm:$0xf0]  ;;  %v507_v37 = vld [vmem:[%s741_s0 + $0x34] sm:$0xf] }
   0xc   :  { %325 = vmatpush.bf16.msra.mxu2 %v530_v8  ;;  %v397_v38 = vld [vmem:[%s741_s0 + $0x3c] sm:$0xf0]  ;;  %v403_v39 = vld [vmem:[%s741_s0 + $0x38] sm:$0xf]  ;;  %v509_v40 = vld [vmem:[%s741_s0 + $0x40] sm:$0xf0]  ;;  %v396_v41 = vor.u32 %v508_v36, %v395_v35 }
   0xd   :  { %v400_v42 = vor.u32 %v507_v37, %v397_v38  ;;  %v404_v43 = vor.u32 %v509_v40, %v403_v39  ;;  %v501_v44 = vld [vmem:[%s741_s0 + $0x4] sm:$0xf]  ;;  %v373_v45 = vld [vmem:[%s741_s0 + $0xc] sm:$0xf0]  ;;  %v407_v46 = vld [vmem:[%s741_s0 + $0x48] sm:$0xf] }
   0xe   :  { %264 = vmatpush.bf16.msra.mxu0 %v517_v9  ;;  %536 = vmatpush.bf16.msra.mxu3 %v517_v9  ;;  %v376_v47 = vor.u32 %v501_v44, %v373_v45  ;;  %v511_v48 = vld [vmem:[%s741_s0 + $0x50] sm:$0xf0]  ;;  %v510_v49 = vld [vmem:[%s741_s0 + $0x4c] sm:$0xf]  ;;  %v409_v50 = vld [vmem:[%s741_s0 + $0x54] sm:$0xf0] }
   0xf   :  { %544 = vmatpush.bf16.msra.mxu1 %v525_v10  ;;  %v415_v51 = vld [vmem:[%s741_s0 + $0x50] sm:$0xf]  ;;  %v512_v52 = vld [vmem:[%s741_s0 + $0x58] sm:$0xf0]  ;;  %v408_v53 = vor.u32 %v511_v48, %v407_v46  ;;  %v412_v54 = vor.u32 %v510_v49, %v409_v50 }
  0x10   :  { %326 = vmatpush.bf16.msra.mxu2 %v529_v11  ;;  %v416_v55 = vor.u32 %v512_v52, %v415_v51 }
  0x12   :  { %265 = vmatpush.bf16.msra.mxu0 %v516_v15  ;;  %537 = vmatpush.bf16.msra.mxu3 %v516_v15 }
  0x13   :  { %497 = vmatmul.msk.bf16.vlgmr.msra.gmra.mxu2 %vm248_vm0, %v380_v14  ;;  %545 = vmatpush.bf16.msra.mxu1 %v524_v16 }
  0x16   :  { %266 = vmatpush.bf16.msra.mxu0 %v515_v17  ;;  %538 = vmatpush.bf16.msra.mxu3 %v515_v17 }
  0x17   :  { %546 = vmatpush.bf16.msra.mxu1 %v523_v18 }
  0x1a   :  { %267 = vmatpush.bf16.msra.mxu0 %v514_v19  ;;  %539 = vmatpush.bf16.msra.mxu3 %v514_v19 }
  0x1b   :  { %547 = vmatpush.bf16.msra.mxu1 %v522_v20 }
  0x1e   :  { %268 = vmatpush.bf16.msra.mxu0 %v513_v21  ;;  %540 = vmatpush.bf16.msra.mxu3 %v513_v21 }
  0x1f   :  { %548 = vmatpush.bf16.msra.mxu1 %v521_v22 }
  0x21   :  { %269 = vmatmul.bf16.vlgmr.msra.gmra.mxu0 %v372_v31  ;;  %274 = vmatmul.bf16.vlgmr.msra.gmra.mxu3 %v384_v32 }
  0x22   :  { %290 = vmatpush.bf16.msrb.mxu0 %v570_v1  ;;  %303 = vmatmul.bf16.vlgmr.msra.gmra.mxu1 %v388_v33 }
  0x23   :  { %498 = vmatmul.msk.bf16.gmra.mxu2 %vm248_vm0, %v392_v34 }
  0x26   :  { %291 = vmatpush.bf16.msrb.mxu0 %v582_v4 }
  0x2a   :  { %292 = vmatpush.bf16.msrb.mxu0 %v526_v7 }
  0x2e   :  { %293 = vmatpush.bf16.msrb.mxu0 %v525_v10 }
  0x31   :  { %279 = vmatmul.bf16.gmra.mxu3 %v396_v41 }
  0x32   :  { %294 = vmatpush.bf16.msrb.mxu0 %v524_v16  ;;  %308 = vmatmul.bf16.gmra.mxu1 %v400_v42 }
  0x33   :  { %499 = vmatmul.msk.bf16.gmra.mxu2 %vm248_vm0, %v404_v43 }
  0x36   :  { %295 = vmatpush.bf16.msrb.mxu0 %v523_v18 }
  0x3a   :  { %296 = vmatpush.bf16.msrb.mxu0 %v522_v20 }
  0x3e   :  { %297 = vmatpush.bf16.msrb.mxu0 %v521_v22 }
  0x41   :  { %298 = vmatmul.bf16.vlgmr.msrb.gmra.mxu0 %v376_v47  ;;  %284 = vmatmul.bf16.gmra.mxu3 %v408_v53 }
  0x42   :  { %313 = vmatmul.bf16.gmra.mxu1 %v412_v54 }
  0x43   :  { %500 = vmatmul.msk.bf16.gmra.mxu2 %vm248_vm0, %v416_v55 }
  0x96   :  { %v328_v56 = vpop.f32.mrf.mxu2 }
  0x9e   :  { %v330_v57 = vpop.f32.mrf.mxu2  ;;  %v270_v0 = vpop.f32.mrf.mxu0 }
  0x9f   :  { %v304_v58 = vpop.f32.mrf.mxu1 }
  0xa4   :  { %v275_v59 = vpop.f32.mrf.mxu3 }
  0xa5   :  { %v305_v60 = vadd.f32 %v304_v58, %v275_v59 }
  0xa6   :  { %v333_v61 = vpop.f32.mrf.mxu2  ;;  %v272_v8 = vpop.f32.mrf.mxu0 }
  0xa7   :  { %v306_v62 = vpop.f32.mrf.mxu1  ;;  %v334_v63 = vadd.f32 %v333_v61, %v305_v60 }
  0xa9   :  { %v350_v1 = vpack.c.bf16 %v334_v63, %v334_v63 }
  0xab   :  { %359 = vst.msk [vmem:[%s742_s2 + $0x8] sm:$0xf] %vm356_vm1, %v350_v1 }
  0xac   :  { %v277_v2 = vpop.f32.mrf.mxu3 }
  0xad   :  { %v307_v3 = vadd.f32 %v306_v62, %v277_v2 }
  0xae   :  { %v335_v4 = vpop.f32.mrf.mxu2 }
  0xaf   :  { %v309_v5 = vpop.f32.mrf.mxu1  ;;  %v336_v6 = vadd.f32 %v335_v4, %v307_v3 }
  0xb1   :  { %v351_v7 = vpack.c.bf16 %v336_v6, %v336_v6 }
  0xb3   :  { %360 = vst.msk [vmem:[%s742_s2 + $0xc] sm:$0xf] %vm356_vm1, %v351_v7 }
  0xb4   :  { %v280_v9 = vpop.f32.mrf.mxu3 }
  0xb5   :  { %v310_v10 = vadd.f32 %v309_v5, %v280_v9 }
  0xb6   :  { %v338_v11 = vpop.f32.mrf.mxu2 }
  0xb7   :  { %v339_v12 = vadd.f32 %v338_v11, %v310_v10  ;;  %v311_v13 = vpop.f32.mrf.mxu1 }
  0xb9   :  { %v352_v14 = vpack.c.bf16 %v339_v12, %v339_v12 }
  0xbb   :  { %361 = vst.msk [vmem:[%s742_s2 + $0x10] sm:$0xf] %vm356_vm1, %v352_v14 }
  0xbc   :  { %v282_v17 = vpop.f32.mrf.mxu3 }
  0xbd   :  { %v312_v18 = vadd.f32 %v311_v13, %v282_v17 }
  0xbe   :  { %v299_v15 = vpop.f32.mrf.mxu0  ;;  %v340_v19 = vpop.f32.mrf.mxu2 }
  0xbf   :  { %v300_v16 = vadd.f32 %v299_v15, %v270_v0  ;;  %v341_v21 = vadd.f32 %v340_v19, %v312_v18  ;;  %v314_v24 = vpop.f32.mrf.mxu1 }
  0xc1   :  { %v329_v20 = vadd.f32 %v328_v56, %v300_v16  ;;  %v353_v23 = vpack.c.bf16 %v341_v21, %v341_v21 }
  0xc3   :  { %v348_v22 = vpack.c.bf16 %v329_v20, %v329_v20  ;;  %362 = vst.msk [vmem:[%s742_s2 + $0x14] sm:$0xf] %vm356_vm1, %v353_v23 }
  0xc4   :  { %v285_v27 = vpop.f32.mrf.mxu3 }
  0xc5   :  { %357 = vst.msk [vmem:[%s742_s2] sm:$0xf] %vm356_vm1, %v348_v22  ;;  %v315_v28 = vadd.f32 %v314_v24, %v285_v27 }
  0xc6   :  { %v301_v25 = vpop.f32.mrf.mxu0  ;;  %v343_v29 = vpop.f32.mrf.mxu2 }
  0xc7   :  { %v302_v26 = vadd.f32 %v301_v25, %v272_v8  ;;  %v344_v31 = vadd.f32 %v343_v29, %v315_v28  ;;  %v316_v34 = vpop.f32.mrf.mxu1 }
  0xc9   :  { %v331_v30 = vadd.f32 %v330_v57, %v302_v26  ;;  %v354_v33 = vpack.c.bf16 %v344_v31, %v344_v31 }
  0xcb   :  { %v349_v32 = vpack.c.bf16 %v331_v30, %v331_v30  ;;  %363 = vst.msk [vmem:[%s742_s2 + $0x18] sm:$0xf] %vm356_vm1, %v354_v33 }
  0xcc   :  { %v287_v35 = vpop.f32.mrf.mxu3 }
  0xcd   :  { %358 = vst.msk [vmem:[%s742_s2 + $0x4] sm:$0xf] %vm356_vm1, %v349_v32  ;;  %v317_v36 = vadd.f32 %v316_v34, %v287_v35 }
  0xce   :  { %v345_v37 = vpop.f32.mrf.mxu2 }
  0xcf   :  { %v346_v38 = vadd.f32 %v345_v37, %v317_v36 }
  0xd1   :  { %v355_v39 = vpack.c.bf16 %v346_v38, %v346_v38 }
  0xd3   :  { %364 = vst.msk [vmem:[%s742_s2 + $0x1c] sm:$0xf] %vm356_vm1, %v355_v39 }

// kernel: _lambda_.11
= control target key start
LH: loop header
LB: loop body
LE: loop exit
PB: predicated region body
PF: predicated region fallthrough
CT: control target
= control target key end

     0   :  { %v286_v4 = vmov 0   ;;  %vm141_vm0 = vcmask 261120   ;;  %vm194_vm1 = vcmask 519168   ;;  %s391_s1 = inlined_call_operand.vmem [shape: bf16[160,64], index: 1, kind: input, shape index: {}]   ;;  %s392_s0 = inlined_call_operand.vmem [shape: bf16[32,160], index: 0, kind: input, shape index: {}]   ;;  %s393_s2 = inlined_call_operand.vmem [shape: f32[32,1], index: 2, kind: input, shape index: {}]   ;;  %s394_s3 = inlined_call_operand.vmem [shape: bf16[32,64], index: 3, kind: output, shape index: {}]  }
   0x1   :  { %v272_v0 = vld [vmem:[%s391_s1 + $0x38] sm:$0xff]  ;;  %v274_v1 = vld [vmem:[%s391_s1 + $0x48] sm:$0xff]  ;;  %v271_v2 = vld [vmem:[%s391_s1 + $0x30] sm:$0xff]  ;;  %285 = vset.pattern.permute.xlu1 %v286_v4  ;;  %284 = vset.pattern.permute.xlu0 %v286_v4 }
   0x2   :  { %148 = vmatpush.bf16.msra.mxu0 %v272_v0  ;;  %275 = vmatpush.bf16.msra.mxu2 %v272_v0  ;;  %v273_v3 = vld [vmem:[%s391_s1 + $0x40] sm:$0xff]  ;;  %v207_v6 = vld [vmem:[%s392_s0 + $0x8] sm:$0xf0]  ;;  %v41_v8 = vld [vmem:[%s393_s2 + $0x10] sm:$0xff] }
   0x3   :  { %173 = vmatpush.bf16.msra.mxu1 %v274_v1  ;;  %v261_v5 = vld [vmem:[%s392_s0 + $0x4] sm:$0xf]  ;;  %v270_v7 = vld [vmem:[%s391_s1 + $0x28] sm:$0xff]  ;;  %55 = vperm.xlu1 %285, %v41_v8   ;;  %v42_v12 = vld [vmem:[%s393_s2 + $0x18] sm:$0xff] }
   0x4   :  { %v39_v9 = vld [vmem:[%s393_s2] sm:$0xff]  ;;  %v210_v10 = vor.u32 %v261_v5, %v207_v6  ;;  %v40_v13 = vld [vmem:[%s393_s2 + $0x8] sm:$0xff]  ;;  %v268_v14 = vld [vmem:[%s391_s1 + $0x18] sm:$0xff] }
   0x5   :  { %45 = vperm.xlu0 %284, %v39_v9   ;;  %v269_v11 = vld [vmem:[%s391_s1 + $0x20] sm:$0xff]  ;;  %v267_v15 = vld [vmem:[%s391_s1 + $0x10] sm:$0xff]  ;;  %v215_v17 = vld [vmem:[%s392_s0 + $0x18] sm:$0xf0] }
   0x6   :  { %149 = vmatpush.bf16.msra.mxu0 %v271_v2  ;;  %276 = vmatpush.bf16.msra.mxu2 %v271_v2  ;;  %v263_v16 = vld [vmem:[%s392_s0 + $0x14] sm:$0xf]  ;;  %v266_v18 = vld [vmem:[%s391_s1 + $0x8] sm:$0xff]  ;;  %v265_v20 = vld [vmem:[%s391_s1] sm:$0xff] }
   0x7   :  { %174 = vmatpush.bf16.msra.mxu1 %v273_v3  ;;  %v218_v19 = vor.u32 %v263_v16, %v215_v17  ;;  %v205_v21 = vld [vmem:[%s392_s0] sm:$0xf]  ;;  %v262_v22 = vld [vmem:[%s392_s0 + $0x4] sm:$0xf0]  ;;  %v213_v23 = vld [vmem:[%s392_s0 + $0x10] sm:$0xf] }
   0x8   :  { %v264_v24 = vld [vmem:[%s392_s0 + $0x14] sm:$0xf0]  ;;  %v206_v25 = vor.u32 %v262_v22, %v205_v21 }
   0x9   :  { %v214_v26 = vor.u32 %v264_v24, %v213_v23 }
   0xa   :  { %150 = vmatpush.bf16.msra.mxu0 %v270_v7  ;;  %277 = vmatpush.bf16.msra.mxu2 %v270_v7 }
   0xb   :  { %259 = vmatmul.msk.bf16.vlgmr.msra.gmra.mxu1 %vm141_vm0, %v210_v10  ;;  %60 = vperm.xlu1 %285, %v42_v12  }
   0xd   :  { %50 = vperm.xlu0 %284, %v40_v13  }
   0xe   :  { %151 = vmatpush.bf16.msra.mxu0 %v269_v11  ;;  %278 = vmatpush.bf16.msra.mxu2 %v269_v11 }
  0x12   :  { %152 = vmatpush.bf16.msra.mxu0 %v268_v14  ;;  %279 = vmatpush.bf16.msra.mxu2 %v268_v14 }
  0x16   :  { %153 = vmatpush.bf16.msra.mxu0 %v267_v15  ;;  %280 = vmatpush.bf16.msra.mxu2 %v267_v15 }
  0x1a   :  { %154 = vmatpush.bf16.msra.mxu0 %v266_v18  ;;  %281 = vmatpush.bf16.msra.mxu2 %v266_v18 }
  0x1b   :  { %260 = vmatmul.msk.bf16.gmra.mxu1 %vm141_vm0, %v218_v19 }
  0x1e   :  { %155 = vmatpush.bf16.msra.mxu0 %v265_v20  ;;  %282 = vmatpush.bf16.msra.mxu2 %v265_v20 }
  0x21   :  { %156 = vmatmul.bf16.vlgmr.msra.gmra.mxu0 %v206_v25  ;;  %161 = vmatmul.bf16.vlgmr.msra.gmra.mxu2 %v214_v26 }
  0x75   :  { %v56_v33 = vpop.permute.xlu1 %55 }
  0x77   :  { %v46_v29 = vpop.permute.xlu0 %45 }
  0x7d   :  { %v61_v47 = vpop.permute.xlu1 %60 }
  0x7f   :  { %v51_v39 = vpop.permute.xlu0 %50 }
  0x88   :  { %v176_v27 = vpop.f32.mrf.mxu1 }
  0x90   :  { %v178_v28 = vpop.f32.mrf.mxu1 }
  0x98   :  { %v181_v35 = vpop.f32.mrf.mxu1 }
  0x9e   :  { %v157_v30 = vpop.f32.mrf.mxu0 }
  0x9f   :  { %v158_v31 = vadd.f32 %v157_v30, %v46_v29 }
  0xa0   :  { %v183_v51 = vpop.f32.mrf.mxu1 }
  0xa1   :  { %v177_v32 = vadd.f32 %v176_v27, %v158_v31 }
  0xa3   :  { %v186_v34 = vmax.f32 %v177_v32, 0.0 }
  0xa4   :  { %v162_v36 = vpop.f32.mrf.mxu2 }
  0xa5   :  { %v190_v37 = vpack.c.bf16 %v186_v34, %v186_v34  ;;  %v163_v38 = vadd.f32 %v162_v36, %v56_v33 }
  0xa6   :  { %v159_v40 = vpop.f32.mrf.mxu0 }
  0xa7   :  { %195 = vst.msk [vmem:[%s394_s3] sm:$0xf] %vm194_vm1, %v190_v37  ;;  %v182_v41 = vadd.f32 %v181_v35, %v163_v38  ;;  %v160_v42 = vadd.f32 %v159_v40, %v51_v39 }
  0xa9   :  { %v188_v43 = vmax.f32 %v182_v41, 0.0  ;;  %v179_v44 = vadd.f32 %v178_v28, %v160_v42 }
  0xab   :  { %v192_v45 = vpack.c.bf16 %v188_v43, %v188_v43  ;;  %v187_v46 = vmax.f32 %v179_v44, 0.0 }
  0xac   :  { %v164_v48 = vpop.f32.mrf.mxu2 }
  0xad   :  { %197 = vst.msk [vmem:[%s394_s3 + $0x8] sm:$0xf] %vm194_vm1, %v192_v45  ;;  %v191_v49 = vpack.c.bf16 %v187_v46, %v187_v46  ;;  %v165_v50 = vadd.f32 %v164_v48, %v61_v47 }
  0xaf   :  { %196 = vst.msk [vmem:[%s394_s3 + $0x4] sm:$0xf] %vm194_vm1, %v191_v49  ;;  %v184_v52 = vadd.f32 %v183_v51, %v165_v50 }
  0xb1   :  { %v189_v53 = vmax.f32 %v184_v52, 0.0 }
  0xb3   :  { %v193_v54 = vpack.c.bf16 %v189_v53, %v189_v53 }
  0xb5   :  { %198 = vst.msk [vmem:[%s394_s3 + $0xc] sm:$0xf] %vm194_vm1, %v193_v54 }

// kernel: _lambda_.12
= control target key start
LH: loop header
LB: loop body
LE: loop exit
PB: predicated region body
PF: predicated region fallthrough
CT: control target
= control target key end

     0   :  { %v224_v3 = vmov 0   ;;  %vm118_vm0 = vcmask 261120   ;;  %vm154_vm1 = vcmask 519168   ;;  %s299_s1 = inlined_call_operand.vmem [shape: bf16[160,64], index: 1, kind: input, shape index: {}]   ;;  %s300_s0 = inlined_call_operand.vmem [shape: bf16[16,160], index: 0, kind: input, shape index: {}]   ;;  %s301_s2 = inlined_call_operand.vmem [shape: f32[16,1], index: 2, kind: input, shape index: {}]   ;;  %s302_s3 = inlined_call_operand.vmem [shape: bf16[16,64], index: 3, kind: output, shape index: {}]  }
   0x1   :  { %v219_v0 = vld [vmem:[%s299_s1 + $0x38] sm:$0xff]  ;;  %v221_v1 = vld [vmem:[%s299_s1 + $0x48] sm:$0xff]  ;;  %v218_v2 = vld [vmem:[%s299_s1 + $0x30] sm:$0xff]  ;;  %223 = vset.pattern.permute.xlu0 %v224_v3 }
   0x2   :  { %122 = vmatpush.bf16.msra.mxu0 %v219_v0  ;;  %142 = vmatpush.bf16.msra.mxu1 %v221_v1  ;;  %v220_v4 = vld [vmem:[%s299_s1 + $0x40] sm:$0xff]  ;;  %v165_v6 = vld [vmem:[%s300_s0 + $0x8] sm:$0xf0]  ;;  %v215_v12 = vld [vmem:[%s299_s1 + $0x18] sm:$0xff] }
   0x3   :  { %v210_v5 = vld [vmem:[%s300_s0 + $0x4] sm:$0xf]  ;;  %v217_v8 = vld [vmem:[%s299_s1 + $0x28] sm:$0xff]  ;;  %v214_v13 = vld [vmem:[%s299_s1 + $0x10] sm:$0xff] }
   0x4   :  { %v37_v7 = vld [vmem:[%s301_s2] sm:$0xff]  ;;  %v168_v9 = vor.u32 %v210_v5, %v165_v6  ;;  %v38_v11 = vld [vmem:[%s301_s2 + $0x8] sm:$0xff] }
   0x5   :  { %41 = vperm.xlu0 %223, %v37_v7   ;;  %v216_v10 = vld [vmem:[%s299_s1 + $0x20] sm:$0xff]  ;;  %v213_v14 = vld [vmem:[%s299_s1 + $0x8] sm:$0xff] }
   0x6   :  { %123 = vmatpush.bf16.msra.mxu0 %v218_v2  ;;  %143 = vmatpush.bf16.msra.mxu1 %v220_v4  ;;  %v212_v15 = vld [vmem:[%s299_s1] sm:$0xff]  ;;  %v211_v17 = vld [vmem:[%s300_s0 + $0x4] sm:$0xf0] }
   0x7   :  { %v163_v16 = vld [vmem:[%s300_s0] sm:$0xf] }
   0x8   :  { %v164_v18 = vor.u32 %v211_v17, %v163_v16 }
   0x9   :  { %209 = vmatmul.msk.bf16.vlgmr.msra.gmra.mxu1 %vm118_vm0, %v168_v9 }
   0xa   :  { %124 = vmatpush.bf16.msra.mxu0 %v217_v8 }
   0xd   :  { %46 = vperm.xlu0 %223, %v38_v11  }
   0xe   :  { %125 = vmatpush.bf16.msra.mxu0 %v216_v10 }
  0x12   :  { %126 = vmatpush.bf16.msra.mxu0 %v215_v12 }
  0x16   :  { %127 = vmatpush.bf16.msra.mxu0 %v214_v13 }
  0x1a   :  { %128 = vmatpush.bf16.msra.mxu0 %v213_v14 }
  0x1e   :  { %129 = vmatpush.bf16.msra.mxu0 %v212_v15 }
  0x21   :  { %130 = vmatmul.bf16.vlgmr.msra.gmra.mxu0 %v164_v18 }
  0x77   :  { %v42_v19 = vpop.permute.xlu0 %41 }
  0x7f   :  { %v47_v26 = vpop.permute.xlu0 %46 }
  0x86   :  { %v145_v20 = vpop.f32.mrf.mxu1 }
  0x8e   :  { %v147_v29 = vpop.f32.mrf.mxu1 }
  0x9e   :  { %v131_v21 = vpop.f32.mrf.mxu0 }
  0x9f   :  { %v132_v22 = vadd.f32 %v131_v21, %v42_v19 }
  0xa1   :  { %v146_v23 = vadd.f32 %v145_v20, %v132_v22 }
  0xa3   :  { %v150_v24 = vmax.f32 %v146_v23, 0.0 }
  0xa5   :  { %v152_v25 = vpack.c.bf16 %v150_v24, %v150_v24 }
  0xa6   :  { %v133_v27 = vpop.f32.mrf.mxu0 }
  0xa7   :  { %155 = vst.msk [vmem:[%s302_s3] sm:$0xf] %vm154_vm1, %v152_v25  ;;  %v134_v28 = vadd.f32 %v133_v27, %v47_v26 }
  0xa9   :  { %v148_v30 = vadd.f32 %v147_v29, %v134_v28 }
  0xab   :  { %v151_v31 = vmax.f32 %v148_v30, 0.0 }
  0xad   :  { %v153_v32 = vpack.c.bf16 %v151_v31, %v151_v31 }
  0xaf   :  { %156 = vst.msk [vmem:[%s302_s3 + $0x4] sm:$0xf] %vm154_vm1, %v153_v32 }

// kernel: _lambda_.13
= control target key start
LH: loop header
LB: loop body
LE: loop exit
PB: predicated region body
PF: predicated region fallthrough
CT: control target
= control target key end

     0   :  { %vm59_vm0 = vcmask 654336   ;;  %vm79_vm1 = vcmask 519168   ;;  %s156_s1 = inlined_call_operand.vmem [shape: bf16[80,64], index: 1, kind: input, shape index: {}]   ;;  %s157_s0 = inlined_call_operand.vmem [shape: bf16[16,80], index: 0, kind: input, shape index: {}]   ;;  %s158_s2 = inlined_call_operand.vmem [shape: bf16[16,64], index: 2, kind: output, shape index: {}]  }
   0x1   :  { %v116_v0 = vld [vmem:[%s156_s1 + $0x20] sm:$0xff]  ;;  %v115_v1 = vld [vmem:[%s156_s1 + $0x18] sm:$0xff]  ;;  %v114_v2 = vld [vmem:[%s156_s1 + $0x10] sm:$0xff] }
   0x2   :  { %66 = vmatpush.bf16.msra.mxu0 %v116_v0  ;;  %v113_v3 = vld [vmem:[%s156_s1 + $0x8] sm:$0xff]  ;;  %v112_v4 = vld [vmem:[%s156_s1] sm:$0xff] }
   0x3   :  { %v111_v5 = vld [vmem:[%s157_s0] sm:$0xff] }
   0x6   :  { %67 = vmatpush.bf16.msra.mxu0 %v115_v1 }
   0xa   :  { %68 = vmatpush.bf16.msra.mxu0 %v114_v2 }
   0xe   :  { %69 = vmatpush.bf16.msra.mxu0 %v113_v3 }
  0x12   :  { %70 = vmatpush.bf16.msra.mxu0 %v112_v4 }
  0x15   :  { %110 = vmatmul.msk.bf16.vlgmr.msra.gmra.mxu0 %vm59_vm0, %v111_v5 }
  0x92   :  { %v72_v6 = vpop.f32.mrf.mxu0 }
  0x93   :  { %v77_v7 = vpack.c.bf16 %v72_v6, %v72_v6 }
  0x95   :  { %80 = vst.msk [vmem:[%s158_s2] sm:$0xf] %vm79_vm1, %v77_v7 }
  0x9a   :  { %v74_v8 = vpop.f32.mrf.mxu0 }
  0x9b   :  { %v78_v9 = vpack.c.bf16 %v74_v8, %v74_v8 }
  0x9d   :  { %81 = vst.msk [vmem:[%s158_s2 + $0x4] sm:$0xf] %vm79_vm1, %v78_v9 }

// kernel: _lambda_.14
= control target key start
LH: loop header
LB: loop body
LE: loop exit
PB: predicated region body
PF: predicated region fallthrough
CT: control target
= control target key end

     0   :  { %v83_v1 = vmov 0   ;;  %vm46_vm0 = vcmask 1043456   ;;  %vm42_vm1 = vcmask 326656   ;;  %s122_s1 = inlined_call_operand.vmem [shape: bf16[40,128], index: 1, kind: input, shape index: {}]   ;;  %s123_s2 = inlined_call_operand.vmem [shape: f32[8,1], index: 2, kind: input, shape index: {}]   ;;  %s124_s0 = inlined_call_operand.vmem [shape: bf16[8,40], index: 0, kind: input, shape index: {}]   ;;  %s125_s3 = inlined_call_operand.vmem [shape: bf16[8,128], index: 3, kind: output, shape index: {}]  }
   0x1   :  { %v20_v0 = vld [vmem:[%s122_s1 + $0x10] sm:$0xf]  ;;  %82 = vset.pattern.permute.xlu0 %v83_v1  ;;  %v21_v3 = vld [vmem:[%s123_s2] sm:$0xff]  ;;  %v80_v6 = vld [vmem:[%s122_s1 + $0x8] sm:$0xff] }
   0x2   :  { %v36_v2 = vunpack.c.l.b16 %v20_v0  ;;  %24 = vperm.xlu0 %82, %v21_v3   ;;  %v79_v7 = vld [vmem:[%s122_s1] sm:$0xff] }
   0x3   :  { %v15_v8 = vld [vmem:[%s124_s0] sm:$0xf] }
   0x4   :  { %v39_v4 = vpack.c.b16 %v36_v2, %v36_v2 }
   0x6   :  { %v48_v5 = vsel %vm46_vm0, %v39_v4, 0 }
   0x7   :  { %55 = vmatpush.bf16.msra.mxu0 %v48_v5 }
   0xb   :  { %56 = vmatpush.bf16.msra.mxu0 %v80_v6 }
   0xf   :  { %57 = vmatpush.bf16.msra.mxu0 %v79_v7 }
  0x12   :  { %78 = vmatmul.msk.bf16.vlgmr.msra.gmra.mxu0 %vm42_vm1, %v15_v8 }
  0x74   :  { %v25_v9 = vpop.permute.xlu0 %24 }
  0x8f   :  { %v59_v10 = vpop.f32.mrf.mxu0 }
  0x90   :  { %v60_v11 = vadd.f32 %v59_v10, %v25_v9 }
  0x92   :  { %v63_v12 = vmax.f32 %v60_v11, 0.0 }
  0x94   :  { %v64_v13 = vpack.c.bf16 %v63_v12, %v63_v12 }
  0x96   :  { %65 = vst [vmem:[%s125_s3] sm:$0xf] %v64_v13 }
  0x97   :  { %v61_v14 = vpop.f32.mrf.mxu0 }

// kernel: _lambda_.9
= control target key start
LH: loop header
LB: loop body
LE: loop exit
PB: predicated region body
PF: predicated region fallthrough
CT: control target
= control target key end

     0   :  { %14 = vsyncpa [#allocation5], 0  ;;  %s5550_s0 = inlined_call_operand.vmem [shape: bf16[32,32], index: 0, kind: input, shape index: {}]   ;;  %s5551_s1 = inlined_call_operand.hbm [shape: bf16[32,256], index: 1, kind: input, shape index: {}]   ;;  %s5552_s2 = inlined_call_operand.vmem [shape: f32[1,256], index: 2, kind: input, shape index: {}]   ;;  %s5553_s3 = inlined_call_operand.vmem [shape: bf16[64,256], index: 3, kind: input, shape index: {}]   ;;  %s5554_s4 = inlined_call_operand.vmem [shape: f32[1,256], index: 4, kind: input, shape index: {}]   ;;  %s5555_s5 = inlined_call_operand.vmem [shape: bf16[4,32,128], index: 5, kind: input, shape index: {}]   ;;  %s5556_s6 = inlined_call_operand.vmem [shape: bf16[32,64], index: 6, kind: output, shape index: {0}]   ;;  %s5557_s7 = inlined_call_operand.hbm [shape: f32[2,32], index: 7, kind: output, shape index: {1}]   ;;  %s5558_s8 = inlined_call_operand.hbm [shape: f32[2,32], index: 8, kind: output, shape index: {2}]  }
   0x1   :  { %15 = vsyncpa [#allocation6], 0 }
   0x2   :  { %16 = vsyncpa [#allocation9], 0  ;;  %s23_s29 = sshll.u32 %s5551_s1, 4  ;;  %s4393_s30 = smov [#allocation4]   ;;  %s24_s29 = int_to_ptr.hbm [resolvable:$true] %s23_s29 }
   0x3   :  { %s25_s9 = sshll.u32 %s4393_s30, 4  ;;  %s4394_s10 = smov 128   ;;  %s26_s9 = int_to_ptr.vmem [resolvable:$true] %s25_s9 }
   0x4   :  { %s4395_s11 = smov 8  }
   0x5   :  { %31 = dma.hbm_to_vmem [thread:$0]  %s24_s29, 512, %s26_s9, [#allocation5], %s4394_s10, %s4394_s10, %s4395_s11  }
   0x6   :  { %4387 = dma.done.wait [#allocation5], 512  }
   0x7   :  { %4388 = vsyncadd [#allocation5], 4294966784  ;;  %v4131_v0 = vld [vmem:[#allocation4 + $0x10] sm:$0xf]  ;;  %v4289_v1 = vld [vmem:[#allocation4 + $0x14] sm:$0xf0] }
   0x8   :  { %v4453_v2 = vld [vmem:[%s5555_s5 + $0x8] sm:$0xff]  ;;  %v4132_v3 = vor.u32 %v4289_v1, %v4131_v0  ;;  %v4123_v4 = vld [vmem:[#allocation4] sm:$0xf]  ;;  %vm89_vm0 = vcmask 261120   ;;  %v4396_v9 = vmov 0   ;;  %s4397_s19 = smov 64  }
   0x9   :  { %v4287_v5 = vld [vmem:[#allocation4 + $0x4] sm:$0xf0]  ;;  %168 = vmatpush.bf16.msra.mxu2 %v4453_v2  ;;  %v4459_v6 = vld [vmem:[%s5555_s5] sm:$0xff]  ;;  %221 = vmatpush.bf16.msra.mxu3 %v4453_v2  ;;  %vm205_vm1 = vcmask 254976   ;;  %vm384_vm2 = vcmask 261126   ;;  %vm324_vm3 = vcmask 259076  }
   0xa   :  { %102 = vmatpush.bf16.msra.mxu0 %v4132_v3  ;;  %v4124_v7 = vor.u32 %v4287_v5, %v4123_v4  ;;  %v4466_v8 = vld [vmem:[%s5550_s0] sm:$0xff]  ;;  %vm1214_vm4 = vcmask 521476   ;;  %vm1154_vm5 = vcmask 523526   ;;  %vm264_vm6 = vcmask 257026   ;;  %s4400_s23 = smov [#allocation8]   ;;  %s4401_s9 = smov [#allocation7]  }
   0xb   :  { %v4484_v10 = vld [vmem:[%s5552_s2] sm:$0x3]  ;;  %s4398_s2 = smov 32   ;;  %vm1274_vm7 = vcmask 519426   ;;  %vm1331_vm8 = vcmask 517376   ;;  %vm2089_vm9 = vcmask 523264  }
   0xc   :  { %v4487_v11 = vperm.slane %v4484_v10, 0  ;;  %vm2211_vm10 = vcmask 253952   ;;  %vm2393_vm11 = vcmask 257027   ;;  %vm2332_vm12 = vcmask 256002   ;;  %s4094_s24 = sshll.u32 %s4400_s23, 4  ;;  %s4083_s10 = sshll.u32 %s4401_s9, 4  ;;  %s4095_s24 = int_to_ptr.vmem [resolvable:$true] %s4094_s24  ;;  %s4084_s10 = int_to_ptr.vmem [resolvable:$true] %s4083_s10 }
   0xd   :  { %169 = vmatpush.bf16.msra.mxu2 %v4459_v6  ;;  %222 = vmatpush.bf16.msra.mxu3 %v4459_v6  ;;  %vm3237_vm13 = vcmask 518402   ;;  %vm3176_vm14 = vcmask 519427   ;;  %vm2271_vm15 = vcmask 254977   ;;  %s4085_s13 = sshll.u32 %s5557_s7, 4  ;;  %s4086_s13 = int_to_ptr.hbm [resolvable:$true] %s4085_s13 }
   0xe   :  { %103 = vmatpush.bf16.msra.mxu0 %v4124_v7 }
  0x10   :  { %170 = vmatmul.bf16.vlgmr.msra.gmra.mxu2 %v4396_v9 }
  0x11   :  { %281 = vmatpush.bf16.msrb.mxu2 %v4453_v2  ;;  %341 = vmatpush.bf16.msrb.mxu3 %v4453_v2 }
  0x12   :  { %401 = vmatpush.bf16.msrb.mxu0 %v4453_v2 }
  0x13   :  { %4137 = vmatmul.msk.bf16.vlgmr.msra.gmra.mxu0 %vm89_vm0, %v4466_v8 }
  0x15   :  { %282 = vmatpush.bf16.msrb.mxu2 %v4459_v6  ;;  %342 = vmatpush.bf16.msrb.mxu3 %v4459_v6 }
  0x16   :  { %402 = vmatpush.bf16.msrb.mxu0 %v4459_v6 }
  0x19   :  { %515 = vmatpush.bf16.msra.mxu2 %v4453_v2 }
  0x1a   :  { %633 = vmatpush.bf16.msra.mxu0 %v4453_v2 }
  0x1d   :  { %516 = vmatpush.bf16.msra.mxu2 %v4459_v6 }
  0x1e   :  { %634 = vmatpush.bf16.msra.mxu0 %v4459_v6 }
  0x90   :  { %v105_v12 = vpop.f32.mrf.mxu0 }
  0x91   :  { %v106_v13 = vadd.f32 %v105_v12, %v4487_v11 }
  0x93   :  { %134 = vst [vmem:[#allocation2 + $0x30] sm:$0xff] %v106_v13  ;;  %v171_v14 = vpop.f32.mrf.mxu2 }
  0x98   :  { %v107_v15 = vpop.f32.mrf.mxu0 }
  0x99   :  { %v108_v16 = vadd.f32 %v107_v15, %v4487_v11 }
  0x9a   :  { %v146_v17 = vld [vmem:[#allocation2 + $0x30] sm:$0x3]  ;;  %v207_v40 = vld [vmem:[#allocation2 + $0x30] sm:$0xc]  ;;  %v266_v1 = vld [vmem:[#allocation2 + $0x30] sm:$0x30] }
  0x9b   :  { %v175_v18 = vadd.f32 %v171_v14, %v146_v17  ;;  %136 = vst [vmem:[#allocation2 + $0x18] sm:$0xff] %v108_v16  ;;  %v173_v19 = vpop.f32.mrf.mxu2 }
  0x9d   :  { %v180_v20 = vmax.f32 %v175_v18, 0.0  ;;  %v176_v21 = vmul.f32 0.25, %v175_v18 }
  0x9f   :  { %183 = vrot.lane.b32.xlu0 %v180_v20, %s4397_s19  ;;  %v177_v22 = vadd.f32 0.5, %v176_v21 }
  0xa1   :  { %v178_v23 = vmax.f32 %v177_v22, 0.0 }
  0xa3   :  { %v179_v24 = vmin.f32 %v178_v23, 1.0 }
  0xa5   :  { %v181_v27 = vmul.f32 0.0, %v179_v24 }
 0x111   :  { %v184_v25 = vpop.permute.xlu0 %183 }
 0x112   :  { %v186_v26 = vmul.f32 %v184_v25, %v179_v24 }
 0x114   :  { %188 = vrot.lane.b32.xlu0 %v186_v26, %s4398_s2 }
 0x186   :  { %v189_v28 = vpop.permute.xlu0 %188 }
 0x187   :  { %v191_v29 = vadd.f32 %v189_v28, %v181_v27 }
 0x189   :  { %v192_v30 = vmul.f32 0.25, %v191_v29  ;;  %v238_v50 = vrot.slane %v191_v29, 6 }
 0x18b   :  { %v193_v31 = vadd.f32 0.5, %v192_v30 }
 0x18d   :  { %v194_v32 = vmax.f32 %v193_v31, 0.0  ;;  %v326_v31 = vld [vmem:[#allocation2 + $0x30] sm:$0xc0] }
 0x18f   :  { %v195_v33 = vmin.f32 %v194_v32, 1.0 }
 0x191   :  { %197 = vrot.lane.b32.xlu1 %v195_v33, %s4397_s19 }
 0x203   :  { %v198_v34 = vpop.permute.xlu1 %197 }
 0x204   :  { %v4494_v35 = vmul.f32 %v198_v34, %v179_v24 }
 0x206   :  { %v208_v36 = vpack.c.bf16 %v4494_v35, %v4494_v35 }
 0x208   :  { %210 = vrot.lane.b32.xlu1 %v208_v36, %s4398_s2 }
 0x27a   :  { %v211_v37 = vpop.permute.xlu1 %210 }
 0x27b   :  { %4149 = vmatmul.msk.bf16.vlgmr.msra.gmra.mxu3 %vm89_vm0, %v211_v37 }
 0x27c   :  { %574 = vmatpush.bf16.msra.mxu3 %v4453_v2 }
 0x280   :  { %575 = vmatpush.bf16.msra.mxu3 %v4459_v6 }
 0x2fe   :  { %v224_v38 = vpop.f32.mrf.mxu3 }
 0x2ff   :  { %v229_v39 = vrot.slane %v224_v38, 6 }
 0x301   :  { %v231_v41 = vadd.f32 %v229_v39, %v207_v40 }
 0x303   :  { %v236_v42 = vmax.f32 %v231_v41, 0.0  ;;  %v232_v44 = vmul.f32 0.25, %v231_v41 }
 0x305   :  { %242 = vrot.lane.b32.xlu2 %v236_v42, %s4397_s19  ;;  %v233_v45 = vadd.f32 0.5, %v232_v44 }
 0x306   :  { %v226_v43 = vpop.f32.mrf.mxu3 }
 0x307   :  { %v234_v46 = vmax.f32 %v233_v45, 0.0 }
 0x309   :  { %v235_v47 = vmin.f32 %v234_v46, 1.0 }
 0x30b   :  { %v240_v51 = vmul.f32 %v238_v50, %v235_v47  ;;  %v4285_v50 = vld [vmem:[%s5550_s0 + $0x8] sm:$0xff] }
 0x30c   :  { %4138 = vmatmul.msk.bf16.gmra.mxu0 %vm89_vm0, %v4285_v50 }
 0x35f   :  { %v243_v48 = vpop.permute.xlu2 %242 }
 0x360   :  { %v245_v49 = vmul.f32 %v243_v48, %v235_v47 }
 0x362   :  { %247 = vrot.lane.b32.xlu2 %v245_v49, %s4398_s2 }
 0x3bc   :  { %v248_v52 = vpop.permute.xlu2 %247 }
 0x3bd   :  { %v250_v53 = vadd.f32 %v248_v52, %v240_v51 }
 0x3bf   :  { %v251_v54 = vmul.f32 0.25, %v250_v53  ;;  %v298_v16 = vrot.slane %v250_v53, 6 }
 0x3c1   :  { %v252_v55 = vadd.f32 0.5, %v251_v54 }
 0x3c3   :  { %v253_v56 = vmax.f32 %v252_v55, 0.0  ;;  %v110_v55 = vpop.f32.mrf.mxu0 }
 0x3c5   :  { %v254_v57 = vmin.f32 %v253_v56, 1.0  ;;  %v111_v56 = vadd.f32 %v110_v55, %v4487_v11 }
 0x3c7   :  { %256 = vrot.lane.b32.xlu0 %v254_v57, %s4397_s19  ;;  %138 = vst [vmem:[#allocation2 + $0x8] sm:$0xff] %v111_v56 }
 0x3cb   :  { %v112_v57 = vpop.f32.mrf.mxu0 }
 0x439   :  { %v257_v58 = vpop.permute.xlu0 %256 }
 0x43a   :  { %v4505_v59 = vmul.f32 %v257_v58, %v235_v47  ;;  %v113_v58 = vadd.f32 %v112_v57, %v4487_v11 }
 0x43c   :  { %v267_v60 = vpack.c.bf16 %v4505_v59, %v4505_v59  ;;  %140 = vst [vmem:[#allocation2 + $0x28] sm:$0xff] %v113_v58 }
 0x43e   :  { %v269_v61 = vrot.slane %v267_v60, 1 }
 0x440   :  { %270 = vrot.lane.b32.xlu1 %v269_v61, %s4398_s2  ;;  %v386_v61 = vld [vmem:[#allocation2 + $0x18] sm:$0x3] }
 0x4b2   :  { %v271_v62 = vpop.permute.xlu1 %270 }
 0x4b3   :  { %4150 = vmatmul.msk.bf16.vlgmr.msrb.gmra.mxu2 %vm89_vm0, %v271_v62 }
 0x4b4   :  { %747 = vmatpush.bf16.msrb.mxu2 %v4453_v2 }
 0x4b8   :  { %748 = vmatpush.bf16.msrb.mxu2 %v4459_v6 }
 0x536   :  { %v284_v63 = vpop.f32.mrf.mxu2 }
 0x537   :  { %v289_v0 = vrot.slane %v284_v63, 4 }
 0x539   :  { %v291_v3 = vadd.f32 %v289_v0, %v266_v1 }
 0x53b   :  { %v296_v4 = vmax.f32 %v291_v3, 0.0  ;;  %v292_v7 = vmul.f32 0.25, %v291_v3 }
 0x53d   :  { %302 = vrot.lane.b32.xlu2 %v296_v4, %s4397_s19  ;;  %v293_v9 = vadd.f32 0.5, %v292_v7 }
 0x53e   :  { %v286_v5 = vpop.f32.mrf.mxu2 }
 0x53f   :  { %v294_v12 = vmax.f32 %v293_v9, 0.0 }
 0x541   :  { %v295_v13 = vmin.f32 %v294_v12, 1.0 }
 0x543   :  { %v300_v17 = vmul.f32 %v298_v16, %v295_v13 }
 0x597   :  { %v303_v14 = vpop.permute.xlu2 %302 }
 0x598   :  { %v305_v15 = vmul.f32 %v303_v14, %v295_v13 }
 0x59a   :  { %307 = vrot.lane.b32.xlu0 %v305_v15, %s4398_s2 }
 0x60c   :  { %v308_v18 = vpop.permute.xlu0 %307 }
 0x60d   :  { %v310_v19 = vadd.f32 %v308_v18, %v300_v17 }
 0x60f   :  { %v311_v20 = vmul.f32 0.25, %v310_v19  ;;  %v358_v42 = vrot.slane %v310_v19, 6 }
 0x611   :  { %v312_v21 = vadd.f32 0.5, %v311_v20  ;;  %v4288_v20 = vld [vmem:[#allocation4 + $0x14] sm:$0xf] }
 0x613   :  { %v313_v22 = vmax.f32 %v312_v21, 0.0  ;;  %v4133_v21 = vld [vmem:[#allocation4 + $0x18] sm:$0xf0] }
 0x615   :  { %v314_v23 = vmin.f32 %v313_v22, 1.0  ;;  %v4286_v22 = vld [vmem:[#allocation4 + $0x4] sm:$0xf] }
 0x617   :  { %316 = vrot.lane.b32.xlu1 %v314_v23, %s4397_s19  ;;  %v4136_v23 = vor.u32 %v4288_v20, %v4133_v21 }
 0x619   :  { %121 = vmatpush.bf16.msra.mxu1 %v4136_v23 }
 0x689   :  { %v317_v24 = vpop.permute.xlu1 %316 }
 0x68a   :  { %v4516_v25 = vmul.f32 %v317_v24, %v295_v13  ;;  %v4125_v24 = vld [vmem:[#allocation4 + $0x8] sm:$0xf0] }
 0x68c   :  { %v327_v26 = vpack.c.bf16 %v4516_v25, %v4516_v25 }
 0x68e   :  { %v329_v27 = vrot.slane %v327_v26, 2  ;;  %v4128_v26 = vor.u32 %v4286_v22, %v4125_v24 }
 0x690   :  { %330 = vrot.lane.b32.xlu2 %v329_v27, %s4398_s2  ;;  %122 = vmatpush.bf16.msra.mxu1 %v4128_v26 }
 0x693   :  { %4139 = vmatmul.msk.bf16.vlgmr.msra.gmra.mxu1 %vm89_vm0, %v4466_v8 }
 0x694   :  { %456 = vmatpush.bf16.msrb.mxu1 %v4453_v2 }
 0x698   :  { %457 = vmatpush.bf16.msrb.mxu1 %v4459_v6 }
 0x69c   :  { %688 = vmatpush.bf16.msra.mxu1 %v4453_v2 }
 0x6a0   :  { %689 = vmatpush.bf16.msra.mxu1 %v4459_v6 }
 0x6a3   :  { %4140 = vmatmul.msk.bf16.gmra.mxu1 %vm89_vm0, %v4285_v50 }
 0x6ea   :  { %v331_v28 = vpop.permute.xlu2 %330 }
 0x6eb   :  { %4151 = vmatmul.msk.bf16.vlgmr.msrb.gmra.mxu3 %vm89_vm0, %v331_v28 }
 0x6ec   :  { %806 = vmatpush.bf16.msrb.mxu3 %v4453_v2 }
 0x6f0   :  { %807 = vmatpush.bf16.msrb.mxu3 %v4459_v6 }
 0x76e   :  { %v344_v29 = vpop.f32.mrf.mxu3 }
 0x76f   :  { %v349_v30 = vrot.slane %v344_v29, 2 }
 0x771   :  { %v351_v32 = vadd.f32 %v349_v30, %v326_v31  ;;  %v56_v30 = vperm.slane %v4484_v10, 1  ;;  %v124_v31 = vpop.f32.mrf.mxu1 }
 0x773   :  { %v356_v33 = vmax.f32 %v351_v32, 0.0  ;;  %v352_v36 = vmul.f32 0.25, %v351_v32  ;;  %v125_v8 = vadd.f32 %v124_v31, %v56_v30 }
 0x775   :  { %362 = vrot.lane.b32.xlu0 %v356_v33, %s4397_s19  ;;  %v353_v37 = vadd.f32 0.5, %v352_v36  ;;  %135 = vst [vmem:[#allocation2] sm:$0xff] %v125_v8 }
 0x776   :  { %v346_v34 = vpop.f32.mrf.mxu3 }
 0x777   :  { %v354_v38 = vmax.f32 %v353_v37, 0.0 }
 0x779   :  { %v355_v39 = vmin.f32 %v354_v38, 1.0  ;;  %v126_v32 = vpop.f32.mrf.mxu1 }
 0x77a   :  { %v127_v33 = vadd.f32 %v126_v32, %v56_v30 }
 0x77b   :  { %v360_v43 = vmul.f32 %v358_v42, %v355_v39 }
 0x77c   :  { %137 = vst [vmem:[#allocation2 + $0x10] sm:$0xff] %v127_v33 }
 0x781   :  { %v129_v36 = vpop.f32.mrf.mxu1 }
 0x782   :  { %v130_v37 = vadd.f32 %v129_v36, %v56_v30 }
 0x784   :  { %139 = vst [vmem:[#allocation2 + $0x20] sm:$0xff] %v130_v37 }
 0x789   :  { %v131_v38 = vpop.f32.mrf.mxu1 }
 0x7e7   :  { %v363_v40 = vpop.permute.xlu0 %362 }
 0x7e8   :  { %v365_v41 = vmul.f32 %v363_v40, %v355_v39 }
 0x7ea   :  { %367 = vrot.lane.b32.xlu1 %v365_v41, %s4398_s2  ;;  %v442_v41 = vld [vmem:[#allocation2 + $0x18] sm:$0xc] }
 0x85c   :  { %v368_v44 = vpop.permute.xlu1 %367 }
 0x85d   :  { %v370_v45 = vadd.f32 %v368_v44, %v360_v43 }
 0x85f   :  { %v371_v46 = vmul.f32 0.25, %v370_v45  ;;  %v415_v12 = vrot.slane %v370_v45, 6 }
 0x861   :  { %v372_v47 = vadd.f32 0.5, %v371_v46 }
 0x863   :  { %v373_v48 = vmax.f32 %v372_v47, 0.0 }
 0x865   :  { %v374_v49 = vmin.f32 %v373_v48, 1.0 }
 0x867   :  { %376 = vrot.lane.b32.xlu2 %v374_v49, %s4397_s19 }
 0x8c1   :  { %v377_v51 = vpop.permute.xlu2 %376 }
 0x8c2   :  { %v4531_v52 = vmul.f32 %v377_v51, %v355_v39  ;;  %v132_v39 = vadd.f32 %v131_v38, %v56_v30 }
 0x8c4   :  { %v387_v53 = vpack.c.bf16 %v4531_v52, %v4531_v52  ;;  %141 = vst [vmem:[#allocation2 + $0x38] sm:$0xff] %v132_v39 }
 0x8c6   :  { %v389_v54 = vrot.slane %v387_v53, 3 }
 0x8c8   :  { %390 = vrot.lane.b32.xlu0 %v389_v54, %s4398_s2 }
 0x93a   :  { %v391_v60 = vpop.permute.xlu0 %390 }
 0x93b   :  { %4152 = vmatmul.msk.bf16.vlgmr.msrb.gmra.mxu0 %vm89_vm0, %v391_v60 }
 0x93c   :  { %865 = vmatpush.bf16.msrb.mxu0 %v4453_v2 }
 0x940   :  { %866 = vmatpush.bf16.msrb.mxu0 %v4459_v6 }
 0x9b8   :  { %v404_v62 = vpop.f32.mrf.mxu0 }
 0x9b9   :  { %v408_v63 = vadd.f32 %v404_v62, %v386_v61 }
 0x9bb   :  { %v413_v0 = vmax.f32 %v408_v63, 0.0  ;;  %v409_v3 = vmul.f32 0.25, %v408_v63 }
 0x9bd   :  { %419 = vrot.lane.b32.xlu1 %v413_v0, %s4397_s19  ;;  %v410_v4 = vadd.f32 0.5, %v409_v3 }
 0x9bf   :  { %v411_v5 = vmax.f32 %v410_v4, 0.0 }
 0x9c0   :  { %v406_v1 = vpop.f32.mrf.mxu0 }
 0x9c1   :  { %v412_v7 = vmin.f32 %v411_v5, 1.0  ;;  %v500_v5 = vld [vmem:[#allocation2 + $0x18] sm:$0x30] }
 0x9c3   :  { %v417_v13 = vmul.f32 %v415_v12, %v412_v7 }
 0xa2f   :  { %v420_v11 = vpop.permute.xlu1 %419 }
 0xa30   :  { %v422_v9 = vmul.f32 %v420_v11, %v412_v7 }
 0xa32   :  { %424 = vrot.lane.b32.xlu2 %v422_v9, %s4398_s2 }
 0xa8c   :  { %v425_v14 = vpop.permute.xlu2 %424 }
 0xa8d   :  { %v427_v15 = vadd.f32 %v425_v14, %v417_v13 }
 0xa8f   :  { %v428_v16 = vmul.f32 0.25, %v427_v15  ;;  %v473_v51 = vrot.slane %v427_v15, 6 }
 0xa91   :  { %v429_v17 = vadd.f32 0.5, %v428_v16 }
 0xa93   :  { %v430_v18 = vmax.f32 %v429_v17, 0.0 }
 0xa95   :  { %v431_v19 = vmin.f32 %v430_v18, 1.0 }
 0xa97   :  { %433 = vrot.lane.b32.xlu0 %v431_v19, %s4397_s19 }
 0xb09   :  { %v434_v27 = vpop.permute.xlu0 %433 }
 0xb0a   :  { %v4551_v28 = vmul.f32 %v434_v27, %v412_v7 }
 0xb0c   :  { %v443_v29 = vpack.c.bf16 %v4551_v28, %v4551_v28 }
 0xb0e   :  { %445 = vrot.lane.b32.xlu1 %v443_v29, %s4398_s2 }
 0xb80   :  { %v446_v34 = vpop.permute.xlu1 %445 }
 0xb81   :  { %4153 = vmatmul.msk.bf16.vlgmr.msrb.gmra.mxu1 %vm89_vm0, %v446_v34  ;;  %v559_v34 = vld [vmem:[#allocation2 + $0x18] sm:$0xc0] }
 0xb82   :  { %920 = vmatpush.bf16.msrb.mxu1 %v4453_v2 }
 0xb86   :  { %921 = vmatpush.bf16.msrb.mxu1 %v4459_v6 }
 0xbfe   :  { %v459_v10 = vpop.f32.mrf.mxu1 }
 0xbff   :  { %v464_v40 = vrot.slane %v459_v10, 6 }
 0xc01   :  { %v466_v42 = vadd.f32 %v464_v40, %v442_v41 }
 0xc03   :  { %v471_v43 = vmax.f32 %v466_v42, 0.0  ;;  %v467_v45 = vmul.f32 0.25, %v466_v42 }
 0xc05   :  { %477 = vrot.lane.b32.xlu2 %v471_v43, %s4397_s19  ;;  %v468_v46 = vadd.f32 0.5, %v467_v45 }
 0xc06   :  { %v461_v44 = vpop.f32.mrf.mxu1 }
 0xc07   :  { %v469_v47 = vmax.f32 %v468_v46, 0.0 }
 0xc09   :  { %v470_v48 = vmin.f32 %v469_v47, 1.0 }
 0xc0b   :  { %v475_v53 = vmul.f32 %v473_v51, %v470_v48 }
 0xc5f   :  { %v478_v49 = vpop.permute.xlu2 %477 }
 0xc60   :  { %v480_v50 = vmul.f32 %v478_v49, %v470_v48 }
 0xc62   :  { %482 = vrot.lane.b32.xlu0 %v480_v50, %s4398_s2 }
 0xcd4   :  { %v483_v54 = vpop.permute.xlu0 %482 }
 0xcd5   :  { %v485_v55 = vadd.f32 %v483_v54, %v475_v53 }
 0xcd7   :  { %v486_v56 = vmul.f32 0.25, %v485_v55  ;;  %v532_v18 = vrot.slane %v485_v55, 6 }
 0xcd9   :  { %v487_v57 = vadd.f32 0.5, %v486_v56  ;;  %v618_v56 = vld [vmem:[#allocation2 + $0x8] sm:$0x3] }
 0xcdb   :  { %v488_v58 = vmax.f32 %v487_v57, 0.0 }
 0xcdd   :  { %v489_v60 = vmin.f32 %v488_v58, 1.0 }
 0xcdf   :  { %491 = vrot.lane.b32.xlu1 %v489_v60, %s4397_s19 }
 0xd51   :  { %v492_v61 = vpop.permute.xlu1 %491 }
 0xd52   :  { %v4563_v62 = vmul.f32 %v492_v61, %v470_v48 }
 0xd54   :  { %v501_v63 = vpack.c.bf16 %v4563_v62, %v4563_v62 }
 0xd56   :  { %v503_v0 = vrot.slane %v501_v63, 1 }
 0xd58   :  { %504 = vrot.lane.b32.xlu2 %v503_v0, %s4398_s2 }
 0xdb2   :  { %v505_v1 = vpop.permute.xlu2 %504 }
 0xdb3   :  { %4154 = vmatmul.msk.bf16.vlgmr.msra.gmra.mxu2 %vm89_vm0, %v505_v1 }
 0xdb4   :  { %979 = vmatpush.bf16.msra.mxu2 %v4453_v2 }
 0xdb8   :  { %980 = vmatpush.bf16.msra.mxu2 %v4459_v6 }
 0xe36   :  { %v518_v3 = vpop.f32.mrf.mxu2 }
 0xe37   :  { %v523_v4 = vrot.slane %v518_v3, 4 }
 0xe39   :  { %v525_v7 = vadd.f32 %v523_v4, %v500_v5 }
 0xe3b   :  { %v530_v11 = vmax.f32 %v525_v7, 0.0  ;;  %v526_v12 = vmul.f32 0.25, %v525_v7 }
 0xe3d   :  { %536 = vrot.lane.b32.xlu0 %v530_v11, %s4397_s19  ;;  %v527_v13 = vadd.f32 0.5, %v526_v12 }
 0xe3e   :  { %v520_v9 = vpop.f32.mrf.mxu2 }
 0xe3f   :  { %v528_v14 = vmax.f32 %v527_v13, 0.0 }
 0xe41   :  { %v529_v15 = vmin.f32 %v528_v14, 1.0 }
 0xe43   :  { %v534_v19 = vmul.f32 %v532_v18, %v529_v15 }
 0xeaf   :  { %v537_v16 = vpop.permute.xlu0 %536 }
 0xeb0   :  { %v539_v17 = vmul.f32 %v537_v16, %v529_v15 }
 0xeb2   :  { %541 = vrot.lane.b32.xlu1 %v539_v17, %s4398_s2 }
 0xf24   :  { %v542_v20 = vpop.permute.xlu1 %541 }
 0xf25   :  { %v544_v21 = vadd.f32 %v542_v20, %v534_v19 }
 0xf27   :  { %v545_v22 = vmul.f32 0.25, %v544_v21  ;;  %v591_v44 = vrot.slane %v544_v21, 6 }
 0xf29   :  { %v546_v23 = vadd.f32 0.5, %v545_v22 }
 0xf2b   :  { %v547_v24 = vmax.f32 %v546_v23, 0.0  ;;  %v674_v23 = vld [vmem:[#allocation2 + $0x8] sm:$0xc] }
 0xf2d   :  { %v548_v26 = vmin.f32 %v547_v24, 1.0 }
 0xf2f   :  { %550 = vrot.lane.b32.xlu2 %v548_v26, %s4397_s19 }
 0xf89   :  { %v551_v27 = vpop.permute.xlu2 %550 }
 0xf8a   :  { %v4574_v29 = vmul.f32 %v551_v27, %v529_v15 }
 0xf8c   :  { %v560_v30 = vpack.c.bf16 %v4574_v29, %v4574_v29 }
 0xf8e   :  { %v562_v31 = vrot.slane %v560_v30, 2 }
 0xf90   :  { %563 = vrot.lane.b32.xlu0 %v562_v31, %s4398_s2 }
0x1002   :  { %v564_v8 = vpop.permute.xlu0 %563 }
0x1003   :  { %4155 = vmatmul.msk.bf16.vlgmr.msra.gmra.mxu3 %vm89_vm0, %v564_v8 }
0x1004   :  { %1038 = vmatpush.bf16.msra.mxu3 %v4453_v2 }
0x1008   :  { %1039 = vmatpush.bf16.msra.mxu3 %v4459_v6 }
0x1086   :  { %v577_v32 = vpop.f32.mrf.mxu3 }
0x1087   :  { %v582_v33 = vrot.slane %v577_v32, 2 }
0x1089   :  { %v584_v36 = vadd.f32 %v582_v33, %v559_v34 }
0x108b   :  { %v589_v37 = vmax.f32 %v584_v36, 0.0  ;;  %v585_v39 = vmul.f32 0.25, %v584_v36 }
0x108d   :  { %595 = vrot.lane.b32.xlu1 %v589_v37, %s4397_s19  ;;  %v586_v10 = vadd.f32 0.5, %v585_v39 }
0x108e   :  { %v579_v38 = vpop.f32.mrf.mxu3 }
0x108f   :  { %v587_v40 = vmax.f32 %v586_v10, 0.0 }
0x1091   :  { %v588_v41 = vmin.f32 %v587_v40, 1.0 }
0x1093   :  { %v593_v2 = vmul.f32 %v591_v44, %v588_v41 }
0x10ff   :  { %v596_v42 = vpop.permute.xlu1 %595 }
0x1100   :  { %v598_v43 = vmul.f32 %v596_v42, %v588_v41 }
0x1102   :  { %600 = vrot.lane.b32.xlu2 %v598_v43, %s4398_s2 }
0x115c   :  { %v601_v45 = vpop.permute.xlu2 %600 }
0x115d   :  { %v603_v6 = vadd.f32 %v601_v45, %v593_v2 }
0x115f   :  { %v604_v46 = vmul.f32 0.25, %v603_v6  ;;  %v647_v7 = vrot.slane %v603_v6, 6 }
0x1161   :  { %v605_v47 = vadd.f32 0.5, %v604_v46 }
0x1163   :  { %v606_v48 = vmax.f32 %v605_v47, 0.0 }
0x1165   :  { %v607_v49 = vmin.f32 %v606_v48, 1.0  ;;  %v732_v48 = vld [vmem:[#allocation2 + $0x8] sm:$0x30] }
0x1167   :  { %609 = vrot.lane.b32.xlu0 %v607_v49, %s4397_s19 }
0x11d9   :  { %v610_v50 = vpop.permute.xlu0 %609 }
0x11da   :  { %v4585_v51 = vmul.f32 %v610_v50, %v588_v41 }
0x11dc   :  { %v619_v53 = vpack.c.bf16 %v4585_v51, %v4585_v51 }
0x11de   :  { %v621_v54 = vrot.slane %v619_v53, 3 }
0x11e0   :  { %622 = vrot.lane.b32.xlu1 %v621_v54, %s4398_s2 }
0x1252   :  { %v623_v55 = vpop.permute.xlu1 %622 }
0x1253   :  { %4156 = vmatmul.msk.bf16.vlgmr.msra.gmra.mxu0 %vm89_vm0, %v623_v55 }
0x12d0   :  { %v636_v57 = vpop.f32.mrf.mxu0 }
0x12d1   :  { %v640_v58 = vadd.f32 %v636_v57, %v618_v56 }
0x12d3   :  { %v645_v60 = vmax.f32 %v640_v58, 0.0  ;;  %v641_v63 = vmul.f32 0.25, %v640_v58 }
0x12d5   :  { %651 = vrot.lane.b32.xlu2 %v645_v60, %s4397_s19  ;;  %v642_v0 = vadd.f32 0.5, %v641_v63 }
0x12d7   :  { %v643_v1 = vmax.f32 %v642_v0, 0.0 }
0x12d8   :  { %v638_v61 = vpop.f32.mrf.mxu0 }
0x12d9   :  { %v644_v3 = vmin.f32 %v643_v1, 1.0 }
0x12db   :  { %v649_v11 = vmul.f32 %v647_v7, %v644_v3 }
0x132f   :  { %v652_v4 = vpop.permute.xlu2 %651 }
0x1330   :  { %v654_v5 = vmul.f32 %v652_v4, %v644_v3 }
0x1332   :  { %656 = vrot.lane.b32.xlu0 %v654_v5, %s4398_s2 }
0x13a4   :  { %v657_v9 = vpop.permute.xlu0 %656 }
0x13a5   :  { %v659_v12 = vadd.f32 %v657_v9, %v649_v11 }
0x13a7   :  { %v660_v13 = vmul.f32 0.25, %v659_v12  ;;  %v705_v36 = vrot.slane %v659_v12, 6 }
0x13a9   :  { %v661_v14 = vadd.f32 0.5, %v660_v13 }
0x13ab   :  { %v662_v15 = vmax.f32 %v661_v14, 0.0 }
0x13ad   :  { %v663_v16 = vmin.f32 %v662_v15, 1.0 }
0x13af   :  { %665 = vrot.lane.b32.xlu1 %v663_v16, %s4397_s19 }
0x1421   :  { %v666_v17 = vpop.permute.xlu1 %665 }
0x1422   :  { %v4594_v18 = vmul.f32 %v666_v17, %v644_v3  ;;  %v791_v17 = vld [vmem:[#allocation2 + $0x8] sm:$0xc0] }
0x1424   :  { %v675_v19 = vpack.c.bf16 %v4594_v18, %v4594_v18 }
0x1426   :  { %677 = vrot.lane.b32.xlu2 %v675_v19, %s4398_s2 }
0x1480   :  { %v678_v20 = vpop.permute.xlu2 %677 }
0x1481   :  { %4157 = vmatmul.msk.bf16.vlgmr.msra.gmra.mxu1 %vm89_vm0, %v678_v20 }
0x14fe   :  { %v691_v21 = vpop.f32.mrf.mxu1 }
0x14ff   :  { %v696_v22 = vrot.slane %v691_v21, 6 }
0x1501   :  { %v698_v24 = vadd.f32 %v696_v22, %v674_v23 }
0x1503   :  { %v703_v26 = vmax.f32 %v698_v24, 0.0  ;;  %v699_v30 = vmul.f32 0.25, %v698_v24 }
0x1505   :  { %709 = vrot.lane.b32.xlu0 %v703_v26, %s4397_s19  ;;  %v700_v31 = vadd.f32 0.5, %v699_v30 }
0x1506   :  { %v693_v27 = vpop.f32.mrf.mxu1 }
0x1507   :  { %v701_v8 = vmax.f32 %v700_v31, 0.0 }
0x1509   :  { %v702_v32 = vmin.f32 %v701_v8, 1.0 }
0x150b   :  { %v707_v37 = vmul.f32 %v705_v36, %v702_v32 }
0x1577   :  { %v710_v33 = vpop.permute.xlu0 %709 }
0x1578   :  { %v712_v34 = vmul.f32 %v710_v33, %v702_v32 }
0x157a   :  { %714 = vrot.lane.b32.xlu1 %v712_v34, %s4398_s2 }
0x15ec   :  { %v715_v38 = vpop.permute.xlu1 %714 }
0x15ed   :  { %v717_v39 = vadd.f32 %v715_v38, %v707_v37 }
0x15ef   :  { %v718_v10 = vmul.f32 0.25, %v717_v39  ;;  %v764_v61 = vrot.slane %v717_v39, 6 }
0x15f1   :  { %v719_v40 = vadd.f32 0.5, %v718_v10 }
0x15f3   :  { %v720_v41 = vmax.f32 %v719_v40, 0.0 }
0x15f5   :  { %v721_v42 = vmin.f32 %v720_v41, 1.0 }
0x15f7   :  { %723 = vrot.lane.b32.xlu2 %v721_v42, %s4397_s19 }
0x1651   :  { %v724_v43 = vpop.permute.xlu2 %723 }
0x1652   :  { %v4603_v44 = vmul.f32 %v724_v43, %v702_v32  ;;  %v850_v43 = vld [vmem:[#allocation2 + $0x28] sm:$0x3] }
0x1654   :  { %v733_v2 = vpack.c.bf16 %v4603_v44, %v4603_v44 }
0x1656   :  { %v735_v45 = vrot.slane %v733_v2, 1 }
0x1658   :  { %736 = vrot.lane.b32.xlu0 %v735_v45, %s4398_s2 }
0x16ca   :  { %v737_v6 = vpop.permute.xlu0 %736 }
0x16cb   :  { %4158 = vmatmul.msk.bf16.vlgmr.msrb.gmra.mxu2 %vm89_vm0, %v737_v6 }
0x174e   :  { %v750_v46 = vpop.f32.mrf.mxu2 }
0x174f   :  { %v755_v47 = vrot.slane %v750_v46, 4 }
0x1751   :  { %v757_v49 = vadd.f32 %v755_v47, %v732_v48 }
0x1753   :  { %v762_v50 = vmax.f32 %v757_v49, 0.0  ;;  %v758_v54 = vmul.f32 0.25, %v757_v49 }
0x1755   :  { %768 = vrot.lane.b32.xlu1 %v762_v50, %s4397_s19  ;;  %v759_v55 = vadd.f32 0.5, %v758_v54 }
0x1756   :  { %v752_v53 = vpop.f32.mrf.mxu2 }
0x1757   :  { %v760_v56 = vmax.f32 %v759_v55, 0.0 }
0x1759   :  { %v761_v57 = vmin.f32 %v760_v56, 1.0 }
0x175b   :  { %v766_v63 = vmul.f32 %v764_v61, %v761_v57 }
0x17c7   :  { %v769_v58 = vpop.permute.xlu1 %768 }
0x17c8   :  { %v771_v60 = vmul.f32 %v769_v58, %v761_v57 }
0x17ca   :  { %773 = vrot.lane.b32.xlu2 %v771_v60, %s4398_s2 }
0x1824   :  { %v774_v0 = vpop.permute.xlu2 %773 }
0x1825   :  { %v776_v1 = vadd.f32 %v774_v0, %v766_v63 }
0x1827   :  { %v777_v3 = vmul.f32 0.25, %v776_v1  ;;  %v823_v31 = vrot.slane %v776_v1, 6 }
0x1829   :  { %v778_v4 = vadd.f32 0.5, %v777_v3 }
0x182b   :  { %v779_v5 = vmax.f32 %v778_v4, 0.0 }
0x182d   :  { %v780_v7 = vmin.f32 %v779_v5, 1.0 }
0x182f   :  { %782 = vrot.lane.b32.xlu0 %v780_v7, %s4397_s19 }
0x18a1   :  { %v783_v11 = vpop.permute.xlu0 %782 }
0x18a2   :  { %v4612_v9 = vmul.f32 %v783_v11, %v761_v57 }
0x18a4   :  { %v792_v12 = vpack.c.bf16 %v4612_v9, %v4612_v9 }
0x18a6   :  { %v794_v13 = vrot.slane %v792_v12, 2  ;;  %v906_v12 = vld [vmem:[#allocation2 + $0x28] sm:$0xc] }
0x18a8   :  { %795 = vrot.lane.b32.xlu1 %v794_v13, %s4398_s2 }
0x191a   :  { %v796_v14 = vpop.permute.xlu1 %795 }
0x191b   :  { %4159 = vmatmul.msk.bf16.vlgmr.msrb.gmra.mxu3 %vm89_vm0, %v796_v14 }
0x199e   :  { %v809_v15 = vpop.f32.mrf.mxu3 }
0x199f   :  { %v814_v16 = vrot.slane %v809_v15, 2 }
0x19a1   :  { %v816_v19 = vadd.f32 %v814_v16, %v791_v17 }
0x19a3   :  { %v821_v20 = vmax.f32 %v816_v19, 0.0  ;;  %v817_v22 = vmul.f32 0.25, %v816_v19 }
0x19a5   :  { %827 = vrot.lane.b32.xlu2 %v821_v20, %s4397_s19  ;;  %v818_v23 = vadd.f32 0.5, %v817_v22 }
0x19a6   :  { %v811_v21 = vpop.f32.mrf.mxu3 }
0x19a7   :  { %v819_v24 = vmax.f32 %v818_v23, 0.0 }
0x19a9   :  { %v820_v26 = vmin.f32 %v819_v24, 1.0 }
0x19ab   :  { %v825_v8 = vmul.f32 %v823_v31, %v820_v26 }
0x19ff   :  { %v828_v27 = vpop.permute.xlu2 %827 }
0x1a00   :  { %v830_v30 = vmul.f32 %v828_v27, %v820_v26 }
0x1a02   :  { %832 = vrot.lane.b32.xlu0 %v830_v30, %s4398_s2 }
0x1a74   :  { %v833_v32 = vpop.permute.xlu0 %832 }
0x1a75   :  { %v835_v33 = vadd.f32 %v833_v32, %v825_v8 }
0x1a77   :  { %v836_v34 = vmul.f32 0.25, %v835_v33  ;;  %v879_v55 = vrot.slane %v835_v33, 6 }
0x1a79   :  { %v837_v36 = vadd.f32 0.5, %v836_v34 }
0x1a7b   :  { %v838_v37 = vmax.f32 %v837_v36, 0.0 }
0x1a7d   :  { %v839_v38 = vmin.f32 %v838_v37, 1.0 }
0x1a7f   :  { %841 = vrot.lane.b32.xlu1 %v839_v38, %s4397_s19 }
0x1af1   :  { %v842_v39 = vpop.permute.xlu1 %841 }
0x1af2   :  { %v4621_v10 = vmul.f32 %v842_v39, %v820_v26 }
0x1af4   :  { %v851_v40 = vpack.c.bf16 %v4621_v10, %v4621_v10 }
0x1af6   :  { %v853_v41 = vrot.slane %v851_v40, 3 }
0x1af8   :  { %854 = vrot.lane.b32.xlu2 %v853_v41, %s4398_s2  ;;  %v964_v41 = vld [vmem:[#allocation2 + $0x28] sm:$0x30] }
0x1b52   :  { %v855_v42 = vpop.permute.xlu2 %854 }
0x1b53   :  { %4160 = vmatmul.msk.bf16.vlgmr.msrb.gmra.mxu0 %vm89_vm0, %v855_v42 }
0x1bd0   :  { %v868_v2 = vpop.f32.mrf.mxu0 }
0x1bd1   :  { %v872_v45 = vadd.f32 %v868_v2, %v850_v43 }
0x1bd3   :  { %v877_v6 = vmax.f32 %v872_v45, 0.0  ;;  %v873_v47 = vmul.f32 0.25, %v872_v45 }
0x1bd5   :  { %883 = vrot.lane.b32.xlu0 %v877_v6, %s4397_s19  ;;  %v874_v48 = vadd.f32 0.5, %v873_v47 }
0x1bd7   :  { %v875_v49 = vmax.f32 %v874_v48, 0.0 }
0x1bd8   :  { %v870_v46 = vpop.f32.mrf.mxu0 }
0x1bd9   :  { %v876_v50 = vmin.f32 %v875_v49, 1.0 }
0x1bdb   :  { %v881_v56 = vmul.f32 %v879_v55, %v876_v50 }
0x1c47   :  { %v884_v53 = vpop.permute.xlu0 %883 }
0x1c48   :  { %v886_v54 = vmul.f32 %v884_v53, %v876_v50 }
0x1c4a   :  { %888 = vrot.lane.b32.xlu1 %v886_v54, %s4398_s2 }
0x1cbc   :  { %v889_v57 = vpop.permute.xlu1 %888 }
0x1cbd   :  { %v891_v58 = vadd.f32 %v889_v57, %v881_v56 }
0x1cbf   :  { %v892_v60 = vmul.f32 0.25, %v891_v58  ;;  %v937_v23 = vrot.slane %v891_v58, 6 }
0x1cc1   :  { %v893_v61 = vadd.f32 0.5, %v892_v60 }
0x1cc3   :  { %v894_v63 = vmax.f32 %v893_v61, 0.0 }
0x1cc5   :  { %v895_v0 = vmin.f32 %v894_v63, 1.0 }
0x1cc7   :  { %897 = vrot.lane.b32.xlu2 %v895_v0, %s4397_s19 }
0x1d21   :  { %v898_v1 = vpop.permute.xlu2 %897 }
0x1d22   :  { %v4630_v3 = vmul.f32 %v898_v1, %v876_v50 }
0x1d24   :  { %v907_v4 = vpack.c.bf16 %v4630_v3, %v4630_v3 }
0x1d26   :  { %909 = vrot.lane.b32.xlu0 %v907_v4, %s4398_s2 }
0x1d98   :  { %v910_v5 = vpop.permute.xlu0 %909 }
0x1d99   :  { %4161 = vmatmul.msk.bf16.vlgmr.msrb.gmra.mxu1 %vm89_vm0, %v910_v5 }
0x1e16   :  { %v923_v7 = vpop.f32.mrf.mxu1 }
0x1e17   :  { %v928_v11 = vrot.slane %v923_v7, 6 }
0x1e19   :  { %v930_v13 = vadd.f32 %v928_v11, %v906_v12  ;;  %v1023_v11 = vld [vmem:[#allocation2 + $0x28] sm:$0xc0] }
0x1e1b   :  { %v935_v14 = vmax.f32 %v930_v13, 0.0  ;;  %v931_v16 = vmul.f32 0.25, %v930_v13 }
0x1e1d   :  { %941 = vrot.lane.b32.xlu1 %v935_v14, %s4397_s19  ;;  %v932_v17 = vadd.f32 0.5, %v931_v16 }
0x1e1e   :  { %v925_v15 = vpop.f32.mrf.mxu1 }
0x1e1f   :  { %v933_v19 = vmax.f32 %v932_v17, 0.0 }
0x1e21   :  { %v934_v20 = vmin.f32 %v933_v19, 1.0 }
0x1e23   :  { %v939_v24 = vmul.f32 %v937_v23, %v934_v20 }
0x1e8f   :  { %v942_v21 = vpop.permute.xlu1 %941 }
0x1e90   :  { %v944_v22 = vmul.f32 %v942_v21, %v934_v20 }
0x1e92   :  { %946 = vrot.lane.b32.xlu2 %v944_v22, %s4398_s2 }
0x1eec   :  { %v947_v26 = vpop.permute.xlu2 %946 }
0x1eed   :  { %v949_v27 = vadd.f32 %v947_v26, %v939_v24 }
0x1eef   :  { %v950_v30 = vmul.f32 0.25, %v949_v27  ;;  %v996_v50 = vrot.slane %v949_v27, 6 }
0x1ef1   :  { %v951_v31 = vadd.f32 0.5, %v950_v30 }
0x1ef3   :  { %v952_v8 = vmax.f32 %v951_v31, 0.0 }
0x1ef5   :  { %v953_v32 = vmin.f32 %v952_v8, 1.0 }
0x1ef7   :  { %955 = vrot.lane.b32.xlu0 %v953_v32, %s4397_s19  ;;  %v4660_v32 = vld [vmem:[%s5555_s5 + $0x18] sm:$0xff] }
0x1ef8   :  { %1114 = vmatpush.bf16.msra.mxu0 %v4660_v32  ;;  %1171 = vmatpush.bf16.msra.mxu1 %v4660_v32 }
0x1ef9   :  { %1231 = vmatpush.bf16.msrb.mxu2 %v4660_v32  ;;  %1291 = vmatpush.bf16.msrb.mxu3 %v4660_v32 }
0x1f69   :  { %v956_v33 = vpop.permute.xlu0 %955 }
0x1f6a   :  { %v4639_v34 = vmul.f32 %v956_v33, %v934_v20  ;;  %v4666_v33 = vld [vmem:[%s5555_s5 + $0x10] sm:$0xff] }
0x1f6b   :  { %1115 = vmatpush.bf16.msra.mxu0 %v4666_v33  ;;  %1172 = vmatpush.bf16.msra.mxu1 %v4666_v33 }
0x1f6c   :  { %v965_v36 = vpack.c.bf16 %v4639_v34, %v4639_v34  ;;  %1232 = vmatpush.bf16.msrb.mxu2 %v4666_v33  ;;  %1292 = vmatpush.bf16.msrb.mxu3 %v4666_v33 }
0x1f6e   :  { %v967_v37 = vrot.slane %v965_v36, 1 }
0x1f6f   :  { %1347 = vmatpush.bf16.msrb.mxu0 %v4660_v32  ;;  %1406 = vmatpush.bf16.msrb.mxu1 %v4660_v32 }
0x1f70   :  { %968 = vrot.lane.b32.xlu1 %v967_v37, %s4398_s2 }
0x1f73   :  { %1348 = vmatpush.bf16.msrb.mxu0 %v4666_v33  ;;  %1407 = vmatpush.bf16.msrb.mxu1 %v4666_v33 }
0x1fe2   :  { %v969_v38 = vpop.permute.xlu1 %968 }
0x1fe3   :  { %4162 = vmatmul.msk.bf16.vlgmr.msra.gmra.mxu2 %vm89_vm0, %v969_v38 }
0x1fe4   :  { %1465 = vmatpush.bf16.msra.mxu2 %v4660_v32 }
0x1fe8   :  { %1466 = vmatpush.bf16.msra.mxu2 %v4666_v33 }
0x2066   :  { %v982_v39 = vpop.f32.mrf.mxu2 }
0x2067   :  { %v987_v40 = vrot.slane %v982_v39, 4 }
0x2069   :  { %v989_v42 = vadd.f32 %v987_v40, %v964_v41 }
0x206b   :  { %v994_v43 = vmax.f32 %v989_v42, 0.0  ;;  %v990_v45 = vmul.f32 0.25, %v989_v42 }
0x206d   :  { %1000 = vrot.lane.b32.xlu2 %v994_v43, %s4397_s19  ;;  %v991_v6 = vadd.f32 0.5, %v990_v45  ;;  %v1087_v43 = vld [vmem:[#allocation2 + $0x38] sm:$0xc0] }
0x206e   :  { %v984_v2 = vpop.f32.mrf.mxu2 }
0x206f   :  { %v992_v46 = vmax.f32 %v991_v6, 0.0 }
0x2071   :  { %v993_v47 = vmin.f32 %v992_v46, 1.0 }
0x2073   :  { %v998_v53 = vmul.f32 %v996_v50, %v993_v47 }
0x20c7   :  { %v1001_v48 = vpop.permute.xlu2 %1000 }
0x20c8   :  { %v1003_v49 = vmul.f32 %v1001_v48, %v993_v47 }
0x20ca   :  { %1005 = vrot.lane.b32.xlu0 %v1003_v49, %s4398_s2 }
0x213c   :  { %v1006_v54 = vpop.permute.xlu0 %1005 }
0x213d   :  { %v1008_v55 = vadd.f32 %v1006_v54, %v998_v53 }
0x213f   :  { %v1009_v56 = vmul.f32 0.25, %v1008_v55  ;;  %v1055_v22 = vrot.slane %v1008_v55, 6 }
0x2141   :  { %v1010_v57 = vadd.f32 0.5, %v1009_v56 }
0x2143   :  { %v1011_v58 = vmax.f32 %v1010_v57, 0.0 }
0x2145   :  { %v1012_v60 = vmin.f32 %v1011_v58, 1.0 }
0x2147   :  { %1014 = vrot.lane.b32.xlu1 %v1012_v60, %s4397_s19 }
0x21b9   :  { %v1015_v61 = vpop.permute.xlu1 %1014 }
0x21ba   :  { %v4648_v63 = vmul.f32 %v1015_v61, %v993_v47 }
0x21bc   :  { %v1024_v0 = vpack.c.bf16 %v4648_v63, %v4648_v63 }
0x21be   :  { %v1026_v1 = vrot.slane %v1024_v0, 2 }
0x21c0   :  { %1027 = vrot.lane.b32.xlu2 %v1026_v1, %s4398_s2 }
0x221a   :  { %v1028_v4 = vpop.permute.xlu2 %1027 }
0x221b   :  { %4163 = vmatmul.msk.bf16.vlgmr.msra.gmra.mxu3 %vm89_vm0, %v1028_v4 }
0x221c   :  { %1524 = vmatpush.bf16.msra.mxu3 %v4660_v32 }
0x2220   :  { %1525 = vmatpush.bf16.msra.mxu3 %v4666_v33 }
0x229e   :  { %v1041_v5 = vpop.f32.mrf.mxu3 }
0x229f   :  { %v1046_v7 = vrot.slane %v1041_v5, 2 }
0x22a1   :  { %v1048_v12 = vadd.f32 %v1046_v7, %v1023_v11 }
0x22a3   :  { %v1053_v13 = vmax.f32 %v1048_v12, 0.0  ;;  %v1049_v15 = vmul.f32 0.25, %v1048_v12 }
0x22a5   :  { %1059 = vrot.lane.b32.xlu0 %v1053_v13, %s4397_s19  ;;  %v1050_v16 = vadd.f32 0.5, %v1049_v15  ;;  %v1156_v13 = vld [vmem:[#allocation2 + $0x38] sm:$0x30] }
0x22a6   :  { %v1043_v14 = vpop.f32.mrf.mxu3 }
0x22a7   :  { %v1051_v17 = vmax.f32 %v1050_v16, 0.0 }
0x22a9   :  { %v1052_v19 = vmin.f32 %v1051_v17, 1.0 }
0x22ab   :  { %v1057_v23 = vmul.f32 %v1055_v22, %v1052_v19 }
0x2317   :  { %v1060_v20 = vpop.permute.xlu0 %1059 }
0x2318   :  { %v1062_v21 = vmul.f32 %v1060_v20, %v1052_v19 }
0x231a   :  { %1064 = vrot.lane.b32.xlu1 %v1062_v21, %s4398_s2 }
0x238c   :  { %v1065_v24 = vpop.permute.xlu1 %1064 }
0x238d   :  { %v1067_v26 = vadd.f32 %v1065_v24, %v1057_v23 }
0x238f   :  { %v1068_v27 = vmul.f32 0.25, %v1067_v26 }
0x2391   :  { %v1069_v30 = vadd.f32 0.5, %v1068_v27 }
0x2393   :  { %v1070_v31 = vmax.f32 %v1069_v30, 0.0 }
0x2395   :  { %v1071_v8 = vmin.f32 %v1070_v31, 1.0 }
0x2397   :  { %1073 = vrot.lane.b32.xlu2 %v1071_v8, %s4397_s19 }
0x23f1   :  { %v1074_v36 = vpop.permute.xlu2 %1073 }
0x23f2   :  { %v4683_v37 = vmul.f32 %v1074_v36, %v1052_v19 }
0x23f4   :  { %v1088_v38 = vpack.c.bf16 %v4683_v37, %v4683_v37 }
0x23f6   :  { %v1090_v39 = vrot.slane %v1088_v38, 3 }
0x23f8   :  { %1091 = vrot.lane.b32.xlu0 %v1090_v39, %s4398_s2 }
0x246a   :  { %v1092_v40 = vpop.permute.xlu0 %1091 }
0x246b   :  { %4176 = vmatmul.msk.bf16.vlgmr.msra.gmra.mxu0 %vm89_vm0, %v1092_v40 }
0x246c   :  { %1579 = vmatpush.bf16.msra.mxu0 %v4660_v32 }
0x2470   :  { %1580 = vmatpush.bf16.msra.mxu0 %v4666_v33 }
0x24e8   :  { %v1117_v41 = vpop.f32.mrf.mxu0 }
0x24e9   :  { %v1122_v42 = vrot.slane %v1117_v41, 2 }
0x24eb   :  { %v1124_v2 = vadd.f32 %v1122_v42, %v1087_v43 }
0x24ed   :  { %v1129_v45 = vmax.f32 %v1124_v2, 0.0  ;;  %v1125_v46 = vmul.f32 0.25, %v1124_v2 }
0x24ef   :  { %1132 = vrot.lane.b32.xlu1 %v1129_v45, %s4397_s19  ;;  %v1126_v47 = vadd.f32 0.5, %v1125_v46 }
0x24f0   :  { %v1119_v6 = vpop.f32.mrf.mxu0 }
0x24f1   :  { %v1127_v48 = vmax.f32 %v1126_v47, 0.0  ;;  %v1216_v6 = vld [vmem:[#allocation2 + $0x38] sm:$0xc] }
0x24f3   :  { %v1128_v49 = vmin.f32 %v1127_v48, 1.0 }
0x24f5   :  { %v1130_v54 = vmul.f32 %v1128_v49, %v1067_v26 }
0x2561   :  { %v1133_v50 = vpop.permute.xlu1 %1132 }
0x2562   :  { %v1135_v53 = vmul.f32 %v1133_v50, %v1128_v49 }
0x2564   :  { %1137 = vrot.lane.b32.xlu2 %v1135_v53, %s4398_s2 }
0x25be   :  { %v1138_v55 = vpop.permute.xlu2 %1137 }
0x25bf   :  { %v1140_v56 = vadd.f32 %v1138_v55, %v1130_v54 }
0x25c1   :  { %v1141_v57 = vmul.f32 0.25, %v1140_v56  ;;  %v1188_v24 = vrot.slane %v1140_v56, 2 }
0x25c3   :  { %v1142_v58 = vadd.f32 0.5, %v1141_v57 }
0x25c5   :  { %v1143_v60 = vmax.f32 %v1142_v58, 0.0 }
0x25c7   :  { %v1144_v61 = vmin.f32 %v1143_v60, 1.0 }
0x25c9   :  { %1146 = vrot.lane.b32.xlu0 %v1144_v61, %s4397_s19 }
0x263b   :  { %v1147_v0 = vpop.permute.xlu0 %1146 }
0x263c   :  { %v4694_v1 = vmul.f32 %v1147_v0, %v1128_v49 }
0x263e   :  { %v1157_v4 = vpack.c.bf16 %v4694_v1, %v4694_v1 }
0x2640   :  { %v1159_v5 = vrot.slane %v1157_v4, 3 }
0x2642   :  { %1160 = vrot.lane.b32.xlu1 %v1159_v5, %s4398_s2 }
0x26b4   :  { %v1161_v7 = vpop.permute.xlu1 %1160 }
0x26b5   :  { %4177 = vmatmul.msk.bf16.vlgmr.msra.gmra.mxu1 %vm89_vm0, %v1161_v7 }
0x26b6   :  { %1638 = vmatpush.bf16.msra.mxu1 %v4660_v32 }
0x26ba   :  { %1639 = vmatpush.bf16.msra.mxu1 %v4666_v33 }
0x2732   :  { %v1174_v11 = vpop.f32.mrf.mxu1 }
0x2733   :  { %v1179_v12 = vrot.slane %v1174_v11, 4 }
0x2735   :  { %v1181_v14 = vadd.f32 %v1179_v12, %v1156_v13 }
0x2737   :  { %v1186_v15 = vmax.f32 %v1181_v14, 0.0  ;;  %v1182_v17 = vmul.f32 0.25, %v1181_v14 }
0x2739   :  { %1192 = vrot.lane.b32.xlu2 %v1186_v15, %s4397_s19  ;;  %v1183_v19 = vadd.f32 0.5, %v1182_v17 }
0x273a   :  { %v1176_v16 = vpop.f32.mrf.mxu1 }
0x273b   :  { %v1184_v20 = vmax.f32 %v1183_v19, 0.0  ;;  %v1276_v16 = vld [vmem:[#allocation2 + $0x38] sm:$0x3] }
0x273d   :  { %v1185_v21 = vmin.f32 %v1184_v20, 1.0 }
0x273f   :  { %v1190_v26 = vmul.f32 %v1188_v24, %v1185_v21 }
0x2793   :  { %v1193_v22 = vpop.permute.xlu2 %1192 }
0x2794   :  { %v1195_v23 = vmul.f32 %v1193_v22, %v1185_v21 }
0x2796   :  { %1197 = vrot.lane.b32.xlu0 %v1195_v23, %s4398_s2 }
0x2808   :  { %v1198_v27 = vpop.permute.xlu0 %1197 }
0x2809   :  { %v1200_v30 = vadd.f32 %v1198_v27, %v1190_v26 }
0x280b   :  { %v1201_v31 = vmul.f32 0.25, %v1200_v30  ;;  %v1248_v57 = vrot.slane %v1200_v30, 2 }
0x280d   :  { %v1202_v8 = vadd.f32 0.5, %v1201_v31 }
0x280f   :  { %v1203_v36 = vmax.f32 %v1202_v8, 0.0 }
0x2811   :  { %v1204_v38 = vmin.f32 %v1203_v36, 1.0 }
0x2813   :  { %1206 = vrot.lane.b32.xlu1 %v1204_v38, %s4397_s19 }
0x2885   :  { %v1207_v39 = vpop.permute.xlu1 %1206 }
0x2886   :  { %v4705_v40 = vmul.f32 %v1207_v39, %v1185_v21 }
0x2888   :  { %v1217_v41 = vpack.c.bf16 %v4705_v40, %v4705_v40 }
0x288a   :  { %v1219_v42 = vrot.slane %v1217_v41, 2 }
0x288c   :  { %1220 = vrot.lane.b32.xlu2 %v1219_v42, %s4398_s2 }
0x28e6   :  { %v1221_v43 = vpop.permute.xlu2 %1220 }
0x28e7   :  { %4178 = vmatmul.msk.bf16.vlgmr.msrb.gmra.mxu2 %vm89_vm0, %v1221_v43 }
0x28e8   :  { %1697 = vmatpush.bf16.msrb.mxu2 %v4660_v32 }
0x28ec   :  { %1698 = vmatpush.bf16.msrb.mxu2 %v4666_v33 }
0x296a   :  { %v1234_v2 = vpop.f32.mrf.mxu2 }
0x296b   :  { %v1239_v45 = vrot.slane %v1234_v2, 6 }
0x296d   :  { %v1241_v46 = vadd.f32 %v1239_v45, %v1216_v6 }
0x296f   :  { %v1246_v47 = vmax.f32 %v1241_v46, 0.0  ;;  %v1242_v49 = vmul.f32 0.25, %v1241_v46 }
0x2971   :  { %1252 = vrot.lane.b32.xlu0 %v1246_v47, %s4397_s19  ;;  %v1243_v50 = vadd.f32 0.5, %v1242_v49  ;;  %v1333_v49 = vld [vmem:[#allocation2 + $0x20] sm:$0xc0] }
0x2972   :  { %v1236_v48 = vpop.f32.mrf.mxu2 }
0x2973   :  { %v1244_v53 = vmax.f32 %v1243_v50, 0.0 }
0x2975   :  { %v1245_v54 = vmin.f32 %v1244_v53, 1.0 }
0x2977   :  { %v1250_v58 = vmul.f32 %v1248_v57, %v1245_v54 }
0x29e3   :  { %v1253_v55 = vpop.permute.xlu0 %1252 }
0x29e4   :  { %v1255_v56 = vmul.f32 %v1253_v55, %v1245_v54 }
0x29e6   :  { %1257 = vrot.lane.b32.xlu1 %v1255_v56, %s4398_s2 }
0x2a58   :  { %v1258_v60 = vpop.permute.xlu1 %1257 }
0x2a59   :  { %v1260_v61 = vadd.f32 %v1258_v60, %v1250_v58 }
0x2a5b   :  { %v1261_v0 = vmul.f32 0.25, %v1260_v61  ;;  %v1305_v31 = vrot.slane %v1260_v61, 2 }
0x2a5d   :  { %v1262_v4 = vadd.f32 0.5, %v1261_v0 }
0x2a5f   :  { %v1263_v5 = vmax.f32 %v1262_v4, 0.0 }
0x2a61   :  { %v1264_v7 = vmin.f32 %v1263_v5, 1.0 }
0x2a63   :  { %1266 = vrot.lane.b32.xlu2 %v1264_v7, %s4397_s19 }
0x2abd   :  { %v1267_v11 = vpop.permute.xlu2 %1266 }
0x2abe   :  { %v4716_v12 = vmul.f32 %v1267_v11, %v1245_v54 }
0x2ac0   :  { %v1277_v13 = vpack.c.bf16 %v4716_v12, %v4716_v12 }
0x2ac2   :  { %v1279_v14 = vrot.slane %v1277_v13, 1 }
0x2ac4   :  { %1280 = vrot.lane.b32.xlu0 %v1279_v14, %s4398_s2 }
0x2b36   :  { %v1281_v15 = vpop.permute.xlu0 %1280 }
0x2b37   :  { %4179 = vmatmul.msk.bf16.vlgmr.msrb.gmra.mxu3 %vm89_vm0, %v1281_v15 }
0x2b38   :  { %1756 = vmatpush.bf16.msrb.mxu3 %v4660_v32 }
0x2b3c   :  { %1757 = vmatpush.bf16.msrb.mxu3 %v4666_v33 }
0x2bba   :  { %v1294_v17 = vpop.f32.mrf.mxu3 }
0x2bbb   :  { %v1298_v19 = vadd.f32 %v1294_v17, %v1276_v16 }
0x2bbd   :  { %v1303_v20 = vmax.f32 %v1298_v19, 0.0  ;;  %v1299_v22 = vmul.f32 0.25, %v1298_v19 }
0x2bbf   :  { %1309 = vrot.lane.b32.xlu1 %v1303_v20, %s4397_s19  ;;  %v1300_v23 = vadd.f32 0.5, %v1299_v22 }
0x2bc1   :  { %v1301_v24 = vmax.f32 %v1300_v23, 0.0 }
0x2bc2   :  { %v1296_v21 = vpop.f32.mrf.mxu3 }
0x2bc3   :  { %v1302_v26 = vmin.f32 %v1301_v24, 1.0  ;;  %v1391_v24 = vld [vmem:[#allocation2 + $0x20] sm:$0x30] }
0x2bc5   :  { %v1307_v8 = vmul.f32 %v1305_v31, %v1302_v26 }
0x2c31   :  { %v1310_v27 = vpop.permute.xlu1 %1309 }
0x2c32   :  { %v1312_v30 = vmul.f32 %v1310_v27, %v1302_v26 }
0x2c34   :  { %1314 = vrot.lane.b32.xlu2 %v1312_v30, %s4398_s2 }
0x2c8e   :  { %v1315_v36 = vpop.permute.xlu2 %1314 }
0x2c8f   :  { %v1317_v38 = vadd.f32 %v1315_v36, %v1307_v8 }
0x2c91   :  { %v1318_v39 = vmul.f32 0.25, %v1317_v38  ;;  %v1364_v0 = vrot.slane %v1317_v38, 2 }
0x2c93   :  { %v1319_v41 = vadd.f32 0.5, %v1318_v39 }
0x2c95   :  { %v1320_v42 = vmax.f32 %v1319_v41, 0.0 }
0x2c97   :  { %v1321_v43 = vmin.f32 %v1320_v42, 1.0 }
0x2c99   :  { %1323 = vrot.lane.b32.xlu0 %v1321_v43, %s4397_s19 }
0x2d0b   :  { %v1324_v2 = vpop.permute.xlu0 %1323 }
0x2d0c   :  { %v4727_v45 = vmul.f32 %v1324_v2, %v1302_v26 }
0x2d0e   :  { %v1334_v6 = vpack.c.bf16 %v4727_v45, %v4727_v45 }
0x2d10   :  { %1336 = vrot.lane.b32.xlu1 %v1334_v6, %s4398_s2 }
0x2d82   :  { %v1337_v46 = vpop.permute.xlu1 %1336 }
0x2d83   :  { %4180 = vmatmul.msk.bf16.vlgmr.msrb.gmra.mxu0 %vm89_vm0, %v1337_v46 }
0x2d84   :  { %1811 = vmatpush.bf16.msrb.mxu0 %v4660_v32 }
0x2d88   :  { %1812 = vmatpush.bf16.msrb.mxu0 %v4666_v33 }
0x2e00   :  { %v1350_v47 = vpop.f32.mrf.mxu0 }
0x2e01   :  { %v1355_v48 = vrot.slane %v1350_v47, 2 }
0x2e03   :  { %v1357_v50 = vadd.f32 %v1355_v48, %v1333_v49 }
0x2e05   :  { %v1362_v53 = vmax.f32 %v1357_v50, 0.0  ;;  %v1358_v55 = vmul.f32 0.25, %v1357_v50 }
0x2e07   :  { %1368 = vrot.lane.b32.xlu2 %v1362_v53, %s4397_s19  ;;  %v1359_v56 = vadd.f32 0.5, %v1358_v55 }
0x2e08   :  { %v1352_v54 = vpop.f32.mrf.mxu0 }
0x2e09   :  { %v1360_v57 = vmax.f32 %v1359_v56, 0.0 }
0x2e0b   :  { %v1361_v58 = vmin.f32 %v1360_v57, 1.0 }
0x2e0d   :  { %v1366_v4 = vmul.f32 %v1364_v0, %v1361_v58 }
0x2e61   :  { %v1369_v60 = vpop.permute.xlu2 %1368 }
0x2e62   :  { %v1371_v61 = vmul.f32 %v1369_v60, %v1361_v58  ;;  %v1450_v60 = vld [vmem:[#allocation2 + $0x20] sm:$0xc] }
0x2e64   :  { %1373 = vrot.lane.b32.xlu0 %v1371_v61, %s4398_s2 }
0x2ed6   :  { %v1374_v5 = vpop.permute.xlu0 %1373 }
0x2ed7   :  { %v1376_v7 = vadd.f32 %v1374_v5, %v1366_v4 }
0x2ed9   :  { %v1377_v11 = vmul.f32 0.25, %v1376_v7  ;;  %v1423_v42 = vrot.slane %v1376_v7, 2 }
0x2edb   :  { %v1378_v13 = vadd.f32 0.5, %v1377_v11 }
0x2edd   :  { %v1379_v14 = vmax.f32 %v1378_v13, 0.0 }
0x2edf   :  { %v1380_v15 = vmin.f32 %v1379_v14, 1.0 }
0x2ee1   :  { %1382 = vrot.lane.b32.xlu1 %v1380_v15, %s4397_s19 }
0x2f53   :  { %v1383_v16 = vpop.permute.xlu1 %1382 }
0x2f54   :  { %v4738_v17 = vmul.f32 %v1383_v16, %v1361_v58 }
0x2f56   :  { %v1392_v19 = vpack.c.bf16 %v4738_v17, %v4738_v17 }
0x2f58   :  { %v1394_v20 = vrot.slane %v1392_v19, 3 }
0x2f5a   :  { %1395 = vrot.lane.b32.xlu2 %v1394_v20, %s4398_s2 }
0x2fb4   :  { %v1396_v21 = vpop.permute.xlu2 %1395 }
0x2fb5   :  { %4181 = vmatmul.msk.bf16.vlgmr.msrb.gmra.mxu1 %vm89_vm0, %v1396_v21 }
0x2fb6   :  { %1870 = vmatpush.bf16.msrb.mxu1 %v4660_v32 }
0x2fba   :  { %1871 = vmatpush.bf16.msrb.mxu1 %v4666_v33 }
0x3032   :  { %v1409_v22 = vpop.f32.mrf.mxu1 }
0x3033   :  { %v1414_v23 = vrot.slane %v1409_v22, 4 }
0x3035   :  { %v1416_v26 = vadd.f32 %v1414_v23, %v1391_v24 }
0x3037   :  { %v1421_v27 = vmax.f32 %v1416_v26, 0.0  ;;  %v1417_v31 = vmul.f32 0.25, %v1416_v26 }
0x3039   :  { %1427 = vrot.lane.b32.xlu0 %v1421_v27, %s4397_s19  ;;  %v1418_v8 = vadd.f32 0.5, %v1417_v31 }
0x303a   :  { %v1411_v30 = vpop.f32.mrf.mxu1 }
0x303b   :  { %v1419_v36 = vmax.f32 %v1418_v8, 0.0 }
0x303d   :  { %v1420_v38 = vmin.f32 %v1419_v36, 1.0 }
0x303f   :  { %v1425_v43 = vmul.f32 %v1423_v42, %v1420_v38 }
0x30ab   :  { %v1428_v39 = vpop.permute.xlu0 %1427 }
0x30ac   :  { %v1430_v41 = vmul.f32 %v1428_v39, %v1420_v38 }
0x30ae   :  { %1432 = vrot.lane.b32.xlu1 %v1430_v41, %s4398_s2 }
0x3120   :  { %v1433_v2 = vpop.permute.xlu1 %1432 }
0x3121   :  { %v1435_v6 = vadd.f32 %v1433_v2, %v1425_v43 }
0x3123   :  { %v1436_v46 = vmul.f32 0.25, %v1435_v6  ;;  %v1482_v16 = vrot.slane %v1435_v6, 2 }
0x3125   :  { %v1437_v47 = vadd.f32 0.5, %v1436_v46 }
0x3127   :  { %v1438_v48 = vmax.f32 %v1437_v47, 0.0 }
0x3129   :  { %v1439_v49 = vmin.f32 %v1438_v48, 1.0 }
0x312b   :  { %1441 = vrot.lane.b32.xlu2 %v1439_v49, %s4397_s19 }
0x3185   :  { %v1442_v50 = vpop.permute.xlu2 %1441 }
0x3186   :  { %v4749_v53 = vmul.f32 %v1442_v50, %v1420_v38  ;;  %v1509_v38 = vld [vmem:[#allocation2 + $0x20] sm:$0x3] }
0x3188   :  { %v1451_v54 = vpack.c.bf16 %v4749_v53, %v4749_v53 }
0x318a   :  { %v1453_v55 = vrot.slane %v1451_v54, 2 }
0x318c   :  { %1454 = vrot.lane.b32.xlu0 %v1453_v55, %s4398_s2 }
0x31fe   :  { %v1455_v56 = vpop.permute.xlu0 %1454 }
0x31ff   :  { %4182 = vmatmul.msk.bf16.vlgmr.msra.gmra.mxu2 %vm89_vm0, %v1455_v56 }
0x3200   :  { %1929 = vmatpush.bf16.msra.mxu2 %v4660_v32 }
0x3204   :  { %1930 = vmatpush.bf16.msra.mxu2 %v4666_v33 }
0x3282   :  { %v1468_v57 = vpop.f32.mrf.mxu2 }
0x3283   :  { %v1473_v58 = vrot.slane %v1468_v57, 6 }
0x3285   :  { %v1475_v61 = vadd.f32 %v1473_v58, %v1450_v60 }
0x3287   :  { %v1480_v0 = vmax.f32 %v1475_v61, 0.0  ;;  %v1476_v5 = vmul.f32 0.25, %v1475_v61 }
0x3289   :  { %1486 = vrot.lane.b32.xlu1 %v1480_v0, %s4397_s19  ;;  %v1477_v7 = vadd.f32 0.5, %v1476_v5 }
0x328a   :  { %v1470_v4 = vpop.f32.mrf.mxu2 }
0x328b   :  { %v1478_v11 = vmax.f32 %v1477_v7, 0.0 }
0x328d   :  { %v1479_v13 = vmin.f32 %v1478_v11, 1.0  ;;  %v1565_v11 = vld [vmem:[#allocation2 + $0x10] sm:$0xc0] }
0x328f   :  { %v1484_v19 = vmul.f32 %v1482_v16, %v1479_v13 }
0x32fb   :  { %v1487_v14 = vpop.permute.xlu1 %1486 }
0x32fc   :  { %v1489_v15 = vmul.f32 %v1487_v14, %v1479_v13 }
0x32fe   :  { %1491 = vrot.lane.b32.xlu2 %v1489_v15, %s4398_s2 }
0x3358   :  { %v1492_v20 = vpop.permute.xlu2 %1491 }
0x3359   :  { %v1494_v21 = vadd.f32 %v1492_v20, %v1484_v19 }
0x335b   :  { %v1495_v22 = vmul.f32 0.25, %v1494_v21  ;;  %v1538_v50 = vrot.slane %v1494_v21, 2 }
0x335d   :  { %v1496_v23 = vadd.f32 0.5, %v1495_v22 }
0x335f   :  { %v1497_v24 = vmax.f32 %v1496_v23, 0.0 }
0x3361   :  { %v1498_v26 = vmin.f32 %v1497_v24, 1.0 }
0x3363   :  { %1500 = vrot.lane.b32.xlu0 %v1498_v26, %s4397_s19 }
0x33d5   :  { %v1501_v27 = vpop.permute.xlu0 %1500 }
0x33d6   :  { %v4760_v30 = vmul.f32 %v1501_v27, %v1479_v13 }
0x33d8   :  { %v1510_v31 = vpack.c.bf16 %v4760_v30, %v4760_v30 }
0x33da   :  { %v1512_v8 = vrot.slane %v1510_v31, 1 }
0x33dc   :  { %1513 = vrot.lane.b32.xlu1 %v1512_v8, %s4398_s2 }
0x344e   :  { %v1514_v36 = vpop.permute.xlu1 %1513 }
0x344f   :  { %4183 = vmatmul.msk.bf16.vlgmr.msra.gmra.mxu3 %vm89_vm0, %v1514_v36 }
0x3450   :  { %1988 = vmatpush.bf16.msra.mxu3 %v4660_v32 }
0x3454   :  { %1989 = vmatpush.bf16.msra.mxu3 %v4666_v33 }
0x34d2   :  { %v1527_v39 = vpop.f32.mrf.mxu3 }
0x34d3   :  { %v1531_v41 = vadd.f32 %v1527_v39, %v1509_v38 }
0x34d5   :  { %v1536_v42 = vmax.f32 %v1531_v41, 0.0  ;;  %v1532_v2 = vmul.f32 0.25, %v1531_v41 }
0x34d7   :  { %1542 = vrot.lane.b32.xlu2 %v1536_v42, %s4397_s19  ;;  %v1533_v6 = vadd.f32 0.5, %v1532_v2 }
0x34d9   :  { %v1534_v46 = vmax.f32 %v1533_v6, 0.0 }
0x34da   :  { %v1529_v43 = vpop.f32.mrf.mxu3 }
0x34db   :  { %v1535_v47 = vmin.f32 %v1534_v46, 1.0 }
0x34dd   :  { %v1540_v54 = vmul.f32 %v1538_v50, %v1535_v47 }
0x3531   :  { %v1543_v48 = vpop.permute.xlu2 %1542 }
0x3532   :  { %v1545_v49 = vmul.f32 %v1543_v48, %v1535_v47  ;;  %v1623_v48 = vld [vmem:[#allocation2 + $0x10] sm:$0x30] }
0x3534   :  { %1547 = vrot.lane.b32.xlu0 %v1545_v49, %s4398_s2 }
0x35a6   :  { %v1548_v32 = vpop.permute.xlu0 %1547 }
0x35a7   :  { %v1550_v55 = vadd.f32 %v1548_v32, %v1540_v54 }
0x35a9   :  { %v1551_v33 = vmul.f32 0.25, %v1550_v55  ;;  %v1596_v24 = vrot.slane %v1550_v55, 2 }
0x35ab   :  { %v1552_v56 = vadd.f32 0.5, %v1551_v33 }
0x35ad   :  { %v1553_v57 = vmax.f32 %v1552_v56, 0.0 }
0x35af   :  { %v1554_v58 = vmin.f32 %v1553_v57, 1.0 }
0x35b1   :  { %1556 = vrot.lane.b32.xlu1 %v1554_v58, %s4397_s19 }
0x3623   :  { %v1557_v60 = vpop.permute.xlu1 %1556 }
0x3624   :  { %v4771_v61 = vmul.f32 %v1557_v60, %v1535_v47 }
0x3626   :  { %v1566_v0 = vpack.c.bf16 %v4771_v61, %v4771_v61 }
0x3628   :  { %1568 = vrot.lane.b32.xlu2 %v1566_v0, %s4398_s2 }
0x3682   :  { %v1569_v4 = vpop.permute.xlu2 %1568 }
0x3683   :  { %4184 = vmatmul.msk.bf16.vlgmr.msra.gmra.mxu0 %vm89_vm0, %v1569_v4 }
0x3700   :  { %v1582_v5 = vpop.f32.mrf.mxu0 }
0x3701   :  { %v1587_v7 = vrot.slane %v1582_v5, 2 }
0x3703   :  { %v1589_v13 = vadd.f32 %v1587_v7, %v1565_v11 }
0x3705   :  { %v1594_v14 = vmax.f32 %v1589_v13, 0.0  ;;  %v1590_v16 = vmul.f32 0.25, %v1589_v13 }
0x3707   :  { %1600 = vrot.lane.b32.xlu0 %v1594_v14, %s4397_s19  ;;  %v1591_v19 = vadd.f32 0.5, %v1590_v16 }
0x3708   :  { %v1584_v15 = vpop.f32.mrf.mxu0 }
0x3709   :  { %v1592_v20 = vmax.f32 %v1591_v19, 0.0 }
0x370b   :  { %v1593_v21 = vmin.f32 %v1592_v20, 1.0 }
0x370d   :  { %v1598_v26 = vmul.f32 %v1596_v24, %v1593_v21  ;;  %v1682_v24 = vld [vmem:[#allocation2 + $0x10] sm:$0xc] }
0x3779   :  { %v1601_v22 = vpop.permute.xlu0 %1600 }
0x377a   :  { %v1603_v23 = vmul.f32 %v1601_v22, %v1593_v21 }
0x377c   :  { %1605 = vrot.lane.b32.xlu1 %v1603_v23, %s4398_s2 }
0x37ee   :  { %v1606_v27 = vpop.permute.xlu1 %1605 }
0x37ef   :  { %v1608_v31 = vadd.f32 %v1606_v27, %v1598_v26 }
0x37f1   :  { %v1609_v8 = vmul.f32 0.25, %v1608_v31  ;;  %v1655_v60 = vrot.slane %v1608_v31, 2 }
0x37f3   :  { %v1610_v36 = vadd.f32 0.5, %v1609_v8 }
0x37f5   :  { %v1611_v38 = vmax.f32 %v1610_v36, 0.0 }
0x37f7   :  { %v1612_v39 = vmin.f32 %v1611_v38, 1.0 }
0x37f9   :  { %1614 = vrot.lane.b32.xlu2 %v1612_v39, %s4397_s19 }
0x3853   :  { %v1615_v41 = vpop.permute.xlu2 %1614 }
0x3854   :  { %v4780_v42 = vmul.f32 %v1615_v41, %v1593_v21 }
0x3856   :  { %v1624_v43 = vpack.c.bf16 %v4780_v42, %v4780_v42 }
0x3858   :  { %v1626_v2 = vrot.slane %v1624_v43, 3 }
0x385a   :  { %1627 = vrot.lane.b32.xlu0 %v1626_v2, %s4398_s2 }
0x38cc   :  { %v1628_v6 = vpop.permute.xlu0 %1627 }
0x38cd   :  { %4185 = vmatmul.msk.bf16.vlgmr.msra.gmra.mxu1 %vm89_vm0, %v1628_v6 }
0x394a   :  { %v1641_v46 = vpop.f32.mrf.mxu1 }
0x394b   :  { %v1646_v47 = vrot.slane %v1641_v46, 4 }
0x394d   :  { %v1648_v49 = vadd.f32 %v1646_v47, %v1623_v48 }
0x394f   :  { %v1653_v50 = vmax.f32 %v1648_v49, 0.0  ;;  %v1649_v32 = vmul.f32 0.25, %v1648_v49 }
0x3951   :  { %1659 = vrot.lane.b32.xlu1 %v1653_v50, %s4397_s19  ;;  %v1650_v55 = vadd.f32 0.5, %v1649_v32 }
0x3952   :  { %v1643_v54 = vpop.f32.mrf.mxu1 }
0x3953   :  { %v1651_v33 = vmax.f32 %v1650_v55, 0.0 }
0x3955   :  { %v1652_v56 = vmin.f32 %v1651_v33, 1.0 }
0x3957   :  { %v1657_v0 = vmul.f32 %v1655_v60, %v1652_v56 }
0x39c3   :  { %v1660_v57 = vpop.permute.xlu1 %1659 }
0x39c4   :  { %v1662_v58 = vmul.f32 %v1660_v57, %v1652_v56 }
0x39c6   :  { %1664 = vrot.lane.b32.xlu2 %v1662_v58, %s4398_s2  ;;  %v1741_v58 = vld [vmem:[#allocation2 + $0x10] sm:$0x3] }
0x3a20   :  { %v1665_v4 = vpop.permute.xlu2 %1664 }
0x3a21   :  { %v1667_v5 = vadd.f32 %v1665_v4, %v1657_v0 }
0x3a23   :  { %v1668_v7 = vmul.f32 0.25, %v1667_v5  ;;  %v1714_v2 = vrot.slane %v1667_v5, 2 }
0x3a25   :  { %v1669_v11 = vadd.f32 0.5, %v1668_v7 }
0x3a27   :  { %v1670_v13 = vmax.f32 %v1669_v11, 0.0 }
0x3a29   :  { %v1671_v14 = vmin.f32 %v1670_v13, 1.0 }
0x3a2b   :  { %1673 = vrot.lane.b32.xlu0 %v1671_v14, %s4397_s19 }
0x3a9d   :  { %v1674_v15 = vpop.permute.xlu0 %1673 }
0x3a9e   :  { %v4789_v16 = vmul.f32 %v1674_v15, %v1652_v56 }
0x3aa0   :  { %v1683_v19 = vpack.c.bf16 %v4789_v16, %v4789_v16 }
0x3aa2   :  { %v1685_v20 = vrot.slane %v1683_v19, 2 }
0x3aa4   :  { %1686 = vrot.lane.b32.xlu1 %v1685_v20, %s4398_s2 }
0x3b16   :  { %v1687_v21 = vpop.permute.xlu1 %1686 }
0x3b17   :  { %4186 = vmatmul.msk.bf16.vlgmr.msrb.gmra.mxu2 %vm89_vm0, %v1687_v21 }
0x3b9a   :  { %v1700_v22 = vpop.f32.mrf.mxu2 }
0x3b9b   :  { %v1705_v23 = vrot.slane %v1700_v22, 6 }
0x3b9d   :  { %v1707_v26 = vadd.f32 %v1705_v23, %v1682_v24 }
0x3b9f   :  { %v1712_v27 = vmax.f32 %v1707_v26, 0.0  ;;  %v1708_v8 = vmul.f32 0.25, %v1707_v26 }
0x3ba1   :  { %1718 = vrot.lane.b32.xlu2 %v1712_v27, %s4397_s19  ;;  %v1709_v36 = vadd.f32 0.5, %v1708_v8 }
0x3ba2   :  { %v1702_v31 = vpop.f32.mrf.mxu2 }
0x3ba3   :  { %v1710_v38 = vmax.f32 %v1709_v36, 0.0 }
0x3ba5   :  { %v1711_v39 = vmin.f32 %v1710_v38, 1.0 }
0x3ba7   :  { %v1716_v6 = vmul.f32 %v1714_v2, %v1711_v39  ;;  %v1797_v2 = vld [vmem:[#allocation2] sm:$0xc0] }
0x3bfb   :  { %v1719_v41 = vpop.permute.xlu2 %1718 }
0x3bfc   :  { %v1721_v43 = vmul.f32 %v1719_v41, %v1711_v39 }
0x3bfe   :  { %1723 = vrot.lane.b32.xlu0 %v1721_v43, %s4398_s2 }
0x3c70   :  { %v1724_v46 = vpop.permute.xlu0 %1723 }
0x3c71   :  { %v1726_v47 = vadd.f32 %v1724_v46, %v1716_v6 }
0x3c73   :  { %v1727_v48 = vmul.f32 0.25, %v1726_v47  ;;  %v1770_v20 = vrot.slane %v1726_v47, 2 }
0x3c75   :  { %v1728_v49 = vadd.f32 0.5, %v1727_v48 }
0x3c77   :  { %v1729_v50 = vmax.f32 %v1728_v49, 0.0 }
0x3c79   :  { %v1730_v54 = vmin.f32 %v1729_v50, 1.0 }
0x3c7b   :  { %1732 = vrot.lane.b32.xlu1 %v1730_v54, %s4397_s19 }
0x3ced   :  { %v1733_v32 = vpop.permute.xlu1 %1732 }
0x3cee   :  { %v4798_v55 = vmul.f32 %v1733_v32, %v1711_v39 }
0x3cf0   :  { %v1742_v33 = vpack.c.bf16 %v4798_v55, %v4798_v55 }
0x3cf2   :  { %v1744_v56 = vrot.slane %v1742_v33, 1 }
0x3cf4   :  { %1745 = vrot.lane.b32.xlu2 %v1744_v56, %s4398_s2 }
0x3d4e   :  { %v1746_v57 = vpop.permute.xlu2 %1745 }
0x3d4f   :  { %4187 = vmatmul.msk.bf16.vlgmr.msrb.gmra.mxu3 %vm89_vm0, %v1746_v57 }
0x3dd2   :  { %v1759_v60 = vpop.f32.mrf.mxu3 }
0x3dd3   :  { %v1763_v0 = vadd.f32 %v1759_v60, %v1741_v58 }
0x3dd5   :  { %v1768_v4 = vmax.f32 %v1763_v0, 0.0  ;;  %v1764_v7 = vmul.f32 0.25, %v1763_v0 }
0x3dd7   :  { %1774 = vrot.lane.b32.xlu0 %v1768_v4, %s4397_s19  ;;  %v1765_v11 = vadd.f32 0.5, %v1764_v7 }
0x3dd9   :  { %v1766_v13 = vmax.f32 %v1765_v11, 0.0 }
0x3dda   :  { %v1761_v5 = vpop.f32.mrf.mxu3 }
0x3ddb   :  { %v1767_v14 = vmin.f32 %v1766_v13, 1.0 }
0x3ddd   :  { %v1772_v21 = vmul.f32 %v1770_v20, %v1767_v14 }
0x3e49   :  { %v1775_v15 = vpop.permute.xlu0 %1774 }
0x3e4a   :  { %v1777_v19 = vmul.f32 %v1775_v15, %v1767_v14 }
0x3e4c   :  { %1779 = vrot.lane.b32.xlu1 %v1777_v19, %s4398_s2 }
0x3ebe   :  { %v1780_v22 = vpop.permute.xlu1 %1779 }
0x3ebf   :  { %v1782_v23 = vadd.f32 %v1780_v22, %v1772_v21  ;;  %v1855_v22 = vld [vmem:[#allocation2] sm:$0x30] }
0x3ec1   :  { %v1783_v24 = vmul.f32 0.25, %v1782_v23  ;;  %v1828_v56 = vrot.slane %v1782_v23, 2 }
0x3ec3   :  { %v1784_v26 = vadd.f32 0.5, %v1783_v24 }
0x3ec5   :  { %v1785_v27 = vmax.f32 %v1784_v26, 0.0 }
0x3ec7   :  { %v1786_v31 = vmin.f32 %v1785_v27, 1.0 }
0x3ec9   :  { %1788 = vrot.lane.b32.xlu2 %v1786_v31, %s4397_s19 }
0x3f23   :  { %v1789_v8 = vpop.permute.xlu2 %1788 }
0x3f24   :  { %v4807_v36 = vmul.f32 %v1789_v8, %v1767_v14 }
0x3f26   :  { %v1798_v38 = vpack.c.bf16 %v4807_v36, %v4807_v36 }
0x3f28   :  { %1800 = vrot.lane.b32.xlu0 %v1798_v38, %s4398_s2 }
0x3f9a   :  { %v1801_v39 = vpop.permute.xlu0 %1800 }
0x3f9b   :  { %4188 = vmatmul.msk.bf16.vlgmr.msrb.gmra.mxu0 %vm89_vm0, %v1801_v39 }
0x4018   :  { %v1814_v41 = vpop.f32.mrf.mxu0 }
0x4019   :  { %v1819_v43 = vrot.slane %v1814_v41, 2 }
0x401b   :  { %v1821_v6 = vadd.f32 %v1819_v43, %v1797_v2 }
0x401d   :  { %v1826_v46 = vmax.f32 %v1821_v6, 0.0  ;;  %v1822_v48 = vmul.f32 0.25, %v1821_v6 }
0x401f   :  { %1832 = vrot.lane.b32.xlu1 %v1826_v46, %s4397_s19  ;;  %v1823_v49 = vadd.f32 0.5, %v1822_v48 }
0x4020   :  { %v1816_v47 = vpop.f32.mrf.mxu0 }
0x4021   :  { %v1824_v50 = vmax.f32 %v1823_v49, 0.0 }
0x4023   :  { %v1825_v54 = vmin.f32 %v1824_v50, 1.0 }
0x4025   :  { %v1830_v57 = vmul.f32 %v1828_v56, %v1825_v54 }
0x4091   :  { %v1833_v32 = vpop.permute.xlu1 %1832 }
0x4092   :  { %v1835_v33 = vmul.f32 %v1833_v32, %v1825_v54 }
0x4094   :  { %1837 = vrot.lane.b32.xlu2 %v1835_v33, %s4398_s2 }
0x40ee   :  { %v1838_v58 = vpop.permute.xlu2 %1837 }
0x40ef   :  { %v1840_v60 = vadd.f32 %v1838_v58, %v1830_v57 }
0x40f1   :  { %v1841_v0 = vmul.f32 0.25, %v1840_v60  ;;  %v1887_v43 = vrot.slane %v1840_v60, 2 }
0x40f3   :  { %v1842_v4 = vadd.f32 0.5, %v1841_v0  ;;  %v1914_v0 = vld [vmem:[#allocation2] sm:$0xc] }
0x40f5   :  { %v1843_v5 = vmax.f32 %v1842_v4, 0.0 }
0x40f7   :  { %v1844_v7 = vmin.f32 %v1843_v5, 1.0 }
0x40f9   :  { %1846 = vrot.lane.b32.xlu0 %v1844_v7, %s4397_s19 }
0x416b   :  { %v1847_v11 = vpop.permute.xlu0 %1846 }
0x416c   :  { %v4816_v13 = vmul.f32 %v1847_v11, %v1825_v54 }
0x416e   :  { %v1856_v14 = vpack.c.bf16 %v4816_v13, %v4816_v13 }
0x4170   :  { %v1858_v15 = vrot.slane %v1856_v14, 3 }
0x4172   :  { %1859 = vrot.lane.b32.xlu1 %v1858_v15, %s4398_s2 }
0x41e4   :  { %v1860_v19 = vpop.permute.xlu1 %1859 }
0x41e5   :  { %4189 = vmatmul.msk.bf16.vlgmr.msrb.gmra.mxu1 %vm89_vm0, %v1860_v19 }
0x4262   :  { %v1873_v20 = vpop.f32.mrf.mxu1 }
0x4263   :  { %v1878_v21 = vrot.slane %v1873_v20, 4 }
0x4265   :  { %v1880_v23 = vadd.f32 %v1878_v21, %v1855_v22 }
0x4267   :  { %v1885_v24 = vmax.f32 %v1880_v23, 0.0  ;;  %v1881_v27 = vmul.f32 0.25, %v1880_v23 }
0x4269   :  { %1891 = vrot.lane.b32.xlu2 %v1885_v24, %s4397_s19  ;;  %v1882_v31 = vadd.f32 0.5, %v1881_v27 }
0x426a   :  { %v1875_v26 = vpop.f32.mrf.mxu1 }
0x426b   :  { %v1883_v8 = vmax.f32 %v1882_v31, 0.0 }
0x426d   :  { %v1884_v38 = vmin.f32 %v1883_v8, 1.0 }
0x426f   :  { %v1889_v2 = vmul.f32 %v1887_v43, %v1884_v38 }
0x42c3   :  { %v1892_v39 = vpop.permute.xlu2 %1891 }
0x42c4   :  { %v1894_v41 = vmul.f32 %v1892_v39, %v1884_v38 }
0x42c6   :  { %1896 = vrot.lane.b32.xlu0 %v1894_v41, %s4398_s2 }
0x4338   :  { %v1897_v6 = vpop.permute.xlu0 %1896 }
0x4339   :  { %v1899_v46 = vadd.f32 %v1897_v6, %v1889_v2 }
0x433b   :  { %v1900_v47 = vmul.f32 0.25, %v1899_v46  ;;  %v1946_v22 = vrot.slane %v1899_v46, 2  ;;  %v1973_v46 = vld [vmem:[#allocation2] sm:$0x3] }
0x433d   :  { %v1901_v48 = vadd.f32 0.5, %v1900_v47 }
0x433f   :  { %v1902_v49 = vmax.f32 %v1901_v48, 0.0 }
0x4341   :  { %v1903_v50 = vmin.f32 %v1902_v49, 1.0 }
0x4343   :  { %1905 = vrot.lane.b32.xlu1 %v1903_v50, %s4397_s19 }
0x43b5   :  { %v1906_v54 = vpop.permute.xlu1 %1905 }
0x43b6   :  { %v4825_v32 = vmul.f32 %v1906_v54, %v1884_v38 }
0x43b8   :  { %v1915_v33 = vpack.c.bf16 %v4825_v32, %v4825_v32 }
0x43ba   :  { %v1917_v56 = vrot.slane %v1915_v33, 2 }
0x43bc   :  { %1918 = vrot.lane.b32.xlu2 %v1917_v56, %s4398_s2 }
0x4416   :  { %v1919_v57 = vpop.permute.xlu2 %1918 }
0x4417   :  { %4190 = vmatmul.msk.bf16.vlgmr.msra.gmra.mxu2 %vm89_vm0, %v1919_v57 }
0x449a   :  { %v1932_v58 = vpop.f32.mrf.mxu2 }
0x449b   :  { %v1937_v60 = vrot.slane %v1932_v58, 6 }
0x449d   :  { %v1939_v4 = vadd.f32 %v1937_v60, %v1914_v0 }
0x449f   :  { %v1944_v5 = vmax.f32 %v1939_v4, 0.0  ;;  %v1940_v11 = vmul.f32 0.25, %v1939_v4 }
0x44a1   :  { %1950 = vrot.lane.b32.xlu0 %v1944_v5, %s4397_s19  ;;  %v1941_v14 = vadd.f32 0.5, %v1940_v11 }
0x44a2   :  { %v1934_v7 = vpop.f32.mrf.mxu2 }
0x44a3   :  { %v1942_v15 = vmax.f32 %v1941_v14, 0.0 }
0x44a5   :  { %v1943_v19 = vmin.f32 %v1942_v15, 1.0 }
0x44a7   :  { %v1948_v23 = vmul.f32 %v1946_v22, %v1943_v19 }
0x4513   :  { %v1951_v20 = vpop.permute.xlu0 %1950 }
0x4514   :  { %v1953_v21 = vmul.f32 %v1951_v20, %v1943_v19 }
0x4516   :  { %1955 = vrot.lane.b32.xlu1 %v1953_v21, %s4398_s2 }
0x4588   :  { %v1956_v24 = vpop.permute.xlu1 %1955 }
0x4589   :  { %v1958_v26 = vadd.f32 %v1956_v24, %v1948_v23 }
0x458b   :  { %v1959_v27 = vmul.f32 0.25, %v1958_v26 }
0x458d   :  { %v1960_v31 = vadd.f32 0.5, %v1959_v27  ;;  %v4218_v27 = vld [vmem:[%s5553_s3 + $0x30] sm:$0xf] }
0x458f   :  { %v1961_v8 = vmax.f32 %v1960_v31, 0.0  ;;  %v4301_v31 = vld [vmem:[%s5553_s3 + $0x34] sm:$0xf0] }
0x4591   :  { %v1962_v38 = vmin.f32 %v1961_v8, 1.0  ;;  %v4300_v8 = vld [vmem:[%s5553_s3 + $0x34] sm:$0xf] }
0x4593   :  { %1964 = vrot.lane.b32.xlu2 %v1962_v38, %s4397_s19  ;;  %v4219_v38 = vor.u32 %v4301_v31, %v4218_v27 }
0x4595   :  { %2100 = vmatpush.bf16.msra.mxu0 %v4219_v38 }
0x45ed   :  { %v1965_v39 = vpop.permute.xlu2 %1964 }
0x45ee   :  { %v4834_v41 = vmul.f32 %v1965_v39, %v1943_v19  ;;  %v4220_v39 = vld [vmem:[%s5553_s3 + $0x38] sm:$0xf0] }
0x45f0   :  { %v1974_v43 = vpack.c.bf16 %v4834_v41, %v4834_v41 }
0x45f2   :  { %v1976_v2 = vrot.slane %v1974_v43, 1  ;;  %v4299_v43 = vld [vmem:[%s5553_s3 + $0x24] sm:$0xf0] }
0x45f4   :  { %1977 = vrot.lane.b32.xlu0 %v1976_v2, %s4398_s2  ;;  %v4223_v2 = vor.u32 %v4300_v8, %v4220_v39 }
0x45f6   :  { %2119 = vmatpush.bf16.msra.mxu1 %v4223_v2 }
0x4666   :  { %v1978_v6 = vpop.permute.xlu0 %1977 }
0x4667   :  { %4191 = vmatmul.msk.bf16.vlgmr.msra.gmra.mxu3 %vm89_vm0, %v1978_v6  ;;  %v4298_v6 = vld [vmem:[%s5553_s3 + $0x24] sm:$0xf] }
0x46ea   :  { %v1991_v47 = vpop.f32.mrf.mxu3 }
0x46eb   :  { %v1995_v48 = vadd.f32 %v1991_v47, %v1973_v46  ;;  %v4212_v46 = vld [vmem:[%s5553_s3 + $0x28] sm:$0xf0] }
0x46ed   :  { %v2000_v49 = vmax.f32 %v1995_v48, 0.0  ;;  %v1996_v54 = vmul.f32 0.25, %v1995_v48  ;;  %v4215_v48 = vor.u32 %v4298_v6, %v4212_v46 }
0x46ef   :  { %2006 = vrot.lane.b32.xlu1 %v2000_v49, %s4397_s19  ;;  %v1997_v33 = vadd.f32 0.5, %v1996_v54  ;;  %2120 = vmatpush.bf16.msra.mxu1 %v4215_v48  ;;  %v4202_v49 = vld [vmem:[%s5553_s3 + $0x10] sm:$0xf]  ;;  %v4296_v54 = vld [vmem:[%s5553_s3 + $0x14] sm:$0xf] }
0x46f1   :  { %v1998_v56 = vmax.f32 %v1997_v33, 0.0 }
0x46f2   :  { %v1993_v50 = vpop.f32.mrf.mxu3 }
0x46f3   :  { %v1999_v57 = vmin.f32 %v1998_v56, 1.0  ;;  %v4297_v50 = vld [vmem:[%s5553_s3 + $0x14] sm:$0xf0]  ;;  %v4204_v56 = vld [vmem:[%s5553_s3 + $0x18] sm:$0xf0] }
0x46f4   :  { %v4203_v33 = vor.u32 %v4297_v50, %v4202_v49 }
0x46f7   :  { %202 = vrot.lane.b32.xlu1 %v4494_v35, %s4398_s2 }
0x46ff   :  { %381 = vrot.lane.b32.xlu1 %v4531_v52, %s4398_s2 }
0x4707   :  { %555 = vrot.lane.b32.xlu1 %v4574_v29, %s4398_s2 }
0x470f   :  { %1678 = vrot.lane.b32.xlu1 %v4789_v16, %s4397_s19 }
0x4717   :  { %1851 = vrot.lane.b32.xlu1 %v4816_v13, %s4397_s19 }
0x4761   :  { %v2007_v58 = vpop.permute.xlu1 %2006 }
0x4762   :  { %v2009_v60 = vmul.f32 %v2007_v58, %v1999_v57  ;;  %v4295_v58 = vld [vmem:[%s5553_s3 + $0x4] sm:$0xf0] }
0x4764   :  { %2011 = vrot.lane.b32.xlu2 %v2009_v60, %s4398_s2  ;;  %v4207_v60 = vor.u32 %v4296_v54, %v4204_v56 }
0x4766   :  { %2121 = vmatpush.bf16.msra.mxu1 %v4207_v60 }
0x4769   :  { %v203_v35 = vpop.permute.xlu1 %202 }
0x476a   :  { %206 = vst.msk [vmem:[#allocation3] sm:$0x3] %vm205_vm1, %v203_v35  ;;  %v4294_v35 = vld [vmem:[%s5553_s3 + $0x4] sm:$0xf] }
0x476c   :  { %261 = vrot.lane.b32.xlu2 %v4505_v59, %s4398_s2 }
0x4771   :  { %v382_v52 = vpop.permute.xlu1 %381 }
0x4772   :  { %385 = vst.msk [vmem:[#allocation3] sm:$0xc0] %vm384_vm2, %v382_v52  ;;  %v4196_v52 = vld [vmem:[%s5553_s3 + $0x8] sm:$0xf0] }
0x4774   :  { %438 = vrot.lane.b32.xlu2 %v4551_v28, %s4398_s2  ;;  %v2002_v28 = vrot.slane %v1958_v26, 2 }
0x4776   :  { %v2004_v13 = vmul.f32 %v2002_v28, %v1999_v57 }
0x4779   :  { %v556_v29 = vpop.permute.xlu1 %555 }
0x477a   :  { %558 = vst.msk [vmem:[#allocation3 + $0x8] sm:$0x30] %vm324_vm3, %v556_v29 }
0x477c   :  { %614 = vrot.lane.b32.xlu2 %v4585_v51, %s4398_s2 }
0x4781   :  { %v1679_v16 = vpop.permute.xlu1 %1678 }
0x4782   :  { %1681 = vst.msk [vmem:[#allocation3 + $0x8] sm:$0x30] %vm1214_vm4, %v1679_v16  ;;  %v4199_v16 = vor.u32 %v4294_v35, %v4196_v52 }
0x4784   :  { %1737 = vrot.lane.b32.xlu2 %v4798_v55, %s4397_s19  ;;  %2122 = vmatpush.bf16.msra.mxu1 %v4199_v16 }
0x4789   :  { %v1852_v59 = vpop.permute.xlu1 %1851 }
0x478a   :  { %1854 = vst.msk [vmem:[#allocation3] sm:$0xc0] %vm1154_vm5, %v1852_v59 }
0x478c   :  { %1910 = vrot.lane.b32.xlu2 %v4825_v32, %s4397_s19 }
0x47be   :  { %v2012_v0 = vpop.permute.xlu2 %2011 }
0x47bf   :  { %v4867_v4 = vadd.f32 %v2012_v0, %v2004_v13 }
0x47c1   :  { %v2015_v51 = vmul.f32 0.25, %v4867_v4 }
0x47c3   :  { %v2016_v5 = vadd.f32 0.5, %v2015_v51 }
0x47c5   :  { %v2017_v7 = vmax.f32 %v2016_v5, 0.0 }
0x47c6   :  { %v262_v11 = vpop.permute.xlu2 %261 }
0x47c7   :  { %265 = vst.msk [vmem:[#allocation3] sm:$0xc] %vm264_vm6, %v262_v11  ;;  %v2018_v55 = vmin.f32 %v2017_v7, 1.0  ;;  %v2043_v11 = vld [vmem:[%s5554_s4] sm:$0x3] }
0x47c9   :  { %2020 = vrot.lane.b32.xlu0 %v2018_v55, %s4397_s19  ;;  %v4976_v55 = vperm.slane %v2043_v11, 0 }
0x47ce   :  { %v439_v14 = vpop.permute.xlu2 %438 }
0x47cf   :  { %441 = vst.msk [vmem:[#allocation3 + $0x8] sm:$0x3] %vm205_vm1, %v439_v14  ;;  %v4978_v14 = vperm.slane %v2043_v11, 1 }
0x47d1   :  { %321 = vrot.lane.b32.xlu0 %v4516_v25, %s4398_s2 }
0x47d6   :  { %v615_v32 = vpop.permute.xlu2 %614 }
0x47d7   :  { %617 = vst.msk [vmem:[#allocation3 + $0x8] sm:$0xc0] %vm384_vm2, %v615_v32 }
0x47d9   :  { %496 = vrot.lane.b32.xlu0 %v4563_v62, %s4398_s2  ;;  %v4890_v62 = vld [vmem:[%s5555_s5 + $0x28] sm:$0xff] }
0x47da   :  { %2173 = vmatpush.bf16.msrb.mxu2 %v4890_v62  ;;  %2227 = vmatpush.bf16.msrb.mxu3 %v4890_v62 }
0x47db   :  { %2466 = vmatpush.bf16.msrb.mxu1 %v4890_v62 }
0x47de   :  { %v1738_v15 = vpop.permute.xlu2 %1737 }
0x47e1   :  { %1619 = vrot.lane.b32.xlu0 %v4780_v42, %s4397_s19  ;;  %v4897_v42 = vld [vmem:[%s5555_s5 + $0x20] sm:$0xff] }
0x47e2   :  { %2174 = vmatpush.bf16.msrb.mxu2 %v4897_v42  ;;  %2228 = vmatpush.bf16.msrb.mxu3 %v4897_v42 }
0x47e3   :  { %2467 = vmatpush.bf16.msrb.mxu1 %v4897_v42 }
0x47e6   :  { %v1911_v22 = vpop.permute.xlu2 %1910  ;;  %2288 = vmatpush.bf16.msra.mxu2 %v4890_v62  ;;  %2349 = vmatpush.bf16.msra.mxu3 %v4890_v62 }
0x47e9   :  { %1793 = vrot.lane.b32.xlu0 %v4807_v36, %s4397_s19 }
0x47ea   :  { %2289 = vmatpush.bf16.msra.mxu2 %v4897_v42  ;;  %2350 = vmatpush.bf16.msra.mxu3 %v4897_v42 }
0x47f1   :  { %1969 = vrot.lane.b32.xlu0 %v4834_v41, %s4397_s19  ;;  %v4210_v41 = vld [vmem:[%s5553_s3 + $0x20] sm:$0xf] }
0x47f2   :  { %v4211_v47 = vor.u32 %v4299_v43, %v4210_v41 }
0x47f4   :  { %2101 = vmatpush.bf16.msra.mxu0 %v4211_v47 }
0x47f8   :  { %2102 = vmatpush.bf16.msra.mxu0 %v4203_v33 }
0x483b   :  { %v2021_v19 = vpop.permute.xlu0 %2020 }
0x483c   :  { %v2023_v20 = vmul.f32 %v2021_v19, %v1999_v57  ;;  %v4194_v57 = vld [vmem:[%s5553_s3] sm:$0xf] }
0x483d   :  { %v4195_v29 = vor.u32 %v4295_v58, %v4194_v57 }
0x483e   :  { %v2148_v21 = vpack.c.bf16 %v2023_v20, %v2023_v20  ;;  %2025 = vrot.lane.b32.xlu1 %v2023_v20, %s4397_s19 }
0x483f   :  { %2103 = vmatpush.bf16.msra.mxu0 %v4195_v29 }
0x4840   :  { %2150 = vrot.lane.b32.xlu2 %v2148_v21, %s4398_s2 }
0x4843   :  { %v322_v25 = vpop.permute.xlu0 %321  ;;  %2410 = vmatpush.bf16.msrb.mxu0 %v4890_v62 }
0x4844   :  { %325 = vst.msk [vmem:[#allocation3] sm:$0x30] %vm324_vm3, %v322_v25 }
0x4845   :  { %1913 = vst.msk [vmem:[#allocation3] sm:$0x30] %vm1214_vm4, %v1911_v22 }
0x4847   :  { %2411 = vmatpush.bf16.msrb.mxu0 %v4897_v42 }
0x484b   :  { %v497_v36 = vpop.permute.xlu0 %496 }
0x484c   :  { %499 = vst.msk [vmem:[#allocation3 + $0x8] sm:$0xc] %vm264_vm6, %v497_v36 }
0x484d   :  { %1740 = vst.msk [vmem:[#allocation3 + $0x8] sm:$0xc] %vm1274_vm7, %v1738_v15 }
0x4853   :  { %v1620_v23 = vpop.permute.xlu0 %1619 }
0x4854   :  { %1622 = vst.msk [vmem:[#allocation3 + $0x8] sm:$0xc0] %vm1154_vm5, %v1620_v23 }
0x485b   :  { %v1794_v24 = vpop.permute.xlu0 %1793 }
0x485c   :  { %1796 = vst.msk [vmem:[#allocation3 + $0x8] sm:$0x3] %vm1331_vm8, %v1794_v24 }
0x4863   :  { %v1970_v26 = vpop.permute.xlu0 %1969  ;;  %v2030_v0 = vld [vmem:[#allocation3 + $0x8] sm:$0xff] }
0x4864   :  { %1972 = vst.msk [vmem:[#allocation3] sm:$0xc] %vm1274_vm7, %v1970_v26 }
0x489a   :  { %v2151_v59 = vpop.permute.xlu2 %2150 }
0x489b   :  { %4240 = vmatmul.msk.bf16.vlgmr.msrb.gmra.mxu2 %vm89_vm0, %v2151_v59 }
0x489c   :  { %2526 = vmatpush.bf16.msrb.mxu2 %v4890_v62 }
0x48a0   :  { %2527 = vmatpush.bf16.msrb.mxu2 %v4897_v42 }
0x48b0   :  { %v2026_v28 = vpop.permute.xlu1 %2025 }
0x48b1   :  { %2028 = vst.msk [vmem:[#allocation3] sm:$0x3] %vm1331_vm8, %v2026_v28 }
0x48b8   :  { %v2029_v13 = vld [vmem:[#allocation3] sm:$0xff] }
0x48b9   :  { %v2033_v51 = vpack.c.bf16 %v2030_v0, %v2029_v13 }
0x48bb   :  { %4224 = vmatmul.msk.bf16.vlgmr.msra.gmra.mxu0 %vm2089_vm9, %v2033_v51  ;;  %4226 = vmatmul.msk.bf16.vlgmr.msra.gmra.mxu1 %vm2089_vm9, %v2033_v51 }
0x48bc   :  { %2646 = vmatpush.bf16.msra.mxu0 %v4890_v62  ;;  %2702 = vmatpush.bf16.msra.mxu1 %v4890_v62 }
0x48c0   :  { %2647 = vmatpush.bf16.msra.mxu0 %v4897_v42  ;;  %2703 = vmatpush.bf16.msra.mxu1 %v4897_v42 }
0x491e   :  { %v2176_v5 = vpop.f32.mrf.mxu2 }
0x4926   :  { %v2178_v7 = vpop.f32.mrf.mxu2 }
0x4938   :  { %v2105_v32 = vpop.f32.mrf.mxu0  ;;  %v2124_v15 = vpop.f32.mrf.mxu1 }
0x4939   :  { %v2106_v19 = vadd.f32 %v2105_v32, %v4976_v55  ;;  %v2125_v20 = vadd.f32 %v2124_v15, %v4978_v14 }
0x493b   :  { %2134 = vst [vmem:[#allocation2 + $0x30] sm:$0xff] %v2106_v19 }
0x493c   :  { %2135 = vst [vmem:[#allocation2] sm:$0xff] %v2125_v20 }
0x4940   :  { %v2107_v21 = vpop.f32.mrf.mxu0  ;;  %v2126_v25 = vpop.f32.mrf.mxu1 }
0x4941   :  { %v2108_v22 = vadd.f32 %v2107_v21, %v4976_v55  ;;  %v2127_v36 = vadd.f32 %v2126_v25, %v4978_v14 }
0x4942   :  { %v2147_v23 = vld [vmem:[#allocation2 + $0x30] sm:$0x3]  ;;  %v2213_v35 = vld [vmem:[#allocation2 + $0x30] sm:$0xc] }
0x4943   :  { %2136 = vst [vmem:[#allocation2 + $0x18] sm:$0xff] %v2108_v22  ;;  %v2180_v24 = vadd.f32 %v2176_v5, %v2147_v23 }
0x4944   :  { %2137 = vst [vmem:[#allocation2 + $0x10] sm:$0xff] %v2127_v36 }
0x4945   :  { %v2185_v26 = vmax.f32 %v2180_v24, 0.0  ;;  %v2181_v27 = vmul.f32 0.25, %v2180_v24 }
0x4947   :  { %2188 = vrot.lane.b32.xlu0 %v2185_v26, %s4397_s19  ;;  %v2182_v31 = vadd.f32 0.5, %v2181_v27 }
0x4949   :  { %v2183_v8 = vmax.f32 %v2182_v31, 0.0 }
0x494b   :  { %v2184_v38 = vmin.f32 %v2183_v8, 1.0 }
0x494d   :  { %v2186_v43 = vmul.f32 %v2184_v38, %v4867_v4 }
0x49b9   :  { %v2189_v39 = vpop.permute.xlu0 %2188 }
0x49ba   :  { %v2191_v41 = vmul.f32 %v2189_v39, %v2184_v38  ;;  %v2273_v39 = vld [vmem:[#allocation2 + $0x30] sm:$0x30] }
0x49bc   :  { %2193 = vrot.lane.b32.xlu1 %v2191_v41, %s4398_s2 }
0x4a2e   :  { %v2194_v2 = vpop.permute.xlu1 %2193 }
0x4a2f   :  { %v2196_v6 = vadd.f32 %v2194_v2, %v2186_v43 }
0x4a31   :  { %v2197_v46 = vmul.f32 0.25, %v2196_v6  ;;  %v2244_v7 = vrot.slane %v2196_v6, 6 }
0x4a33   :  { %v2198_v47 = vadd.f32 0.5, %v2197_v46 }
0x4a35   :  { %v2199_v48 = vmax.f32 %v2198_v47, 0.0 }
0x4a37   :  { %v2200_v49 = vmin.f32 %v2199_v48, 1.0 }
0x4a39   :  { %2202 = vrot.lane.b32.xlu2 %v2200_v49, %s4397_s19 }
0x4a93   :  { %v2203_v50 = vpop.permute.xlu2 %2202 }
0x4a94   :  { %v2205_v54 = vmul.f32 %v2203_v50, %v2184_v38 }
0x4a96   :  { %v4988_v33 = vpack.c.bf16 %v2205_v54, %v2205_v54 }
0x4a98   :  { %v2214_v56 = vunpack.c.l.b16 %v4988_v33 }
0x4a9a   :  { %v2215_v57 = vpack.c.b16 %v2214_v56, %v2214_v56 }
0x4a9c   :  { %2216 = vrot.lane.b32.xlu0 %v2215_v57, %s4398_s2 }
0x4b0e   :  { %v2217_v58 = vpop.permute.xlu0 %2216 }
0x4b0f   :  { %4241 = vmatmul.msk.bf16.vlgmr.msrb.gmra.mxu3 %vm89_vm0, %v2217_v58 }
0x4b10   :  { %2586 = vmatpush.bf16.msrb.mxu3 %v4890_v62 }
0x4b14   :  { %2587 = vmatpush.bf16.msrb.mxu3 %v4897_v42 }
0x4b92   :  { %v2230_v4 = vpop.f32.mrf.mxu3 }
0x4b93   :  { %v2235_v60 = vrot.slane %v2230_v4, 6 }
0x4b95   :  { %v2237_v52 = vadd.f32 %v2235_v60, %v2213_v35 }
0x4b97   :  { %v2242_v29 = vmax.f32 %v2237_v52, 0.0  ;;  %v2238_v59 = vmul.f32 0.25, %v2237_v52 }
0x4b99   :  { %2248 = vrot.lane.b32.xlu1 %v2242_v29, %s4397_s19  ;;  %v2239_v28 = vadd.f32 0.5, %v2238_v59 }
0x4b9a   :  { %v2232_v16 = vpop.f32.mrf.mxu3 }
0x4b9b   :  { %v2240_v13 = vmax.f32 %v2239_v28, 0.0 }
0x4b9d   :  { %v2241_v0 = vmin.f32 %v2240_v13, 1.0 }
0x4b9f   :  { %v2246_v11 = vmul.f32 %v2244_v7, %v2241_v0 }
0x4c0b   :  { %v2249_v51 = vpop.permute.xlu1 %2248 }
0x4c0c   :  { %v2251_v5 = vmul.f32 %v2249_v51, %v2241_v0 }
0x4c0e   :  { %2253 = vrot.lane.b32.xlu2 %v2251_v5, %s4398_s2 }
0x4c68   :  { %v2254_v32 = vpop.permute.xlu2 %2253 }
0x4c69   :  { %v2256_v15 = vadd.f32 %v2254_v32, %v2246_v11 }
0x4c6b   :  { %v2257_v19 = vmul.f32 0.25, %v2256_v15  ;;  %v2305_v54 = vrot.slane %v2256_v15, 6  ;;  %v2334_v15 = vld [vmem:[#allocation2 + $0x30] sm:$0xc0] }
0x4c6d   :  { %v2258_v20 = vadd.f32 0.5, %v2257_v19 }
0x4c6f   :  { %v2259_v21 = vmax.f32 %v2258_v20, 0.0 }
0x4c71   :  { %v2260_v25 = vmin.f32 %v2259_v21, 1.0 }
0x4c73   :  { %2262 = vrot.lane.b32.xlu0 %v2260_v25, %s4397_s19 }
0x4ce5   :  { %v2263_v22 = vpop.permute.xlu0 %2262 }
0x4ce6   :  { %v2265_v36 = vmul.f32 %v2263_v22, %v2241_v0 }
0x4ce8   :  { %v4998_v23 = vpack.c.bf16 %v2265_v36, %v2265_v36 }
0x4cea   :  { %v2274_v24 = vunpack.c.l.b16 %v4998_v23 }
0x4cec   :  { %v2275_v26 = vpack.c.b16 %v2274_v24, %v2274_v24 }
0x4cee   :  { %v2276_v27 = vrot.slane %v2275_v26, 1 }
0x4cf0   :  { %2277 = vrot.lane.b32.xlu1 %v2276_v27, %s4398_s2 }
0x4d62   :  { %v2278_v31 = vpop.permute.xlu1 %2277 }
0x4d63   :  { %4242 = vmatmul.msk.bf16.vlgmr.msra.gmra.mxu2 %vm89_vm0, %v2278_v31 }
0x4d64   :  { %2762 = vmatpush.bf16.msra.mxu2 %v4890_v62 }
0x4d68   :  { %2763 = vmatpush.bf16.msra.mxu2 %v4897_v42 }
0x4de6   :  { %v2291_v8 = vpop.f32.mrf.mxu2 }
0x4de7   :  { %v2296_v38 = vrot.slane %v2291_v8, 4 }
0x4de9   :  { %v2298_v41 = vadd.f32 %v2296_v38, %v2273_v39 }
0x4deb   :  { %v2303_v43 = vmax.f32 %v2298_v41, 0.0  ;;  %v2299_v6 = vmul.f32 0.25, %v2298_v41 }
0x4ded   :  { %2309 = vrot.lane.b32.xlu2 %v2303_v43, %s4397_s19  ;;  %v2300_v46 = vadd.f32 0.5, %v2299_v6 }
0x4dee   :  { %v2293_v2 = vpop.f32.mrf.mxu2 }
0x4def   :  { %v2301_v47 = vmax.f32 %v2300_v46, 0.0 }
0x4df1   :  { %v2302_v48 = vmin.f32 %v2301_v47, 1.0 }
0x4df3   :  { %v2307_v56 = vmul.f32 %v2305_v54, %v2302_v48 }
0x4e47   :  { %v2310_v49 = vpop.permute.xlu2 %2309 }
0x4e48   :  { %v2312_v50 = vmul.f32 %v2310_v49, %v2302_v48 }
0x4e4a   :  { %2314 = vrot.lane.b32.xlu0 %v2312_v50, %s4398_s2 }
0x4ebc   :  { %v2315_v57 = vpop.permute.xlu0 %2314 }
0x4ebd   :  { %v2317_v58 = vadd.f32 %v2315_v57, %v2307_v56 }
0x4ebf   :  { %v2318_v4 = vmul.f32 0.25, %v2317_v58 }
0x4ec1   :  { %v2319_v60 = vadd.f32 0.5, %v2318_v4 }
0x4ec3   :  { %v2320_v35 = vmax.f32 %v2319_v60, 0.0 }
0x4ec5   :  { %v2321_v52 = vmin.f32 %v2320_v35, 1.0 }
0x4ec7   :  { %2323 = vrot.lane.b32.xlu1 %v2321_v52, %s4397_s19 }
0x4f39   :  { %v2324_v29 = vpop.permute.xlu1 %2323 }
0x4f3a   :  { %v2326_v16 = vmul.f32 %v2324_v29, %v2302_v48 }
0x4f3c   :  { %v5008_v59 = vpack.c.bf16 %v2326_v16, %v2326_v16 }
0x4f3e   :  { %v2335_v28 = vunpack.c.l.b16 %v5008_v59 }
0x4f40   :  { %v2336_v13 = vpack.c.b16 %v2335_v28, %v2335_v28 }
0x4f42   :  { %v2337_v0 = vrot.slane %v2336_v13, 2  ;;  %v2395_v13 = vld [vmem:[#allocation2 + $0x18] sm:$0x3] }
0x4f44   :  { %2338 = vrot.lane.b32.xlu2 %v2337_v0, %s4398_s2 }
0x4f4c   :  { %787 = vrot.lane.b32.xlu2 %v4612_v9, %s4398_s2 }
0x4f54   :  { %960 = vrot.lane.b32.xlu2 %v4639_v34, %s4398_s2 }
0x4f9e   :  { %v2339_v51 = vpop.permute.xlu2 %2338 }
0x4f9f   :  { %4243 = vmatmul.msk.bf16.vlgmr.msra.gmra.mxu3 %vm89_vm0, %v2339_v51 }
0x4fa0   :  { %2822 = vmatpush.bf16.msra.mxu3 %v4890_v62 }
0x4fa4   :  { %2823 = vmatpush.bf16.msra.mxu3 %v4897_v42 }
0x4fa6   :  { %v788_v5 = vpop.permute.xlu2 %787 }
0x4fa7   :  { %790 = vst.msk [vmem:[#allocation3 + $0x10] sm:$0x30] %vm324_vm3, %v788_v5 }
0x4fae   :  { %v961_v7 = vpop.permute.xlu2 %960 }
0x4faf   :  { %963 = vst.msk [vmem:[#allocation3 + $0x18] sm:$0xc] %vm264_vm6, %v961_v7 }
0x5022   :  { %v2352_v11 = vpop.f32.mrf.mxu3 }
0x5023   :  { %v2357_v32 = vrot.slane %v2352_v11, 2 }
0x5025   :  { %v2359_v9 = vadd.f32 %v2357_v32, %v2334_v15 }
0x5027   :  { %v2364_v19 = vmax.f32 %v2359_v9, 0.0  ;;  %v2360_v20 = vmul.f32 0.25, %v2359_v9 }
0x5029   :  { %2370 = vrot.lane.b32.xlu0 %v2364_v19, %s4397_s19  ;;  %v2361_v21 = vadd.f32 0.5, %v2360_v20 }
0x502a   :  { %v2354_v34 = vpop.f32.mrf.mxu3 }
0x502b   :  { %v2362_v25 = vmax.f32 %v2361_v21, 0.0 }
0x502d   :  { %v2363_v22 = vmin.f32 %v2362_v25, 1.0 }
0x5031   :  { %670 = vrot.lane.b32.xlu0 %v4594_v18, %s4398_s2 }
0x5039   :  { %846 = vrot.lane.b32.xlu0 %v4621_v10, %s4398_s2 }
0x5041   :  { %1019 = vrot.lane.b32.xlu0 %v4648_v63, %s4398_s2 }
0x5049   :  { %1211 = vrot.lane.b32.xlu0 %v4705_v40, %s4397_s19 }
0x5051   :  { %1387 = vrot.lane.b32.xlu0 %v4738_v17, %s4397_s19 }
0x5059   :  { %1561 = vrot.lane.b32.xlu0 %v4771_v61, %s4397_s19 }
0x509b   :  { %v2371_v18 = vpop.permute.xlu0 %2370 }
0x509c   :  { %v2373_v36 = vmul.f32 %v2371_v18, %v2363_v22 }
0x509e   :  { %2375 = vrot.lane.b32.xlu1 %v2373_v36, %s4398_s2 }
0x50a3   :  { %v671_v10 = vpop.permute.xlu0 %670 }
0x50a4   :  { %673 = vst.msk [vmem:[#allocation3 + $0x10] sm:$0x3] %vm205_vm1, %v671_v10 }
0x50a6   :  { %728 = vrot.lane.b32.xlu1 %v4603_v44, %s4398_s2 }
0x50ab   :  { %v847_v63 = vpop.permute.xlu0 %846 }
0x50ac   :  { %849 = vst.msk [vmem:[#allocation3 + $0x10] sm:$0xc0] %vm384_vm2, %v847_v63 }
0x50ae   :  { %902 = vrot.lane.b32.xlu1 %v4630_v3, %s4398_s2  ;;  %v2366_v3 = vrot.slane %v2317_v58, 6 }
0x50b0   :  { %v2368_v24 = vmul.f32 %v2366_v3, %v2363_v22 }
0x50b3   :  { %v1020_v40 = vpop.permute.xlu0 %1019 }
0x50b4   :  { %1022 = vst.msk [vmem:[#allocation3 + $0x18] sm:$0x30] %vm324_vm3, %v1020_v40 }
0x50b6   :  { %1078 = vrot.lane.b32.xlu1 %v4683_v37, %s4398_s2 }
0x50bb   :  { %v1212_v17 = vpop.permute.xlu0 %1211 }
0x50bc   :  { %1215 = vst.msk [vmem:[#allocation3 + $0x18] sm:$0x30] %vm1214_vm4, %v1212_v17 }
0x50be   :  { %1271 = vrot.lane.b32.xlu1 %v4716_v12, %s4397_s19 }
0x50c3   :  { %v1388_v61 = vpop.permute.xlu0 %1387 }
0x50c4   :  { %1390 = vst.msk [vmem:[#allocation3 + $0x10] sm:$0xc0] %vm1154_vm5, %v1388_v61 }
0x50c6   :  { %1446 = vrot.lane.b32.xlu1 %v4749_v53, %s4397_s19 }
0x50cb   :  { %v1562_v44 = vpop.permute.xlu0 %1561 }
0x50cc   :  { %1564 = vst.msk [vmem:[#allocation3 + $0x10] sm:$0x3] %vm1331_vm8, %v1562_v44 }
0x5110   :  { %v2376_v26 = vpop.permute.xlu1 %2375 }
0x5111   :  { %v5051_v27 = vadd.f32 %v2376_v26, %v2368_v24  ;;  %v2452_v26 = vld [vmem:[#allocation2 + $0x18] sm:$0xc] }
0x5113   :  { %v2379_v37 = vmul.f32 0.25, %v5051_v27 }
0x5115   :  { %v2380_v31 = vadd.f32 0.5, %v2379_v37 }
0x5117   :  { %v2381_v8 = vmax.f32 %v2380_v31, 0.0 }
0x5118   :  { %v729_v38 = vpop.permute.xlu1 %728 }
0x5119   :  { %v2382_v12 = vmin.f32 %v2381_v8, 1.0  ;;  %731 = vst.msk [vmem:[#allocation3 + $0x10] sm:$0xc] %vm264_vm6, %v729_v38 }
0x511b   :  { %2384 = vrot.lane.b32.xlu2 %v2382_v12, %s4397_s19 }
0x5120   :  { %v903_v39 = vpop.permute.xlu1 %902 }
0x5121   :  { %905 = vst.msk [vmem:[#allocation3 + $0x18] sm:$0x3] %vm205_vm1, %v903_v39 }
0x5123   :  { %1151 = vrot.lane.b32.xlu2 %v4694_v1, %s4397_s19 }
0x5128   :  { %v1079_v53 = vpop.permute.xlu1 %1078 }
0x5129   :  { %1081 = vst.msk [vmem:[#allocation3 + $0x18] sm:$0xc0] %vm384_vm2, %v1079_v53  ;;  %vm3356_vm2 = vcmask 516352  }
0x512b   :  { %1328 = vrot.lane.b32.xlu2 %v4727_v45, %s4397_s19 }
0x5130   :  { %v1272_v41 = vpop.permute.xlu1 %1271 }
0x5131   :  { %1275 = vst.msk [vmem:[#allocation3 + $0x18] sm:$0xc] %vm1274_vm7, %v1272_v41 }
0x5133   :  { %1505 = vrot.lane.b32.xlu2 %v4760_v30, %s4397_s19 }
0x5138   :  { %v1447_v43 = vpop.permute.xlu1 %1446 }
0x5139   :  { %1449 = vst.msk [vmem:[#allocation3 + $0x10] sm:$0x30] %vm1214_vm4, %v1447_v43 }
0x5175   :  { %v2385_v2 = vpop.permute.xlu2 %2384 }
0x5176   :  { %v2387_v6 = vmul.f32 %v2385_v2, %v2363_v22 }
0x5178   :  { %v5066_v46 = vpack.c.bf16 %v2387_v6, %v2387_v6 }
0x517a   :  { %v2396_v1 = vunpack.c.l.b16 %v5066_v46 }
0x517c   :  { %v2397_v47 = vpack.c.b16 %v2396_v1, %v2396_v1 }
0x517d   :  { %v1152_v48 = vpop.permute.xlu2 %1151 }
0x517e   :  { %v2398_v49 = vrot.slane %v2397_v47, 3  ;;  %1155 = vst.msk [vmem:[#allocation3 + $0x18] sm:$0xc0] %vm1154_vm5, %v1152_v48 }
0x5180   :  { %2399 = vrot.lane.b32.xlu1 %v2398_v49, %s4398_s2 }
0x5185   :  { %v1329_v45 = vpop.permute.xlu2 %1328 }
0x5186   :  { %1332 = vst.msk [vmem:[#allocation3 + $0x18] sm:$0x3] %vm1331_vm8, %v1329_v45 }
0x518d   :  { %v1506_v30 = vpop.permute.xlu2 %1505  ;;  %v2032_v54 = vld [vmem:[#allocation3 + $0x18] sm:$0xff] }
0x518e   :  { %1508 = vst.msk [vmem:[#allocation3 + $0x10] sm:$0xc] %vm1274_vm7, %v1506_v30 }
0x5195   :  { %v2031_v50 = vld [vmem:[#allocation3 + $0x10] sm:$0xff] }
0x5196   :  { %v2034_v56 = vpack.c.bf16 %v2032_v54, %v2031_v50 }
0x5198   :  { %4225 = vmatmul.msk.bf16.gmra.mxu0 %vm2089_vm9, %v2034_v56  ;;  %4227 = vmatmul.msk.bf16.gmra.mxu1 %vm2089_vm9, %v2034_v56 }
0x51f2   :  { %v2400_v57 = vpop.permute.xlu1 %2399 }
0x51f3   :  { %4244 = vmatmul.msk.bf16.vlgmr.msrb.gmra.mxu0 %vm89_vm0, %v2400_v57 }
0x51f4   :  { %2882 = vmatpush.bf16.msrb.mxu0 %v4890_v62 }
0x51f8   :  { %2883 = vmatpush.bf16.msrb.mxu0 %v4897_v42 }
0x5215   :  { %v2110_v58 = vpop.f32.mrf.mxu0  ;;  %v2129_v4 = vpop.f32.mrf.mxu1 }
0x5216   :  { %v2111_v60 = vadd.f32 %v2110_v58, %v4976_v55  ;;  %v2130_v35 = vadd.f32 %v2129_v4, %v4978_v14 }
0x5218   :  { %2138 = vst [vmem:[#allocation2 + $0x8] sm:$0xff] %v2111_v60 }
0x5219   :  { %2139 = vst [vmem:[#allocation2 + $0x20] sm:$0xff] %v2130_v35 }
0x521d   :  { %v2112_v52 = vpop.f32.mrf.mxu0  ;;  %v2131_v29 = vpop.f32.mrf.mxu1 }
0x521e   :  { %v2113_v16 = vadd.f32 %v2112_v52, %v4976_v55  ;;  %v2132_v28 = vadd.f32 %v2131_v29, %v4978_v14  ;;  %v2424_v55 = vrot.slane %v5051_v27, 6  ;;  %v2511_v52 = vld [vmem:[#allocation2 + $0x18] sm:$0x30] }
0x5220   :  { %2140 = vst [vmem:[#allocation2 + $0x28] sm:$0xff] %v2113_v16 }
0x5221   :  { %2141 = vst [vmem:[#allocation2 + $0x38] sm:$0xff] %v2132_v28 }
0x5270   :  { %v2413_v0 = vpop.f32.mrf.mxu0 }
0x5271   :  { %v2417_v51 = vadd.f32 %v2413_v0, %v2395_v13 }
0x5273   :  { %v2422_v5 = vmax.f32 %v2417_v51, 0.0  ;;  %v2418_v11 = vmul.f32 0.25, %v2417_v51 }
0x5275   :  { %2428 = vrot.lane.b32.xlu2 %v2422_v5, %s4397_s19  ;;  %v2419_v32 = vadd.f32 0.5, %v2418_v11 }
0x5277   :  { %v2420_v15 = vmax.f32 %v2419_v32, 0.0 }
0x5278   :  { %v2415_v7 = vpop.f32.mrf.mxu0 }
0x5279   :  { %v2421_v9 = vmin.f32 %v2420_v15, 1.0 }
0x527b   :  { %v2426_v14 = vmul.f32 %v2424_v55, %v2421_v9 }
0x52cf   :  { %v2429_v19 = vpop.permute.xlu2 %2428 }
0x52d0   :  { %v2431_v34 = vmul.f32 %v2429_v19, %v2421_v9 }
0x52d2   :  { %2433 = vrot.lane.b32.xlu0 %v2431_v34, %s4398_s2 }
0x5344   :  { %v2434_v20 = vpop.permute.xlu0 %2433 }
0x5345   :  { %v2436_v21 = vadd.f32 %v2434_v20, %v2426_v14 }
0x5347   :  { %v2437_v25 = vmul.f32 0.25, %v2436_v21  ;;  %v2483_v43 = vrot.slane %v2436_v21, 6 }
0x5349   :  { %v2438_v22 = vadd.f32 0.5, %v2437_v25 }
0x534b   :  { %v2439_v18 = vmax.f32 %v2438_v22, 0.0 }
0x534d   :  { %v2440_v36 = vmin.f32 %v2439_v18, 1.0 }
0x534f   :  { %2442 = vrot.lane.b32.xlu1 %v2440_v36, %s4397_s19 }
0x53c1   :  { %v2443_v10 = vpop.permute.xlu1 %2442 }
0x53c2   :  { %v2445_v63 = vmul.f32 %v2443_v10, %v2421_v9 }
0x53c4   :  { %v5086_v40 = vpack.c.bf16 %v2445_v63, %v2445_v63 }
0x53c6   :  { %v2453_v17 = vunpack.c.l.b16 %v5086_v40 }
0x53c8   :  { %v2454_v61 = vpack.c.b16 %v2453_v17, %v2453_v17 }
0x53ca   :  { %2455 = vrot.lane.b32.xlu2 %v2454_v61, %s4398_s2 }
0x5424   :  { %v2456_v44 = vpop.permute.xlu2 %2455 }
0x5425   :  { %4245 = vmatmul.msk.bf16.vlgmr.msrb.gmra.mxu1 %vm89_vm0, %v2456_v44  ;;  %v2571_v44 = vld [vmem:[#allocation2 + $0x18] sm:$0xc0] }
0x5426   :  { %2938 = vmatpush.bf16.msrb.mxu1 %v4890_v62 }
0x542a   :  { %2939 = vmatpush.bf16.msrb.mxu1 %v4897_v42 }
0x54a2   :  { %v2469_v3 = vpop.f32.mrf.mxu1 }
0x54a3   :  { %v2474_v24 = vrot.slane %v2469_v3, 6 }
0x54a5   :  { %v2476_v27 = vadd.f32 %v2474_v24, %v2452_v26 }
0x54a7   :  { %v2481_v37 = vmax.f32 %v2476_v27, 0.0  ;;  %v2477_v8 = vmul.f32 0.25, %v2476_v27 }
0x54a9   :  { %2487 = vrot.lane.b32.xlu0 %v2481_v37, %s4397_s19  ;;  %v2478_v38 = vadd.f32 0.5, %v2477_v8 }
0x54aa   :  { %v2471_v31 = vpop.f32.mrf.mxu1 }
0x54ab   :  { %v2479_v12 = vmax.f32 %v2478_v38, 0.0 }
0x54ad   :  { %v2480_v39 = vmin.f32 %v2479_v12, 1.0 }
0x54af   :  { %v2485_v2 = vmul.f32 %v2483_v43, %v2480_v39 }
0x551b   :  { %v2488_v53 = vpop.permute.xlu0 %2487 }
0x551c   :  { %v2490_v41 = vmul.f32 %v2488_v53, %v2480_v39 }
0x551e   :  { %2492 = vrot.lane.b32.xlu1 %v2490_v41, %s4398_s2 }
0x5590   :  { %v2493_v6 = vpop.permute.xlu1 %2492 }
0x5591   :  { %v2495_v1 = vadd.f32 %v2493_v6, %v2485_v2 }
0x5593   :  { %v2496_v47 = vmul.f32 0.25, %v2495_v1  ;;  %v2543_v32 = vrot.slane %v2495_v1, 6 }
0x5595   :  { %v2497_v48 = vadd.f32 0.5, %v2496_v47 }
0x5597   :  { %v2498_v49 = vmax.f32 %v2497_v48, 0.0 }
0x5599   :  { %v2499_v45 = vmin.f32 %v2498_v49, 1.0 }
0x559b   :  { %2501 = vrot.lane.b32.xlu2 %v2499_v45, %s4397_s19 }
0x55f5   :  { %v2502_v30 = vpop.permute.xlu2 %2501 }
0x55f6   :  { %v2504_v50 = vmul.f32 %v2502_v30, %v2480_v39 }
0x55f8   :  { %v5096_v54 = vpack.c.bf16 %v2504_v50, %v2504_v50 }
0x55fa   :  { %v2512_v56 = vunpack.c.l.b16 %v5096_v54 }
0x55fc   :  { %v2513_v57 = vpack.c.b16 %v2512_v56, %v2512_v56  ;;  %v2631_v56 = vld [vmem:[#allocation2 + $0x8] sm:$0x3] }
0x55fe   :  { %v2514_v58 = vrot.slane %v2513_v57, 1 }
0x5600   :  { %2515 = vrot.lane.b32.xlu0 %v2514_v58, %s4398_s2 }
0x5672   :  { %v2516_v4 = vpop.permute.xlu0 %2515 }
0x5673   :  { %4246 = vmatmul.msk.bf16.vlgmr.msrb.gmra.mxu2 %vm89_vm0, %v2516_v4 }
0x5674   :  { %2998 = vmatpush.bf16.msrb.mxu2 %v4890_v62 }
0x5678   :  { %2999 = vmatpush.bf16.msrb.mxu2 %v4897_v42 }
0x56f6   :  { %v2529_v60 = vpop.f32.mrf.mxu2 }
0x56f7   :  { %v2534_v35 = vrot.slane %v2529_v60, 4 }
0x56f9   :  { %v2536_v29 = vadd.f32 %v2534_v35, %v2511_v52 }
0x56fb   :  { %v2541_v16 = vmax.f32 %v2536_v29, 0.0  ;;  %v2537_v13 = vmul.f32 0.25, %v2536_v29 }
0x56fd   :  { %2547 = vrot.lane.b32.xlu1 %v2541_v16, %s4397_s19  ;;  %v2538_v0 = vadd.f32 0.5, %v2537_v13 }
0x56fe   :  { %v2531_v28 = vpop.f32.mrf.mxu2 }
0x56ff   :  { %v2539_v51 = vmax.f32 %v2538_v0, 0.0 }
0x5701   :  { %v2540_v5 = vmin.f32 %v2539_v51, 1.0 }
0x5703   :  { %v2545_v15 = vmul.f32 %v2543_v32, %v2540_v5 }
0x576f   :  { %v2548_v7 = vpop.permute.xlu1 %2547 }
0x5770   :  { %v2550_v11 = vmul.f32 %v2548_v7, %v2540_v5 }
0x5772   :  { %2552 = vrot.lane.b32.xlu2 %v2550_v11, %s4398_s2 }
0x57cc   :  { %v2553_v9 = vpop.permute.xlu2 %2552 }
0x57cd   :  { %v2555_v19 = vadd.f32 %v2553_v9, %v2545_v15 }
0x57cf   :  { %v2556_v34 = vmul.f32 0.25, %v2555_v19  ;;  %v2603_v39 = vrot.slane %v2555_v19, 6 }
0x57d1   :  { %v2557_v55 = vadd.f32 0.5, %v2556_v34 }
0x57d3   :  { %v2558_v14 = vmax.f32 %v2557_v55, 0.0 }
0x57d5   :  { %v2559_v20 = vmin.f32 %v2558_v14, 1.0 }
0x57d7   :  { %2561 = vrot.lane.b32.xlu0 %v2559_v20, %s4397_s19 }
0x5849   :  { %v2562_v21 = vpop.permute.xlu0 %2561 }
0x584a   :  { %v2564_v25 = vmul.f32 %v2562_v21, %v2540_v5 }
0x584c   :  { %v5106_v22 = vpack.c.bf16 %v2564_v25, %v2564_v25 }
0x584e   :  { %v2572_v18 = vunpack.c.l.b16 %v5106_v22 }
0x5850   :  { %v2573_v36 = vpack.c.b16 %v2572_v18, %v2572_v18 }
0x5852   :  { %v2574_v10 = vrot.slane %v2573_v36, 2  ;;  %v2688_v36 = vld [vmem:[#allocation2 + $0x8] sm:$0xc] }
0x5854   :  { %2575 = vrot.lane.b32.xlu1 %v2574_v10, %s4398_s2 }
0x58c6   :  { %v2576_v63 = vpop.permute.xlu1 %2575 }
0x58c7   :  { %4247 = vmatmul.msk.bf16.vlgmr.msrb.gmra.mxu3 %vm89_vm0, %v2576_v63 }
0x58c8   :  { %3058 = vmatpush.bf16.msrb.mxu3 %v4890_v62 }
0x58cc   :  { %3059 = vmatpush.bf16.msrb.mxu3 %v4897_v42 }
0x594a   :  { %v2589_v17 = vpop.f32.mrf.mxu3 }
0x594b   :  { %v2594_v61 = vrot.slane %v2589_v17, 2 }
0x594d   :  { %v2596_v3 = vadd.f32 %v2594_v61, %v2571_v44 }
0x594f   :  { %v2601_v24 = vmax.f32 %v2596_v3, 0.0  ;;  %v2597_v27 = vmul.f32 0.25, %v2596_v3 }
0x5951   :  { %2607 = vrot.lane.b32.xlu2 %v2601_v24, %s4397_s19  ;;  %v2598_v37 = vadd.f32 0.5, %v2597_v27 }
0x5952   :  { %v2591_v26 = vpop.f32.mrf.mxu3 }
0x5953   :  { %v2599_v31 = vmax.f32 %v2598_v37, 0.0 }
0x5955   :  { %v2600_v8 = vmin.f32 %v2599_v31, 1.0 }
0x5957   :  { %v2605_v62 = vmul.f32 %v2603_v39, %v2600_v8 }
0x59ab   :  { %v2608_v38 = vpop.permute.xlu2 %2607 }
0x59ac   :  { %v2610_v12 = vmul.f32 %v2608_v38, %v2600_v8 }
0x59ae   :  { %2612 = vrot.lane.b32.xlu0 %v2610_v12, %s4398_s2 }
0x5a20   :  { %v2613_v53 = vpop.permute.xlu0 %2612 }
0x5a21   :  { %v2615_v42 = vadd.f32 %v2613_v53, %v2605_v62 }
0x5a23   :  { %v2616_v41 = vmul.f32 0.25, %v2615_v42  ;;  %v2660_v0 = vrot.slane %v2615_v42, 6 }
0x5a25   :  { %v2617_v43 = vadd.f32 0.5, %v2616_v41 }
0x5a27   :  { %v2618_v2 = vmax.f32 %v2617_v43, 0.0 }
0x5a29   :  { %v2619_v6 = vmin.f32 %v2618_v2, 1.0 }
0x5a2b   :  { %2621 = vrot.lane.b32.xlu1 %v2619_v6, %s4397_s19 }
0x5a9d   :  { %v2622_v1 = vpop.permute.xlu1 %2621 }
0x5a9e   :  { %v2624_v47 = vmul.f32 %v2622_v1, %v2600_v8 }
0x5aa0   :  { %v5116_v48 = vpack.c.bf16 %v2624_v47, %v2624_v47 }
0x5aa2   :  { %v2632_v49 = vunpack.c.l.b16 %v5116_v48 }
0x5aa4   :  { %v2633_v45 = vpack.c.b16 %v2632_v49, %v2632_v49 }
0x5aa6   :  { %v2634_v30 = vrot.slane %v2633_v45, 3 }
0x5aa8   :  { %2635 = vrot.lane.b32.xlu2 %v2634_v30, %s4398_s2  ;;  %v2747_v30 = vld [vmem:[#allocation2 + $0x8] sm:$0x30] }
0x5b02   :  { %v2636_v50 = vpop.permute.xlu2 %2635 }
0x5b03   :  { %4248 = vmatmul.msk.bf16.vlgmr.msra.gmra.mxu0 %vm89_vm0, %v2636_v50 }
0x5b80   :  { %v2649_v57 = vpop.f32.mrf.mxu0 }
0x5b81   :  { %v2653_v58 = vadd.f32 %v2649_v57, %v2631_v56 }
0x5b83   :  { %v2658_v4 = vmax.f32 %v2653_v58, 0.0  ;;  %v2654_v35 = vmul.f32 0.25, %v2653_v58 }
0x5b85   :  { %2664 = vrot.lane.b32.xlu0 %v2658_v4, %s4397_s19  ;;  %v2655_v52 = vadd.f32 0.5, %v2654_v35 }
0x5b87   :  { %v2656_v29 = vmax.f32 %v2655_v52, 0.0 }
0x5b88   :  { %v2651_v60 = vpop.f32.mrf.mxu0 }
0x5b89   :  { %v2657_v16 = vmin.f32 %v2656_v29, 1.0 }
0x5b8b   :  { %v2662_v51 = vmul.f32 %v2660_v0, %v2657_v16 }
0x5bf7   :  { %v2665_v28 = vpop.permute.xlu0 %2664 }
0x5bf8   :  { %v2667_v13 = vmul.f32 %v2665_v28, %v2657_v16 }
0x5bfa   :  { %2669 = vrot.lane.b32.xlu1 %v2667_v13, %s4398_s2 }
0x5c6c   :  { %v2670_v5 = vpop.permute.xlu1 %2669 }
0x5c6d   :  { %v2672_v7 = vadd.f32 %v2670_v5, %v2662_v51 }
0x5c6f   :  { %v2673_v11 = vmul.f32 0.25, %v2672_v7  ;;  %v2719_v37 = vrot.slane %v2672_v7, 6 }
0x5c71   :  { %v2674_v32 = vadd.f32 0.5, %v2673_v11 }
0x5c73   :  { %v2675_v15 = vmax.f32 %v2674_v32, 0.0 }
0x5c75   :  { %v2676_v9 = vmin.f32 %v2675_v15, 1.0 }
0x5c77   :  { %2678 = vrot.lane.b32.xlu2 %v2676_v9, %s4397_s19 }
0x5cd1   :  { %v2679_v19 = vpop.permute.xlu2 %2678 }
0x5cd2   :  { %v2681_v34 = vmul.f32 %v2679_v19, %v2657_v16 }
0x5cd4   :  { %v5124_v55 = vpack.c.bf16 %v2681_v34, %v2681_v34 }
0x5cd6   :  { %v2689_v14 = vunpack.c.l.b16 %v5124_v55 }
0x5cd8   :  { %v2690_v20 = vpack.c.b16 %v2689_v14, %v2689_v14 }
0x5cda   :  { %2691 = vrot.lane.b32.xlu0 %v2690_v20, %s4398_s2 }
0x5d4c   :  { %v2692_v21 = vpop.permute.xlu0 %2691 }
0x5d4d   :  { %4249 = vmatmul.msk.bf16.vlgmr.msra.gmra.mxu1 %vm89_vm0, %v2692_v21 }
0x5dca   :  { %v2705_v25 = vpop.f32.mrf.mxu1 }
0x5dcb   :  { %v2710_v18 = vrot.slane %v2705_v25, 6 }
0x5dcd   :  { %v2712_v10 = vadd.f32 %v2710_v18, %v2688_v36  ;;  %v2807_v18 = vld [vmem:[#allocation2 + $0x8] sm:$0xc0] }
0x5dcf   :  { %v2717_v63 = vmax.f32 %v2712_v10, 0.0  ;;  %v2713_v61 = vmul.f32 0.25, %v2712_v10 }
0x5dd1   :  { %2723 = vrot.lane.b32.xlu1 %v2717_v63, %s4397_s19  ;;  %v2714_v44 = vadd.f32 0.5, %v2713_v61 }
0x5dd2   :  { %v2707_v17 = vpop.f32.mrf.mxu1 }
0x5dd3   :  { %v2715_v3 = vmax.f32 %v2714_v44, 0.0 }
0x5dd5   :  { %v2716_v24 = vmin.f32 %v2715_v3, 1.0 }
0x5dd7   :  { %v2721_v31 = vmul.f32 %v2719_v37, %v2716_v24 }
0x5e43   :  { %v2724_v26 = vpop.permute.xlu1 %2723 }
0x5e44   :  { %v2726_v27 = vmul.f32 %v2724_v26, %v2716_v24 }
0x5e46   :  { %2728 = vrot.lane.b32.xlu2 %v2726_v27, %s4398_s2 }
0x5ea0   :  { %v2729_v8 = vpop.permute.xlu2 %2728 }
0x5ea1   :  { %v2731_v38 = vadd.f32 %v2729_v8, %v2721_v31 }
0x5ea3   :  { %v2732_v12 = vmul.f32 0.25, %v2731_v38  ;;  %v2779_v16 = vrot.slane %v2731_v38, 6 }
0x5ea5   :  { %v2733_v39 = vadd.f32 0.5, %v2732_v12 }
0x5ea7   :  { %v2734_v62 = vmax.f32 %v2733_v39, 0.0 }
0x5ea9   :  { %v2735_v53 = vmin.f32 %v2734_v62, 1.0 }
0x5eab   :  { %2737 = vrot.lane.b32.xlu0 %v2735_v53, %s4397_s19 }
0x5f1d   :  { %v2738_v42 = vpop.permute.xlu0 %2737 }
0x5f1e   :  { %v2740_v41 = vmul.f32 %v2738_v42, %v2716_v24 }
0x5f20   :  { %v5132_v43 = vpack.c.bf16 %v2740_v41, %v2740_v41 }
0x5f22   :  { %v2748_v2 = vunpack.c.l.b16 %v5132_v43 }
0x5f24   :  { %v2749_v6 = vpack.c.b16 %v2748_v2, %v2748_v2 }
0x5f26   :  { %v2750_v1 = vrot.slane %v2749_v6, 1 }
0x5f28   :  { %2751 = vrot.lane.b32.xlu1 %v2750_v1, %s4398_s2 }
0x5f9a   :  { %v2752_v47 = vpop.permute.xlu1 %2751 }
0x5f9b   :  { %4250 = vmatmul.msk.bf16.vlgmr.msra.gmra.mxu2 %vm89_vm0, %v2752_v47 }
0x601e   :  { %v2765_v49 = vpop.f32.mrf.mxu2 }
0x601f   :  { %v2770_v45 = vrot.slane %v2765_v49, 4  ;;  %v2867_v49 = vld [vmem:[#allocation2 + $0x28] sm:$0x3] }
0x6021   :  { %v2772_v50 = vadd.f32 %v2770_v45, %v2747_v30 }
0x6023   :  { %v2777_v56 = vmax.f32 %v2772_v50, 0.0  ;;  %v2773_v58 = vmul.f32 0.25, %v2772_v50 }
0x6025   :  { %2783 = vrot.lane.b32.xlu2 %v2777_v56, %s4397_s19  ;;  %v2774_v4 = vadd.f32 0.5, %v2773_v58 }
0x6026   :  { %v2767_v57 = vpop.f32.mrf.mxu2 }
0x6027   :  { %v2775_v60 = vmax.f32 %v2774_v4, 0.0 }
0x6029   :  { %v2776_v35 = vmin.f32 %v2775_v60, 1.0 }
0x602b   :  { %v2781_v28 = vmul.f32 %v2779_v16, %v2776_v35 }
0x607f   :  { %v2784_v52 = vpop.permute.xlu2 %2783 }
0x6080   :  { %v2786_v29 = vmul.f32 %v2784_v52, %v2776_v35 }
0x6082   :  { %2788 = vrot.lane.b32.xlu0 %v2786_v29, %s4398_s2 }
0x60f4   :  { %v2789_v13 = vpop.permute.xlu0 %2788 }
0x60f5   :  { %v2791_v0 = vadd.f32 %v2789_v13, %v2781_v28 }
0x60f7   :  { %v2792_v51 = vmul.f32 0.25, %v2791_v0  ;;  %v2839_v27 = vrot.slane %v2791_v0, 6 }
0x60f9   :  { %v2793_v5 = vadd.f32 0.5, %v2792_v51 }
0x60fb   :  { %v2794_v7 = vmax.f32 %v2793_v5, 0.0 }
0x60fd   :  { %v2795_v11 = vmin.f32 %v2794_v7, 1.0 }
0x60ff   :  { %2797 = vrot.lane.b32.xlu1 %v2795_v11, %s4397_s19 }
0x6171   :  { %v2798_v32 = vpop.permute.xlu1 %2797 }
0x6172   :  { %v2800_v15 = vmul.f32 %v2798_v32, %v2776_v35 }
0x6174   :  { %v5140_v9 = vpack.c.bf16 %v2800_v15, %v2800_v15 }
0x6176   :  { %v2808_v19 = vunpack.c.l.b16 %v5140_v9 }
0x6178   :  { %v2809_v34 = vpack.c.b16 %v2808_v19, %v2808_v19 }
0x617a   :  { %v2810_v14 = vrot.slane %v2809_v34, 2 }
0x617c   :  { %2811 = vrot.lane.b32.xlu2 %v2810_v14, %s4398_s2 }
0x61d6   :  { %v2812_v20 = vpop.permute.xlu2 %2811 }
0x61d7   :  { %4251 = vmatmul.msk.bf16.vlgmr.msra.gmra.mxu3 %vm89_vm0, %v2812_v20 }
0x625a   :  { %v2825_v21 = vpop.f32.mrf.mxu3 }
0x625b   :  { %v2830_v25 = vrot.slane %v2825_v21, 2 }
0x625d   :  { %v2832_v36 = vadd.f32 %v2830_v25, %v2807_v18  ;;  %v2924_v25 = vld [vmem:[#allocation2 + $0x28] sm:$0xc] }
0x625f   :  { %v2837_v10 = vmax.f32 %v2832_v36, 0.0  ;;  %v2833_v17 = vmul.f32 0.25, %v2832_v36 }
0x6261   :  { %2843 = vrot.lane.b32.xlu0 %v2837_v10, %s4397_s19  ;;  %v2834_v61 = vadd.f32 0.5, %v2833_v17 }
0x6262   :  { %v2827_v63 = vpop.f32.mrf.mxu3 }
0x6263   :  { %v2835_v44 = vmax.f32 %v2834_v61, 0.0 }
0x6265   :  { %v2836_v3 = vmin.f32 %v2835_v44, 1.0 }
0x6267   :  { %v2841_v37 = vmul.f32 %v2839_v27, %v2836_v3 }
0x62d3   :  { %v2844_v24 = vpop.permute.xlu0 %2843 }
0x62d4   :  { %v2846_v26 = vmul.f32 %v2844_v24, %v2836_v3 }
0x62d6   :  { %2848 = vrot.lane.b32.xlu1 %v2846_v26, %s4398_s2 }
0x6348   :  { %v2849_v31 = vpop.permute.xlu1 %2848 }
0x6349   :  { %v2851_v8 = vadd.f32 %v2849_v31, %v2841_v37 }
0x634b   :  { %v2852_v38 = vmul.f32 0.25, %v2851_v8  ;;  %v2896_v29 = vrot.slane %v2851_v8, 6 }
0x634d   :  { %v2853_v12 = vadd.f32 0.5, %v2852_v38 }
0x634f   :  { %v2854_v39 = vmax.f32 %v2853_v12, 0.0 }
0x6351   :  { %v2855_v62 = vmin.f32 %v2854_v39, 1.0 }
0x6353   :  { %2857 = vrot.lane.b32.xlu2 %v2855_v62, %s4397_s19 }
0x63ad   :  { %v2858_v53 = vpop.permute.xlu2 %2857 }
0x63ae   :  { %v2860_v42 = vmul.f32 %v2858_v53, %v2836_v3 }
0x63b0   :  { %v5148_v41 = vpack.c.bf16 %v2860_v42, %v2860_v42 }
0x63b2   :  { %v2868_v2 = vunpack.c.l.b16 %v5148_v41 }
0x63b4   :  { %v2869_v6 = vpack.c.b16 %v2868_v2, %v2868_v2 }
0x63b6   :  { %v2870_v1 = vrot.slane %v2869_v6, 3 }
0x63b8   :  { %2871 = vrot.lane.b32.xlu0 %v2870_v1, %s4398_s2 }
0x642a   :  { %v2872_v47 = vpop.permute.xlu0 %2871 }
0x642b   :  { %4252 = vmatmul.msk.bf16.vlgmr.msrb.gmra.mxu0 %vm89_vm0, %v2872_v47 }
0x64a8   :  { %v2885_v45 = vpop.f32.mrf.mxu0 }
0x64a9   :  { %v2889_v30 = vadd.f32 %v2885_v45, %v2867_v49 }
0x64ab   :  { %v2894_v50 = vmax.f32 %v2889_v30, 0.0  ;;  %v2890_v57 = vmul.f32 0.25, %v2889_v30  ;;  %v2983_v30 = vld [vmem:[#allocation2 + $0x28] sm:$0x30] }
0x64ad   :  { %2900 = vrot.lane.b32.xlu1 %v2894_v50, %s4397_s19  ;;  %v2891_v58 = vadd.f32 0.5, %v2890_v57 }
0x64af   :  { %v2892_v4 = vmax.f32 %v2891_v58, 0.0 }
0x64b0   :  { %v2887_v56 = vpop.f32.mrf.mxu0 }
0x64b1   :  { %v2893_v60 = vmin.f32 %v2892_v4, 1.0 }
0x64b3   :  { %v2898_v16 = vmul.f32 %v2896_v29, %v2893_v60 }
0x651f   :  { %v2901_v35 = vpop.permute.xlu1 %2900 }
0x6520   :  { %v2903_v52 = vmul.f32 %v2901_v35, %v2893_v60 }
0x6522   :  { %2905 = vrot.lane.b32.xlu2 %v2903_v52, %s4398_s2 }
0x657c   :  { %v2906_v28 = vpop.permute.xlu2 %2905 }
0x657d   :  { %v2908_v13 = vadd.f32 %v2906_v28, %v2898_v16 }
0x657f   :  { %v2909_v0 = vmul.f32 0.25, %v2908_v13  ;;  %v2955_v26 = vrot.slane %v2908_v13, 6 }
0x6581   :  { %v2910_v51 = vadd.f32 0.5, %v2909_v0 }
0x6583   :  { %v2911_v5 = vmax.f32 %v2910_v51, 0.0 }
0x6585   :  { %v2912_v7 = vmin.f32 %v2911_v5, 1.0 }
0x6587   :  { %2914 = vrot.lane.b32.xlu0 %v2912_v7, %s4397_s19 }
0x65f9   :  { %v2915_v11 = vpop.permute.xlu0 %2914 }
0x65fa   :  { %v2917_v32 = vmul.f32 %v2915_v11, %v2893_v60 }
0x65fc   :  { %v5156_v15 = vpack.c.bf16 %v2917_v32, %v2917_v32 }
0x65fe   :  { %v2925_v19 = vunpack.c.l.b16 %v5156_v15 }
0x6600   :  { %v2926_v34 = vpack.c.b16 %v2925_v19, %v2925_v19 }
0x6602   :  { %2927 = vrot.lane.b32.xlu1 %v2926_v34, %s4398_s2 }
0x6674   :  { %v2928_v14 = vpop.permute.xlu1 %2927 }
0x6675   :  { %4253 = vmatmul.msk.bf16.vlgmr.msrb.gmra.mxu1 %vm89_vm0, %v2928_v14 }
0x66f2   :  { %v2941_v20 = vpop.f32.mrf.mxu1 }
0x66f3   :  { %v2946_v21 = vrot.slane %v2941_v20, 6 }
0x66f5   :  { %v2948_v18 = vadd.f32 %v2946_v21, %v2924_v25 }
0x66f7   :  { %v2953_v36 = vmax.f32 %v2948_v18, 0.0  ;;  %v2949_v63 = vmul.f32 0.25, %v2948_v18 }
0x66f9   :  { %2959 = vrot.lane.b32.xlu2 %v2953_v36, %s4397_s19  ;;  %v2950_v17 = vadd.f32 0.5, %v2949_v63 }
0x66fa   :  { %v2943_v10 = vpop.f32.mrf.mxu1 }
0x66fb   :  { %v2951_v61 = vmax.f32 %v2950_v17, 0.0  ;;  %v3043_v10 = vld [vmem:[#allocation2 + $0x28] sm:$0xc0] }
0x66fd   :  { %v2952_v44 = vmin.f32 %v2951_v61, 1.0 }
0x66ff   :  { %v2957_v27 = vmul.f32 %v2955_v26, %v2952_v44 }
0x6753   :  { %v2960_v3 = vpop.permute.xlu2 %2959 }
0x6754   :  { %v2962_v24 = vmul.f32 %v2960_v3, %v2952_v44 }
0x6756   :  { %2964 = vrot.lane.b32.xlu0 %v2962_v24, %s4398_s2 }
0x67c8   :  { %v2965_v37 = vpop.permute.xlu0 %2964 }
0x67c9   :  { %v2967_v31 = vadd.f32 %v2965_v37, %v2957_v27 }
0x67cb   :  { %v2968_v8 = vmul.f32 0.25, %v2967_v31  ;;  %v3015_v16 = vrot.slane %v2967_v31, 6 }
0x67cd   :  { %v2969_v38 = vadd.f32 0.5, %v2968_v8 }
0x67cf   :  { %v2970_v12 = vmax.f32 %v2969_v38, 0.0 }
0x67d1   :  { %v2971_v39 = vmin.f32 %v2970_v12, 1.0 }
0x67d3   :  { %2973 = vrot.lane.b32.xlu1 %v2971_v39, %s4397_s19 }
0x6845   :  { %v2974_v62 = vpop.permute.xlu1 %2973 }
0x6846   :  { %v2976_v53 = vmul.f32 %v2974_v62, %v2952_v44 }
0x6848   :  { %v5164_v42 = vpack.c.bf16 %v2976_v53, %v2976_v53 }
0x684a   :  { %v2984_v2 = vunpack.c.l.b16 %v5164_v42 }
0x684c   :  { %v2985_v6 = vpack.c.b16 %v2984_v2, %v2984_v2 }
0x684e   :  { %v2986_v1 = vrot.slane %v2985_v6, 1  ;;  %v5183_v6 = vld [vmem:[%s5555_s5 + $0x38] sm:$0xff] }
0x684f   :  { %3135 = vmatpush.bf16.msra.mxu0 %v5183_v6  ;;  %3193 = vmatpush.bf16.msra.mxu1 %v5183_v6 }
0x6850   :  { %2987 = vrot.lane.b32.xlu2 %v2986_v1, %s4398_s2  ;;  %v5189_v1 = vld [vmem:[%s5555_s5 + $0x30] sm:$0xff]  ;;  %3254 = vmatpush.bf16.msra.mxu2 %v5183_v6  ;;  %s4399_s5 = smov 96  }
0x6851   :  { %3315 = vmatpush.bf16.msra.mxu3 %v5183_v6 }
0x6853   :  { %3136 = vmatpush.bf16.msra.mxu0 %v5189_v1  ;;  %3194 = vmatpush.bf16.msra.mxu1 %v5189_v1 }
0x6854   :  { %3255 = vmatpush.bf16.msra.mxu2 %v5189_v1 }
0x6855   :  { %3316 = vmatpush.bf16.msra.mxu3 %v5189_v1 }
0x6857   :  { %3372 = vmatpush.bf16.msrb.mxu0 %v5183_v6  ;;  %3432 = vmatpush.bf16.msrb.mxu1 %v5183_v6 }
0x685b   :  { %3373 = vmatpush.bf16.msrb.mxu0 %v5189_v1  ;;  %3433 = vmatpush.bf16.msrb.mxu1 %v5189_v1 }
0x68aa   :  { %v2988_v47 = vpop.permute.xlu2 %2987 }
0x68ab   :  { %4254 = vmatmul.msk.bf16.vlgmr.msrb.gmra.mxu2 %vm89_vm0, %v2988_v47 }
0x68ac   :  { %3492 = vmatpush.bf16.msrb.mxu2 %v5183_v6 }
0x68b0   :  { %3493 = vmatpush.bf16.msrb.mxu2 %v5189_v1 }
0x692e   :  { %v3001_v49 = vpop.f32.mrf.mxu2 }
0x692f   :  { %v3006_v45 = vrot.slane %v3001_v49, 4 }
0x6931   :  { %v3008_v50 = vadd.f32 %v3006_v45, %v2983_v30 }
0x6933   :  { %v3013_v56 = vmax.f32 %v3008_v50, 0.0  ;;  %v3009_v58 = vmul.f32 0.25, %v3008_v50 }
0x6935   :  { %3019 = vrot.lane.b32.xlu0 %v3013_v56, %s4397_s19  ;;  %v3010_v4 = vadd.f32 0.5, %v3009_v58 }
0x6936   :  { %v3003_v57 = vpop.f32.mrf.mxu2 }
0x6937   :  { %v3011_v60 = vmax.f32 %v3010_v4, 0.0 }
0x6939   :  { %v3012_v35 = vmin.f32 %v3011_v60, 1.0  ;;  %v3108_v60 = vld [vmem:[#allocation2 + $0x38] sm:$0xc0] }
0x693b   :  { %v3017_v28 = vmul.f32 %v3015_v16, %v3012_v35 }
0x69a7   :  { %v3020_v52 = vpop.permute.xlu0 %3019 }
0x69a8   :  { %v3022_v29 = vmul.f32 %v3020_v52, %v3012_v35 }
0x69aa   :  { %3024 = vrot.lane.b32.xlu1 %v3022_v29, %s4398_s2 }
0x6a1c   :  { %v3025_v13 = vpop.permute.xlu1 %3024 }
0x6a1d   :  { %v3027_v0 = vadd.f32 %v3025_v13, %v3017_v28 }
0x6a1f   :  { %v3028_v51 = vmul.f32 0.25, %v3027_v0  ;;  %v3075_v31 = vrot.slane %v3027_v0, 6 }
0x6a21   :  { %v3029_v5 = vadd.f32 0.5, %v3028_v51 }
0x6a23   :  { %v3030_v7 = vmax.f32 %v3029_v5, 0.0 }
0x6a25   :  { %v3031_v11 = vmin.f32 %v3030_v7, 1.0 }
0x6a27   :  { %3033 = vrot.lane.b32.xlu2 %v3031_v11, %s4397_s19 }
0x6a81   :  { %v3034_v32 = vpop.permute.xlu2 %3033 }
0x6a82   :  { %v3036_v19 = vmul.f32 %v3034_v32, %v3012_v35 }
0x6a84   :  { %v5172_v34 = vpack.c.bf16 %v3036_v19, %v3036_v19 }
0x6a86   :  { %v3044_v14 = vunpack.c.l.b16 %v5172_v34 }
0x6a88   :  { %v3045_v20 = vpack.c.b16 %v3044_v14, %v3044_v14 }
0x6a8a   :  { %v3046_v21 = vrot.slane %v3045_v20, 2 }
0x6a8c   :  { %3047 = vrot.lane.b32.xlu0 %v3046_v21, %s4398_s2 }
0x6afe   :  { %v3048_v25 = vpop.permute.xlu0 %3047 }
0x6aff   :  { %4255 = vmatmul.msk.bf16.vlgmr.msrb.gmra.mxu3 %vm89_vm0, %v3048_v25 }
0x6b00   :  { %3552 = vmatpush.bf16.msrb.mxu3 %v5183_v6 }
0x6b04   :  { %3553 = vmatpush.bf16.msrb.mxu3 %v5189_v1 }
0x6b82   :  { %v3061_v18 = vpop.f32.mrf.mxu3 }
0x6b83   :  { %v3066_v36 = vrot.slane %v3061_v18, 2 }
0x6b85   :  { %v3068_v63 = vadd.f32 %v3066_v36, %v3043_v10 }
0x6b87   :  { %v3073_v17 = vmax.f32 %v3068_v63, 0.0  ;;  %v3069_v44 = vmul.f32 0.25, %v3068_v63 }
0x6b89   :  { %3079 = vrot.lane.b32.xlu1 %v3073_v17, %s4397_s19  ;;  %v3070_v3 = vadd.f32 0.5, %v3069_v44 }
0x6b8a   :  { %v3063_v61 = vpop.f32.mrf.mxu3 }
0x6b8b   :  { %v3071_v24 = vmax.f32 %v3070_v3, 0.0 }
0x6b8d   :  { %v3072_v26 = vmin.f32 %v3071_v24, 1.0  ;;  %v3178_v24 = vld [vmem:[#allocation2 + $0x38] sm:$0x30] }
0x6b8f   :  { %v3077_v8 = vmul.f32 %v3075_v31, %v3072_v26 }
0x6bfb   :  { %v3080_v27 = vpop.permute.xlu1 %3079 }
0x6bfc   :  { %v3082_v37 = vmul.f32 %v3080_v27, %v3072_v26 }
0x6bfe   :  { %3084 = vrot.lane.b32.xlu2 %v3082_v37, %s4398_s2 }
0x6c58   :  { %v3085_v38 = vpop.permute.xlu2 %3084 }
0x6c59   :  { %v3087_v12 = vadd.f32 %v3085_v38, %v3077_v8 }
0x6c5b   :  { %v3088_v39 = vmul.f32 0.25, %v3087_v12 }
0x6c5d   :  { %v3089_v62 = vadd.f32 0.5, %v3088_v39 }
0x6c5f   :  { %v3090_v53 = vmax.f32 %v3089_v62, 0.0 }
0x6c61   :  { %v3091_v2 = vmin.f32 %v3090_v53, 1.0 }
0x6c63   :  { %3093 = vrot.lane.b32.xlu0 %v3091_v2, %s4397_s19 }
0x6cd5   :  { %v3094_v47 = vpop.permute.xlu0 %3093 }
0x6cd6   :  { %v3096_v49 = vmul.f32 %v3094_v47, %v3072_v26 }
0x6cd8   :  { %v5206_v45 = vpack.c.bf16 %v3096_v49, %v3096_v49 }
0x6cda   :  { %v3109_v30 = vunpack.c.l.b16 %v5206_v45 }
0x6cdc   :  { %v3110_v50 = vpack.c.b16 %v3109_v30, %v3109_v30 }
0x6cde   :  { %v3111_v56 = vrot.slane %v3110_v50, 3 }
0x6ce0   :  { %3112 = vrot.lane.b32.xlu1 %v3111_v56, %s4398_s2 }
0x6d52   :  { %v3113_v57 = vpop.permute.xlu1 %3112 }
0x6d53   :  { %4268 = vmatmul.msk.bf16.vlgmr.msra.gmra.mxu0 %vm89_vm0, %v3113_v57 }
0x6d54   :  { %3608 = vmatpush.bf16.msra.mxu0 %v5183_v6 }
0x6d58   :  { %3609 = vmatpush.bf16.msra.mxu0 %v5189_v1 }
0x6dd0   :  { %v3138_v58 = vpop.f32.mrf.mxu0 }
0x6dd1   :  { %v3143_v4 = vrot.slane %v3138_v58, 2 }
0x6dd3   :  { %v3145_v35 = vadd.f32 %v3143_v4, %v3108_v60 }
0x6dd5   :  { %v3150_v52 = vmax.f32 %v3145_v35, 0.0  ;;  %v3146_v16 = vmul.f32 0.25, %v3145_v35 }
0x6dd7   :  { %3153 = vrot.lane.b32.xlu2 %v3150_v52, %s4397_s19  ;;  %v3147_v28 = vadd.f32 0.5, %v3146_v16 }
0x6dd8   :  { %v3140_v29 = vpop.f32.mrf.mxu0 }
0x6dd9   :  { %v3148_v13 = vmax.f32 %v3147_v28, 0.0 }
0x6ddb   :  { %v3149_v0 = vmin.f32 %v3148_v13, 1.0 }
0x6ddd   :  { %v3151_v7 = vmul.f32 %v3149_v0, %v3087_v12 }
0x6e31   :  { %v3154_v51 = vpop.permute.xlu2 %3153 }
0x6e32   :  { %v3156_v5 = vmul.f32 %v3154_v51, %v3149_v0 }
0x6e34   :  { %3158 = vrot.lane.b32.xlu0 %v3156_v5, %s4398_s2 }
0x6ea6   :  { %v3159_v11 = vpop.permute.xlu0 %3158 }
0x6ea7   :  { %v3161_v32 = vadd.f32 %v3159_v11, %v3151_v7 }
0x6ea9   :  { %v3162_v19 = vmul.f32 0.25, %v3161_v32  ;;  %v3210_v53 = vrot.slane %v3161_v32, 2 }
0x6eab   :  { %v3163_v14 = vadd.f32 0.5, %v3162_v19 }
0x6ead   :  { %v3164_v20 = vmax.f32 %v3163_v14, 0.0 }
0x6eaf   :  { %v3165_v21 = vmin.f32 %v3164_v20, 1.0 }
0x6eb1   :  { %3167 = vrot.lane.b32.xlu1 %v3165_v21, %s4397_s19 }
0x6f23   :  { %v3168_v25 = vpop.permute.xlu1 %3167 }
0x6f24   :  { %v3170_v18 = vmul.f32 %v3168_v25, %v3149_v0  ;;  %v3239_v0 = vld [vmem:[#allocation2 + $0x38] sm:$0xc] }
0x6f26   :  { %v5216_v36 = vpack.c.bf16 %v3170_v18, %v3170_v18 }
0x6f28   :  { %v3179_v10 = vunpack.c.l.b16 %v5216_v36 }
0x6f2a   :  { %v3180_v63 = vpack.c.b16 %v3179_v10, %v3179_v10 }
0x6f2c   :  { %v3181_v17 = vrot.slane %v3180_v63, 3 }
0x6f2e   :  { %3182 = vrot.lane.b32.xlu2 %v3181_v17, %s4398_s2 }
0x6f88   :  { %v3183_v61 = vpop.permute.xlu2 %3182 }
0x6f89   :  { %4269 = vmatmul.msk.bf16.vlgmr.msra.gmra.mxu1 %vm89_vm0, %v3183_v61 }
0x6f8a   :  { %3668 = vmatpush.bf16.msra.mxu1 %v5183_v6 }
0x6f8e   :  { %3669 = vmatpush.bf16.msra.mxu1 %v5189_v1 }
0x7006   :  { %v3196_v44 = vpop.f32.mrf.mxu1 }
0x7007   :  { %v3201_v3 = vrot.slane %v3196_v44, 4 }
0x7009   :  { %v3203_v26 = vadd.f32 %v3201_v3, %v3178_v24 }
0x700b   :  { %v3208_v27 = vmax.f32 %v3203_v26, 0.0  ;;  %v3204_v31 = vmul.f32 0.25, %v3203_v26 }
0x700d   :  { %3214 = vrot.lane.b32.xlu0 %v3208_v27, %s4397_s19  ;;  %v3205_v8 = vadd.f32 0.5, %v3204_v31 }
0x700e   :  { %v3198_v37 = vpop.f32.mrf.mxu1 }
0x700f   :  { %v3206_v38 = vmax.f32 %v3205_v8, 0.0 }
0x7011   :  { %v3207_v12 = vmin.f32 %v3206_v38, 1.0 }
0x7013   :  { %v3212_v2 = vmul.f32 %v3210_v53, %v3207_v12 }
0x707f   :  { %v3215_v39 = vpop.permute.xlu0 %3214 }
0x7080   :  { %v3217_v62 = vmul.f32 %v3215_v39, %v3207_v12 }
0x7082   :  { %3219 = vrot.lane.b32.xlu1 %v3217_v62, %s4398_s2 }
0x70f4   :  { %v3220_v47 = vpop.permute.xlu1 %3219 }
0x70f5   :  { %v3222_v49 = vadd.f32 %v3220_v47, %v3212_v2 }
0x70f7   :  { %v3223_v30 = vmul.f32 0.25, %v3222_v49  ;;  %v3271_v25 = vrot.slane %v3222_v49, 2 }
0x70f9   :  { %v3224_v50 = vadd.f32 0.5, %v3223_v30 }
0x70fb   :  { %v3225_v56 = vmax.f32 %v3224_v50, 0.0 }
0x70fd   :  { %v3226_v57 = vmin.f32 %v3225_v56, 1.0 }
0x70ff   :  { %3228 = vrot.lane.b32.xlu2 %v3226_v57, %s4397_s19 }
0x7159   :  { %v3229_v58 = vpop.permute.xlu2 %3228 }
0x715a   :  { %v3231_v4 = vmul.f32 %v3229_v58, %v3207_v12  ;;  %v3300_v12 = vld [vmem:[#allocation2 + $0x38] sm:$0x3] }
0x715c   :  { %v5226_v60 = vpack.c.bf16 %v3231_v4, %v3231_v4 }
0x715e   :  { %v3240_v35 = vunpack.c.l.b16 %v5226_v60 }
0x7160   :  { %v3241_v52 = vpack.c.b16 %v3240_v35, %v3240_v35 }
0x7162   :  { %v3242_v29 = vrot.slane %v3241_v52, 2 }
0x7164   :  { %3243 = vrot.lane.b32.xlu0 %v3242_v29, %s4398_s2 }
0x71d6   :  { %v3244_v16 = vpop.permute.xlu0 %3243 }
0x71d7   :  { %4270 = vmatmul.msk.bf16.vlgmr.msra.gmra.mxu2 %vm89_vm0, %v3244_v16 }
0x71d8   :  { %3728 = vmatpush.bf16.msra.mxu2 %v5183_v6 }
0x71dc   :  { %3729 = vmatpush.bf16.msra.mxu2 %v5189_v1 }
0x725a   :  { %v3257_v28 = vpop.f32.mrf.mxu2 }
0x725b   :  { %v3262_v13 = vrot.slane %v3257_v28, 6 }
0x725d   :  { %v3264_v51 = vadd.f32 %v3262_v13, %v3239_v0 }
0x725f   :  { %v3269_v5 = vmax.f32 %v3264_v51, 0.0  ;;  %v3265_v11 = vmul.f32 0.25, %v3264_v51 }
0x7261   :  { %3275 = vrot.lane.b32.xlu1 %v3269_v5, %s4397_s19  ;;  %v3266_v32 = vadd.f32 0.5, %v3265_v11 }
0x7262   :  { %v3259_v7 = vpop.f32.mrf.mxu2 }
0x7263   :  { %v3267_v19 = vmax.f32 %v3266_v32, 0.0 }
0x7265   :  { %v3268_v14 = vmin.f32 %v3267_v19, 1.0 }
0x7267   :  { %v3273_v18 = vmul.f32 %v3271_v25, %v3268_v14 }
0x72d3   :  { %v3276_v20 = vpop.permute.xlu1 %3275 }
0x72d4   :  { %v3278_v21 = vmul.f32 %v3276_v20, %v3268_v14  ;;  %v3358_v20 = vld [vmem:[#allocation2 + $0x20] sm:$0xc0] }
0x72d6   :  { %3280 = vrot.lane.b32.xlu2 %v3278_v21, %s4398_s2 }
0x7330   :  { %v3281_v10 = vpop.permute.xlu2 %3280 }
0x7331   :  { %v3283_v63 = vadd.f32 %v3281_v10, %v3273_v18 }
0x7333   :  { %v3284_v17 = vmul.f32 0.25, %v3283_v63  ;;  %v3329_v58 = vrot.slane %v3283_v63, 2 }
0x7335   :  { %v3285_v61 = vadd.f32 0.5, %v3284_v17 }
0x7337   :  { %v3286_v44 = vmax.f32 %v3285_v61, 0.0 }
0x7339   :  { %v3287_v3 = vmin.f32 %v3286_v44, 1.0 }
0x733b   :  { %3289 = vrot.lane.b32.xlu0 %v3287_v3, %s4397_s19 }
0x73ad   :  { %v3290_v24 = vpop.permute.xlu0 %3289 }
0x73ae   :  { %v3292_v26 = vmul.f32 %v3290_v24, %v3268_v14 }
0x73b0   :  { %v5236_v27 = vpack.c.bf16 %v3292_v26, %v3292_v26 }
0x73b2   :  { %v3301_v37 = vunpack.c.l.b16 %v5236_v27 }
0x73b4   :  { %v3302_v31 = vpack.c.b16 %v3301_v37, %v3301_v37 }
0x73b6   :  { %v3303_v8 = vrot.slane %v3302_v31, 1 }
0x73b8   :  { %3304 = vrot.lane.b32.xlu1 %v3303_v8, %s4398_s2 }
0x742a   :  { %v3305_v38 = vpop.permute.xlu1 %3304 }
0x742b   :  { %4271 = vmatmul.msk.bf16.vlgmr.msra.gmra.mxu3 %vm89_vm0, %v3305_v38 }
0x742c   :  { %3788 = vmatpush.bf16.msra.mxu3 %v5183_v6 }
0x7430   :  { %3789 = vmatpush.bf16.msra.mxu3 %v5189_v1 }
0x74ae   :  { %v3318_v39 = vpop.f32.mrf.mxu3 }
0x74af   :  { %v3322_v62 = vadd.f32 %v3318_v39, %v3300_v12 }
0x74b1   :  { %v3327_v53 = vmax.f32 %v3322_v62, 0.0  ;;  %v3323_v47 = vmul.f32 0.25, %v3322_v62 }
0x74b3   :  { %3333 = vrot.lane.b32.xlu2 %v3327_v53, %s4397_s19  ;;  %v3324_v49 = vadd.f32 0.5, %v3323_v47 }
0x74b5   :  { %v3325_v30 = vmax.f32 %v3324_v49, 0.0 }
0x74b6   :  { %v3320_v2 = vpop.f32.mrf.mxu3 }
0x74b7   :  { %v3326_v50 = vmin.f32 %v3325_v30, 1.0 }
0x74b9   :  { %v3331_v4 = vmul.f32 %v3329_v58, %v3326_v50  ;;  %v3417_v58 = vld [vmem:[#allocation2 + $0x20] sm:$0x30] }
0x750d   :  { %v3334_v56 = vpop.permute.xlu2 %3333 }
0x750e   :  { %v3336_v57 = vmul.f32 %v3334_v56, %v3326_v50 }
0x7510   :  { %3338 = vrot.lane.b32.xlu0 %v3336_v57, %s4398_s2 }
0x7582   :  { %v3339_v35 = vpop.permute.xlu0 %3338 }
0x7583   :  { %v3341_v52 = vadd.f32 %v3339_v35, %v3331_v4 }
0x7585   :  { %v3342_v29 = vmul.f32 0.25, %v3341_v52  ;;  %v3389_v24 = vrot.slane %v3341_v52, 2 }
0x7587   :  { %v3343_v16 = vadd.f32 0.5, %v3342_v29 }
0x7589   :  { %v3344_v28 = vmax.f32 %v3343_v16, 0.0 }
0x758b   :  { %v3345_v13 = vmin.f32 %v3344_v28, 1.0 }
0x758d   :  { %3347 = vrot.lane.b32.xlu1 %v3345_v13, %s4397_s19 }
0x75ff   :  { %v3348_v0 = vpop.permute.xlu1 %3347 }
0x7600   :  { %v3350_v51 = vmul.f32 %v3348_v0, %v3326_v50 }
0x7602   :  { %v5246_v5 = vpack.c.bf16 %v3350_v51, %v3350_v51 }
0x7604   :  { %v3359_v7 = vunpack.c.l.b16 %v5246_v5 }
0x7606   :  { %v3360_v11 = vpack.c.b16 %v3359_v7, %v3359_v7 }
0x7608   :  { %3361 = vrot.lane.b32.xlu2 %v3360_v11, %s4398_s2 }
0x7662   :  { %v3362_v32 = vpop.permute.xlu2 %3361 }
0x7663   :  { %4272 = vmatmul.msk.bf16.vlgmr.msrb.gmra.mxu0 %vm89_vm0, %v3362_v32 }
0x7664   :  { %3844 = vmatpush.bf16.msrb.mxu0 %v5183_v6 }
0x7668   :  { %3845 = vmatpush.bf16.msrb.mxu0 %v5189_v1 }
0x76e0   :  { %v3375_v19 = vpop.f32.mrf.mxu0 }
0x76e1   :  { %v3380_v14 = vrot.slane %v3375_v19, 2 }
0x76e3   :  { %v3382_v21 = vadd.f32 %v3380_v14, %v3358_v20 }
0x76e5   :  { %v3387_v25 = vmax.f32 %v3382_v21, 0.0  ;;  %v3383_v10 = vmul.f32 0.25, %v3382_v21 }
0x76e7   :  { %3393 = vrot.lane.b32.xlu0 %v3387_v25, %s4397_s19  ;;  %v3384_v63 = vadd.f32 0.5, %v3383_v10 }
0x76e8   :  { %v3377_v18 = vpop.f32.mrf.mxu0 }
0x76e9   :  { %v3385_v17 = vmax.f32 %v3384_v63, 0.0 }
0x76eb   :  { %v3386_v61 = vmin.f32 %v3385_v17, 1.0 }
0x76ed   :  { %v3391_v26 = vmul.f32 %v3389_v24, %v3386_v61 }
0x7759   :  { %v3394_v44 = vpop.permute.xlu0 %3393 }
0x775a   :  { %v3396_v3 = vmul.f32 %v3394_v44, %v3386_v61 }
0x775c   :  { %3398 = vrot.lane.b32.xlu1 %v3396_v3, %s4398_s2 }
0x77ce   :  { %v3399_v37 = vpop.permute.xlu1 %3398 }
0x77cf   :  { %v3401_v31 = vadd.f32 %v3399_v37, %v3391_v26  ;;  %v3477_v37 = vld [vmem:[#allocation2 + $0x20] sm:$0xc] }
0x77d1   :  { %v3402_v8 = vmul.f32 0.25, %v3401_v31  ;;  %v3449_v7 = vrot.slane %v3401_v31, 2 }
0x77d3   :  { %v3403_v38 = vadd.f32 0.5, %v3402_v8 }
0x77d5   :  { %v3404_v12 = vmax.f32 %v3403_v38, 0.0 }
0x77d7   :  { %v3405_v39 = vmin.f32 %v3404_v12, 1.0 }
0x77d9   :  { %3407 = vrot.lane.b32.xlu2 %v3405_v39, %s4397_s19 }
0x7833   :  { %v3408_v62 = vpop.permute.xlu2 %3407 }
0x7834   :  { %v3410_v53 = vmul.f32 %v3408_v62, %v3386_v61 }
0x7836   :  { %v5256_v2 = vpack.c.bf16 %v3410_v53, %v3410_v53 }
0x7838   :  { %v3418_v47 = vunpack.c.l.b16 %v5256_v2 }
0x783a   :  { %v3419_v49 = vpack.c.b16 %v3418_v47, %v3418_v47 }
0x783c   :  { %v3420_v30 = vrot.slane %v3419_v49, 3 }
0x783e   :  { %3421 = vrot.lane.b32.xlu0 %v3420_v30, %s4398_s2 }
0x78b0   :  { %v3422_v50 = vpop.permute.xlu0 %3421 }
0x78b1   :  { %4273 = vmatmul.msk.bf16.vlgmr.msrb.gmra.mxu1 %vm89_vm0, %v3422_v50 }
0x78b2   :  { %3904 = vmatpush.bf16.msrb.mxu1 %v5183_v6 }
0x78b6   :  { %3905 = vmatpush.bf16.msrb.mxu1 %v5189_v1 }
0x792e   :  { %v3435_v56 = vpop.f32.mrf.mxu1 }
0x792f   :  { %v3440_v57 = vrot.slane %v3435_v56, 4 }
0x7931   :  { %v3442_v4 = vadd.f32 %v3440_v57, %v3417_v58 }
0x7933   :  { %v3447_v35 = vmax.f32 %v3442_v4, 0.0  ;;  %v3443_v29 = vmul.f32 0.25, %v3442_v4 }
0x7935   :  { %3453 = vrot.lane.b32.xlu1 %v3447_v35, %s4397_s19  ;;  %v3444_v16 = vadd.f32 0.5, %v3443_v29 }
0x7936   :  { %v3437_v52 = vpop.f32.mrf.mxu1 }
0x7937   :  { %v3445_v28 = vmax.f32 %v3444_v16, 0.0 }
0x7939   :  { %v3446_v13 = vmin.f32 %v3445_v28, 1.0 }
0x793b   :  { %v3451_v11 = vmul.f32 %v3449_v7, %v3446_v13 }
0x79a7   :  { %v3454_v0 = vpop.permute.xlu1 %3453 }
0x79a8   :  { %v3456_v51 = vmul.f32 %v3454_v0, %v3446_v13 }
0x79aa   :  { %3458 = vrot.lane.b32.xlu2 %v3456_v51, %s4398_s2 }
0x7a04   :  { %v3459_v32 = vpop.permute.xlu2 %3458 }
0x7a05   :  { %v3461_v19 = vadd.f32 %v3459_v32, %v3451_v11  ;;  %v3537_v11 = vld [vmem:[#allocation2 + $0x20] sm:$0x3] }
0x7a07   :  { %v3462_v14 = vmul.f32 0.25, %v3461_v19  ;;  %v3509_v30 = vrot.slane %v3461_v19, 2 }
0x7a09   :  { %v3463_v20 = vadd.f32 0.5, %v3462_v14 }
0x7a0b   :  { %v3464_v21 = vmax.f32 %v3463_v20, 0.0 }
0x7a0d   :  { %v3465_v25 = vmin.f32 %v3464_v21, 1.0 }
0x7a0f   :  { %3467 = vrot.lane.b32.xlu0 %v3465_v25, %s4397_s19 }
0x7a81   :  { %v3468_v18 = vpop.permute.xlu0 %3467 }
0x7a82   :  { %v3470_v10 = vmul.f32 %v3468_v18, %v3446_v13 }
0x7a84   :  { %v5266_v63 = vpack.c.bf16 %v3470_v10, %v3470_v10 }
0x7a86   :  { %v3478_v17 = vunpack.c.l.b16 %v5266_v63 }
0x7a88   :  { %v3479_v61 = vpack.c.b16 %v3478_v17, %v3478_v17 }
0x7a8a   :  { %v3480_v44 = vrot.slane %v3479_v61, 2 }
0x7a8c   :  { %3481 = vrot.lane.b32.xlu1 %v3480_v44, %s4398_s2 }
0x7afe   :  { %v3482_v3 = vpop.permute.xlu1 %3481 }
0x7aff   :  { %4274 = vmatmul.msk.bf16.vlgmr.msrb.gmra.mxu2 %vm89_vm0, %v3482_v3 }
0x7b00   :  { %3964 = vmatpush.bf16.msrb.mxu2 %v5183_v6 }
0x7b04   :  { %3965 = vmatpush.bf16.msrb.mxu2 %v5189_v1 }
0x7b82   :  { %v3495_v24 = vpop.f32.mrf.mxu2 }
0x7b83   :  { %v3500_v26 = vrot.slane %v3495_v24, 6 }
0x7b85   :  { %v3502_v31 = vadd.f32 %v3500_v26, %v3477_v37 }
0x7b87   :  { %v3507_v8 = vmax.f32 %v3502_v31, 0.0  ;;  %v3503_v12 = vmul.f32 0.25, %v3502_v31 }
0x7b89   :  { %3513 = vrot.lane.b32.xlu2 %v3507_v8, %s4397_s19  ;;  %v3504_v39 = vadd.f32 0.5, %v3503_v12 }
0x7b8a   :  { %v3497_v38 = vpop.f32.mrf.mxu2 }
0x7b8b   :  { %v3505_v62 = vmax.f32 %v3504_v39, 0.0 }
0x7b8d   :  { %v3506_v53 = vmin.f32 %v3505_v62, 1.0 }
0x7b8f   :  { %v3511_v50 = vmul.f32 %v3509_v30, %v3506_v53  ;;  %v3594_v30 = vld [vmem:[#allocation2 + $0x10] sm:$0xc0] }
0x7be3   :  { %v3514_v47 = vpop.permute.xlu2 %3513 }
0x7be4   :  { %v3516_v49 = vmul.f32 %v3514_v47, %v3506_v53 }
0x7be6   :  { %3518 = vrot.lane.b32.xlu0 %v3516_v49, %s4398_s2 }
0x7c58   :  { %v3519_v56 = vpop.permute.xlu0 %3518 }
0x7c59   :  { %v3521_v57 = vadd.f32 %v3519_v56, %v3511_v50 }
0x7c5b   :  { %v3522_v58 = vmul.f32 0.25, %v3521_v57  ;;  %v3566_v44 = vrot.slane %v3521_v57, 2 }
0x7c5d   :  { %v3523_v4 = vadd.f32 0.5, %v3522_v58 }
0x7c5f   :  { %v3524_v35 = vmax.f32 %v3523_v4, 0.0 }
0x7c61   :  { %v3525_v52 = vmin.f32 %v3524_v35, 1.0 }
0x7c63   :  { %3527 = vrot.lane.b32.xlu1 %v3525_v52, %s4397_s19 }
0x7cd5   :  { %v3528_v29 = vpop.permute.xlu1 %3527 }
0x7cd6   :  { %v3530_v16 = vmul.f32 %v3528_v29, %v3506_v53 }
0x7cd8   :  { %v5276_v28 = vpack.c.bf16 %v3530_v16, %v3530_v16 }
0x7cda   :  { %v3538_v13 = vunpack.c.l.b16 %v5276_v28 }
0x7cdc   :  { %v3539_v0 = vpack.c.b16 %v3538_v13, %v3538_v13 }
0x7cde   :  { %v3540_v51 = vrot.slane %v3539_v0, 1 }
0x7ce0   :  { %3541 = vrot.lane.b32.xlu2 %v3540_v51, %s4398_s2 }
0x7d3a   :  { %v3542_v7 = vpop.permute.xlu2 %3541 }
0x7d3b   :  { %4275 = vmatmul.msk.bf16.vlgmr.msrb.gmra.mxu3 %vm89_vm0, %v3542_v7 }
0x7d3c   :  { %4024 = vmatpush.bf16.msrb.mxu3 %v5183_v6 }
0x7d40   :  { %4025 = vmatpush.bf16.msrb.mxu3 %v5189_v1 }
0x7dbe   :  { %v3555_v32 = vpop.f32.mrf.mxu3 }
0x7dbf   :  { %v3559_v19 = vadd.f32 %v3555_v32, %v3537_v11 }
0x7dc1   :  { %v3564_v14 = vmax.f32 %v3559_v19, 0.0  ;;  %v3560_v21 = vmul.f32 0.25, %v3559_v19 }
0x7dc3   :  { %3570 = vrot.lane.b32.xlu0 %v3564_v14, %s4397_s19  ;;  %v3561_v25 = vadd.f32 0.5, %v3560_v21 }
0x7dc5   :  { %v3562_v18 = vmax.f32 %v3561_v25, 0.0 }
0x7dc6   :  { %v3557_v20 = vpop.f32.mrf.mxu3 }
0x7dc7   :  { %v3563_v10 = vmin.f32 %v3562_v18, 1.0 }
0x7dc9   :  { %v3568_v3 = vmul.f32 %v3566_v44, %v3563_v10 }
0x7e35   :  { %v3571_v17 = vpop.permute.xlu0 %3570 }
0x7e36   :  { %v3573_v61 = vmul.f32 %v3571_v17, %v3563_v10 }
0x7e38   :  { %3575 = vrot.lane.b32.xlu1 %v3573_v61, %s4398_s2 }
0x7eaa   :  { %v3576_v6 = vpop.permute.xlu1 %3575 }
0x7eab   :  { %v3578_v24 = vadd.f32 %v3576_v6, %v3568_v3  ;;  %v3653_v6 = vld [vmem:[#allocation2 + $0x10] sm:$0x30] }
0x7ead   :  { %v3579_v1 = vmul.f32 0.25, %v3578_v24  ;;  %v3625_v13 = vrot.slane %v3578_v24, 2 }
0x7eaf   :  { %v3580_v26 = vadd.f32 0.5, %v3579_v1 }
0x7eb1   :  { %v3581_v37 = vmax.f32 %v3580_v26, 0.0 }
0x7eb3   :  { %v3582_v31 = vmin.f32 %v3581_v37, 1.0 }
0x7eb5   :  { %3584 = vrot.lane.b32.xlu2 %v3582_v31, %s4397_s19 }
0x7f0f   :  { %v3585_v8 = vpop.permute.xlu2 %3584 }
0x7f10   :  { %v3587_v38 = vmul.f32 %v3585_v8, %v3563_v10 }
0x7f12   :  { %v5286_v12 = vpack.c.bf16 %v3587_v38, %v3587_v38 }
0x7f14   :  { %v3595_v39 = vunpack.c.l.b16 %v5286_v12 }
0x7f16   :  { %v3596_v62 = vpack.c.b16 %v3595_v39, %v3595_v39 }
0x7f18   :  { %3597 = vrot.lane.b32.xlu0 %v3596_v62, %s4398_s2 }
0x7f8a   :  { %v3598_v53 = vpop.permute.xlu0 %3597 }
0x7f8b   :  { %4276 = vmatmul.msk.bf16.vlgmr.msra.gmra.mxu0 %vm89_vm0, %v3598_v53 }
0x8008   :  { %v3611_v47 = vpop.f32.mrf.mxu0 }
0x8009   :  { %v3616_v49 = vrot.slane %v3611_v47, 2 }
0x800b   :  { %v3618_v50 = vadd.f32 %v3616_v49, %v3594_v30 }
0x800d   :  { %v3623_v56 = vmax.f32 %v3618_v50, 0.0  ;;  %v3619_v58 = vmul.f32 0.25, %v3618_v50 }
0x800f   :  { %3629 = vrot.lane.b32.xlu1 %v3623_v56, %s4397_s19  ;;  %v3620_v4 = vadd.f32 0.5, %v3619_v58 }
0x8010   :  { %v3613_v57 = vpop.f32.mrf.mxu0 }
0x8011   :  { %v3621_v35 = vmax.f32 %v3620_v4, 0.0 }
0x8013   :  { %v3622_v52 = vmin.f32 %v3621_v35, 1.0 }
0x8015   :  { %v3627_v0 = vmul.f32 %v3625_v13, %v3622_v52 }
0x8081   :  { %v3630_v29 = vpop.permute.xlu1 %3629 }
0x8082   :  { %v3632_v16 = vmul.f32 %v3630_v29, %v3622_v52 }
0x8084   :  { %3634 = vrot.lane.b32.xlu2 %v3632_v16, %s4398_s2 }
0x80de   :  { %v3635_v51 = vpop.permute.xlu2 %3634 }
0x80df   :  { %v3637_v7 = vadd.f32 %v3635_v51, %v3627_v0 }
0x80e1   :  { %v3638_v11 = vmul.f32 0.25, %v3637_v7  ;;  %v3685_v53 = vrot.slane %v3637_v7, 2 }
0x80e3   :  { %v3639_v32 = vadd.f32 0.5, %v3638_v11  ;;  %v3713_v11 = vld [vmem:[#allocation2 + $0x10] sm:$0xc] }
0x80e5   :  { %v3640_v19 = vmax.f32 %v3639_v32, 0.0 }
0x80e7   :  { %v3641_v14 = vmin.f32 %v3640_v19, 1.0 }
0x80e9   :  { %3643 = vrot.lane.b32.xlu0 %v3641_v14, %s4397_s19 }
0x815b   :  { %v3644_v20 = vpop.permute.xlu0 %3643 }
0x815c   :  { %v3646_v21 = vmul.f32 %v3644_v20, %v3622_v52 }
0x815e   :  { %v5294_v25 = vpack.c.bf16 %v3646_v21, %v3646_v21 }
0x8160   :  { %v3654_v18 = vunpack.c.l.b16 %v5294_v25 }
0x8162   :  { %v3655_v10 = vpack.c.b16 %v3654_v18, %v3654_v18 }
0x8164   :  { %v3656_v17 = vrot.slane %v3655_v10, 3 }
0x8166   :  { %3657 = vrot.lane.b32.xlu1 %v3656_v17, %s4398_s2 }
0x81d8   :  { %v3658_v61 = vpop.permute.xlu1 %3657 }
0x81d9   :  { %4277 = vmatmul.msk.bf16.vlgmr.msra.gmra.mxu1 %vm89_vm0, %v3658_v61 }
0x8256   :  { %v3671_v44 = vpop.f32.mrf.mxu1 }
0x8257   :  { %v3676_v3 = vrot.slane %v3671_v44, 4 }
0x8259   :  { %v3678_v24 = vadd.f32 %v3676_v3, %v3653_v6 }
0x825b   :  { %v3683_v1 = vmax.f32 %v3678_v24, 0.0  ;;  %v3679_v37 = vmul.f32 0.25, %v3678_v24 }
0x825d   :  { %3689 = vrot.lane.b32.xlu2 %v3683_v1, %s4397_s19  ;;  %v3680_v31 = vadd.f32 0.5, %v3679_v37 }
0x825e   :  { %v3673_v26 = vpop.f32.mrf.mxu1 }
0x825f   :  { %v3681_v8 = vmax.f32 %v3680_v31, 0.0 }
0x8261   :  { %v3682_v38 = vmin.f32 %v3681_v8, 1.0 }
0x8263   :  { %v3687_v47 = vmul.f32 %v3685_v53, %v3682_v38 }
0x82b7   :  { %v3690_v39 = vpop.permute.xlu2 %3689 }
0x82b8   :  { %v3692_v62 = vmul.f32 %v3690_v39, %v3682_v38 }
0x82ba   :  { %3694 = vrot.lane.b32.xlu0 %v3692_v62, %s4398_s2 }
0x832c   :  { %v3695_v49 = vpop.permute.xlu0 %3694 }
0x832d   :  { %v3697_v30 = vadd.f32 %v3695_v49, %v3687_v47 }
0x832f   :  { %v3698_v50 = vmul.f32 0.25, %v3697_v30  ;;  %v3745_v44 = vrot.slane %v3697_v30, 2  ;;  %v3773_v30 = vld [vmem:[#allocation2 + $0x10] sm:$0x3] }
0x8331   :  { %v3699_v56 = vadd.f32 0.5, %v3698_v50 }
0x8333   :  { %v3700_v57 = vmax.f32 %v3699_v56, 0.0 }
0x8335   :  { %v3701_v58 = vmin.f32 %v3700_v57, 1.0 }
0x8337   :  { %3703 = vrot.lane.b32.xlu1 %v3701_v58, %s4397_s19 }
0x83a9   :  { %v3704_v4 = vpop.permute.xlu1 %3703 }
0x83aa   :  { %v3706_v35 = vmul.f32 %v3704_v4, %v3682_v38 }
0x83ac   :  { %v5302_v52 = vpack.c.bf16 %v3706_v35, %v3706_v35 }
0x83ae   :  { %v3714_v29 = vunpack.c.l.b16 %v5302_v52 }
0x83b0   :  { %v3715_v16 = vpack.c.b16 %v3714_v29, %v3714_v29 }
0x83b2   :  { %v3716_v13 = vrot.slane %v3715_v16, 2 }
0x83b4   :  { %3717 = vrot.lane.b32.xlu2 %v3716_v13, %s4398_s2 }
0x840e   :  { %v3718_v0 = vpop.permute.xlu2 %3717 }
0x840f   :  { %4278 = vmatmul.msk.bf16.vlgmr.msra.gmra.mxu2 %vm89_vm0, %v3718_v0 }
0x8492   :  { %v3731_v51 = vpop.f32.mrf.mxu2 }
0x8493   :  { %v3736_v7 = vrot.slane %v3731_v51, 6 }
0x8495   :  { %v3738_v32 = vadd.f32 %v3736_v7, %v3713_v11 }
0x8497   :  { %v3743_v19 = vmax.f32 %v3738_v32, 0.0  ;;  %v3739_v20 = vmul.f32 0.25, %v3738_v32 }
0x8499   :  { %3749 = vrot.lane.b32.xlu0 %v3743_v19, %s4397_s19  ;;  %v3740_v21 = vadd.f32 0.5, %v3739_v20 }
0x849a   :  { %v3733_v14 = vpop.f32.mrf.mxu2 }
0x849b   :  { %v3741_v18 = vmax.f32 %v3740_v21, 0.0 }
0x849d   :  { %v3742_v10 = vmin.f32 %v3741_v18, 1.0 }
0x849f   :  { %v3747_v3 = vmul.f32 %v3745_v44, %v3742_v10 }
0x850b   :  { %v3750_v17 = vpop.permute.xlu0 %3749 }
0x850c   :  { %v3752_v61 = vmul.f32 %v3750_v17, %v3742_v10 }
0x850e   :  { %3754 = vrot.lane.b32.xlu1 %v3752_v61, %s4398_s2 }
0x8580   :  { %v3755_v6 = vpop.permute.xlu1 %3754 }
0x8581   :  { %v3757_v24 = vadd.f32 %v3755_v6, %v3747_v3 }
0x8583   :  { %v3758_v1 = vmul.f32 0.25, %v3757_v24  ;;  %v3802_v51 = vrot.slane %v3757_v24, 2 }
0x8585   :  { %v3759_v26 = vadd.f32 0.5, %v3758_v1  ;;  %v3830_v1 = vld [vmem:[#allocation2] sm:$0xc0] }
0x8587   :  { %v3760_v37 = vmax.f32 %v3759_v26, 0.0 }
0x8589   :  { %v3761_v31 = vmin.f32 %v3760_v37, 1.0 }
0x858b   :  { %3763 = vrot.lane.b32.xlu2 %v3761_v31, %s4397_s19 }
0x85e5   :  { %v3764_v8 = vpop.permute.xlu2 %3763 }
0x85e6   :  { %v3766_v38 = vmul.f32 %v3764_v8, %v3742_v10 }
0x85e8   :  { %v5310_v39 = vpack.c.bf16 %v3766_v38, %v3766_v38 }
0x85ea   :  { %v3774_v62 = vunpack.c.l.b16 %v5310_v39 }
0x85ec   :  { %v3775_v53 = vpack.c.b16 %v3774_v62, %v3774_v62 }
0x85ee   :  { %v3776_v47 = vrot.slane %v3775_v53, 1 }
0x85f0   :  { %3777 = vrot.lane.b32.xlu0 %v3776_v47, %s4398_s2 }
0x8662   :  { %v3778_v49 = vpop.permute.xlu0 %3777 }
0x8663   :  { %4279 = vmatmul.msk.bf16.vlgmr.msra.gmra.mxu3 %vm89_vm0, %v3778_v49 }
0x86e6   :  { %v3791_v50 = vpop.f32.mrf.mxu3 }
0x86e7   :  { %v3795_v56 = vadd.f32 %v3791_v50, %v3773_v30 }
0x86e9   :  { %v3800_v57 = vmax.f32 %v3795_v56, 0.0  ;;  %v3796_v4 = vmul.f32 0.25, %v3795_v56 }
0x86eb   :  { %3806 = vrot.lane.b32.xlu1 %v3800_v57, %s4397_s19  ;;  %v3797_v35 = vadd.f32 0.5, %v3796_v4 }
0x86ed   :  { %v3798_v29 = vmax.f32 %v3797_v35, 0.0 }
0x86ee   :  { %v3793_v58 = vpop.f32.mrf.mxu3 }
0x86ef   :  { %v3799_v16 = vmin.f32 %v3798_v29, 1.0 }
0x86f1   :  { %v3804_v7 = vmul.f32 %v3802_v51, %v3799_v16 }
0x875d   :  { %v3807_v13 = vpop.permute.xlu1 %3806 }
0x875e   :  { %v3809_v0 = vmul.f32 %v3807_v13, %v3799_v16 }
0x8760   :  { %3811 = vrot.lane.b32.xlu2 %v3809_v0, %s4398_s2 }
0x87ba   :  { %v3812_v11 = vpop.permute.xlu2 %3811 }
0x87bb   :  { %v3814_v32 = vadd.f32 %v3812_v11, %v3804_v7 }
0x87bd   :  { %v3815_v19 = vmul.f32 0.25, %v3814_v32  ;;  %v3861_v30 = vrot.slane %v3814_v32, 2 }
0x87bf   :  { %v3816_v14 = vadd.f32 0.5, %v3815_v19 }
0x87c1   :  { %v3817_v20 = vmax.f32 %v3816_v14, 0.0 }
0x87c3   :  { %v3818_v21 = vmin.f32 %v3817_v20, 1.0  ;;  %v3889_v20 = vld [vmem:[#allocation2] sm:$0x30] }
0x87c5   :  { %3820 = vrot.lane.b32.xlu0 %v3818_v21, %s4397_s19 }
0x8837   :  { %v3821_v18 = vpop.permute.xlu0 %3820 }
0x8838   :  { %v3823_v10 = vmul.f32 %v3821_v18, %v3799_v16 }
0x883a   :  { %v5318_v17 = vpack.c.bf16 %v3823_v10, %v3823_v10 }
0x883c   :  { %v3831_v61 = vunpack.c.l.b16 %v5318_v17 }
0x883e   :  { %v3832_v44 = vpack.c.b16 %v3831_v61, %v3831_v61 }
0x8840   :  { %3833 = vrot.lane.b32.xlu1 %v3832_v44, %s4398_s2 }
0x88b2   :  { %v3834_v3 = vpop.permute.xlu1 %3833 }
0x88b3   :  { %4280 = vmatmul.msk.bf16.vlgmr.msrb.gmra.mxu0 %vm89_vm0, %v3834_v3 }
0x8930   :  { %v3847_v6 = vpop.f32.mrf.mxu0 }
0x8931   :  { %v3852_v24 = vrot.slane %v3847_v6, 2 }
0x8933   :  { %v3854_v26 = vadd.f32 %v3852_v24, %v3830_v1 }
0x8935   :  { %v3859_v37 = vmax.f32 %v3854_v26, 0.0  ;;  %v3855_v8 = vmul.f32 0.25, %v3854_v26 }
0x8937   :  { %3865 = vrot.lane.b32.xlu2 %v3859_v37, %s4397_s19  ;;  %v3856_v38 = vadd.f32 0.5, %v3855_v8 }
0x8938   :  { %v3849_v31 = vpop.f32.mrf.mxu0 }
0x8939   :  { %v3857_v62 = vmax.f32 %v3856_v38, 0.0 }
0x893b   :  { %v3858_v53 = vmin.f32 %v3857_v62, 1.0 }
0x893d   :  { %v3863_v50 = vmul.f32 %v3861_v30, %v3858_v53 }
0x8991   :  { %v3866_v47 = vpop.permute.xlu2 %3865 }
0x8992   :  { %v3868_v49 = vmul.f32 %v3866_v47, %v3858_v53 }
0x8994   :  { %3870 = vrot.lane.b32.xlu0 %v3868_v49, %s4398_s2 }
0x8a06   :  { %v3871_v56 = vpop.permute.xlu0 %3870 }
0x8a07   :  { %v3873_v57 = vadd.f32 %v3871_v56, %v3863_v50 }
0x8a09   :  { %v3874_v58 = vmul.f32 0.25, %v3873_v57  ;;  %v3921_v26 = vrot.slane %v3873_v57, 2 }
0x8a0b   :  { %v3875_v4 = vadd.f32 0.5, %v3874_v58 }
0x8a0d   :  { %v3876_v35 = vmax.f32 %v3875_v4, 0.0 }
0x8a0f   :  { %v3877_v29 = vmin.f32 %v3876_v35, 1.0 }
0x8a11   :  { %3879 = vrot.lane.b32.xlu1 %v3877_v29, %s4397_s19 }
0x8a83   :  { %v3880_v16 = vpop.permute.xlu1 %3879 }
0x8a84   :  { %v3882_v13 = vmul.f32 %v3880_v16, %v3858_v53  ;;  %v3949_v16 = vld [vmem:[#allocation2] sm:$0xc] }
0x8a86   :  { %v5326_v0 = vpack.c.bf16 %v3882_v13, %v3882_v13 }
0x8a88   :  { %v3890_v51 = vunpack.c.l.b16 %v5326_v0 }
0x8a8a   :  { %v3891_v7 = vpack.c.b16 %v3890_v51, %v3890_v51 }
0x8a8c   :  { %v3892_v11 = vrot.slane %v3891_v7, 3 }
0x8a8e   :  { %3893 = vrot.lane.b32.xlu2 %v3892_v11, %s4398_s2 }
0x8ae8   :  { %v3894_v32 = vpop.permute.xlu2 %3893 }
0x8ae9   :  { %4281 = vmatmul.msk.bf16.vlgmr.msrb.gmra.mxu1 %vm89_vm0, %v3894_v32 }
0x8b66   :  { %v3907_v19 = vpop.f32.mrf.mxu1 }
0x8b67   :  { %v3912_v14 = vrot.slane %v3907_v19, 4 }
0x8b69   :  { %v3914_v21 = vadd.f32 %v3912_v14, %v3889_v20 }
0x8b6b   :  { %v3919_v18 = vmax.f32 %v3914_v21, 0.0  ;;  %v3915_v61 = vmul.f32 0.25, %v3914_v21 }
0x8b6d   :  { %3925 = vrot.lane.b32.xlu0 %v3919_v18, %s4397_s19  ;;  %v3916_v44 = vadd.f32 0.5, %v3915_v61 }
0x8b6e   :  { %v3909_v10 = vpop.f32.mrf.mxu1 }
0x8b6f   :  { %v3917_v3 = vmax.f32 %v3916_v44, 0.0 }
0x8b71   :  { %v3918_v6 = vmin.f32 %v3917_v3, 1.0 }
0x8b73   :  { %v3923_v37 = vmul.f32 %v3921_v26, %v3918_v6 }
0x8bdf   :  { %v3926_v24 = vpop.permute.xlu0 %3925 }
0x8be0   :  { %v3928_v1 = vmul.f32 %v3926_v24, %v3918_v6 }
0x8be2   :  { %3930 = vrot.lane.b32.xlu1 %v3928_v1, %s4398_s2 }
0x8c54   :  { %v3931_v31 = vpop.permute.xlu1 %3930 }
0x8c55   :  { %v3933_v8 = vadd.f32 %v3931_v31, %v3923_v37 }
0x8c57   :  { %v3934_v38 = vmul.f32 0.25, %v3933_v8  ;;  %v3981_v18 = vrot.slane %v3933_v8, 2 }
0x8c59   :  { %v3935_v62 = vadd.f32 0.5, %v3934_v38 }
0x8c5b   :  { %v3936_v53 = vmax.f32 %v3935_v62, 0.0 }
0x8c5d   :  { %v3937_v47 = vmin.f32 %v3936_v53, 1.0 }
0x8c5f   :  { %3939 = vrot.lane.b32.xlu2 %v3937_v47, %s4397_s19 }
0x8cb9   :  { %v3940_v49 = vpop.permute.xlu2 %3939 }
0x8cba   :  { %v3942_v30 = vmul.f32 %v3940_v49, %v3918_v6 }
0x8cbc   :  { %v5334_v50 = vpack.c.bf16 %v3942_v30, %v3942_v30 }
0x8cbe   :  { %v3950_v56 = vunpack.c.l.b16 %v5334_v50 }
0x8cc0   :  { %v3951_v58 = vpack.c.b16 %v3950_v56, %v3950_v56 }
0x8cc2   :  { %v3952_v4 = vrot.slane %v3951_v58, 2 }
0x8cc4   :  { %3953 = vrot.lane.b32.xlu0 %v3952_v4, %s4398_s2 }
0x8d36   :  { %v3954_v57 = vpop.permute.xlu0 %3953 }
0x8d37   :  { %4282 = vmatmul.msk.bf16.vlgmr.msrb.gmra.mxu2 %vm89_vm0, %v3954_v57 }
0x8dba   :  { %v3967_v35 = vpop.f32.mrf.mxu2 }
0x8dbb   :  { %v3972_v29 = vrot.slane %v3967_v35, 6 }
0x8dbd   :  { %v3974_v13 = vadd.f32 %v3972_v29, %v3949_v16 }
0x8dbf   :  { %v3979_v51 = vmax.f32 %v3974_v13, 0.0  ;;  %v3975_v11 = vmul.f32 0.25, %v3974_v13 }
0x8dc1   :  { %3985 = vrot.lane.b32.xlu1 %v3979_v51, %s4397_s19  ;;  %v3976_v32 = vadd.f32 0.5, %v3975_v11 }
0x8dc2   :  { %v3969_v7 = vpop.f32.mrf.mxu2 }
0x8dc3   :  { %v3977_v19 = vmax.f32 %v3976_v32, 0.0 }
0x8dc5   :  { %v3978_v14 = vmin.f32 %v3977_v19, 1.0 }
0x8dc7   :  { %v3983_v10 = vmul.f32 %v3981_v18, %v3978_v14 }
0x8e33   :  { %v3986_v20 = vpop.permute.xlu1 %3985 }
0x8e34   :  { %v3988_v21 = vmul.f32 %v3986_v20, %v3978_v14 }
0x8e36   :  { %3990 = vrot.lane.b32.xlu2 %v3988_v21, %s4398_s2 }
0x8e90   :  { %v3991_v61 = vpop.permute.xlu2 %3990 }
0x8e91   :  { %v5341_v44 = vadd.f32 %v3991_v61, %v3983_v10 }
0x8e93   :  { %v3994_v3 = vmul.f32 0.25, %v5341_v44  ;;  %v4038_v29 = vrot.slane %v5341_v44, 2 }
0x8e95   :  { %v3995_v6 = vadd.f32 0.5, %v3994_v3 }
0x8e97   :  { %v3996_v24 = vmax.f32 %v3995_v6, 0.0 }
0x8e99   :  { %v3997_v1 = vmin.f32 %v3996_v24, 1.0 }
0x8e9b   :  { %3999 = vrot.lane.b32.xlu0 %v3997_v1, %s4397_s19 }
0x8f0d   :  { %v4000_v26 = vpop.permute.xlu0 %3999 }
0x8f0e   :  { %v4002_v37 = vmul.f32 %v4000_v26, %v3978_v14 }
0x8f10   :  { %v4003_v31 = vpack.c.bf16 %v4002_v37, %v4002_v37 }
0x8f12   :  { %v4010_v38 = vunpack.c.l.b16 %v4003_v31 }
0x8f14   :  { %v4011_v62 = vpack.c.b16 %v4010_v38, %v4010_v38 }
0x8f16   :  { %v4012_v53 = vrot.slane %v4011_v62, 1 }
0x8f18   :  { %4013 = vrot.lane.b32.xlu1 %v4012_v53, %s4398_s2 }
0x8f20   :  { %2208 = vrot.lane.b32.xlu1 %v4988_v33, %s4398_s2 }
0x8f28   :  { %2390 = vrot.lane.b32.xlu1 %v5066_v46, %s4398_s2 }
0x8f30   :  { %2567 = vrot.lane.b32.xlu1 %v5106_v22, %s4398_s2 }
0x8f38   :  { %2684 = vrot.lane.b32.xlu1 %v5124_v55, %s4398_s2 }
0x8f40   :  { %2863 = vrot.lane.b32.xlu1 %v5148_v41, %s4398_s2 }
0x8f48   :  { %3039 = vrot.lane.b32.xlu1 %v5172_v34, %s4398_s2 }
0x8f50   :  { %3234 = vrot.lane.b32.xlu1 %v5226_v60, %s4397_s19 }
0x8f58   :  { %3413 = vrot.lane.b32.xlu1 %v5256_v2, %s4397_s19 }
0x8f60   :  { %3473 = vrot.lane.b32.xlu1 %v5266_v63, %s4397_s19 }
0x8f68   :  { %3649 = vrot.lane.b32.xlu1 %v5294_v25, %s4397_s19  ;;  %v4009_v25 = vld [vmem:[#allocation2] sm:$0x3] }
0x8f70   :  { %3826 = vrot.lane.b32.xlu1 %v5318_v17, %s4397_s19 }
0x8f78   :  { %4005 = vrot.lane.b32.xlu1 %v4003_v31, %s4397_s19 }
0x8f8a   :  { %v4014_v33 = vpop.permute.xlu1 %4013 }
0x8f8b   :  { %4283 = vmatmul.msk.bf16.vlgmr.msrb.gmra.mxu3 %vm89_vm0, %v4014_v33  ;;  %vm3298_vm0 = vcmask 517377  }
0x8f92   :  { %v2209_v46 = vpop.permute.xlu1 %2208 }
0x8f93   :  { %2212 = vst.msk [vmem:[%s5556_s6] sm:$0x1] %vm2211_vm10, %v2209_v46 }
0x8f9a   :  { %v2391_v22 = vpop.permute.xlu1 %2390 }
0x8f9b   :  { %2394 = vst.msk [vmem:[%s5556_s6] sm:$0x8] %vm2393_vm11, %v2391_v22 }
0x8fa2   :  { %v2568_v55 = vpop.permute.xlu1 %2567 }
0x8fa3   :  { %2570 = vst.msk [vmem:[%s5556_s6 + $0x4] sm:$0x4] %vm2332_vm12, %v2568_v55 }
0x8faa   :  { %v2685_v41 = vpop.permute.xlu1 %2684 }
0x8fab   :  { %2687 = vst.msk [vmem:[%s5556_s6 + $0x8] sm:$0x1] %vm2211_vm10, %v2685_v41 }
0x8fb2   :  { %v2864_v34 = vpop.permute.xlu1 %2863 }
0x8fb3   :  { %2866 = vst.msk [vmem:[%s5556_s6 + $0x8] sm:$0x8] %vm2393_vm11, %v2864_v34 }
0x8fba   :  { %v3040_v60 = vpop.permute.xlu1 %3039 }
0x8fbb   :  { %3042 = vst.msk [vmem:[%s5556_s6 + $0xc] sm:$0x4] %vm2332_vm12, %v3040_v60 }
0x8fc2   :  { %v3235_v2 = vpop.permute.xlu1 %3234 }
0x8fc3   :  { %3238 = vst.msk [vmem:[%s5556_s6 + $0xc] sm:$0x4] %vm3237_vm13, %v3235_v2 }
0x8fca   :  { %v3414_v63 = vpop.permute.xlu1 %3413 }
0x8fcb   :  { %3416 = vst.msk [vmem:[%s5556_s6 + $0x8] sm:$0x8] %vm3176_vm14, %v3414_v63 }
0x900e   :  { %v4027_v17 = vpop.f32.mrf.mxu3 }
0x900f   :  { %v4031_v8 = vadd.f32 %v4027_v17, %v4009_v25 }
0x9011   :  { %v4036_v47 = vmax.f32 %v4031_v8, 0.0 }
0x9013   :  { %4042 = vrot.lane.b32.xlu2 %v4036_v47, %s4397_s19 }
0x9016   :  { %v4029_v49 = vpop.f32.mrf.mxu3 }
0x901b   :  { %2268 = vrot.lane.b32.xlu2 %v4998_v23, %s4398_s2  ;;  %v3474_v23 = vpop.permute.xlu1 %3473 }
0x9023   :  { %2448 = vrot.lane.b32.xlu2 %v5086_v40, %s4398_s2  ;;  %v4032_v40 = vmul.f32 0.25, %v4031_v8 }
0x902b   :  { %2627 = vrot.lane.b32.xlu2 %v5116_v48, %s4398_s2  ;;  %v3650_v48 = vpop.permute.xlu1 %3649 }
0x9033   :  { %2743 = vrot.lane.b32.xlu2 %v5132_v43, %s4398_s2  ;;  %v4033_v43 = vadd.f32 0.5, %v4032_v40  ;;  %v3827_v30 = vpop.permute.xlu1 %3826 }
0x903b   :  { %2920 = vrot.lane.b32.xlu2 %v5156_v15, %s4398_s2  ;;  %v4034_v15 = vmax.f32 %v4033_v43, 0.0 }
0x903d   :  { %v4035_v56 = vmin.f32 %v4034_v15, 1.0 }
0x903f   :  { %v4040_v16 = vmul.f32 %v4038_v29, %v4035_v56 }
0x9043   :  { %3099 = vrot.lane.b32.xlu2 %v5206_v45, %s4398_s2 }
0x904b   :  { %3295 = vrot.lane.b32.xlu2 %v5236_v27, %s4397_s19 }
0x9053   :  { %3533 = vrot.lane.b32.xlu2 %v5276_v28, %s4397_s19  ;;  %v4006_v28 = vpop.permute.xlu1 %4005 }
0x905b   :  { %3709 = vrot.lane.b32.xlu2 %v5302_v52, %s4397_s19 }
0x9063   :  { %3885 = vrot.lane.b32.xlu2 %v5326_v0, %s4397_s19 }
0x906d   :  { %v4043_v45 = vpop.permute.xlu2 %4042 }
0x906e   :  { %v4045_v58 = vmul.f32 %v4043_v45, %v4035_v56 }
0x9070   :  { %4047 = vrot.lane.b32.xlu0 %v4045_v58, %s4398_s2 }
0x9075   :  { %v2269_v27 = vpop.permute.xlu2 %2268 }
0x9076   :  { %2272 = vst.msk [vmem:[%s5556_s6] sm:$0x2] %vm2271_vm15, %v2269_v27 }
0x9077   :  { %4008 = vst.msk [vmem:[%s5556_s6] sm:$0x2] %vm3298_vm0, %v4006_v28 }
0x9078   :  { %2329 = vrot.lane.b32.xlu0 %v5008_v59, %s4398_s2 }
0x907d   :  { %v2449_v52 = vpop.permute.xlu2 %2448 }
0x907e   :  { %2451 = vst.msk [vmem:[%s5556_s6 + $0x4] sm:$0x1] %vm2211_vm10, %v2449_v52 }
0x907f   :  { %3829 = vst.msk [vmem:[%s5556_s6 + $0x4] sm:$0x1] %vm3356_vm2, %v3827_v30 }
0x9080   :  { %2507 = vrot.lane.b32.xlu0 %v5096_v54, %s4398_s2 }
0x9085   :  { %v2628_v0 = vpop.permute.xlu2 %2627 }
0x9086   :  { %2630 = vst.msk [vmem:[%s5556_s6 + $0x4] sm:$0x8] %vm2393_vm11, %v2628_v0 }
0x9087   :  { %3652 = vst.msk [vmem:[%s5556_s6 + $0x4] sm:$0x8] %vm3176_vm14, %v3650_v48 }
0x9088   :  { %2803 = vrot.lane.b32.xlu0 %v5140_v9, %s4398_s2 }
0x908d   :  { %v2744_v59 = vpop.permute.xlu2 %2743 }
0x908e   :  { %2746 = vst.msk [vmem:[%s5556_s6 + $0x8] sm:$0x2] %vm2271_vm15, %v2744_v59 }
0x9090   :  { %2979 = vrot.lane.b32.xlu0 %v5164_v42, %s4398_s2 }
0x9095   :  { %v2921_v54 = vpop.permute.xlu2 %2920 }
0x9096   :  { %2923 = vst.msk [vmem:[%s5556_s6 + $0xc] sm:$0x1] %vm2211_vm10, %v2921_v54 }
0x909d   :  { %v3100_v4 = vpop.permute.xlu2 %3099 }
0x909e   :  { %3102 = vst.msk [vmem:[%s5556_s6 + $0xc] sm:$0x8] %vm2393_vm11, %v3100_v4 }
0x90a5   :  { %v3296_v9 = vpop.permute.xlu2 %3295 }
0x90ad   :  { %v3534_v57 = vpop.permute.xlu2 %3533 }
0x90ae   :  { %3536 = vst.msk [vmem:[%s5556_s6 + $0x8] sm:$0x2] %vm3298_vm0, %v3534_v57 }
0x90b5   :  { %v3710_v42 = vpop.permute.xlu2 %3709 }
0x90b6   :  { %3712 = vst.msk [vmem:[%s5556_s6 + $0x4] sm:$0x4] %vm3237_vm13, %v3710_v42 }
0x90bd   :  { %v3886_v35 = vpop.permute.xlu2 %3885 }
0x90be   :  { %3888 = vst.msk [vmem:[%s5556_s6] sm:$0x8] %vm3176_vm14, %v3886_v35 }
0x90e2   :  { %v4048_v13 = vpop.permute.xlu0 %4047 }
0x90e3   :  { %v4050_v51 = vadd.f32 %v4048_v13, %v4040_v16 }
0x90e5   :  { %v4051_v7 = vmul.f32 0.25, %v4050_v51 }
0x90e7   :  { %v4052_v11 = vadd.f32 0.5, %v4051_v7 }
0x90e9   :  { %v4053_v32 = vmax.f32 %v4052_v11, 0.0 }
0x90ea   :  { %v2330_v19 = vpop.permute.xlu0 %2329 }
0x90eb   :  { %v4054_v14 = vmin.f32 %v4053_v32, 1.0  ;;  %2333 = vst.msk [vmem:[%s5556_s6] sm:$0x4] %vm2332_vm12, %v2330_v19 }
0x90ed   :  { %4056 = vrot.lane.b32.xlu0 %v4054_v14, %s4397_s19 }
0x90f2   :  { %v2508_v20 = vpop.permute.xlu0 %2507 }
0x90f3   :  { %2510 = vst.msk [vmem:[%s5556_s6 + $0x4] sm:$0x2] %vm2271_vm15, %v2508_v20 }
0x90f5   :  { %3173 = vrot.lane.b32.xlu0 %v5216_v36, %s4397_s19 }
0x90fa   :  { %v2804_v21 = vpop.permute.xlu0 %2803 }
0x90fb   :  { %2806 = vst.msk [vmem:[%s5556_s6 + $0x8] sm:$0x4] %vm2332_vm12, %v2804_v21 }
0x90fc   :  { %3476 = vst.msk [vmem:[%s5556_s6 + $0x8] sm:$0x4] %vm3237_vm13, %v3474_v23 }
0x90fd   :  { %3353 = vrot.lane.b32.xlu0 %v5246_v5, %s4397_s19 }
0x9102   :  { %v2980_v18 = vpop.permute.xlu0 %2979 }
0x9103   :  { %2982 = vst.msk [vmem:[%s5556_s6 + $0xc] sm:$0x2] %vm2271_vm15, %v2980_v18 }
0x9104   :  { %3299 = vst.msk [vmem:[%s5556_s6 + $0xc] sm:$0x2] %vm3298_vm0, %v3296_v9 }
0x9105   :  { %4072 = vrot.lane.b32.xlu0 %v4050_v51, %s4399_s5 }
0x910d   :  { %3590 = vrot.lane.b32.xlu0 %v5286_v12, %s4397_s19 }
0x9115   :  { %3769 = vrot.lane.b32.xlu0 %v5310_v39, %s4397_s19 }
0x911d   :  { %3945 = vrot.lane.b32.xlu0 %v5334_v50, %s4397_s19 }
0x915f   :  { %v4057_v36 = vpop.permute.xlu0 %4056 }
0x9160   :  { %v4059_v5 = vmul.f32 %v4057_v36, %v4035_v56 }
0x9162   :  { %4067 = vrot.lane.b32.xlu2 %v4059_v5, %s4398_s2  ;;  %v4060_v61 = vpack.c.bf16 %v4059_v5, %v4059_v5  ;;  %s4096_s2 = sshll.u32 %s5558_s8, 4  ;;  %s4097_s2 = int_to_ptr.hbm [resolvable:$true] %s4096_s2 }
0x9167   :  { %v3174_v10 = vpop.permute.xlu0 %3173 }
0x9168   :  { %3177 = vst.msk [vmem:[%s5556_s6 + $0xc] sm:$0x8] %vm3176_vm14, %v3174_v10 }
0x916a   :  { %4062 = vrot.lane.b32.xlu2 %v4060_v61, %s4397_s19 }
0x916f   :  { %v3354_v12 = vpop.permute.xlu0 %3353 }
0x9170   :  { %3357 = vst.msk [vmem:[%s5556_s6 + $0xc] sm:$0x1] %vm3356_vm2, %v3354_v12 }
0x9177   :  { %v4073_v39 = vpop.permute.xlu0 %4072 }
0x9178   :  { %4075 = vst.msk [vmem:[#allocation8] sm:$0x3] %vm205_vm1, %v4073_v39 }
0x9179   :  { %4099 = dma.vmem_to_hbm [thread:$0]  %s4095_s24, 32, %s4097_s2, [#allocation9]  }
0x917f   :  { %v3591_v50 = vpop.permute.xlu0 %3590 }
0x9180   :  { %3593 = vst.msk [vmem:[%s5556_s6 + $0x8] sm:$0x1] %vm3356_vm2, %v3591_v50 }
0x9187   :  { %v3770_v44 = vpop.permute.xlu0 %3769 }
0x9188   :  { %3772 = vst.msk [vmem:[%s5556_s6 + $0x4] sm:$0x2] %vm3298_vm0, %v3770_v44 }
0x918f   :  { %v3946_v3 = vpop.permute.xlu0 %3945 }
0x9190   :  { %3948 = vst.msk [vmem:[%s5556_s6] sm:$0x4] %vm3237_vm13, %v3946_v3 }
0x91bc   :  { %v4068_v6 = vpop.permute.xlu2 %4067 }
0x91bd   :  { %4070 = vst.msk [vmem:[#allocation7] sm:$0x3] %vm205_vm1, %v4068_v6 }
0x91be   :  { %4088 = dma.vmem_to_hbm [thread:$0]  %s4084_s10, 32, %s4086_s13, [#allocation6]  }
0x91c4   :  { %v4063_v24 = vpop.permute.xlu2 %4062 }
0x91c5   :  { %4065 = vst.msk [vmem:[%s5556_s6] sm:$0x1] %vm3356_vm2, %v4063_v24 }
0x91c6   :  { %4389 = dma.done.wait [#allocation6], 32  }
0x91c7   :  { %4390 = vsyncadd [#allocation6], 4294967264 }
0x91c8   :  { %4391 = dma.done.wait [#allocation9], 32  }
0x91c9   :  { %4392 = vsyncadd [#allocation9], 4294967264 }
0x91ca   :  { %4110 = vsyncpa [#allocation5], 1 }
0x91cb   :  { %4111 = vsyncpa [#allocation6], 1 }
0x91cc   :  { %4112 = vsyncpa [#allocation9], 1 }

// kernel: _lambda_.15
= control target key start
LH: loop header
LB: loop body
LE: loop exit
PB: predicated region body
PF: predicated region fallthrough
CT: control target
= control target key end

     0   :  { %v82_v1 = vmov 0   ;;  %vm46_vm0 = vcmask 1043456   ;;  %vm42_vm1 = vcmask 326656   ;;  %s121_s1 = inlined_call_operand.vmem [shape: bf16[40,128], index: 1, kind: input, shape index: {}]   ;;  %s122_s2 = inlined_call_operand.vmem [shape: f32[3,1], index: 2, kind: input, shape index: {}]   ;;  %s123_s0 = inlined_call_operand.vmem [shape: bf16[3,40], index: 0, kind: input, shape index: {}]   ;;  %s124_s3 = inlined_call_operand.vmem [shape: f32[3,128], index: 3, kind: output, shape index: {}]  }
   0x1   :  { %v20_v0 = vld [vmem:[%s121_s1 + $0x10] sm:$0xf]  ;;  %81 = vset.pattern.permute.xlu0 %v82_v1  ;;  %v21_v3 = vld [vmem:[%s122_s2] sm:$0x7]  ;;  %v79_v6 = vld [vmem:[%s121_s1 + $0x8] sm:$0xff] }
   0x2   :  { %v36_v2 = vunpack.c.l.b16 %v20_v0  ;;  %24 = vperm.xlu0 %81, %v21_v3   ;;  %v78_v7 = vld [vmem:[%s121_s1] sm:$0xff] }
   0x3   :  { %v15_v8 = vld [vmem:[%s123_s0] sm:$0x3] }
   0x4   :  { %v39_v4 = vpack.c.b16 %v36_v2, %v36_v2 }
   0x6   :  { %v48_v5 = vsel %vm46_vm0, %v39_v4, 0 }
   0x7   :  { %55 = vmatpush.bf16.msra.mxu0 %v48_v5 }
   0xb   :  { %56 = vmatpush.bf16.msra.mxu0 %v79_v6 }
   0xf   :  { %57 = vmatpush.bf16.msra.mxu0 %v78_v7 }
  0x12   :  { %77 = vmatmul.msk.bf16.vlgmr.msra.gmra.mxu0 %vm42_vm1, %v15_v8 }
  0x74   :  { %v25_v9 = vpop.permute.xlu0 %24 }
  0x8f   :  { %v59_v10 = vpop.f32.mrf.mxu0 }
  0x90   :  { %v60_v11 = vadd.f32 %v59_v10, %v25_v9 }
  0x92   :  { %v63_v12 = vmax.f32 %v60_v11, 0.0 }
  0x94   :  { %64 = vst [vmem:[%s124_s3] sm:$0x7] %v63_v12 }
  0x97   :  { %v61_v13 = vpop.f32.mrf.mxu0 }

</bundles_post_ra>
